<compile_context>
chip_gen: v6e
topology: v6e:2x2x1
jax: 0.10.0
libtpu: 0.0.40
codegen_flags: <defaults>
</compile_context>

<pallas_src>
import jax
import jax.numpy as jnp
from jax.experimental import pallas as pl
from jax.experimental.pallas import tpu as pltpu

INPUT_DIM = 768
LATENT_DIM = 10
LATENT_PAD = 128          # lane-dense latent slab (z lives in lanes 0..9)
H1 = 256
H2 = 64
H2P = 128                 # 64-wide layers padded to a full 128-lane width
BN_EPS = 1e-5

# Rows of the packed (16, 768) f32 parameter table (each row zero-padded):
#  0: b1   1: g1   2: be1          (encoder L1 bias + BN, width 256)
#  3: b2   4: g2   5: be2          (encoder L2 bias + BN, padded 64 -> 128)
#  6: b3c                          ([b3 pad->128 | b34 pad->128], width 256)
#  7: g4   8: be4                  (decoder BN1, padded 64 -> 128)
#  9: b5  10: g5  11: be5          (decoder L2 bias + BN, width 256)
# 12: b6                           (decoder output bias, width 768)
N_TBL_ROWS = 16


def _ae_kernel(x_ref, tbl_ref, w1_ref, w2_ref, w3c_ref, w5_ref, w6_ref,
               recon_ref, z_ref):
    def row(i, n):
        # static (1, n) slice of the packed parameter table (f32); n is a
        # multiple of 128 everywhere -> unmasked lane-aligned loads.
        return tbl_ref[i:i + 1, 0:n]

    def linear(h_bf16, w_ref, b):
        # bf16 operands on the MXU, f32 accumulate, f32 bias add.
        return jnp.dot(h_bf16, w_ref[...],
                       preferred_element_type=jnp.float32) + b

    def bn_relu(h, g, be):
        # BatchNorm1d, training mode: batch mean + biased batch variance.
        # Statistics and normalization in f32; narrow to bf16 once at the end.
        mu = jnp.mean(h, axis=0, keepdims=True)
        var = jnp.maximum(                                    # clamp: one-pass
            jnp.mean(h * h, axis=0, keepdims=True) - mu * mu, # var can go <0
            0.0)                                              # under f32 cancel
        hn = (h - mu) * jax.lax.rsqrt(var + BN_EPS)           # EUP rsqrt
        return jnp.maximum(hn * g + be, 0.0).astype(jnp.bfloat16)

    x = x_ref[...].astype(jnp.bfloat16)                                   # (B,768)

    # ---- encoder ----
    a = bn_relu(linear(x, w1_ref, row(0, H1)), row(1, H1), row(2, H1))    # (B,256)
    a = bn_relu(linear(a, w2_ref, row(3, H2P)), row(4, H2P), row(5, H2P)) # (B,128)

    # Fused latent + decoder-first-linear:
    #   zc = a @ [w3_pad | (w3 @ w4)_pad] + [b3_pad | (b3 @ w4 + b4)_pad]
    zc = linear(a, w3c_ref, row(6, LATENT_PAD + H2P))                     # (B,256)
    z_ref[...] = zc[:, :LATENT_PAD].astype(z_ref.dtype)   # lane-dense 128-wide store
    d = zc[:, LATENT_PAD:]                                                # (B,128)

    # ---- decoder ----
    a = bn_relu(d, row(7, H2P), row(8, H2P))                              # (B,128)
    a = bn_relu(linear(a, w5_ref, row(9, H1)), row(10, H1), row(11, H1))  # (B,256)
    recon_ref[...] = linear(a, w6_ref, row(12, INPUT_DIM)).astype(recon_ref.dtype)


def _param_bytes(packed):
    return sum(int(p.size) * jnp.dtype(p.dtype).itemsize for p in packed)


def _vmem_limit_bytes(batch, packed, x_itemsize):
    """Scoped-VMEM limit from the actual footprint (not a hardcoded ceiling)."""
    per_row = (INPUT_DIM * x_itemsize        # x
               + INPUT_DIM * 4               # recon
               + LATENT_PAD * 4              # z slab
               + 6 * 1024)                   # live f32/bf16 intermediates (generous)
    need = int((_param_bytes(packed) + batch * per_row) * 1.4) + (1 << 20)
    return max(need, 8 << 20)


def autoencoder_forward(x, packed):
    """x: (B, INPUT_DIM) float32/bfloat16. packed: pack_params output.
    Returns (x_recon, z), both float32."""
    B, F = x.shape
    assert F == INPUT_DIM
    x_itemsize = jnp.dtype(x.dtype).itemsize

    vmem_limit = _vmem_limit_bytes(B, packed, x_itemsize)
    if vmem_limit > (100 << 20):
        # Exceeds single-block VMEM even on v5e/v6e; see TODO(synk) at the top.
        raise ValueError(f"batch {B} too large for the single-block exact-BN kernel")

    flops = 2 * B * (INPUT_DIM * H1 + H1 * H2P + H2P * (LATENT_PAD + H2P)
                     + H2P * H1 + H1 * INPUT_DIM)
    bytes_accessed = (_param_bytes(packed)
                      + B * (INPUT_DIM * x_itemsize        # x in
                             + INPUT_DIM * 4               # recon out
                             + LATENT_PAD * 4))            # z out

    vmem = pl.BlockSpec(memory_space=pltpu.MemorySpace.VMEM)
    recon, z_pad = pl.pallas_call(
        _ae_kernel,
        out_shape=(
            jax.ShapeDtypeStruct((B, INPUT_DIM), jnp.float32),
            jax.ShapeDtypeStruct((B, LATENT_PAD), jnp.float32),
        ),
        in_specs=[vmem] * (1 + len(packed)),
        out_specs=(vmem, vmem),
        compiler_params=pltpu.CompilerParams(vmem_limit_bytes=vmem_limit),
        cost_estimate=pl.CostEstimate(
            flops=flops,
            transcendentals=2 * (H1 + H2P),   # rsqrt per BN feature (4 BN layers)
            bytes_accessed=bytes_accessed),
    )(x, *packed)
    return recon, z_pad[:, :LATENT_DIM]


def init_params(key):
    """Raw PyTorch-style parameters (weights stored as (in, out), biases 1-D)."""
    dims = [
        (INPUT_DIM, H1), (H1, H2), (H2, LATENT_DIM),   # encoder linears
        (LATENT_DIM, H2), (H2, H1), (H1, INPUT_DIM),   # decoder linears
    ]
    keys = jax.random.split(key, 2 * len(dims))
    linears = []
    for i, (fin, fout) in enumerate(dims):
        bound = 1.0 / (fin ** 0.5)
        w = jax.random.uniform(keys[2 * i], (fin, fout), jnp.float32, -bound, bound)
        b = jax.random.uniform(keys[2 * i + 1], (fout,), jnp.float32, -bound, bound)
        linears.append((w, b))
    bns = [(jnp.ones((d,), jnp.float32), jnp.zeros((d,), jnp.float32))
           for d in (H1, H2, H2, H1)]
    (w1, b1), (w2, b2), (w3, b3), (w4, b4), (w5, b5), (w6, b6) = linears
    (g1, be1), (g2, be2), (g4, be4), (g5, be5) = bns
    return (w1, b1, g1, be1, w2, b2, g2, be2, w3, b3,
            w4, b4, g4, be4, w5, b5, g5, be5, w6, b6)


def pack_params(raw):
    """Pack raw params into kernel inputs: one f32 param table + 5 bf16 weights.
    All 64-wide dims are zero-padded to 128 lanes (pad lanes provably stay 0)."""
    (w1, b1, g1, be1, w2, b2, g2, be2, w3, b3,
     w4, b4, g4, be4, w5, b5, g5, be5, w6, b6) = raw

    def pad_cols(w, n):
        return jnp.zeros((w.shape[0], n), jnp.float32).at[:, :w.shape[1]].set(w)

    def pad_rows(w, n):
        return jnp.zeros((n, w.shape[1]), jnp.float32).at[:w.shape[0], :].set(w)

    def pad_vec(v, n):
        return jnp.zeros((n,), jnp.float32).at[:v.shape[0]].set(v)

    # Fuse encoder-output -> decoder-first-linear (exactly equal, no nonlinearity):
    #   z @ w4 + b4 == h2 @ (w3 @ w4) + (b3 @ w4 + b4)
    w34 = w3 @ w4                                              # (64, 64)
    b34 = b3 @ w4 + b4                                         # (64,)

    w2p = pad_cols(w2, H2P)                                    # (256, 128)
    w3c = jnp.concatenate(
        [pad_rows(pad_cols(w3, LATENT_PAD), H2P),              # z slab   (128,128)
         pad_rows(pad_cols(w34, H2P), H2P)], axis=1)           # dec slab (128,128)
    w5p = pad_rows(w5, H2P)                                    # (128, 256)
    b3c = jnp.concatenate([pad_vec(b3, LATENT_PAD), pad_vec(b34, H2P)])   # (256,)

    rows = [b1, g1, be1,
            pad_vec(b2, H2P), pad_vec(g2, H2P), pad_vec(be2, H2P),
            b3c,
            pad_vec(g4, H2P), pad_vec(be4, H2P),
            b5, g5, be5, b6]
    tbl = jnp.zeros((N_TBL_ROWS, INPUT_DIM), jnp.float32)
    for i, r in enumerate(rows):
        tbl = tbl.at[i, :r.shape[0]].set(r)

    bf16 = lambda w: w.astype(jnp.bfloat16)
    return (tbl, bf16(w1), bf16(w2p), bf16(w3c), bf16(w5p), bf16(w6))


def reference_mirror(x, packed):
    """Pure-JAX reference mirroring the kernel math exactly (bf16 matmuls, padding,
    fused decoder, one-pass clamped variance)."""
    tbl, w1, w2p, w3c, w5p, w6 = packed

    def row(i, n):
        return tbl[i:i + 1, :n]

    def lin(h, w, b):
        return jnp.dot(h, w, preferred_element_type=jnp.float32) + b

    def bn_relu(h, g, be):
        mu = jnp.mean(h, axis=0, keepdims=True)
        var = jnp.maximum(jnp.mean(h * h, axis=0, keepdims=True) - mu * mu, 0.0)
        hn = (h - mu) * jax.lax.rsqrt(var + BN_EPS)
        return jnp.maximum(hn * g + be, 0.0).astype(jnp.bfloat16)

    a = bn_relu(lin(x.astype(jnp.bfloat16), w1, row(0, H1)), row(1, H1), row(2, H1))
    a = bn_relu(lin(a, w2p, row(3, H2P)), row(4, H2P), row(5, H2P))
    zc = lin(a, w3c, row(6, LATENT_PAD + H2P))
    z = zc[:, :LATENT_DIM]
    a = bn_relu(zc[:, LATENT_PAD:], row(7, H2P), row(8, H2P))
    a = bn_relu(lin(a, w5p, row(9, H1)), row(10, H1), row(11, H1))
    return lin(a, w6, row(12, INPUT_DIM)), z


def reference_f32(x, raw):
    """Plain f32 PyTorch-style forward (un-fused, un-padded) for a semantic check."""
    (w1, b1, g1, be1, w2, b2, g2, be2, w3, b3,
     w4, b4, g4, be4, w5, b5, g5, be5, w6, b6) = raw

    def bn_relu(h, g, be):
        mu = jnp.mean(h, axis=0, keepdims=True)
        var = jnp.mean((h - mu) ** 2, axis=0, keepdims=True)
        return jnp.maximum((h - mu) / jnp.sqrt(var + BN_EPS) * g + be, 0.0)

    h = bn_relu(x @ w1 + b1, g1, be1)
    h = bn_relu(h @ w2 + b2, g2, be2)
    z = h @ w3 + b3
    h = bn_relu(z @ w4 + b4, g4, be4)
    h = bn_relu(h @ w5 + b5, g5, be5)
    return h @ w6 + b6, z


if __name__ == "__main__":
    key = jax.random.PRNGKey(0)
    pkey, xkey = jax.random.split(key)

    # Batch is a multiple of 256 (v6e/v7x MXU rows; 2x the v5e MXU) yet still small
    # (x is 768 KB f32); training-mode BN requires B >= 2 anyway.
    B = 256
    x = jax.random.normal(xkey, (B, INPUT_DIM), jnp.float32)
    raw = init_params(pkey)
    packed = pack_params(raw)

    x_recon, z = autoencoder_forward(x, packed)
    jax.block_until_ready((x_recon, z))

    assert x_recon.shape == (B, INPUT_DIM) and x_recon.dtype == jnp.float32
    assert z.shape == (B, LATENT_DIM) and z.dtype == jnp.float32

    # Tight check against a reference that mirrors the kernel math exactly.
    recon_m, z_m = reference_mirror(x, packed)
    assert jnp.allclose(x_recon, recon_m, atol=1e-2, rtol=1e-2), \
        float(jnp.max(jnp.abs(x_recon - recon_m)))
    assert jnp.allclose(z, z_m, atol=1e-2, rtol=1e-2), \
        float(jnp.max(jnp.abs(z - z_m)))

    # Loose check against the plain f32 PyTorch-style forward (bf16 cast tolerance).
    recon_f, z_f = reference_f32(x, raw)
    assert jnp.allclose(x_recon, recon_f, atol=2e-1, rtol=2e-1)
    assert jnp.allclose(z, z_f, atol=2e-1, rtol=2e-1)

    print("KERNEL_OK")
</pallas_src>

<mosaic_0001>
module attributes {stable_mosaic.version = 11 : i64} {
  func.func @_ae_kernel(%arg0: memref<256x768xf32, #tpu.memory_space<vmem>>, %arg1: memref<16x768xf32, #tpu.memory_space<vmem>>, %arg2: memref<768x256xbf16, #tpu.memory_space<vmem>>, %arg3: memref<256x128xbf16, #tpu.memory_space<vmem>>, %arg4: memref<128x256xbf16, #tpu.memory_space<vmem>>, %arg5: memref<128x256xbf16, #tpu.memory_space<vmem>>, %arg6: memref<256x768xbf16, #tpu.memory_space<vmem>>, %arg7: memref<256x768xf32, #tpu.memory_space<vmem>>, %arg8: memref<256x128xf32, #tpu.memory_space<vmem>>) attributes {dimension_semantics = [], scalar_prefetch = 0 : i64, scratch_operands = 0 : i64, tpu.core_type = #tpu.core_type<tc>} {
    %c0 = arith.constant 0 : index
    %c0_0 = arith.constant 0 : index
    %0 = vector.load %arg0[%c0, %c0_0] : memref<256x768xf32, #tpu.memory_space<vmem>>, vector<256x768xf32>
    %1 = arith.truncf %0 : vector<256x768xf32> to vector<256x768xbf16>
    %c0_1 = arith.constant 0 : index
    %c0_2 = arith.constant 0 : index
    %2 = vector.load %arg1[%c0_1, %c0_2] : memref<16x768xf32, #tpu.memory_space<vmem>>, vector<1x256xf32>
    %c0_3 = arith.constant 0 : index
    %c0_4 = arith.constant 0 : index
    %3 = vector.load %arg2[%c0_3, %c0_4] : memref<768x256xbf16, #tpu.memory_space<vmem>>, vector<768x256xbf16>
    %cst = arith.constant dense<0.000000e+00> : vector<256x256xf32>
    %4 = tpu.matmul %1, %3, %cst {dimension_numbers = #tpu.dot_dimension_numbers<[1], [0], [0], [1], [0, 0, 1, 1], [], []>} : vector<256x768xbf16>, vector<768x256xbf16>, vector<256x256xf32> -> vector<256x256xf32>
    %5 = vector.broadcast %2 : vector<1x256xf32> to vector<256x256xf32>
    %6 = arith.addf %4, %5 : vector<256x256xf32>
    %c1 = arith.constant 1 : index
    %c0_5 = arith.constant 0 : index
    %7 = vector.load %arg1[%c1, %c0_5] : memref<16x768xf32, #tpu.memory_space<vmem>>, vector<1x256xf32>
    %c2 = arith.constant 2 : index
    %c0_6 = arith.constant 0 : index
    %8 = vector.load %arg1[%c2, %c0_6] : memref<16x768xf32, #tpu.memory_space<vmem>>, vector<1x256xf32>
    %cst_7 = arith.constant dense<0.000000e+00> : vector<256xf32>
    %9 = vector.multi_reduction <add>, %6, %cst_7 [0] : vector<256x256xf32> to vector<256xf32>
    %10 = vector.shape_cast %9 : vector<256xf32> to vector<1x256xf32>
    %cst_8 = arith.constant 2.560000e+02 : f32
    %11 = vector.broadcast %cst_8 : f32 to vector<1x256xf32>
    %12 = arith.divf %10, %11 : vector<1x256xf32>
    %13 = arith.mulf %6, %6 : vector<256x256xf32>
    %cst_9 = arith.constant dense<0.000000e+00> : vector<256xf32>
    %14 = vector.multi_reduction <add>, %13, %cst_9 [0] : vector<256x256xf32> to vector<256xf32>
    %15 = vector.shape_cast %14 : vector<256xf32> to vector<1x256xf32>
    %cst_10 = arith.constant 2.560000e+02 : f32
    %16 = vector.broadcast %cst_10 : f32 to vector<1x256xf32>
    %17 = arith.divf %15, %16 : vector<1x256xf32>
    %18 = arith.mulf %12, %12 : vector<1x256xf32>
    %19 = arith.subf %17, %18 : vector<1x256xf32>
    %cst_11 = arith.constant 0.000000e+00 : f32
    %20 = vector.broadcast %cst_11 : f32 to vector<1x256xf32>
    %21 = arith.maximumf %19, %20 : vector<1x256xf32>
    %22 = vector.broadcast %12 : vector<1x256xf32> to vector<256x256xf32>
    %23 = arith.subf %6, %22 : vector<256x256xf32>
    %cst_12 = arith.constant 9.99999974E-6 : f32
    %24 = vector.broadcast %cst_12 : f32 to vector<1x256xf32>
    %25 = arith.addf %21, %24 : vector<1x256xf32>
    %26 = math.rsqrt %25 : vector<1x256xf32>
    %27 = vector.broadcast %26 : vector<1x256xf32> to vector<256x256xf32>
    %28 = arith.mulf %23, %27 : vector<256x256xf32>
    %29 = vector.broadcast %7 : vector<1x256xf32> to vector<256x256xf32>
    %30 = arith.mulf %28, %29 : vector<256x256xf32>
    %31 = vector.broadcast %8 : vector<1x256xf32> to vector<256x256xf32>
    %32 = arith.addf %30, %31 : vector<256x256xf32>
    %cst_13 = arith.constant 0.000000e+00 : f32
    %33 = vector.broadcast %cst_13 : f32 to vector<256x256xf32>
    %34 = arith.maximumf %32, %33 : vector<256x256xf32>
    %35 = arith.truncf %34 : vector<256x256xf32> to vector<256x256xbf16>
    %c3 = arith.constant 3 : index
    %c0_14 = arith.constant 0 : index
    %36 = vector.load %arg1[%c3, %c0_14] : memref<16x768xf32, #tpu.memory_space<vmem>>, vector<1x128xf32>
    %c0_15 = arith.constant 0 : index
    %c0_16 = arith.constant 0 : index
    %37 = vector.load %arg3[%c0_15, %c0_16] : memref<256x128xbf16, #tpu.memory_space<vmem>>, vector<256x128xbf16>
    %cst_17 = arith.constant dense<0.000000e+00> : vector<256x128xf32>
    %38 = tpu.matmul %35, %37, %cst_17 {dimension_numbers = #tpu.dot_dimension_numbers<[1], [0], [0], [1], [0, 0, 1, 1], [], []>} : vector<256x256xbf16>, vector<256x128xbf16>, vector<256x128xf32> -> vector<256x128xf32>
    %39 = vector.broadcast %36 : vector<1x128xf32> to vector<256x128xf32>
    %40 = arith.addf %38, %39 : vector<256x128xf32>
    %c4 = arith.constant 4 : index
    %c0_18 = arith.constant 0 : index
    %41 = vector.load %arg1[%c4, %c0_18] : memref<16x768xf32, #tpu.memory_space<vmem>>, vector<1x128xf32>
    %c5 = arith.constant 5 : index
    %c0_19 = arith.constant 0 : index
    %42 = vector.load %arg1[%c5, %c0_19] : memref<16x768xf32, #tpu.memory_space<vmem>>, vector<1x128xf32>
    %cst_20 = arith.constant dense<0.000000e+00> : vector<128xf32>
    %43 = vector.multi_reduction <add>, %40, %cst_20 [0] : vector<256x128xf32> to vector<128xf32>
    %44 = vector.shape_cast %43 : vector<128xf32> to vector<1x128xf32>
    %cst_21 = arith.constant 2.560000e+02 : f32
    %45 = vector.broadcast %cst_21 : f32 to vector<1x128xf32>
    %46 = arith.divf %44, %45 : vector<1x128xf32>
    %47 = arith.mulf %40, %40 : vector<256x128xf32>
    %cst_22 = arith.constant dense<0.000000e+00> : vector<128xf32>
    %48 = vector.multi_reduction <add>, %47, %cst_22 [0] : vector<256x128xf32> to vector<128xf32>
    %49 = vector.shape_cast %48 : vector<128xf32> to vector<1x128xf32>
    %cst_23 = arith.constant 2.560000e+02 : f32
    %50 = vector.broadcast %cst_23 : f32 to vector<1x128xf32>
    %51 = arith.divf %49, %50 : vector<1x128xf32>
    %52 = arith.mulf %46, %46 : vector<1x128xf32>
    %53 = arith.subf %51, %52 : vector<1x128xf32>
    %cst_24 = arith.constant 0.000000e+00 : f32
    %54 = vector.broadcast %cst_24 : f32 to vector<1x128xf32>
    %55 = arith.maximumf %53, %54 : vector<1x128xf32>
    %56 = vector.broadcast %46 : vector<1x128xf32> to vector<256x128xf32>
    %57 = arith.subf %40, %56 : vector<256x128xf32>
    %cst_25 = arith.constant 9.99999974E-6 : f32
    %58 = vector.broadcast %cst_25 : f32 to vector<1x128xf32>
    %59 = arith.addf %55, %58 : vector<1x128xf32>
    %60 = math.rsqrt %59 : vector<1x128xf32>
    %61 = vector.broadcast %60 : vector<1x128xf32> to vector<256x128xf32>
    %62 = arith.mulf %57, %61 : vector<256x128xf32>
    %63 = vector.broadcast %41 : vector<1x128xf32> to vector<256x128xf32>
    %64 = arith.mulf %62, %63 : vector<256x128xf32>
    %65 = vector.broadcast %42 : vector<1x128xf32> to vector<256x128xf32>
    %66 = arith.addf %64, %65 : vector<256x128xf32>
    %cst_26 = arith.constant 0.000000e+00 : f32
    %67 = vector.broadcast %cst_26 : f32 to vector<256x128xf32>
    %68 = arith.maximumf %66, %67 : vector<256x128xf32>
    %69 = arith.truncf %68 : vector<256x128xf32> to vector<256x128xbf16>
    %c6 = arith.constant 6 : index
    %c0_27 = arith.constant 0 : index
    %70 = vector.load %arg1[%c6, %c0_27] : memref<16x768xf32, #tpu.memory_space<vmem>>, vector<1x256xf32>
    %c0_28 = arith.constant 0 : index
    %c0_29 = arith.constant 0 : index
    %71 = vector.load %arg4[%c0_28, %c0_29] : memref<128x256xbf16, #tpu.memory_space<vmem>>, vector<128x256xbf16>
    %cst_30 = arith.constant dense<0.000000e+00> : vector<256x256xf32>
    %72 = tpu.matmul %69, %71, %cst_30 {dimension_numbers = #tpu.dot_dimension_numbers<[1], [0], [0], [1], [0, 0, 1, 1], [], []>} : vector<256x128xbf16>, vector<128x256xbf16>, vector<256x256xf32> -> vector<256x256xf32>
    %73 = vector.broadcast %70 : vector<1x256xf32> to vector<256x256xf32>
    %74 = arith.addf %72, %73 : vector<256x256xf32>
    %75 = vector.extract_strided_slice %74 {offsets = [0, 0], sizes = [256, 128], strides = [1, 1]} : vector<256x256xf32> to vector<256x128xf32>
    %c0_31 = arith.constant 0 : index
    %c0_32 = arith.constant 0 : index
    %76 = vector.load %arg8[%c0_31, %c0_32] : memref<256x128xf32, #tpu.memory_space<vmem>>, vector<256x128xf32>
    tpu.vector_store %arg8[%c0_31, %c0_32], %75 {strides = array<i32>} : memref<256x128xf32, #tpu.memory_space<vmem>>, vector<256x128xf32>,
    %77 = vector.extract_strided_slice %74 {offsets = [0, 128], sizes = [256, 128], strides = [1, 1]} : vector<256x256xf32> to vector<256x128xf32>
    %c7 = arith.constant 7 : index
    %c0_33 = arith.constant 0 : index
    %78 = vector.load %arg1[%c7, %c0_33] : memref<16x768xf32, #tpu.memory_space<vmem>>, vector<1x128xf32>
    %c8 = arith.constant 8 : index
    %c0_34 = arith.constant 0 : index
    %79 = vector.load %arg1[%c8, %c0_34] : memref<16x768xf32, #tpu.memory_space<vmem>>, vector<1x128xf32>
    %cst_35 = arith.constant dense<0.000000e+00> : vector<128xf32>
    %80 = vector.multi_reduction <add>, %77, %cst_35 [0] : vector<256x128xf32> to vector<128xf32>
    %81 = vector.shape_cast %80 : vector<128xf32> to vector<1x128xf32>
    %cst_36 = arith.constant 2.560000e+02 : f32
    %82 = vector.broadcast %cst_36 : f32 to vector<1x128xf32>
    %83 = arith.divf %81, %82 : vector<1x128xf32>
    %84 = arith.mulf %77, %77 : vector<256x128xf32>
    %cst_37 = arith.constant dense<0.000000e+00> : vector<128xf32>
    %85 = vector.multi_reduction <add>, %84, %cst_37 [0] : vector<256x128xf32> to vector<128xf32>
    %86 = vector.shape_cast %85 : vector<128xf32> to vector<1x128xf32>
    %cst_38 = arith.constant 2.560000e+02 : f32
    %87 = vector.broadcast %cst_38 : f32 to vector<1x128xf32>
    %88 = arith.divf %86, %87 : vector<1x128xf32>
    %89 = arith.mulf %83, %83 : vector<1x128xf32>
    %90 = arith.subf %88, %89 : vector<1x128xf32>
    %cst_39 = arith.constant 0.000000e+00 : f32
    %91 = vector.broadcast %cst_39 : f32 to vector<1x128xf32>
    %92 = arith.maximumf %90, %91 : vector<1x128xf32>
    %93 = vector.broadcast %83 : vector<1x128xf32> to vector<256x128xf32>
    %94 = arith.subf %77, %93 : vector<256x128xf32>
    %cst_40 = arith.constant 9.99999974E-6 : f32
    %95 = vector.broadcast %cst_40 : f32 to vector<1x128xf32>
    %96 = arith.addf %92, %95 : vector<1x128xf32>
    %97 = math.rsqrt %96 : vector<1x128xf32>
    %98 = vector.broadcast %97 : vector<1x128xf32> to vector<256x128xf32>
    %99 = arith.mulf %94, %98 : vector<256x128xf32>
    %100 = vector.broadcast %78 : vector<1x128xf32> to vector<256x128xf32>
    %101 = arith.mulf %99, %100 : vector<256x128xf32>
    %102 = vector.broadcast %79 : vector<1x128xf32> to vector<256x128xf32>
    %103 = arith.addf %101, %102 : vector<256x128xf32>
    %cst_41 = arith.constant 0.000000e+00 : f32
    %104 = vector.broadcast %cst_41 : f32 to vector<256x128xf32>
    %105 = arith.maximumf %103, %104 : vector<256x128xf32>
    %106 = arith.truncf %105 : vector<256x128xf32> to vector<256x128xbf16>
    %c9 = arith.constant 9 : index
    %c0_42 = arith.constant 0 : index
    %107 = vector.load %arg1[%c9, %c0_42] : memref<16x768xf32, #tpu.memory_space<vmem>>, vector<1x256xf32>
    %c0_43 = arith.constant 0 : index
    %c0_44 = arith.constant 0 : index
    %108 = vector.load %arg5[%c0_43, %c0_44] : memref<128x256xbf16, #tpu.memory_space<vmem>>, vector<128x256xbf16>
    %cst_45 = arith.constant dense<0.000000e+00> : vector<256x256xf32>
    %109 = tpu.matmul %106, %108, %cst_45 {dimension_numbers = #tpu.dot_dimension_numbers<[1], [0], [0], [1], [0, 0, 1, 1], [], []>} : vector<256x128xbf16>, vector<128x256xbf16>, vector<256x256xf32> -> vector<256x256xf32>
    %110 = vector.broadcast %107 : vector<1x256xf32> to vector<256x256xf32>
    %111 = arith.addf %109, %110 : vector<256x256xf32>
    %c10 = arith.constant 10 : index
    %c0_46 = arith.constant 0 : index
    %112 = vector.load %arg1[%c10, %c0_46] : memref<16x768xf32, #tpu.memory_space<vmem>>, vector<1x256xf32>
    %c11 = arith.constant 11 : index
    %c0_47 = arith.constant 0 : index
    %113 = vector.load %arg1[%c11, %c0_47] : memref<16x768xf32, #tpu.memory_space<vmem>>, vector<1x256xf32>
    %cst_48 = arith.constant dense<0.000000e+00> : vector<256xf32>
    %114 = vector.multi_reduction <add>, %111, %cst_48 [0] : vector<256x256xf32> to vector<256xf32>
    %115 = vector.shape_cast %114 : vector<256xf32> to vector<1x256xf32>
    %cst_49 = arith.constant 2.560000e+02 : f32
    %116 = vector.broadcast %cst_49 : f32 to vector<1x256xf32>
    %117 = arith.divf %115, %116 : vector<1x256xf32>
    %118 = arith.mulf %111, %111 : vector<256x256xf32>
    %cst_50 = arith.constant dense<0.000000e+00> : vector<256xf32>
    %119 = vector.multi_reduction <add>, %118, %cst_50 [0] : vector<256x256xf32> to vector<256xf32>
    %120 = vector.shape_cast %119 : vector<256xf32> to vector<1x256xf32>
    %cst_51 = arith.constant 2.560000e+02 : f32
    %121 = vector.broadcast %cst_51 : f32 to vector<1x256xf32>
    %122 = arith.divf %120, %121 : vector<1x256xf32>
    %123 = arith.mulf %117, %117 : vector<1x256xf32>
    %124 = arith.subf %122, %123 : vector<1x256xf32>
    %cst_52 = arith.constant 0.000000e+00 : f32
    %125 = vector.broadcast %cst_52 : f32 to vector<1x256xf32>
    %126 = arith.maximumf %124, %125 : vector<1x256xf32>
    %127 = vector.broadcast %117 : vector<1x256xf32> to vector<256x256xf32>
    %128 = arith.subf %111, %127 : vector<256x256xf32>
    %cst_53 = arith.constant 9.99999974E-6 : f32
    %129 = vector.broadcast %cst_53 : f32 to vector<1x256xf32>
    %130 = arith.addf %126, %129 : vector<1x256xf32>
    %131 = math.rsqrt %130 : vector<1x256xf32>
    %132 = vector.broadcast %131 : vector<1x256xf32> to vector<256x256xf32>
    %133 = arith.mulf %128, %132 : vector<256x256xf32>
    %134 = vector.broadcast %112 : vector<1x256xf32> to vector<256x256xf32>
    %135 = arith.mulf %133, %134 : vector<256x256xf32>
    %136 = vector.broadcast %113 : vector<1x256xf32> to vector<256x256xf32>
    %137 = arith.addf %135, %136 : vector<256x256xf32>
    %cst_54 = arith.constant 0.000000e+00 : f32
    %138 = vector.broadcast %cst_54 : f32 to vector<256x256xf32>
    %139 = arith.maximumf %137, %138 : vector<256x256xf32>
    %140 = arith.truncf %139 : vector<256x256xf32> to vector<256x256xbf16>
    %c12 = arith.constant 12 : index
    %c0_55 = arith.constant 0 : index
    %141 = vector.load %arg1[%c12, %c0_55] : memref<16x768xf32, #tpu.memory_space<vmem>>, vector<1x768xf32>
    %c0_56 = arith.constant 0 : index
    %c0_57 = arith.constant 0 : index
    %142 = vector.load %arg6[%c0_56, %c0_57] : memref<256x768xbf16, #tpu.memory_space<vmem>>, vector<256x768xbf16>
    %cst_58 = arith.constant dense<0.000000e+00> : vector<256x768xf32>
    %143 = tpu.matmul %140, %142, %cst_58 {dimension_numbers = #tpu.dot_dimension_numbers<[1], [0], [0], [1], [0, 0, 1, 1], [], []>} : vector<256x256xbf16>, vector<256x768xbf16>, vector<256x768xf32> -> vector<256x768xf32>
    %144 = vector.broadcast %141 : vector<1x768xf32> to vector<256x768xf32>
    %145 = arith.addf %143, %144 : vector<256x768xf32>
    %c0_59 = arith.constant 0 : index
    %c0_60 = arith.constant 0 : index
    %146 = vector.load %arg7[%c0_59, %c0_60] : memref<256x768xf32, #tpu.memory_space<vmem>>, vector<256x768xf32>
    tpu.vector_store %arg7[%c0_59, %c0_60], %145 {strides = array<i32>} : memref<256x768xf32, #tpu.memory_space<vmem>>, vector<256x768xf32>,
    return
  }
}

</mosaic_0001>

<bundles_post_ra>
// kernel: tpu_custom_call.1
= control target key start
LH: loop header
LB: loop body
LE: loop exit
PB: predicated region body
PF: predicated region fallthrough
CT: control target
= control target key end

     0   :  { %14 = vsyncpa [#allocation3], 0  ;;  %s10849_s0 = inlined_call_operand.hbm [shape: f32[256,768], index: 0, kind: input, shape index: {}]   ;;  %s10850_s1 = inlined_call_operand.hbm [shape: f32[16,768], index: 1, kind: input, shape index: {}]   ;;  %s10851_s2 = inlined_call_operand.hbm [shape: bf16[768,256], index: 2, kind: input, shape index: {}]   ;;  %s10852_s3 = inlined_call_operand.hbm [shape: bf16[256,128], index: 3, kind: input, shape index: {}]   ;;  %s10853_s4 = inlined_call_operand.hbm [shape: bf16[128,256], index: 4, kind: input, shape index: {}]   ;;  %s10854_s5 = inlined_call_operand.hbm [shape: bf16[128,256], index: 5, kind: input, shape index: {}]   ;;  %s10855_s6 = inlined_call_operand.hbm [shape: bf16[256,768], index: 6, kind: input, shape index: {}]   ;;  %s10856_s7 = inlined_call_operand.hbm [shape: f32[256,768], index: 7, kind: output, shape index: {0}]   ;;  %s10857_s8 = inlined_call_operand.hbm [shape: f32[256,128], index: 8, kind: output, shape index: {1}]  }
   0x1   :  { %15 = vsyncpa [#allocation6], 0 }
   0x2   :  { %16 = vsyncpa [#allocation9], 0 }
   0x3   :  { %17 = vsyncpa [#allocation12], 0 }
   0x4   :  { %18 = vsyncpa [#allocation4], 0 }
   0x5   :  { %19 = vsyncpa [#allocation16], 0  ;;  %s6674_s27 = smov [#allocation5]   ;;  %s6675_s29 = smov [#allocation8]  }
   0x6   :  { %s37_s28 = sshll.u32 %s6674_s27, 4  ;;  %s61_s30 = sshll.u32 %s6675_s29, 4  ;;  %s38_s28 = int_to_ptr.vmem [resolvable:$true] %s37_s28  ;;  %s62_s30 = int_to_ptr.vmem [resolvable:$true] %s61_s30 }
   0x7   :  { %s6490_s9 = scalar_lea.vmem %s38_s28, 1536  ;;  %p6495_p1 = scmp.lt.s32.totalorder %s38_s28, %s38_s28 }
   0x8   :  { %p6491_p0 = scmp.ne.s32.totalorder %s38_s28, %s6490_s9  ;;  %p6496_p2 = scmp.lt.s32.totalorder %s6490_s9, %s6490_s9 }
   0xa   :  { %p6497_p3 = por %p6496_p2, %p6495_p1 }
   0xc   :  { %p6498_p4 = pnand %p6497_p3, %p6491_p0 }
   0xe   :  { %6501 = shalt.err (!%p6498_p4)
}
   0xf   :  { %s6676_s10 = smov 768   ;;  %s6677_s11 = smov 48  }
  0x10   :  { %43 = dma.hbm_to_vmem [thread:$0]  %s10850_s1, 1536, %s38_s28, [#allocation6], %s6676_s10, %s6676_s10, %s6677_s11  }
  0x11   :  { %s6510_s14 = scalar_lea.vmem %s62_s30, 2048  ;;  %p6515_p6 = scmp.lt.s32.totalorder %s62_s30, %s62_s30 }
  0x12   :  { %p6511_p5 = scmp.ne.s32.totalorder %s62_s30, %s6510_s14  ;;  %p6516_p7 = scmp.lt.s32.totalorder %s6510_s14, %s6510_s14 }
  0x14   :  { %p6517_p8 = por %p6516_p7, %p6515_p6 }
  0x16   :  { %p6518_p9 = pnand %p6517_p8, %p6511_p5 }
  0x18   :  { %6521 = shalt.err (!%p6518_p9)
}
  0x19   :  { %s6678_s15 = smov 64   ;;  %s6679_s16 = smov 4  }
  0x1a   :  { %67 = dma.hbm_to_vmem [thread:$0]  %s10852_s3, 2048, %s62_s30, [#allocation9], %s6678_s15, %s6678_s15, %s6679_s16  }
  0x1b   :  { %s6680_s19 = smov [#allocation11]   ;;  %s6681_s21 = smov [#allocation2]  }
  0x1c   :  { %s85_s20 = sshll.u32 %s6680_s19, 4  ;;  %s25_s22 = sshll.u32 %s6681_s21, 4  ;;  %s86_s20 = int_to_ptr.vmem [resolvable:$true] %s85_s20  ;;  %s26_s22 = int_to_ptr.vmem [resolvable:$true] %s25_s22 }
  0x1d   :  { %s6530_s1 = scalar_lea.vmem %s86_s20, 2048  ;;  %p6535_p11 = scmp.lt.s32.totalorder %s86_s20, %s86_s20 }
  0x1e   :  { %p6531_p10 = scmp.ne.s32.totalorder %s86_s20, %s6530_s1  ;;  %p6536_p12 = scmp.lt.s32.totalorder %s6530_s1, %s6530_s1 }
  0x20   :  { %p6537_p13 = por %p6536_p12, %p6535_p11 }
  0x22   :  { %p6538_p0 = pnand %p6537_p13, %p6531_p10 }
  0x24   :  { %6541 = shalt.err (!%p6538_p0)
}
  0x25   :  { %s6682_s23 = smov 128   ;;  %s6683_s24 = smov 8  }
  0x26   :  { %91 = dma.hbm_to_vmem [thread:$0]  %s10854_s5, 2048, %s86_s20, [#allocation12], %s6682_s23, %s6682_s23, %s6683_s24  }
  0x27   :  { %s6550_s26 = scalar_lea.vmem %s26_s22, 24576  ;;  %p6555_p2 = scmp.lt.s32.totalorder %s26_s22, %s26_s22 }
  0x28   :  { %p6551_p1 = scmp.ne.s32.totalorder %s26_s22, %s6550_s26  ;;  %p6556_p3 = scmp.lt.s32.totalorder %s6550_s26, %s6550_s26 }
  0x2a   :  { %p6557_p4 = por %p6556_p3, %p6555_p2 }
  0x2c   :  { %p6558_p5 = pnand %p6557_p4, %p6551_p1 }
  0x2e   :  { %6561 = shalt.err (!%p6558_p5)
}
  0x2f   :  { %31 = dma.hbm_to_vmem [thread:$0]  %s10849_s0, 24576, %s26_s22, [#allocation3], %s6676_s10, %s6676_s10, %s6677_s11  }
  0x30   :  { %s6684_s29 = smov [#allocation7]   ;;  %s6685_s9 = smov [#allocation10]  }
  0x31   :  { %s49_s30 = sshll.u32 %s6684_s29, 4  ;;  %s73_s12 = sshll.u32 %s6685_s9, 4  ;;  %s50_s30 = int_to_ptr.vmem [resolvable:$true] %s49_s30  ;;  %s74_s12 = int_to_ptr.vmem [resolvable:$true] %s73_s12 }
  0x32   :  { %s6570_s5 = scalar_lea.vmem %s50_s30, 12288  ;;  %p6575_p7 = scmp.lt.s32.totalorder %s50_s30, %s50_s30 }
  0x33   :  { %p6571_p6 = scmp.ne.s32.totalorder %s50_s30, %s6570_s5  ;;  %p6576_p8 = scmp.lt.s32.totalorder %s6570_s5, %s6570_s5 }
  0x35   :  { %p6577_p9 = por %p6576_p8, %p6575_p7 }
  0x37   :  { %p6578_p10 = pnand %p6577_p9, %p6571_p6 }
  0x39   :  { %6581 = shalt.err (!%p6578_p10)
}
  0x3a   :  { %55 = dma.hbm_to_vmem [thread:$0]  %s10851_s2, 12288, %s50_s30, [#allocation6], %s6682_s23, %s6682_s23, %s6683_s24  }
  0x3b   :  { %s6590_s0 = scalar_lea.vmem %s74_s12, 2048  ;;  %p6595_p12 = scmp.lt.s32.totalorder %s74_s12, %s74_s12 }
  0x3c   :  { %p6591_p11 = scmp.ne.s32.totalorder %s74_s12, %s6590_s0  ;;  %p6596_p13 = scmp.lt.s32.totalorder %s6590_s0, %s6590_s0 }
  0x3e   :  { %p6597_p0 = por %p6596_p13, %p6595_p12 }
  0x40   :  { %p6598_p1 = pnand %p6597_p0, %p6591_p11 }
  0x42   :  { %6601 = shalt.err (!%p6598_p1)
}
  0x43   :  { %79 = dma.hbm_to_vmem [thread:$0]  %s10853_s4, 2048, %s74_s12, [#allocation9], %s6682_s23, %s6682_s23, %s6683_s24  }
  0x44   :  { %s6686_s17 = smov [#allocation13]  }
  0x45   :  { %s97_s18 = sshll.u32 %s6686_s17, 4  ;;  %s98_s18 = int_to_ptr.vmem [resolvable:$true] %s97_s18 }
  0x46   :  { %s6610_s19 = scalar_lea.vmem %s98_s18, 12288  ;;  %p6615_p3 = scmp.lt.s32.totalorder %s98_s18, %s98_s18 }
  0x47   :  { %p6611_p2 = scmp.ne.s32.totalorder %s98_s18, %s6610_s19  ;;  %p6616_p4 = scmp.lt.s32.totalorder %s6610_s19, %s6610_s19 }
  0x49   :  { %p6617_p5 = por %p6616_p4, %p6615_p3 }
  0x4b   :  { %p6618_p6 = pnand %p6617_p5, %p6611_p2 }
  0x4d   :  { %6621 = shalt.err (!%p6618_p6)
}
  0x4e   :  { %s6687_s2 = smov 384   ;;  %s6688_s20 = smov 24  }
  0x4f   :  { %103 = dma.hbm_to_vmem [thread:$0]  %s10855_s6, 12288, %s98_s18, [#allocation12], %s6687_s2, %s6687_s2, %s6688_s20  }
  0x50   :  { %6662 = dma.done.wait [#allocation3], 24576  }
  0x51   :  { %6663 = vsyncadd [#allocation3], 4294942720 }
  0x52   :  { %6664 = dma.done.wait [#allocation6], 13824  }
  0x53   :  { %6665 = vsyncadd [#allocation6], 4294953472 }
  0x54   :  { %6666 = dma.done.wait [#allocation9], 4096  }
  0x55   :  { %6667 = vsyncadd [#allocation9], 4294963200 }
  0x56   :  { %6668 = dma.done.wait [#allocation12], 14336  }
  0x57   :  { %6669 = vsyncadd [#allocation12], 4294952960  ;;  %v6118_v0 = vld [vmem:[#allocation7 + $0x74] ss:$8 sps:$4 sm:$0xff]   ;;  %v6120_v1 = vld [vmem:[#allocation7 + $0x70] ss:$8 sps:$4 sm:$0xff]  }
  0x58   :  { %1002 = vmatprep.subr.bf16.mxu0 %v6118_v0  ;;  %6068 = vmatprep.subr.bf16.mxu1 %v6118_v0  ;;  %v6121_v2 = vld [vmem:[#allocation7 + $0x64] ss:$8 sps:$4 sm:$0xff]   ;;  %v6123_v3 = vld [vmem:[#allocation7 + $0x60] ss:$8 sps:$4 sm:$0xff]   ;;  %v6124_v4 = vld [vmem:[#allocation7 + $0x54] ss:$8 sps:$4 sm:$0xff]  }
  0x59   :  { %1003 = vmatpush1.bf16.msra.mxu0 %v6120_v1  ;;  %6084 = vmatpush1.bf16.msra.mxu1 %v6120_v1  ;;  %v6126_v5 = vld [vmem:[#allocation7 + $0x50] ss:$8 sps:$4 sm:$0xff]   ;;  %v6127_v6 = vld [vmem:[#allocation7 + $0x44] ss:$8 sps:$4 sm:$0xff]   ;;  %v6129_v7 = vld [vmem:[#allocation7 + $0x40] ss:$8 sps:$4 sm:$0xff]  }
  0x5a   :  { %1004 = vmatprep.subr.bf16.mxu0 %v6121_v2  ;;  %6069 = vmatprep.subr.bf16.mxu1 %v6121_v2  ;;  %v6130_v8 = vld [vmem:[#allocation7 + $0x34] ss:$8 sps:$4 sm:$0xff]   ;;  %v6132_v9 = vld [vmem:[#allocation7 + $0x30] ss:$8 sps:$4 sm:$0xff]   ;;  %v6133_v10 = vld [vmem:[#allocation7 + $0x24] ss:$8 sps:$4 sm:$0xff]  }
  0x5b   :  { %v6135_v11 = vld [vmem:[#allocation7 + $0x20] ss:$8 sps:$4 sm:$0xff]   ;;  %v6136_v12 = vld [vmem:[#allocation7 + $0x14] ss:$8 sps:$4 sm:$0xff]   ;;  %v6138_v18 = vld [vmem:[#allocation7 + $0x10] ss:$8 sps:$4 sm:$0xff]  }
  0x5c   :  { %v127_v13 = vld [vmem:[#allocation2 + $0x8] sm:$0xff]  ;;  %v133_v14 = vld [vmem:[#allocation2 + $0x38] sm:$0xff]  ;;  %v126_v38 = vld [vmem:[#allocation2] sm:$0xff]  ;;  %s6690_s4 = smov [#allocation15]  }
  0x5d   :  { %1005 = vmatpush1.bf16.msra.mxu0 %v6123_v3  ;;  %6085 = vmatpush1.bf16.msra.mxu1 %v6123_v3  ;;  %v319_v15 = vpack.c.bf16 %v133_v14, %v127_v13  ;;  %v223_v16 = vld [vmem:[#allocation2 + $0x308] sm:$0xff]  ;;  %v229_v17 = vld [vmem:[#allocation2 + $0x338] sm:$0xff]  ;;  %v132_v39 = vld [vmem:[#allocation2 + $0x30] sm:$0xff]  ;;  %s5697_s6 = sshll.u32 %s6690_s4, 4  ;;  %s5698_s6 = int_to_ptr.vmem [resolvable:$true] %s5697_s6 }
  0x5e   :  { %1006 = vmatprep.subr.bf16.mxu0 %v6124_v4  ;;  %6070 = vmatprep.subr.bf16.mxu1 %v6124_v4  ;;  %v367_v19 = vpack.c.bf16 %v229_v17, %v223_v16  ;;  %v6139_v20 = vld [vmem:[#allocation7 + $0x4] ss:$8 sps:$4 sm:$0xff]   ;;  %v6141_v21 = vld [vmem:[#allocation7] ss:$8 sps:$4 sm:$0xff]   ;;  %v6142_v22 = vld [vmem:[#allocation7 + $0xf4] ss:$8 sps:$4 sm:$0xff]   ;;  %v318_v45 = vpack.c.bf16 %v132_v39, %v126_v38  ;;  %p6627_p8 = scmp.lt.s32.totalorder %s5698_s6, %s5698_s6 }
  0x5f   :  { %1034 = vmatprep.mubr.bf16.mxu0 %v319_v15  ;;  %v6144_v23 = vld [vmem:[#allocation7 + $0xf0] ss:$8 sps:$4 sm:$0xff]   ;;  %v6145_v24 = vld [vmem:[#allocation7 + $0xe4] ss:$8 sps:$4 sm:$0xff]   ;;  %v6147_v25 = vld [vmem:[#allocation7 + $0xe0] ss:$8 sps:$4 sm:$0xff]  }
  0x60   :  { %1114 = vmatprep.mubr.bf16.mxu1 %v367_v19  ;;  %v6148_v26 = vld [vmem:[#allocation7 + $0xd4] ss:$8 sps:$4 sm:$0xff]   ;;  %v6150_v27 = vld [vmem:[#allocation7 + $0xd0] ss:$8 sps:$4 sm:$0xff]   ;;  %v6151_v28 = vld [vmem:[#allocation7 + $0xc4] ss:$8 sps:$4 sm:$0xff]  }
  0x61   :  { %1007 = vmatpush1.bf16.msra.mxu0 %v6126_v5  ;;  %6086 = vmatpush1.bf16.msra.mxu1 %v6126_v5  ;;  %v6153_v29 = vld [vmem:[#allocation7 + $0xc0] ss:$8 sps:$4 sm:$0xff]   ;;  %v6154_v30 = vld [vmem:[#allocation7 + $0xb4] ss:$8 sps:$4 sm:$0xff]   ;;  %v6156_v31 = vld [vmem:[#allocation7 + $0xb0] ss:$8 sps:$4 sm:$0xff]  }
  0x62   :  { %1008 = vmatprep.subr.bf16.mxu0 %v6127_v6  ;;  %6071 = vmatprep.subr.bf16.mxu1 %v6127_v6  ;;  %v6157_v32 = vld [vmem:[#allocation7 + $0xa4] ss:$8 sps:$4 sm:$0xff]   ;;  %v6159_v33 = vld [vmem:[#allocation7 + $0xa0] ss:$8 sps:$4 sm:$0xff]   ;;  %v6160_v34 = vld [vmem:[#allocation7 + $0x94] ss:$8 sps:$4 sm:$0xff]  }
  0x63   :  { %v6162_v35 = vld [vmem:[#allocation7 + $0x90] ss:$8 sps:$4 sm:$0xff]   ;;  %v6163_v36 = vld [vmem:[#allocation7 + $0x84] ss:$8 sps:$4 sm:$0xff]   ;;  %v6165_v37 = vld [vmem:[#allocation7 + $0x80] ss:$8 sps:$4 sm:$0xff]  }
  0x64   :  { %v222_v40 = vld [vmem:[#allocation2 + $0x300] sm:$0xff]  ;;  %v228_v41 = vld [vmem:[#allocation2 + $0x330] sm:$0xff]  ;;  %v139_v44 = vld [vmem:[#allocation2 + $0x68] sm:$0xff]  ;;  %s6622_s1 = scalar_lea.vmem %s5698_s6, 4096 }
  0x65   :  { %1009 = vmatpush1.bf16.msra.mxu0 %v6129_v7  ;;  %6087 = vmatpush1.bf16.msra.mxu1 %v6129_v7  ;;  %v6168_v42 = vld [vmem:[#allocation7 + $0x174] ss:$8 sps:$4 sm:$0xff]   ;;  %v366_v46 = vpack.c.bf16 %v228_v41, %v222_v40  ;;  %v235_v48 = vld [vmem:[#allocation2 + $0x368] sm:$0xff]  ;;  %v6166_v50 = vld [vmem:[#allocation7 + $0x170] ss:$8 sps:$4 sm:$0xff]   ;;  %p6623_p7 = scmp.ne.s32.totalorder %s5698_s6, %s6622_s1  ;;  %p6628_p9 = scmp.lt.s32.totalorder %s6622_s1, %s6622_s1 }
  0x66   :  { %1010 = vmatprep.subr.bf16.mxu0 %v6130_v8  ;;  %6072 = vmatprep.subr.bf16.mxu1 %v6130_v8  ;;  %v6171_v43 = vld [vmem:[#allocation7 + $0x274] ss:$8 sps:$4 sm:$0xff]   ;;  %v6169_v51 = vld [vmem:[#allocation7 + $0x270] ss:$8 sps:$4 sm:$0xff]   ;;  %v6174_v52 = vld [vmem:[#allocation7 + $0x164] ss:$8 sps:$4 sm:$0xff]  }
  0x67   :  { %v145_v47 = vld [vmem:[#allocation2 + $0x98] sm:$0xff]  ;;  %v6177_v53 = vld [vmem:[#allocation7 + $0x264] ss:$8 sps:$4 sm:$0xff]   ;;  %v6172_v54 = vld [vmem:[#allocation7 + $0x160] ss:$8 sps:$4 sm:$0xff]   ;;  %p6629_p10 = por %p6628_p9, %p6627_p8 }
  0x68   :  { %v241_v49 = vld [vmem:[#allocation2 + $0x398] sm:$0xff]  ;;  %v6175_v55 = vld [vmem:[#allocation7 + $0x260] ss:$8 sps:$4 sm:$0xff]   ;;  %v325_v56 = vpack.c.bf16 %v145_v47, %v139_v44  ;;  %v144_v59 = vld [vmem:[#allocation2 + $0x90] sm:$0xff] }
  0x69   :  { %1011 = vmatpush1.bf16.msra.mxu0 %v6132_v9  ;;  %6088 = vmatpush1.bf16.msra.mxu1 %v6132_v9  ;;  %v373_v57 = vpack.c.bf16 %v241_v49, %v235_v48  ;;  %v138_v58 = vld [vmem:[#allocation2 + $0x60] sm:$0xff]  ;;  %v240_v61 = vld [vmem:[#allocation2 + $0x390] sm:$0xff]  ;;  %v151_v0 = vld [vmem:[#allocation2 + $0xc8] sm:$0xff]  ;;  %p6630_p11 = pnand %p6629_p10, %p6623_p7 }
  0x6a   :  { %1012 = vmatprep.subr.bf16.mxu0 %v6133_v10  ;;  %6073 = vmatprep.subr.bf16.mxu1 %v6133_v10  ;;  %v234_v60 = vld [vmem:[#allocation2 + $0x360] sm:$0xff]  ;;  %v6180_v62 = vld [vmem:[#allocation7 + $0x154] ss:$8 sps:$4 sm:$0xff]   ;;  %v324_v1 = vpack.c.bf16 %v144_v59, %v138_v58  ;;  %v247_v4 = vld [vmem:[#allocation2 + $0x3c8] sm:$0xff] }
  0x6b   :  { %v6183_v63 = vld [vmem:[#allocation7 + $0x254] ss:$8 sps:$4 sm:$0xff]   ;;  %v372_v2 = vpack.c.bf16 %v240_v61, %v234_v60  ;;  %v6178_v6 = vld [vmem:[#allocation7 + $0x150] ss:$8 sps:$4 sm:$0xff]   ;;  %v6186_v8 = vld [vmem:[#allocation7 + $0x144] ss:$8 sps:$4 sm:$0xff]  }
  0x6c   :  { %v157_v3 = vld [vmem:[#allocation2 + $0xf8] sm:$0xff]  ;;  %v6189_v9 = vld [vmem:[#allocation7 + $0x244] ss:$8 sps:$4 sm:$0xff]   ;;  %v6184_v10 = vld [vmem:[#allocation7 + $0x140] ss:$8 sps:$4 sm:$0xff]  }
  0x6d   :  { %1013 = vmatpush1.bf16.msra.mxu0 %v6135_v11  ;;  %6089 = vmatpush1.bf16.msra.mxu1 %v6135_v11  ;;  %v253_v5 = vld [vmem:[#allocation2 + $0x3f8] sm:$0xff]  ;;  %v6187_v11 = vld [vmem:[#allocation7 + $0x240] ss:$8 sps:$4 sm:$0xff]   ;;  %v156_v15 = vld [vmem:[#allocation2 + $0xf0] sm:$0xff] }
  0x6e   :  { %1014 = vmatprep.subr.bf16.mxu0 %v6136_v12  ;;  %6074 = vmatprep.subr.bf16.mxu1 %v6136_v12  ;;  %v6181_v7 = vld [vmem:[#allocation7 + $0x250] ss:$8 sps:$4 sm:$0xff]   ;;  %v331_v12 = vpack.c.bf16 %v157_v3, %v151_v0  ;;  %v379_v13 = vpack.c.bf16 %v253_v5, %v247_v4  ;;  %v150_v14 = vld [vmem:[#allocation2 + $0xc0] sm:$0xff]  ;;  %v6195_v19 = vld [vmem:[#allocation7 + $0x234] ss:$8 sps:$4 sm:$0xff]  }
  0x6f   :  { %v246_v16 = vld [vmem:[#allocation2 + $0x3c0] sm:$0xff]  ;;  %v252_v17 = vld [vmem:[#allocation2 + $0x3f0] sm:$0xff]  ;;  %v175_v40 = vld [vmem:[#allocation2 + $0x188] sm:$0xff] }
  0x70   :  { %v6204_v38 = vld [vmem:[#allocation7 + $0x114] ss:$8 sps:$4 sm:$0xff]   ;;  %v271_v44 = vld [vmem:[#allocation2 + $0x488] sm:$0xff]  ;;  %v6205_v47 = vld [vmem:[#allocation7 + $0x210] ss:$8 sps:$4 sm:$0xff]  }
  0x71   :  { %1015 = vmatpush1.bf16.msra.mxu0 %v6138_v18  ;;  %6090 = vmatpush1.bf16.msra.mxu1 %v6138_v18  ;;  %v6192_v18 = vld [vmem:[#allocation7 + $0x134] ss:$8 sps:$4 sm:$0xff]   ;;  %v6210_v48 = vld [vmem:[#allocation7 + $0x104] ss:$8 sps:$4 sm:$0xff]   ;;  %v6217_v3 = vld [vmem:[#allocation7 + $0x2f0] ss:$8 sps:$4 sm:$0xff]  }
  0x72   :  { %1016 = vmatprep.subr.bf16.mxu0 %v6139_v20  ;;  %6075 = vmatprep.subr.bf16.mxu1 %v6139_v20  ;;  %v163_v20 = vld [vmem:[#allocation2 + $0x128] sm:$0xff]  ;;  %v6207_v39 = vld [vmem:[#allocation7 + $0x214] ss:$8 sps:$4 sm:$0xff]  }
  0x73   :  { %v6213_v49 = vld [vmem:[#allocation7 + $0x204] ss:$8 sps:$4 sm:$0xff]   ;;  %v6216_v58 = vld [vmem:[#allocation7 + $0x1f4] ss:$8 sps:$4 sm:$0xff]  }
  0x74   :  { %v6219_v59 = vld [vmem:[#allocation7 + $0x2f4] ss:$8 sps:$4 sm:$0xff]   ;;  %v187_v60 = vld [vmem:[#allocation2 + $0x1e8] sm:$0xff] }
  0x75   :  { %1017 = vmatpush1.bf16.msra.mxu0 %v6141_v21  ;;  %6091 = vmatpush1.bf16.msra.mxu1 %v6141_v21  ;;  %v330_v21 = vpack.c.bf16 %v156_v15, %v150_v14  ;;  %v283_v0 = vld [vmem:[#allocation2 + $0x4e8] sm:$0xff]  ;;  %v6228_v14 = vld [vmem:[#allocation7 + $0x1d4] ss:$8 sps:$4 sm:$0xff]  }
  0x76   :  { %1018 = vmatprep.subr.bf16.mxu0 %v6142_v22  ;;  %6076 = vmatprep.subr.bf16.mxu1 %v6142_v22  ;;  %v378_v22 = vpack.c.bf16 %v252_v17, %v246_v16  ;;  %v6222_v4 = vld [vmem:[#allocation7 + $0x1e4] ss:$8 sps:$4 sm:$0xff]   ;;  %v6231_v15 = vld [vmem:[#allocation7 + $0x2d4] ss:$8 sps:$4 sm:$0xff]  }
  0x77   :  { %v6225_v5 = vld [vmem:[#allocation7 + $0x2e4] ss:$8 sps:$4 sm:$0xff]  }
  0x78   :  { %v199_v16 = vld [vmem:[#allocation2 + $0x248] sm:$0xff] }
  0x79   :  { %1019 = vmatpush2.bf16.msra.mxu0 %v6144_v23  ;;  %6092 = vmatpush2.bf16.msra.mxu1 %v6144_v23  ;;  %v169_v23 = vld [vmem:[#allocation2 + $0x158] sm:$0xff] }
  0x7a   :  { %1020 = vmatprep.subr.bf16.mxu0 %v6145_v24  ;;  %6077 = vmatprep.subr.bf16.mxu1 %v6145_v24  ;;  %v259_v24 = vld [vmem:[#allocation2 + $0x428] sm:$0xff] }
  0x7d   :  { %1021 = vmatpush2.bf16.msra.mxu0 %v6147_v25  ;;  %6093 = vmatpush2.bf16.msra.mxu1 %v6147_v25  ;;  %v265_v25 = vld [vmem:[#allocation2 + $0x458] sm:$0xff] }
  0x7e   :  { %1022 = vmatprep.subr.bf16.mxu0 %v6148_v26  ;;  %6078 = vmatprep.subr.bf16.mxu1 %v6148_v26  ;;  %v6190_v26 = vld [vmem:[#allocation7 + $0x130] ss:$8 sps:$4 sm:$0xff]  }
  0x81   :  { %1023 = vmatpush2.bf16.msra.mxu0 %v6150_v27  ;;  %6094 = vmatpush2.bf16.msra.mxu1 %v6150_v27  ;;  %v6193_v27 = vld [vmem:[#allocation7 + $0x230] ss:$8 sps:$4 sm:$0xff]  }
  0x82   :  { %1024 = vmatprep.subr.bf16.mxu0 %v6151_v28  ;;  %6079 = vmatprep.subr.bf16.mxu1 %v6151_v28  ;;  %v6198_v28 = vld [vmem:[#allocation7 + $0x124] ss:$8 sps:$4 sm:$0xff]  }
  0x85   :  { %1025 = vmatpush2.bf16.msra.mxu0 %v6153_v29  ;;  %6095 = vmatpush2.bf16.msra.mxu1 %v6153_v29  ;;  %v6201_v29 = vld [vmem:[#allocation7 + $0x224] ss:$8 sps:$4 sm:$0xff]  }
  0x86   :  { %1026 = vmatprep.subr.bf16.mxu0 %v6154_v30  ;;  %6080 = vmatprep.subr.bf16.mxu1 %v6154_v30  ;;  %v6196_v30 = vld [vmem:[#allocation7 + $0x120] ss:$8 sps:$4 sm:$0xff]  }
  0x89   :  { %1027 = vmatpush2.bf16.msra.mxu0 %v6156_v31  ;;  %6096 = vmatpush2.bf16.msra.mxu1 %v6156_v31  ;;  %v6199_v31 = vld [vmem:[#allocation7 + $0x220] ss:$8 sps:$4 sm:$0xff]  }
  0x8a   :  { %1028 = vmatprep.subr.bf16.mxu0 %v6157_v32  ;;  %6081 = vmatprep.subr.bf16.mxu1 %v6157_v32  ;;  %v337_v32 = vpack.c.bf16 %v169_v23, %v163_v20  ;;  %v295_v20 = vld [vmem:[#allocation2 + $0x548] sm:$0xff]  ;;  %v6229_v23 = vld [vmem:[#allocation7 + $0x2d0] ss:$8 sps:$4 sm:$0xff]  }
  0x8d   :  { %1029 = vmatpush2.bf16.msra.mxu0 %v6159_v33  ;;  %6097 = vmatpush2.bf16.msra.mxu1 %v6159_v33  ;;  %v385_v33 = vpack.c.bf16 %v265_v25, %v259_v24  ;;  %v6234_v24 = vld [vmem:[#allocation7 + $0x1c4] ss:$8 sps:$4 sm:$0xff]  }
  0x8e   :  { %1030 = vmatprep.subr.bf16.mxu0 %v6160_v34  ;;  %6082 = vmatprep.subr.bf16.mxu1 %v6160_v34  ;;  %v162_v34 = vld [vmem:[#allocation2 + $0x120] sm:$0xff] }
  0x8f   :  { %v6237_v25 = vld [vmem:[#allocation7 + $0x2c4] ss:$8 sps:$4 sm:$0xff]  }
  0x91   :  { %1031 = vmatpush2.bf16.msra.mxu0 %v6162_v35  ;;  %6098 = vmatpush2.bf16.msra.mxu1 %v6162_v35  ;;  %v168_v35 = vld [vmem:[#allocation2 + $0x150] sm:$0xff] }
  0x92   :  { %1032 = vmatprep.subr.bf16.mxu0 %v6163_v36  ;;  %6083 = vmatprep.subr.bf16.mxu1 %v6163_v36  ;;  %v258_v36 = vld [vmem:[#allocation2 + $0x420] sm:$0xff]  ;;  %v336_v41 = vpack.c.bf16 %v168_v35, %v162_v34  ;;  %v6240_v34 = vld [vmem:[#allocation7 + $0x1b4] ss:$8 sps:$4 sm:$0xff]  }
  0x93   :  { %v6243_v35 = vld [vmem:[#allocation7 + $0x2b4] ss:$8 sps:$4 sm:$0xff]  }
  0x95   :  { %1033 = vmatpush2.bf16.msra.mxu0 %v6165_v37  ;;  %6099 = vmatpush2.bf16.msra.mxu1 %v6165_v37  ;;  %v264_v37 = vld [vmem:[#allocation2 + $0x450] sm:$0xff] }
  0x96   :  { %1195 = vmatprep.subr.bf16.mxu1 %v6168_v42  ;;  %1388 = vmatprep.subr.bf16.mxu0 %v6171_v43  ;;  %v384_v42 = vpack.c.bf16 %v264_v37, %v258_v36  ;;  %v181_v43 = vld [vmem:[#allocation2 + $0x1b8] sm:$0xff]  ;;  %v211_v36 = vld [vmem:[#allocation2 + $0x2a8] sm:$0xff] }
  0x98   :  { %1035 = vmatmul.mubr.bf16.vlgmr.msra.gmra.mxu0 %v318_v45  ;;  %1115 = vmatmul.mubr.bf16.vlgmr.msra.gmra.mxu1 %v366_v46  ;;  %v277_v45 = vld [vmem:[#allocation2 + $0x4b8] sm:$0xff] }
  0x99   :  { %1196 = vmatpush1.bf16.msra.mxu1 %v6166_v50  ;;  %1389 = vmatpush1.bf16.msra.mxu0 %v6169_v51  ;;  %v6202_v46 = vld [vmem:[#allocation7 + $0x110] ss:$8 sps:$4 sm:$0xff]   ;;  %v343_v50 = vpack.c.bf16 %v181_v43, %v175_v40  ;;  %v391_v51 = vpack.c.bf16 %v277_v45, %v271_v44  ;;  %v307_v40 = vld [vmem:[#allocation2 + $0x5a8] sm:$0xff] }
  0x9a   :  { %1197 = vmatprep.subr.bf16.mxu1 %v6174_v52  ;;  %1390 = vmatprep.subr.bf16.mxu0 %v6177_v53  ;;  %v6208_v52 = vld [vmem:[#allocation7 + $0x100] ss:$8 sps:$4 sm:$0xff]   ;;  %v6241_v43 = vld [vmem:[#allocation7 + $0x2b0] ss:$8 sps:$4 sm:$0xff]   ;;  %v6246_v44 = vld [vmem:[#allocation7 + $0x1a4] ss:$8 sps:$4 sm:$0xff]  }
  0x9b   :  { %1044 = vmatprep.mubr.bf16.mxu0 %v325_v56  ;;  %1124 = vmatprep.mubr.bf16.mxu1 %v373_v57  ;;  %v6211_v53 = vld [vmem:[#allocation7 + $0x200] ss:$8 sps:$4 sm:$0xff]   ;;  %v276_v57 = vld [vmem:[#allocation2 + $0x4b0] sm:$0xff]  ;;  %v6249_v45 = vld [vmem:[#allocation7 + $0x2a4] ss:$8 sps:$4 sm:$0xff]  }
  0x9c   :  { %v270_v56 = vld [vmem:[#allocation2 + $0x480] sm:$0xff] }
  0x9d   :  { %1198 = vmatpush1.bf16.msra.mxu1 %v6172_v54  ;;  %1391 = vmatpush1.bf16.msra.mxu0 %v6175_v55  ;;  %v174_v54 = vld [vmem:[#allocation2 + $0x180] sm:$0xff]  ;;  %v180_v55 = vld [vmem:[#allocation2 + $0x1b0] sm:$0xff] }
  0x9e   :  { %1199 = vmatprep.subr.bf16.mxu1 %v6180_v62  ;;  %1392 = vmatprep.subr.bf16.mxu0 %v6183_v63  ;;  %v342_v61 = vpack.c.bf16 %v180_v55, %v174_v54  ;;  %v390_v62 = vpack.c.bf16 %v276_v57, %v270_v56  ;;  %v193_v63 = vld [vmem:[#allocation2 + $0x218] sm:$0xff] }
  0x9f   :  { %v6252_v54 = vld [vmem:[#allocation7 + $0x194] ss:$8 sps:$4 sm:$0xff]  }
  0xa0   :  { %1045 = vmatmul.mubr.bf16.gmra.mxu0 %v324_v1  ;;  %1125 = vmatmul.mubr.bf16.gmra.mxu1 %v372_v2  ;;  %v289_v1 = vld [vmem:[#allocation2 + $0x518] sm:$0xff] }
  0xa1   :  { %1200 = vmatpush1.bf16.msra.mxu1 %v6178_v6  ;;  %1393 = vmatpush1.bf16.msra.mxu0 %v6181_v7  ;;  %v6214_v2 = vld [vmem:[#allocation7 + $0x1f0] ss:$8 sps:$4 sm:$0xff]   ;;  %v349_v6 = vpack.c.bf16 %v193_v63, %v187_v60  ;;  %v397_v7 = vpack.c.bf16 %v289_v1, %v283_v0  ;;  %v6255_v55 = vld [vmem:[#allocation7 + $0x294] ss:$8 sps:$4 sm:$0xff]   ;;  %v131_v60 = vld [vmem:[#allocation2 + $0x28] sm:$0xff] }
  0xa2   :  { %1201 = vmatprep.subr.bf16.mxu1 %v6186_v8  ;;  %1394 = vmatprep.subr.bf16.mxu0 %v6189_v9  ;;  %v6220_v8 = vld [vmem:[#allocation7 + $0x1e0] ss:$8 sps:$4 sm:$0xff]   ;;  %v129_v56 = vld [vmem:[#allocation2 + $0x18] sm:$0xff]  ;;  %v6258_v0 = vld [vmem:[#allocation7 + $0x184] ss:$8 sps:$4 sm:$0xff]  }
  0xa3   :  { %1054 = vmatprep.mubr.bf16.mxu0 %v331_v12  ;;  %1134 = vmatprep.mubr.bf16.mxu1 %v379_v13  ;;  %v6223_v9 = vld [vmem:[#allocation7 + $0x2e0] ss:$8 sps:$4 sm:$0xff]   ;;  %v288_v13 = vld [vmem:[#allocation2 + $0x510] sm:$0xff]  ;;  %v6261_v1 = vld [vmem:[#allocation7 + $0x284] ss:$8 sps:$4 sm:$0xff]  }
  0xa4   :  { %v282_v12 = vld [vmem:[#allocation2 + $0x4e0] sm:$0xff]  ;;  %v6253_v63 = vld [vmem:[#allocation7 + $0x290] ss:$8 sps:$4 sm:$0xff]  }
  0xa5   :  { %1202 = vmatpush1.bf16.msra.mxu1 %v6184_v10  ;;  %1395 = vmatpush1.bf16.msra.mxu0 %v6187_v11  ;;  %v186_v10 = vld [vmem:[#allocation2 + $0x1e0] sm:$0xff]  ;;  %v192_v11 = vld [vmem:[#allocation2 + $0x210] sm:$0xff] }
  0xa6   :  { %1203 = vmatprep.subr.bf16.mxu1 %v6192_v18  ;;  %1396 = vmatprep.subr.bf16.mxu0 %v6195_v19  ;;  %v348_v17 = vpack.c.bf16 %v192_v11, %v186_v10  ;;  %v396_v18 = vpack.c.bf16 %v288_v13, %v282_v12  ;;  %v205_v19 = vld [vmem:[#allocation2 + $0x278] sm:$0xff]  ;;  %v147_v11 = vld [vmem:[#allocation2 + $0xa8] sm:$0xff] }
  0xa7   :  { %v141_v10 = vld [vmem:[#allocation2 + $0x78] sm:$0xff]  ;;  %v143_v12 = vld [vmem:[#allocation2 + $0x88] sm:$0xff] }
  0xa8   :  { %1055 = vmatmul.mubr.bf16.gmra.mxu0 %v330_v21  ;;  %1135 = vmatmul.mubr.bf16.gmra.mxu1 %v378_v22  ;;  %v301_v21 = vld [vmem:[#allocation2 + $0x578] sm:$0xff] }
  0xa9   :  { %1204 = vmatpush1.bf16.msra.mxu1 %v6190_v26  ;;  %1397 = vmatpush1.bf16.msra.mxu0 %v6193_v27  ;;  %v6226_v22 = vld [vmem:[#allocation7 + $0x1d0] ss:$8 sps:$4 sm:$0xff]   ;;  %v355_v26 = vpack.c.bf16 %v205_v19, %v199_v16  ;;  %v403_v27 = vpack.c.bf16 %v301_v21, %v295_v20  ;;  %v327_v16 = vpack.c.bf16 %v147_v11, %v141_v10  ;;  %v146_v19 = vld [vmem:[#allocation2 + $0xa0] sm:$0xff] }
  0xaa   :  { %1205 = vmatprep.subr.bf16.mxu1 %v6198_v28  ;;  %1398 = vmatprep.subr.bf16.mxu0 %v6201_v29  ;;  %v6232_v28 = vld [vmem:[#allocation7 + $0x1c0] ss:$8 sps:$4 sm:$0xff]   ;;  %v149_v13 = vld [vmem:[#allocation2 + $0xb8] sm:$0xff]  ;;  %v148_v21 = vld [vmem:[#allocation2 + $0xb0] sm:$0xff] }
  0xab   :  { %1064 = vmatprep.mubr.bf16.mxu0 %v337_v32  ;;  %1144 = vmatprep.mubr.bf16.mxu1 %v385_v33  ;;  %v6235_v29 = vld [vmem:[#allocation7 + $0x2c0] ss:$8 sps:$4 sm:$0xff]   ;;  %v300_v33 = vld [vmem:[#allocation2 + $0x570] sm:$0xff] }
  0xac   :  { %v294_v32 = vld [vmem:[#allocation2 + $0x540] sm:$0xff] }
  0xad   :  { %1206 = vmatpush1.bf16.msra.mxu1 %v6196_v30  ;;  %1399 = vmatpush1.bf16.msra.mxu0 %v6199_v31  ;;  %v198_v30 = vld [vmem:[#allocation2 + $0x240] sm:$0xff]  ;;  %v204_v31 = vld [vmem:[#allocation2 + $0x270] sm:$0xff] }
  0xae   :  { %1207 = vmatprep.subr.bf16.mxu1 %v6204_v38  ;;  %1400 = vmatprep.subr.bf16.mxu0 %v6207_v39  ;;  %v354_v37 = vpack.c.bf16 %v204_v31, %v198_v30  ;;  %v402_v38 = vpack.c.bf16 %v300_v33, %v294_v32  ;;  %v217_v39 = vld [vmem:[#allocation2 + $0x2d8] sm:$0xff]  ;;  %v142_v20 = vld [vmem:[#allocation2 + $0x80] sm:$0xff]  ;;  %v152_v30 = vld [vmem:[#allocation2 + $0xd0] sm:$0xff] }
  0xaf   :  { %v158_v31 = vld [vmem:[#allocation2 + $0x100] sm:$0xff]  ;;  %v160_v33 = vld [vmem:[#allocation2 + $0x110] sm:$0xff] }
  0xb0   :  { %1065 = vmatmul.mubr.bf16.gmra.mxu0 %v336_v41  ;;  %1145 = vmatmul.mubr.bf16.gmra.mxu1 %v384_v42  ;;  %v313_v41 = vld [vmem:[#allocation2 + $0x5d8] sm:$0xff]  ;;  %v154_v32 = vld [vmem:[#allocation2 + $0xe0] sm:$0xff] }
  0xb1   :  { %1208 = vmatpush1.bf16.msra.mxu1 %v6202_v46  ;;  %1401 = vmatpush1.bf16.msra.mxu0 %v6205_v47  ;;  %v6238_v42 = vld [vmem:[#allocation7 + $0x1b0] ss:$8 sps:$4 sm:$0xff]   ;;  %v361_v46 = vpack.c.bf16 %v217_v39, %v211_v36  ;;  %v409_v47 = vpack.c.bf16 %v313_v41, %v307_v40  ;;  %v167_v36 = vld [vmem:[#allocation2 + $0x148] sm:$0xff]  ;;  %v334_v39 = vpack.c.bf16 %v160_v33, %v154_v32 }
  0xb2   :  { %1209 = vmatprep.subr.bf16.mxu1 %v6210_v48  ;;  %1402 = vmatprep.subr.bf16.mxu0 %v6213_v49  ;;  %v6244_v48 = vld [vmem:[#allocation7 + $0x1a0] ss:$8 sps:$4 sm:$0xff]   ;;  %v233_v33 = vld [vmem:[#allocation2 + $0x358] sm:$0xff] }
  0xb3   :  { %1074 = vmatprep.mubr.bf16.mxu0 %v343_v50  ;;  %1154 = vmatprep.mubr.bf16.mxu1 %v391_v51  ;;  %v6247_v49 = vld [vmem:[#allocation7 + $0x2a0] ss:$8 sps:$4 sm:$0xff]   ;;  %v216_v51 = vld [vmem:[#allocation2 + $0x2d0] sm:$0xff] }
  0xb4   :  { %v210_v50 = vld [vmem:[#allocation2 + $0x2a0] sm:$0xff]  ;;  %v227_v32 = vld [vmem:[#allocation2 + $0x328] sm:$0xff] }
  0xb5   :  { %1210 = vmatpush1.bf16.msra.mxu1 %v6208_v52  ;;  %1403 = vmatpush1.bf16.msra.mxu0 %v6211_v53  ;;  %v306_v52 = vld [vmem:[#allocation2 + $0x5a0] sm:$0xff]  ;;  %v312_v53 = vld [vmem:[#allocation2 + $0x5d0] sm:$0xff]  ;;  %v360_v57 = vpack.c.bf16 %v216_v51, %v210_v50 }
  0xb6   :  { %1211 = vmatprep.subr.bf16.mxu1 %v6216_v58  ;;  %1404 = vmatprep.subr.bf16.mxu0 %v6219_v59  ;;  %v408_v58 = vpack.c.bf16 %v312_v53, %v306_v52  ;;  %v135_v59 = vld [vmem:[#allocation2 + $0x48] sm:$0xff] }
  0xb8   :  { %1075 = vmatmul.mubr.bf16.gmra.mxu0 %v342_v61  ;;  %1155 = vmatmul.mubr.bf16.gmra.mxu1 %v390_v62  ;;  %v137_v61 = vld [vmem:[#allocation2 + $0x58] sm:$0xff] }
  0xb9   :  { %1212 = vmatpush2.bf16.msra.mxu1 %v6214_v2  ;;  %1405 = vmatpush2.bf16.msra.mxu0 %v6217_v3  ;;  %v6250_v62 = vld [vmem:[#allocation7 + $0x190] ss:$8 sps:$4 sm:$0xff]   ;;  %v6256_v2 = vld [vmem:[#allocation7 + $0x180] ss:$8 sps:$4 sm:$0xff]   ;;  %v321_v3 = vpack.c.bf16 %v135_v59, %v129_v56 }
  0xba   :  { %1213 = vmatprep.subr.bf16.mxu1 %v6222_v4  ;;  %1406 = vmatprep.subr.bf16.mxu0 %v6225_v5  ;;  %v323_v4 = vpack.c.bf16 %v137_v61, %v131_v60  ;;  %v6259_v5 = vld [vmem:[#allocation7 + $0x280] ss:$8 sps:$4 sm:$0xff]   ;;  %v197_v61 = vld [vmem:[#allocation2 + $0x238] sm:$0xff] }
  0xbb   :  { %1084 = vmatprep.mubr.bf16.mxu0 %v349_v6  ;;  %1164 = vmatprep.mubr.bf16.mxu1 %v397_v7  ;;  %v128_v6 = vld [vmem:[#allocation2 + $0x10] sm:$0xff]  ;;  %v134_v7 = vld [vmem:[#allocation2 + $0x40] sm:$0xff]  ;;  %v195_v59 = vld [vmem:[#allocation2 + $0x228] sm:$0xff] }
  0xbc   :  { %v178_v56 = vld [vmem:[#allocation2 + $0x1a0] sm:$0xff]  ;;  %v191_v60 = vld [vmem:[#allocation2 + $0x208] sm:$0xff] }
  0xbd   :  { %1214 = vmatpush2.bf16.msra.mxu1 %v6220_v8  ;;  %1407 = vmatpush2.bf16.msra.mxu0 %v6223_v9  ;;  %v130_v8 = vld [vmem:[#allocation2 + $0x20] sm:$0xff]  ;;  %v136_v9 = vld [vmem:[#allocation2 + $0x50] sm:$0xff] }
  0xbe   :  { %1215 = vmatprep.subr.bf16.mxu1 %v6228_v14  ;;  %1408 = vmatprep.subr.bf16.mxu0 %v6231_v15  ;;  %v320_v14 = vpack.c.bf16 %v134_v7, %v128_v6  ;;  %v322_v15 = vpack.c.bf16 %v136_v9, %v130_v8  ;;  %v201_v6 = vld [vmem:[#allocation2 + $0x258] sm:$0xff]  ;;  %v207_v7 = vld [vmem:[#allocation2 + $0x288] sm:$0xff] }
  0xbf   :  { %v203_v8 = vld [vmem:[#allocation2 + $0x268] sm:$0xff]  ;;  %v209_v9 = vld [vmem:[#allocation2 + $0x298] sm:$0xff] }
  0xc0   :  { %1085 = vmatmul.mubr.bf16.gmra.mxu0 %v348_v17  ;;  %1165 = vmatmul.mubr.bf16.gmra.mxu1 %v396_v18  ;;  %v329_v17 = vpack.c.bf16 %v149_v13, %v143_v12  ;;  %v140_v18 = vld [vmem:[#allocation2 + $0x70] sm:$0xff]  ;;  %v357_v12 = vpack.c.bf16 %v207_v7, %v201_v6  ;;  %v359_v13 = vpack.c.bf16 %v209_v9, %v203_v8 }
  0xc1   :  { %1216 = vmatpush2.bf16.msra.mxu1 %v6226_v22  ;;  %1409 = vmatpush2.bf16.msra.mxu0 %v6229_v23  ;;  %v153_v22 = vld [vmem:[#allocation2 + $0xd8] sm:$0xff]  ;;  %v159_v23 = vld [vmem:[#allocation2 + $0x108] sm:$0xff] }
  0xc2   :  { %1217 = vmatprep.subr.bf16.mxu1 %v6234_v24  ;;  %1410 = vmatprep.subr.bf16.mxu0 %v6237_v25  ;;  %v155_v24 = vld [vmem:[#allocation2 + $0xe8] sm:$0xff]  ;;  %v161_v25 = vld [vmem:[#allocation2 + $0x118] sm:$0xff] }
  0xc3   :  { %1094 = vmatprep.mubr.bf16.mxu0 %v355_v26  ;;  %1174 = vmatprep.mubr.bf16.mxu1 %v403_v27  ;;  %v326_v26 = vpack.c.bf16 %v146_v19, %v140_v18  ;;  %v328_v27 = vpack.c.bf16 %v148_v21, %v142_v20  ;;  %v213_v18 = vld [vmem:[#allocation2 + $0x2b8] sm:$0xff]  ;;  %v219_v19 = vld [vmem:[#allocation2 + $0x2e8] sm:$0xff] }
  0xc4   :  { %v215_v20 = vld [vmem:[#allocation2 + $0x2c8] sm:$0xff]  ;;  %v221_v21 = vld [vmem:[#allocation2 + $0x2f8] sm:$0xff] }
  0xc5   :  { %1218 = vmatpush2.bf16.msra.mxu1 %v6232_v28  ;;  %1411 = vmatpush2.bf16.msra.mxu0 %v6235_v29  ;;  %v333_v28 = vpack.c.bf16 %v159_v23, %v153_v22  ;;  %v335_v29 = vpack.c.bf16 %v161_v25, %v155_v24  ;;  %v363_v24 = vpack.c.bf16 %v219_v19, %v213_v18 }
  0xc6   :  { %1219 = vmatprep.subr.bf16.mxu1 %v6240_v34  ;;  %1412 = vmatprep.subr.bf16.mxu0 %v6243_v35  ;;  %v165_v34 = vld [vmem:[#allocation2 + $0x138] sm:$0xff]  ;;  %v171_v35 = vld [vmem:[#allocation2 + $0x168] sm:$0xff]  ;;  %v365_v25 = vpack.c.bf16 %v221_v21, %v215_v20 }
  0xc7   :  { %v339_v40 = vpack.c.bf16 %v171_v35, %v165_v34 }
  0xc8   :  { %1095 = vmatmul.mubr.bf16.gmra.mxu0 %v354_v37  ;;  %1175 = vmatmul.mubr.bf16.gmra.mxu1 %v402_v38  ;;  %v173_v37 = vld [vmem:[#allocation2 + $0x178] sm:$0xff]  ;;  %v332_v38 = vpack.c.bf16 %v158_v31, %v152_v30  ;;  %v231_v31 = vld [vmem:[#allocation2 + $0x348] sm:$0xff] }
  0xc9   :  { %1220 = vmatpush2.bf16.msra.mxu1 %v6238_v42  ;;  %1413 = vmatpush2.bf16.msra.mxu0 %v6241_v43  ;;  %v341_v41 = vpack.c.bf16 %v173_v37, %v167_v36  ;;  %v164_v42 = vld [vmem:[#allocation2 + $0x130] sm:$0xff]  ;;  %v170_v43 = vld [vmem:[#allocation2 + $0x160] sm:$0xff]  ;;  %v225_v30 = vld [vmem:[#allocation2 + $0x318] sm:$0xff]  ;;  %v371_v37 = vpack.c.bf16 %v233_v33, %v227_v32 }
  0xca   :  { %1221 = vmatprep.subr.bf16.mxu1 %v6246_v44  ;;  %1414 = vmatprep.subr.bf16.mxu0 %v6249_v45  ;;  %v166_v44 = vld [vmem:[#allocation2 + $0x140] sm:$0xff]  ;;  %v172_v45 = vld [vmem:[#allocation2 + $0x170] sm:$0xff]  ;;  %v338_v50 = vpack.c.bf16 %v170_v43, %v164_v42  ;;  %v369_v36 = vpack.c.bf16 %v231_v31, %v225_v30  ;;  %v237_v42 = vld [vmem:[#allocation2 + $0x378] sm:$0xff] }
  0xcb   :  { %1104 = vmatprep.mubr.bf16.mxu0 %v361_v46  ;;  %1184 = vmatprep.mubr.bf16.mxu1 %v409_v47  ;;  %v177_v46 = vld [vmem:[#allocation2 + $0x198] sm:$0xff]  ;;  %v183_v47 = vld [vmem:[#allocation2 + $0x1c8] sm:$0xff]  ;;  %v340_v51 = vpack.c.bf16 %v172_v45, %v166_v44 }
  0xcc   :  { %v345_v52 = vpack.c.bf16 %v183_v47, %v177_v46  ;;  %v243_v43 = vld [vmem:[#allocation2 + $0x3a8] sm:$0xff]  ;;  %v245_v45 = vld [vmem:[#allocation2 + $0x3b8] sm:$0xff] }
  0xcd   :  { %1222 = vmatpush2.bf16.msra.mxu1 %v6244_v48  ;;  %1415 = vmatpush2.bf16.msra.mxu0 %v6247_v49  ;;  %v179_v48 = vld [vmem:[#allocation2 + $0x1a8] sm:$0xff]  ;;  %v185_v49 = vld [vmem:[#allocation2 + $0x1d8] sm:$0xff] }
  0xce   :  { %1223 = vmatprep.subr.bf16.mxu1 %v6252_v54  ;;  %1416 = vmatprep.subr.bf16.mxu0 %v6255_v55  ;;  %v347_v53 = vpack.c.bf16 %v185_v49, %v179_v48  ;;  %v176_v54 = vld [vmem:[#allocation2 + $0x190] sm:$0xff]  ;;  %v182_v55 = vld [vmem:[#allocation2 + $0x1c0] sm:$0xff]  ;;  %v239_v44 = vld [vmem:[#allocation2 + $0x388] sm:$0xff]  ;;  %v375_v48 = vpack.c.bf16 %v243_v43, %v237_v42 }
  0xcf   :  { %v377_v49 = vpack.c.bf16 %v245_v45, %v239_v44 }
  0xd0   :  { %1105 = vmatmul.mubr.bf16.gmra.mxu0 %v360_v57  ;;  %1185 = vmatmul.mubr.bf16.gmra.mxu1 %v408_v58  ;;  %v184_v57 = vld [vmem:[#allocation2 + $0x1d0] sm:$0xff]  ;;  %v189_v58 = vld [vmem:[#allocation2 + $0x1f8] sm:$0xff] }
  0xd1   :  { %1224 = vmatpush2.bf16.msra.mxu1 %v6250_v62  ;;  %1417 = vmatpush2.bf16.msra.mxu0 %v6253_v63  ;;  %v344_v62 = vpack.c.bf16 %v182_v55, %v176_v54  ;;  %v346_v63 = vpack.c.bf16 %v184_v57, %v178_v56  ;;  %v249_v54 = vld [vmem:[#allocation2 + $0x3d8] sm:$0xff]  ;;  %v255_v55 = vld [vmem:[#allocation2 + $0x408] sm:$0xff] }
  0xd2   :  { %1225 = vmatprep.subr.bf16.mxu1 %v6258_v0  ;;  %1418 = vmatprep.subr.bf16.mxu0 %v6261_v1  ;;  %v351_v0 = vpack.c.bf16 %v195_v59, %v189_v58  ;;  %v353_v1 = vpack.c.bf16 %v197_v61, %v191_v60  ;;  %v251_v56 = vld [vmem:[#allocation2 + $0x3e8] sm:$0xff]  ;;  %v257_v57 = vld [vmem:[#allocation2 + $0x418] sm:$0xff]  ;;  %v381_v60 = vpack.c.bf16 %v255_v55, %v249_v54 }
  0xd3   :  { %1227 = vmatprep.mubr.bf16.mxu1 %v321_v3  ;;  %1420 = vmatprep.mubr.bf16.mxu0 %v323_v4  ;;  %v194_v3 = vld [vmem:[#allocation2 + $0x220] sm:$0xff]  ;;  %v383_v61 = vpack.c.bf16 %v257_v57, %v251_v56 }
  0xd4   :  { %v190_v4 = vld [vmem:[#allocation2 + $0x200] sm:$0xff] }
  0xd5   :  { %1226 = vmatpush2.bf16.msra.mxu1 %v6256_v2  ;;  %1419 = vmatpush2.bf16.msra.mxu0 %v6259_v5  ;;  %v188_v2 = vld [vmem:[#allocation2 + $0x1f0] sm:$0xff] }
  0xd6   :  { %v196_v5 = vld [vmem:[#allocation2 + $0x230] sm:$0xff]  ;;  %v350_v10 = vpack.c.bf16 %v194_v3, %v188_v2  ;;  %v261_v2 = vld [vmem:[#allocation2 + $0x438] sm:$0xff]  ;;  %v267_v3 = vld [vmem:[#allocation2 + $0x468] sm:$0xff] }
  0xd7   :  { %v352_v11 = vpack.c.bf16 %v196_v5, %v190_v4  ;;  %v263_v4 = vld [vmem:[#allocation2 + $0x448] sm:$0xff]  ;;  %v269_v5 = vld [vmem:[#allocation2 + $0x478] sm:$0xff]  ;;  %v387_v8 = vpack.c.bf16 %v267_v3, %v261_v2 }
  0xd8   :  { %1228 = vmatmul.mubr.bf16.vlgmr.msra.gmra.mxu1 %v320_v14  ;;  %1421 = vmatmul.mubr.bf16.vlgmr.msra.gmra.mxu0 %v322_v15  ;;  %v200_v14 = vld [vmem:[#allocation2 + $0x250] sm:$0xff]  ;;  %v206_v15 = vld [vmem:[#allocation2 + $0x280] sm:$0xff]  ;;  %v389_v9 = vpack.c.bf16 %v269_v5, %v263_v4 }
  0xd9   :  { %1237 = vmatprep.mubr.bf16.mxu1 %v327_v16  ;;  %1430 = vmatprep.mubr.bf16.mxu0 %v329_v17  ;;  %v202_v16 = vld [vmem:[#allocation2 + $0x260] sm:$0xff]  ;;  %v208_v17 = vld [vmem:[#allocation2 + $0x290] sm:$0xff]  ;;  %v356_v22 = vpack.c.bf16 %v206_v15, %v200_v14  ;;  %v273_v14 = vld [vmem:[#allocation2 + $0x498] sm:$0xff] }
  0xda   :  { %v358_v23 = vpack.c.bf16 %v208_v17, %v202_v16  ;;  %v279_v15 = vld [vmem:[#allocation2 + $0x4c8] sm:$0xff]  ;;  %v281_v17 = vld [vmem:[#allocation2 + $0x4d8] sm:$0xff] }
  0xdb   :  { %v275_v16 = vld [vmem:[#allocation2 + $0x4a8] sm:$0xff]  ;;  %v393_v20 = vpack.c.bf16 %v279_v15, %v273_v14  ;;  %v6264_v14 = vld [vmem:[#allocation8 + $0x70] sm:$0xff]  }
  0xdc   :  { %v395_v21 = vpack.c.bf16 %v281_v17, %v275_v16  ;;  %v6265_v15 = vld [vmem:[#allocation8 + $0x30] sm:$0xff]  }
  0xe0   :  { %1238 = vmatmul.mubr.bf16.gmra.mxu1 %v326_v26  ;;  %1431 = vmatmul.mubr.bf16.gmra.mxu0 %v328_v27  ;;  %v212_v26 = vld [vmem:[#allocation2 + $0x2b0] sm:$0xff]  ;;  %v218_v27 = vld [vmem:[#allocation2 + $0x2e0] sm:$0xff] }
  0xe1   :  { %1247 = vmatprep.mubr.bf16.mxu1 %v333_v28  ;;  %1440 = vmatprep.mubr.bf16.mxu0 %v335_v29  ;;  %v214_v28 = vld [vmem:[#allocation2 + $0x2c0] sm:$0xff]  ;;  %v220_v29 = vld [vmem:[#allocation2 + $0x2f0] sm:$0xff]  ;;  %v362_v34 = vpack.c.bf16 %v218_v27, %v212_v26  ;;  %v285_v26 = vld [vmem:[#allocation2 + $0x4f8] sm:$0xff] }
  0xe2   :  { %v364_v35 = vpack.c.bf16 %v220_v29, %v214_v28  ;;  %v291_v27 = vld [vmem:[#allocation2 + $0x528] sm:$0xff]  ;;  %v293_v29 = vld [vmem:[#allocation2 + $0x538] sm:$0xff] }
  0xe3   :  { %v287_v28 = vld [vmem:[#allocation2 + $0x508] sm:$0xff]  ;;  %v399_v32 = vpack.c.bf16 %v291_v27, %v285_v26 }
  0xe4   :  { %v401_v33 = vpack.c.bf16 %v293_v29, %v287_v28 }
  0xe8   :  { %1248 = vmatmul.mubr.bf16.gmra.mxu1 %v332_v38  ;;  %1441 = vmatmul.mubr.bf16.gmra.mxu0 %v334_v39  ;;  %v224_v38 = vld [vmem:[#allocation2 + $0x310] sm:$0xff]  ;;  %v230_v39 = vld [vmem:[#allocation2 + $0x340] sm:$0xff] }
  0xe9   :  { %1257 = vmatprep.mubr.bf16.mxu1 %v339_v40  ;;  %1450 = vmatprep.mubr.bf16.mxu0 %v341_v41  ;;  %v226_v40 = vld [vmem:[#allocation2 + $0x320] sm:$0xff]  ;;  %v232_v41 = vld [vmem:[#allocation2 + $0x350] sm:$0xff]  ;;  %v368_v46 = vpack.c.bf16 %v230_v39, %v224_v38  ;;  %v297_v38 = vld [vmem:[#allocation2 + $0x558] sm:$0xff] }
  0xea   :  { %v370_v47 = vpack.c.bf16 %v232_v41, %v226_v40  ;;  %v303_v39 = vld [vmem:[#allocation2 + $0x588] sm:$0xff]  ;;  %v305_v41 = vld [vmem:[#allocation2 + $0x598] sm:$0xff] }
  0xeb   :  { %v299_v40 = vld [vmem:[#allocation2 + $0x568] sm:$0xff]  ;;  %v405_v44 = vpack.c.bf16 %v303_v39, %v297_v38 }
  0xec   :  { %v407_v45 = vpack.c.bf16 %v305_v41, %v299_v40 }
  0xf0   :  { %1258 = vmatmul.mubr.bf16.gmra.mxu1 %v338_v50  ;;  %1451 = vmatmul.mubr.bf16.gmra.mxu0 %v340_v51  ;;  %v236_v50 = vld [vmem:[#allocation2 + $0x370] sm:$0xff]  ;;  %v242_v51 = vld [vmem:[#allocation2 + $0x3a0] sm:$0xff] }
  0xf1   :  { %1267 = vmatprep.mubr.bf16.mxu1 %v345_v52  ;;  %1460 = vmatprep.mubr.bf16.mxu0 %v347_v53  ;;  %v238_v52 = vld [vmem:[#allocation2 + $0x380] sm:$0xff]  ;;  %v244_v53 = vld [vmem:[#allocation2 + $0x3b0] sm:$0xff]  ;;  %v374_v58 = vpack.c.bf16 %v242_v51, %v236_v50  ;;  %v309_v50 = vld [vmem:[#allocation2 + $0x5b8] sm:$0xff] }
  0xf2   :  { %v376_v59 = vpack.c.bf16 %v244_v53, %v238_v52  ;;  %v315_v51 = vld [vmem:[#allocation2 + $0x5e8] sm:$0xff]  ;;  %v317_v53 = vld [vmem:[#allocation2 + $0x5f8] sm:$0xff] }
  0xf3   :  { %v311_v52 = vld [vmem:[#allocation2 + $0x5c8] sm:$0xff]  ;;  %v411_v56 = vpack.c.bf16 %v315_v51, %v309_v50  ;;  %v6268_v50 = vld [vmem:[#allocation8 + $0x60] sm:$0xff]  }
  0xf4   :  { %v413_v57 = vpack.c.bf16 %v317_v53, %v311_v52  ;;  %v6269_v51 = vld [vmem:[#allocation8 + $0x20] sm:$0xff]  }
  0xf8   :  { %1268 = vmatmul.mubr.bf16.gmra.mxu1 %v344_v62  ;;  %1461 = vmatmul.mubr.bf16.gmra.mxu0 %v346_v63  ;;  %v248_v62 = vld [vmem:[#allocation2 + $0x3d0] sm:$0xff]  ;;  %v254_v63 = vld [vmem:[#allocation2 + $0x400] sm:$0xff] }
  0xf9   :  { %1277 = vmatprep.mubr.bf16.mxu1 %v351_v0  ;;  %1470 = vmatprep.mubr.bf16.mxu0 %v353_v1  ;;  %v250_v0 = vld [vmem:[#allocation2 + $0x3e0] sm:$0xff]  ;;  %v256_v1 = vld [vmem:[#allocation2 + $0x410] sm:$0xff]  ;;  %v380_v6 = vpack.c.bf16 %v254_v63, %v248_v62 }
  0xfa   :  { %v382_v7 = vpack.c.bf16 %v256_v1, %v250_v0  ;;  %v6262_v0 = vld [vmem:[#allocation8 + $0x78] sm:$0xff]  }
  0xfb   :  { %v6263_v1 = vld [vmem:[#allocation8 + $0x38] sm:$0xff]   ;;  %5956 = vmatprep.subr.bf16.mxu1 %v6262_v0 }
  0xfc   :  { %5957 = vmatpush3.bf16.msra.mxu1 %v6263_v1 }
  0xfd   :  { %5958 = vmatprep.subr.bf16.mxu1 %v6264_v14 }
 0x100   :  { %1278 = vmatmul.mubr.bf16.gmra.mxu1 %v350_v10  ;;  %1471 = vmatmul.mubr.bf16.gmra.mxu0 %v352_v11  ;;  %v260_v10 = vld [vmem:[#allocation2 + $0x430] sm:$0xff]  ;;  %v266_v11 = vld [vmem:[#allocation2 + $0x460] sm:$0xff] }
 0x101   :  { %1287 = vmatprep.mubr.bf16.mxu1 %v357_v12  ;;  %1480 = vmatprep.mubr.bf16.mxu0 %v359_v13  ;;  %v262_v12 = vld [vmem:[#allocation2 + $0x440] sm:$0xff]  ;;  %v268_v13 = vld [vmem:[#allocation2 + $0x470] sm:$0xff]  ;;  %v386_v18 = vpack.c.bf16 %v266_v11, %v260_v10 }
 0x102   :  { %v388_v19 = vpack.c.bf16 %v268_v13, %v262_v12  ;;  %5959 = vmatpush3.bf16.msra.mxu1 %v6265_v15 }
 0x108   :  { %1288 = vmatmul.mubr.bf16.gmra.mxu1 %v356_v22  ;;  %1481 = vmatmul.mubr.bf16.gmra.mxu0 %v358_v23  ;;  %v272_v22 = vld [vmem:[#allocation2 + $0x490] sm:$0xff]  ;;  %v278_v23 = vld [vmem:[#allocation2 + $0x4c0] sm:$0xff] }
 0x109   :  { %1297 = vmatprep.mubr.bf16.mxu1 %v363_v24  ;;  %1490 = vmatprep.mubr.bf16.mxu0 %v365_v25  ;;  %v274_v24 = vld [vmem:[#allocation2 + $0x4a0] sm:$0xff]  ;;  %v280_v25 = vld [vmem:[#allocation2 + $0x4d0] sm:$0xff]  ;;  %v392_v30 = vpack.c.bf16 %v278_v23, %v272_v22 }
 0x10a   :  { %v394_v31 = vpack.c.bf16 %v280_v25, %v274_v24 }
 0x110   :  { %1298 = vmatmul.mubr.bf16.gmra.mxu1 %v362_v34  ;;  %1491 = vmatmul.mubr.bf16.gmra.mxu0 %v364_v35  ;;  %v284_v34 = vld [vmem:[#allocation2 + $0x4f0] sm:$0xff]  ;;  %v290_v35 = vld [vmem:[#allocation2 + $0x520] sm:$0xff] }
 0x111   :  { %1307 = vmatprep.mubr.bf16.mxu1 %v369_v36  ;;  %1500 = vmatprep.mubr.bf16.mxu0 %v371_v37  ;;  %v286_v36 = vld [vmem:[#allocation2 + $0x500] sm:$0xff]  ;;  %v292_v37 = vld [vmem:[#allocation2 + $0x530] sm:$0xff]  ;;  %v398_v42 = vpack.c.bf16 %v290_v35, %v284_v34 }
 0x112   :  { %v400_v43 = vpack.c.bf16 %v292_v37, %v286_v36 }
 0x118   :  { %1308 = vmatmul.mubr.bf16.gmra.mxu1 %v368_v46  ;;  %1501 = vmatmul.mubr.bf16.gmra.mxu0 %v370_v47  ;;  %v296_v46 = vld [vmem:[#allocation2 + $0x550] sm:$0xff]  ;;  %v302_v47 = vld [vmem:[#allocation2 + $0x580] sm:$0xff] }
 0x119   :  { %1317 = vmatprep.mubr.bf16.mxu1 %v375_v48  ;;  %1510 = vmatprep.mubr.bf16.mxu0 %v377_v49  ;;  %v298_v48 = vld [vmem:[#allocation2 + $0x560] sm:$0xff]  ;;  %v304_v49 = vld [vmem:[#allocation2 + $0x590] sm:$0xff]  ;;  %v404_v54 = vpack.c.bf16 %v302_v47, %v296_v46 }
 0x11a   :  { %v406_v55 = vpack.c.bf16 %v304_v49, %v298_v48 }
 0x120   :  { %1318 = vmatmul.mubr.bf16.gmra.mxu1 %v374_v58  ;;  %1511 = vmatmul.mubr.bf16.gmra.mxu0 %v376_v59  ;;  %v308_v58 = vld [vmem:[#allocation2 + $0x5b0] sm:$0xff]  ;;  %v314_v59 = vld [vmem:[#allocation2 + $0x5e0] sm:$0xff] }
 0x121   :  { %1327 = vmatprep.mubr.bf16.mxu1 %v381_v60  ;;  %1520 = vmatprep.mubr.bf16.mxu0 %v383_v61  ;;  %v310_v60 = vld [vmem:[#allocation2 + $0x5c0] sm:$0xff]  ;;  %v316_v61 = vld [vmem:[#allocation2 + $0x5f0] sm:$0xff]  ;;  %v410_v62 = vpack.c.bf16 %v314_v59, %v308_v58  ;;  %v512_v58 = vlaneseq }
 0x122   :  { %v412_v63 = vpack.c.bf16 %v316_v61, %v310_v60 }
 0x128   :  { %1328 = vmatmul.mubr.bf16.gmra.mxu1 %v380_v6  ;;  %1521 = vmatmul.mubr.bf16.gmra.mxu0 %v382_v7 }
 0x129   :  { %1337 = vmatprep.mubr.bf16.mxu1 %v387_v8  ;;  %1530 = vmatprep.mubr.bf16.mxu0 %v389_v9 }
 0x130   :  { %1338 = vmatmul.mubr.bf16.gmra.mxu1 %v386_v18  ;;  %1531 = vmatmul.mubr.bf16.gmra.mxu0 %v388_v19 }
 0x131   :  { %1347 = vmatprep.mubr.bf16.mxu1 %v393_v20  ;;  %1540 = vmatprep.mubr.bf16.mxu0 %v395_v21 }
 0x138   :  { %1348 = vmatmul.mubr.bf16.gmra.mxu1 %v392_v30  ;;  %1541 = vmatmul.mubr.bf16.gmra.mxu0 %v394_v31 }
 0x139   :  { %1357 = vmatprep.mubr.bf16.mxu1 %v399_v32  ;;  %1550 = vmatprep.mubr.bf16.mxu0 %v401_v33  ;;  %v6266_v32 = vld [vmem:[#allocation8 + $0x68] sm:$0xff]  }
 0x13a   :  { %v6267_v33 = vld [vmem:[#allocation8 + $0x28] sm:$0xff]   ;;  %5960 = vmatprep.subr.bf16.mxu1 %v6266_v32 }
 0x13b   :  { %5961 = vmatpush3.bf16.msra.mxu1 %v6267_v33 }
 0x13c   :  { %5962 = vmatprep.subr.bf16.mxu1 %v6268_v50  ;;  %v414_v50 = vld [vmem:[#allocation5] ss:$8 sm:$0x3] }
 0x13f   :  { %5963 = vmatpush3.bf16.msra.mxu1 %v6269_v51 }
 0x140   :  { %1358 = vmatmul.mubr.bf16.gmra.mxu1 %v398_v42  ;;  %1551 = vmatmul.mubr.bf16.gmra.mxu0 %v400_v43 }
 0x141   :  { %1367 = vmatprep.mubr.bf16.mxu1 %v405_v44  ;;  %1560 = vmatprep.mubr.bf16.mxu0 %v407_v45 }
 0x148   :  { %1368 = vmatmul.mubr.bf16.gmra.mxu1 %v404_v54  ;;  %1561 = vmatmul.mubr.bf16.gmra.mxu0 %v406_v55 }
 0x149   :  { %1377 = vmatprep.mubr.bf16.mxu1 %v411_v56  ;;  %1570 = vmatprep.mubr.bf16.mxu0 %v413_v57 }
 0x150   :  { %1378 = vmatmul.mubr.bf16.gmra.mxu1 %v410_v62  ;;  %1571 = vmatmul.mubr.bf16.gmra.mxu0 %v412_v63  ;;  %v6881_v63 = vshrl.u32 %v512_v58, 7  ;;  %v6270_v58 = vld [vmem:[#allocation8 + $0x58] sm:$0xff]  }
 0x151   :  { %5964 = vmatprep.subr.bf16.mxu1 %v6270_v58 }
 0x152   :  { %10988 = vst [vmem:[#allocation34_spill] sm:$0xff] %v6881_v63  ;;  %v6892_v32 = vsub.s32 0, %v6881_v63  ;;  %v6895_v33 = vsub.s32 1, %v6881_v63 }
 0x154   :  { %10991 = vst [vmem:[#allocation37_spill] sm:$0xff] %v6892_v32  ;;  %10992 = vst [vmem:[#allocation38_spill] sm:$0xff] %v6895_v33 }
 0x158   :  { %v6773_v2 = vpop.f32.mrf.mxu0  ;;  %v6775_v3 = vpop.f32.mrf.mxu1 }
 0x15a   :  { %v6777_v4 = vpop.f32.mrf.mxu0  ;;  %v6779_v5 = vpop.f32.mrf.mxu1 }
 0x15c   :  { %v6781_v6 = vpop.f32.mrf.mxu0  ;;  %v6783_v7 = vpop.f32.mrf.mxu1 }
 0x15e   :  { %v6785_v8 = vpop.f32.mrf.mxu0  ;;  %v6787_v9 = vpop.f32.mrf.mxu1 }
 0x160   :  { %v6789_v10 = vpop.f32.mrf.mxu0  ;;  %v6791_v11 = vpop.f32.mrf.mxu1 }
 0x162   :  { %v6793_v12 = vpop.f32.mrf.mxu0  ;;  %v6795_v13 = vpop.f32.mrf.mxu1 }
 0x164   :  { %v6797_v16 = vpop.f32.mrf.mxu0  ;;  %v6799_v17 = vpop.f32.mrf.mxu1 }
 0x166   :  { %v6801_v18 = vpop.f32.mrf.mxu0  ;;  %v6803_v19 = vpop.f32.mrf.mxu1 }
 0x168   :  { %v6805_v20 = vpop.f32.mrf.mxu0  ;;  %v6807_v21 = vpop.f32.mrf.mxu1 }
 0x16a   :  { %v6809_v22 = vpop.f32.mrf.mxu0  ;;  %v6811_v23 = vpop.f32.mrf.mxu1 }
 0x16c   :  { %v6813_v24 = vpop.f32.mrf.mxu0  ;;  %v6815_v25 = vpop.f32.mrf.mxu1 }
 0x16e   :  { %v6817_v26 = vpop.f32.mrf.mxu0  ;;  %v6819_v27 = vpop.f32.mrf.mxu1 }
 0x170   :  { %v6821_v28 = vpop.f32.mrf.mxu0  ;;  %v6823_v29 = vpop.f32.mrf.mxu1 }
 0x172   :  { %v6825_v30 = vpop.f32.mrf.mxu0  ;;  %v6827_v31 = vpop.f32.mrf.mxu1 }
 0x174   :  { %v6829_v34 = vpop.f32.mrf.mxu0  ;;  %v6831_v35 = vpop.f32.mrf.mxu1 }
 0x176   :  { %v6833_v36 = vpop.f32.mrf.mxu0  ;;  %v6835_v37 = vpop.f32.mrf.mxu1 }
 0x178   :  { %v6837_v38 = vpop.f32.mrf.mxu0  ;;  %v6839_v39 = vpop.f32.mrf.mxu1 }
 0x179   :  { %10977 = vst [vmem:[#allocation23_spill] sm:$0xff] %v6839_v39 }
 0x17a   :  { %v6841_v40 = vpop.f32.mrf.mxu0  ;;  %v6843_v41 = vpop.f32.mrf.mxu1 }
 0x17b   :  { %10978 = vst [vmem:[#allocation24_spill] sm:$0xff] %v6843_v41 }
 0x17c   :  { %v6845_v42 = vpop.f32.mrf.mxu0  ;;  %v6847_v43 = vpop.f32.mrf.mxu1 }
 0x17d   :  { %10979 = vst [vmem:[#allocation25_spill] sm:$0xff] %v6847_v43 }
 0x17e   :  { %v6849_v44 = vpop.f32.mrf.mxu0  ;;  %v6851_v45 = vpop.f32.mrf.mxu1 }
 0x17f   :  { %10980 = vst [vmem:[#allocation26_spill] sm:$0xff] %v6851_v45 }
 0x180   :  { %v6853_v46 = vpop.f32.mrf.mxu0  ;;  %v6855_v47 = vpop.f32.mrf.mxu1 }
 0x181   :  { %10981 = vst [vmem:[#allocation27_spill] sm:$0xff] %v6855_v47 }
 0x182   :  { %v6857_v48 = vpop.f32.mrf.mxu0  ;;  %v6859_v49 = vpop.f32.mrf.mxu1 }
 0x183   :  { %10982 = vst [vmem:[#allocation28_spill] sm:$0xff] %v6859_v49 }
 0x184   :  { %v6861_v52 = vpop.f32.mrf.mxu0  ;;  %v6863_v53 = vpop.f32.mrf.mxu1 }
 0x185   :  { %10983 = vst [vmem:[#allocation29_spill] sm:$0xff] %v6863_v53 }
 0x186   :  { %v6865_v54 = vpop.f32.mrf.mxu0  ;;  %v6867_v55 = vpop.f32.mrf.mxu1 }
 0x187   :  { %10984 = vst [vmem:[#allocation30_spill] sm:$0xff] %v6867_v55  ;;  %v6906_v55 = vrot.slane %v414_v50, %v6892_v32 }
 0x188   :  { %v6869_v56 = vpop.f32.mrf.mxu0  ;;  %v6871_v57 = vpop.f32.mrf.mxu1 }
 0x189   :  { %10985 = vst [vmem:[#allocation31_spill] sm:$0xff] %v6871_v57  ;;  %10997 = vst [vmem:[#allocation43_spill] sm:$0xff] %v6906_v55 }
 0x18a   :  { %v6873_v59 = vpop.f32.mrf.mxu0  ;;  %v6875_v60 = vpop.f32.mrf.mxu1 }
 0x18b   :  { %10986 = vst [vmem:[#allocation32_spill] sm:$0xff] %v6875_v60  ;;  %v6271_v60 = vld [vmem:[#allocation8 + $0x18] sm:$0xff]  }
 0x18c   :  { %v6877_v61 = vpop.f32.mrf.mxu0  ;;  %v6879_v62 = vpop.f32.mrf.mxu1  ;;  %5965 = vmatpush3.bf16.msra.mxu1 %v6271_v60 }
 0x18d   :  { %10987 = vst [vmem:[#allocation33_spill] sm:$0xff] %v6879_v62 }
 0x18e   :  { %v6883_v0 = vpop.f32.mrf.mxu0  ;;  %v6885_v1 = vpop.f32.mrf.mxu1 }
 0x18f   :  { %10989 = vst [vmem:[#allocation35_spill] sm:$0xff] %v6885_v1 }
 0x190   :  { %v6887_v14 = vpop.f32.mrf.mxu0  ;;  %v6889_v15 = vpop.f32.mrf.mxu1 }
 0x191   :  { %10990 = vst [vmem:[#allocation36_spill] sm:$0xff] %v6889_v15  ;;  %v6909_v15 = vrot.slane %v414_v50, %v6895_v33 }
 0x192   :  { %v6897_v51 = vpop.f32.mrf.mxu0  ;;  %v6899_v62 = vpop.f32.mrf.mxu1 }
 0x193   :  { %10993 = vst [vmem:[#allocation39_spill] sm:$0xff] %v6897_v51  ;;  %10994 = vst [vmem:[#allocation40_spill] sm:$0xff] %v6899_v62  ;;  %v1037_v62 = vadd.f32 %v6773_v2, %v6906_v55 }
 0x194   :  { %v6901_v57 = vpop.f32.mrf.mxu0  ;;  %v6903_v1 = vpop.f32.mrf.mxu1  ;;  %10998 = vst [vmem:[#allocation44_spill] sm:$0xff] %v6909_v15 }
 0x195   :  { %10995 = vst [vmem:[#allocation41_spill] sm:$0xff] %v6901_v57  ;;  %10996 = vst [vmem:[#allocation42_spill] sm:$0xff] %v6903_v1  ;;  %v1039_v1 = vadd.f32 %v6777_v4, %v6909_v15 }
 0x196   :  { %v6911_v63 = vpop.f32.mrf.mxu0  ;;  %v6913_v53 = vpop.f32.mrf.mxu1 }
 0x197   :  { %10999 = vst [vmem:[#allocation45_spill] sm:$0xff] %v6911_v63  ;;  %11000 = vst [vmem:[#allocation46_spill] sm:$0xff] %v6913_v53 }
 0x198   :  { %v1229_v49 = vpop.f32.mrf.mxu1  ;;  %v1422_v47 = vpop.f32.mrf.mxu0 }
 0x199   :  { %v1230_v45 = vadd.f32 %v1229_v49, %v1037_v62 }
 0x19a   :  { %v1231_v32 = vpop.f32.mrf.mxu1  ;;  %v1424_v43 = vpop.f32.mrf.mxu0 }
 0x19b   :  { %v6919_v41 = vadd.f32 %v1422_v47, %v1230_v45  ;;  %v1232_v50 = vadd.f32 %v1231_v32, %v1039_v1 }
 0x19c   :  { %v1233_v58 = vpop.f32.mrf.mxu1  ;;  %v6921_v33 = vpop.f32.mrf.mxu0 }
 0x19d   :  { %11001 = vst [vmem:[#allocation47_spill] sm:$0xff] %v6919_v41  ;;  %v6923_v39 = vadd.f32 %v1424_v43, %v1232_v50 }
 0x19e   :  { %v1235_v60 = vpop.f32.mrf.mxu1  ;;  %v6925_v53 = vpop.f32.mrf.mxu0 }
 0x19f   :  { %11002 = vst [vmem:[#allocation48_spill] sm:$0xff] %v6923_v39 }
 0x1a0   :  { %v6927_v2 = vpop.f32.mrf.mxu1  ;;  %v6929_v63 = vpop.f32.mrf.mxu0 }
 0x1a2   :  { %v6931_v57 = vpop.f32.mrf.mxu1  ;;  %v6933_v4 = vpop.f32.mrf.mxu0 }
 0x1a3   :  { %11003 = vst [vmem:[#allocation49_spill] sm:$0xff] %v6933_v4 }
 0x1a4   :  { %v6935_v49 = vpop.f32.mrf.mxu1  ;;  %v6937_v45 = vpop.f32.mrf.mxu0 }
 0x1a5   :  { %11004 = vst [vmem:[#allocation50_spill] sm:$0xff] %v6937_v45 }
 0x1a6   :  { %v6939_v47 = vpop.f32.mrf.mxu1  ;;  %v6941_v62 = vpop.f32.mrf.mxu0 }
 0x1a7   :  { %11005 = vst [vmem:[#allocation51_spill] sm:$0xff] %v6939_v47  ;;  %11006 = vst [vmem:[#allocation52_spill] sm:$0xff] %v6941_v62 }
 0x1a8   :  { %v6943_v43 = vpop.f32.mrf.mxu1  ;;  %v6945_v1 = vpop.f32.mrf.mxu0 }
 0x1a9   :  { %11007 = vst [vmem:[#allocation53_spill] sm:$0xff] %v6943_v43  ;;  %11008 = vst [vmem:[#allocation54_spill] sm:$0xff] %v6945_v1 }
 0x1aa   :  { %v6947_v32 = vpop.f32.mrf.mxu1  ;;  %v6949_v50 = vpop.f32.mrf.mxu0 }
 0x1ab   :  { %11009 = vst [vmem:[#allocation55_spill] sm:$0xff] %v6947_v32  ;;  %11010 = vst [vmem:[#allocation56_spill] sm:$0xff] %v6949_v50 }
 0x1ac   :  { %v6951_v39 = vpop.f32.mrf.mxu1  ;;  %v6953_v41 = vpop.f32.mrf.mxu0 }
 0x1ad   :  { %11011 = vst [vmem:[#allocation57_spill] sm:$0xff] %v6951_v39  ;;  %11012 = vst [vmem:[#allocation58_spill] sm:$0xff] %v6953_v41  ;;  %v6977_v41 = vadd.f32 %v6775_v3, %v6906_v55  ;;  %v6997_v3 = vadd.f32 %v6787_v9, %v6909_v15  ;;  %v7015_v9 = vadd.f32 %v6799_v17, %v6906_v55 }
 0x1ae   :  { %v6955_v4 = vpop.f32.mrf.mxu1  ;;  %v6957_v51 = vpop.f32.mrf.mxu0  ;;  %v1059_v17 = vadd.f32 %v6809_v22, %v6909_v15  ;;  %v7053_v22 = vadd.f32 %v6819_v27, %v6909_v15 }
 0x1af   :  { %11013 = vst [vmem:[#allocation59_spill] sm:$0xff] %v6957_v51  ;;  %v6981_v51 = vadd.f32 %v6779_v5, %v6909_v15  ;;  %11021 = vst [vmem:[#allocation67_spill] sm:$0xff] %v6997_v3  ;;  %v1047_v5 = vadd.f32 %v6789_v10, %v6906_v55 }
 0x1b0   :  { %v6959_v45 = vpop.f32.mrf.mxu1  ;;  %v6961_v47 = vpop.f32.mrf.mxu0  ;;  %11024 = vst [vmem:[#allocation70_spill] sm:$0xff] %v7015_v9  ;;  %11029 = vst [vmem:[#allocation75_spill] sm:$0xff] %v7053_v22 }
 0x1b1   :  { %11014 = vst [vmem:[#allocation60_spill] sm:$0xff] %v6961_v47  ;;  %11019 = vst [vmem:[#allocation65_spill] sm:$0xff] %v6981_v51  ;;  %v1041_v47 = vadd.f32 %v6781_v6, %v6906_v55  ;;  %v7003_v6 = vadd.f32 %v6791_v11, %v6906_v55  ;;  %v7009_v51 = vadd.f32 %v6795_v13, %v6909_v15 }
 0x1b2   :  { %v6963_v62 = vpop.f32.mrf.mxu1  ;;  %v6965_v43 = vpop.f32.mrf.mxu0  ;;  %v1053_v11 = vadd.f32 %v6801_v18, %v6909_v15  ;;  %v1057_v13 = vadd.f32 %v6805_v20, %v6906_v55  ;;  %v1061_v18 = vadd.f32 %v6813_v24, %v6906_v55  ;;  %v7059_v24 = vadd.f32 %v6823_v29, %v6906_v55 }
 0x1b3   :  { %11015 = vst [vmem:[#allocation61_spill] sm:$0xff] %v6965_v43  ;;  %v6987_v43 = vadd.f32 %v6783_v7, %v6906_v55  ;;  %11022 = vst [vmem:[#allocation68_spill] sm:$0xff] %v7003_v6  ;;  %v1049_v7 = vadd.f32 %v6793_v12, %v6909_v15  ;;  %v7025_v12 = vadd.f32 %v6803_v19, %v6909_v15 }
 0x1b4   :  { %v6967_v1 = vpop.f32.mrf.mxu1  ;;  %v6969_v32 = vpop.f32.mrf.mxu0  ;;  %11023 = vst [vmem:[#allocation69_spill] sm:$0xff] %v7009_v51  ;;  %v7037_v51 = vadd.f32 %v6811_v23, %v6909_v15  ;;  %v7043_v19 = vadd.f32 %v6815_v25, %v6906_v55  ;;  %v1067_v23 = vadd.f32 %v6821_v28, %v6906_v55  ;;  %11030 = vst [vmem:[#allocation76_spill] sm:$0xff] %v7059_v24  ;;  %v11053_v6 = vld [vmem:[#allocation57_spill] sm:$0xff] }
 0x1b5   :  { %11016 = vst [vmem:[#allocation62_spill] sm:$0xff] %v6969_v32  ;;  %11020 = vst [vmem:[#allocation66_spill] sm:$0xff] %v6987_v43  ;;  %v7063_v25 = vadd.f32 %v6825_v30, %v6909_v15  ;;  %v7075_v28 = vadd.f32 %v6829_v34, %v6906_v55  ;;  %v7079_v29 = vadd.f32 %v6831_v35, %v6906_v55 }
 0x1b6   :  { %v6971_v50 = vpop.f32.mrf.mxu1  ;;  %v6973_v39 = vpop.f32.mrf.mxu0  ;;  %11025 = vst [vmem:[#allocation71_spill] sm:$0xff] %v7025_v12  ;;  %11027 = vst [vmem:[#allocation73_spill] sm:$0xff] %v7037_v51  ;;  %v1234_v51 = vadd.f32 %v1233_v58, %v1041_v47  ;;  %v7083_v30 = vadd.f32 %v6833_v36, %v6909_v15  ;;  %v7095_v34 = vadd.f32 %v6841_v40, %v6909_v15 }
 0x1b7   :  { %11017 = vst [vmem:[#allocation63_spill] sm:$0xff] %v6971_v50  ;;  %11018 = vst [vmem:[#allocation64_spill] sm:$0xff] %v6973_v39  ;;  %v1043_v39 = vadd.f32 %v6785_v8, %v6909_v15  ;;  %v1051_v8 = vadd.f32 %v6797_v16, %v6906_v55  ;;  %v7031_v16 = vadd.f32 %v6807_v21, %v6906_v55 }
 0x1b8   :  { %v6989_v32 = vpop.f32.mrf.mxu1  ;;  %v6991_v50 = vpop.f32.mrf.mxu0  ;;  %11028 = vst [vmem:[#allocation74_spill] sm:$0xff] %v7043_v19  ;;  %v1063_v21 = vadd.f32 %v6817_v26, %v6909_v15  ;;  %v7067_v19 = vadd.f32 %v6827_v31, %v6909_v15  ;;  %11032 = vst [vmem:[#allocation78_spill] sm:$0xff] %v7079_v29  ;;  %v7087_v31 = vadd.f32 %v6835_v37, %v6909_v15 }
 0x1b9   :  { %11026 = vst [vmem:[#allocation72_spill] sm:$0xff] %v7031_v16  ;;  %v1236_v26 = vadd.f32 %v1235_v60, %v1043_v39  ;;  %v7091_v39 = vadd.f32 %v6837_v38, %v6906_v55  ;;  %v7099_v35 = vadd.f32 %v6845_v42, %v6906_v55  ;;  %v1240_v58 = vadd.f32 %v6927_v2, %v1047_v5 }
 0x1ba   :  { %v7017_v3 = vpop.f32.mrf.mxu1  ;;  %v7019_v10 = vpop.f32.mrf.mxu0  ;;  %11031 = vst [vmem:[#allocation77_spill] sm:$0xff] %v7067_v19  ;;  %11033 = vst [vmem:[#allocation79_spill] sm:$0xff] %v7087_v31  ;;  %v7108_v37 = vadd.f32 %v6849_v44, %v6909_v15  ;;  %v7112_v38 = vadd.f32 %v6853_v46, %v6906_v55  ;;  %v7115_v40 = vadd.f32 %v6921_v33, %v1234_v51 }
 0x1bb   :  { %v1242_v42 = vadd.f32 %v6931_v57, %v1049_v7  ;;  %v7120_v2 = vadd.f32 %v6857_v48, %v6909_v15  ;;  %v7124_v47 = vadd.f32 %v6861_v52, %v6906_v55  ;;  %v7127_v44 = vadd.f32 %v6925_v53, %v1236_v26  ;;  %v11041_v26 = vld [vmem:[#allocation49_spill] sm:$0xff] }
 0x1bc   :  { %v7045_v12 = vpop.f32.mrf.mxu1  ;;  %v7047_v20 = vpop.f32.mrf.mxu0  ;;  %11034 = vst [vmem:[#allocation80_spill] sm:$0xff] %v7115_v40  ;;  %v1244_v5 = vadd.f32 %v6935_v49, %v1051_v8  ;;  %v7136_v57 = vadd.f32 %v6865_v54, %v6909_v15  ;;  %v7140_v48 = vadd.f32 %v6869_v56, %v6906_v55  ;;  %v7144_v52 = vadd.f32 %v6873_v59, %v6909_v15  ;;  %v11038_v56 = vld [vmem:[#allocation51_spill] sm:$0xff] }
 0x1bd   :  { %11035 = vst [vmem:[#allocation81_spill] sm:$0xff] %v7127_v44  ;;  %v7148_v53 = vadd.f32 %v6877_v61, %v6906_v55  ;;  %v7152_v33 = vadd.f32 %v6883_v0, %v6909_v15  ;;  %v7156_v54 = vadd.f32 %v6887_v14, %v6906_v55  ;;  %v7159_v51 = vadd.f32 %v6929_v63, %v1240_v58  ;;  %v11039_v61 = vld [vmem:[#allocation39_spill] sm:$0xff]  ;;  %v11043_v14 = vld [vmem:[#allocation53_spill] sm:$0xff] }
 0x1be   :  { %v7069_v16 = vpop.f32.mrf.mxu1  ;;  %v7071_v27 = vpop.f32.mrf.mxu0  ;;  %11036 = vst [vmem:[#allocation82_spill] sm:$0xff] %v7144_v52  ;;  %v1246_v49 = vadd.f32 %v11038_v56, %v1053_v11  ;;  %v7168_v8 = vadd.f32 %v11039_v61, %v6909_v15  ;;  %v1664_v0 = vmul.f32 %v7115_v40, %v7115_v40  ;;  %v7173_v19 = vadd.f32 %v11041_v26, %v1242_v42  ;;  %v11044_v63 = vld [vmem:[#allocation41_spill] sm:$0xff]  ;;  %v11045_v56 = vld [vmem:[#allocation50_spill] sm:$0xff]  ;;  %v11047_v61 = vld [vmem:[#allocation55_spill] sm:$0xff] }
 0x1bf   :  { %11037 = vst [vmem:[#allocation83_spill] sm:$0xff] %v7152_v33  ;;  %v1250_v29 = vadd.f32 %v11043_v14, %v1057_v13  ;;  %v7178_v58 = vadd.f32 %v11044_v63, %v6906_v55  ;;  %v1665_v11 = vmul.f32 %v7127_v44, %v7127_v44  ;;  %v7183_v22 = vadd.f32 %v11045_v56, %v1244_v5  ;;  %v11049_v42 = vld [vmem:[#allocation45_spill] sm:$0xff]  ;;  %v11051_v13 = vld [vmem:[#allocation47_spill] sm:$0xff]  ;;  %v11052_v63 = vld [vmem:[#allocation48_spill] sm:$0xff] }
 0x1c0   :  { %v7102_v36 = vpop.f32.mrf.mxu1  ;;  %v7104_v60 = vpop.f32.mrf.mxu0  ;;  %11040 = vst [vmem:[#allocation51_spill] sm:$0xff] %v7168_v8  ;;  %11042 = vst [vmem:[#allocation39_spill] sm:$0xff] %v7173_v19  ;;  %v1252_v24 = vadd.f32 %v11047_v61, %v1059_v17  ;;  %v7192_v26 = vadd.f32 %v11049_v42, %v6909_v15  ;;  %v1662_v14 = vmul.f32 %v11051_v13, %v11051_v13  ;;  %v11054_v56 = vld [vmem:[#allocation52_spill] sm:$0xff] }
 0x1c1   :  { %11046 = vst [vmem:[#allocation49_spill] sm:$0xff] %v7183_v22  ;;  %v1663_v55 = vmul.f32 %v11052_v63, %v11052_v63  ;;  %v1254_v33 = vadd.f32 %v11053_v6, %v1061_v18  ;;  %v1585_v5 = vadd.f32 %v7115_v40, %v11051_v13  ;;  %v1666_v17 = vmul.f32 %v7159_v51, %v7159_v51  ;;  %v11056_v6 = vld [vmem:[#allocation54_spill] sm:$0xff] }
 0x1c2   :  { %v7130_v46 = vpop.f32.mrf.mxu1  ;;  %v7132_v31 = vpop.f32.mrf.mxu0  ;;  %11050 = vst [vmem:[#allocation41_spill] sm:$0xff] %v7192_v26  ;;  %v7204_v61 = vadd.f32 %v11054_v56, %v1246_v49  ;;  %v1256_v42 = vadd.f32 %v6955_v4, %v1063_v21  ;;  %v1726_v43 = vadd.f32 %v1664_v0, %v1662_v14  ;;  %v1667_v52 = vmul.f32 %v7173_v19, %v7173_v19  ;;  %v11057_v21 = vld [vmem:[#allocation56_spill] sm:$0xff] }
 0x1c3   :  { %v7214_v18 = vadd.f32 %v11056_v6, %v1250_v29  ;;  %v1260_v40 = vadd.f32 %v6959_v45, %v1067_v23  ;;  %v1622_v13 = vadd.f32 %v7127_v44, %v11052_v63  ;;  %v1763_v49 = vadd.f32 %v1665_v11, %v1663_v55  ;;  %v11058_v29 = vld [vmem:[#allocation58_spill] sm:$0xff] }
 0x1c4   :  { %v7162_v7 = vpop.f32.mrf.mxu1  ;;  %v7164_v59 = vpop.f32.mrf.mxu0  ;;  %11055 = vst [vmem:[#allocation50_spill] sm:$0xff] %v7204_v61  ;;  %v1668_v4 = vmul.f32 %v7183_v22, %v7183_v22  ;;  %v7222_v56 = vadd.f32 %v11057_v21, %v1252_v24  ;;  %v1586_v14 = vadd.f32 %v1585_v5, %v7159_v51  ;;  %v7230_v6 = vadd.f32 %v11058_v29, %v1254_v33  ;;  %v11059_v21 = vld [vmem:[#allocation59_spill] sm:$0xff] }
 0x1c5   :  { %v1262_v45 = vadd.f32 %v6963_v62, %v7063_v25  ;;  %v1264_v55 = vadd.f32 %v6967_v1, %v7075_v28  ;;  %v1727_v23 = vadd.f32 %v1726_v43, %v1666_v17  ;;  %v1623_v11 = vadd.f32 %v1622_v13, %v7173_v19  ;;  %v11060_v1 = vld [vmem:[#allocation60_spill] sm:$0xff] }
 0x1c6   :  { %v7186_v9 = vpop.f32.mrf.mxu1  ;;  %v7188_v8 = vpop.f32.mrf.mxu0  ;;  %v1669_v24 = vmul.f32 %v7204_v61, %v7204_v61  ;;  %v7240_v44 = vadd.f32 %v11059_v21, %v1256_v42  ;;  %v1764_v33 = vadd.f32 %v1763_v49, %v1667_v52  ;;  %v1587_v29 = vadd.f32 %v1586_v14, %v7183_v22  ;;  %v11061_v14 = vld [vmem:[#allocation61_spill] sm:$0xff] }
 0x1c7   :  { %11048 = vst [vmem:[#allocation53_spill] sm:$0xff] %v7188_v8  ;;  %v1670_v62 = vmul.f32 %v7214_v18, %v7214_v18  ;;  %v7250_v43 = vadd.f32 %v11060_v1, %v1260_v40  ;;  %v1728_v25 = vadd.f32 %v1727_v23, %v1668_v4  ;;  %v1624_v28 = vadd.f32 %v1623_v11, %v7204_v61  ;;  %v11062_v40 = vld [vmem:[#allocation62_spill] sm:$0xff]  ;;  %v11063_v23 = vld [vmem:[#allocation63_spill] sm:$0xff] }
 0x1c8   :  { %v7207_v15 = vpop.f32.mrf.mxu1  ;;  %v7209_v26 = vpop.f32.mrf.mxu0  ;;  %v1671_v13 = vmul.f32 %v7222_v56, %v7222_v56  ;;  %v1270_v17 = vadd.f32 %v6989_v32, %v7091_v39  ;;  %v1672_v49 = vmul.f32 %v7230_v6, %v7230_v6  ;;  %v7264_v21 = vadd.f32 %v11061_v14, %v1262_v45 }
 0x1c9   :  { %v7267_v4 = vadd.f32 %v11062_v40, %v1264_v55  ;;  %v1266_v11 = vadd.f32 %v11063_v23, %v7083_v30  ;;  %v1765_v1 = vadd.f32 %v1764_v33, %v1669_v24  ;;  %v1588_v61 = vadd.f32 %v1587_v29, %v7214_v18 }
 0x1ca   :  { %v7224_v8 = vpop.f32.mrf.mxu1  ;;  %v7226_v0 = vpop.f32.mrf.mxu0  ;;  %v1673_v32 = vmul.f32 %v7240_v44, %v7240_v44  ;;  %v1274_v39 = vadd.f32 %v7045_v12, %v7099_v35  ;;  %v1729_v45 = vadd.f32 %v1728_v25, %v1670_v62  ;;  %v1625_v14 = vadd.f32 %v1624_v28, %v7222_v56  ;;  %v6272_v25 = vld [vmem:[#allocation8 + $0x50] sm:$0xff]  }
 0x1cb   :  { %v1674_v55 = vmul.f32 %v7250_v43, %v7250_v43  ;;  %v1272_v30 = vadd.f32 %v7017_v3, %v7095_v34  ;;  %v1766_v24 = vadd.f32 %v1765_v1, %v1671_v13  ;;  %v1589_v33 = vadd.f32 %v1588_v61, %v7230_v6  ;;  %v11064_v34 = vld [vmem:[#allocation64_spill] sm:$0xff]  ;;  %5966 = vmatprep.subr.bf16.mxu1 %v6272_v25 }
 0x1cc   :  { %v7242_v63 = vpop.f32.mrf.mxu1  ;;  %v7244_v5 = vpop.f32.mrf.mxu0  ;;  %v7285_v29 = vadd.f32 %v6991_v50, %v1270_v17  ;;  %v1280_v12 = vadd.f32 %v7102_v36, %v7112_v38  ;;  %v1730_v28 = vadd.f32 %v1729_v45, %v1672_v49  ;;  %v1675_v40 = vmul.f32 %v7264_v21, %v7264_v21  ;;  %v6273_v50 = vld [vmem:[#allocation8 + $0x10] sm:$0xff]  }
 0x1cd   :  { %v1676_v3 = vmul.f32 %v7267_v4, %v7267_v4  ;;  %v7298_v61 = vadd.f32 %v11064_v34, %v1266_v11  ;;  %v1626_v13 = vadd.f32 %v1625_v14, %v7240_v44  ;;  %v1767_v17 = vadd.f32 %v1766_v24, %v1673_v32  ;;  %5967 = vmatpush3.bf16.msra.mxu1 %v6273_v50  ;;  %v6274_v32 = vld [vmem:[#allocation8 + $0x48] sm:$0xff]  }
 0x1ce   :  { %v7257_v42 = vpop.f32.mrf.mxu1  ;;  %v7259_v52 = vpop.f32.mrf.mxu0  ;;  %v7302_v36 = vadd.f32 %v7047_v20, %v1274_v39  ;;  %v1284_v38 = vadd.f32 %v7162_v7, %v7124_v47  ;;  %v1590_v1 = vadd.f32 %v1589_v33, %v7250_v43  ;;  %v1731_v45 = vadd.f32 %v1730_v28, %v1674_v55  ;;  %v6275_v20 = vld [vmem:[#allocation8 + $0x8] sm:$0xff]   ;;  %5968 = vmatprep.subr.bf16.mxu1 %v6274_v32 }
 0x1cf   :  { %v7310_v11 = vadd.f32 %v7019_v10, %v1272_v30  ;;  %v1276_v14 = vadd.f32 %v7069_v16, %v7108_v37  ;;  %v1627_v39 = vadd.f32 %v1626_v13, %v7264_v21  ;;  %v1678_v47 = vmul.f32 %v7285_v29, %v7285_v29  ;;  %v6276_v30 = vld [vmem:[#allocation8 + $0x40] sm:$0xff]  }
 0x1d0   :  { %v1299_v19 = vpop.f32.mrf.mxu1  ;;  %v7276_v22 = vpop.f32.mrf.mxu0  ;;  %v7318_v7 = vadd.f32 %v7104_v60, %v1280_v12  ;;  %v1290_v55 = vadd.f32 %v7207_v15, %v7140_v48  ;;  %v1768_v16 = vadd.f32 %v1767_v17, %v1675_v40  ;;  %v1591_v37 = vadd.f32 %v1590_v1, %v7267_v4  ;;  %v6277_v17 = vld [vmem:[#allocation8] sm:$0xff]  }
 0x1d1   :  { %v1732_v33 = vadd.f32 %v1731_v45, %v1676_v3  ;;  %v1677_v25 = vmul.f32 %v7298_v61, %v7298_v61  ;;  %v1628_v28 = vadd.f32 %v1627_v39, %v7298_v61  ;;  %v1680_v60 = vmul.f32 %v7302_v36, %v7302_v36  ;;  %5969 = vmatpush3.bf16.msra.mxu1 %v6275_v20 }
 0x1d2   :  { %v7289_v35 = vpop.f32.mrf.mxu1  ;;  %v7291_v62 = vpop.f32.mrf.mxu0  ;;  %v7333_v15 = vadd.f32 %v7164_v59, %v1284_v38  ;;  %v1294_v48 = vadd.f32 %v7242_v63, %v7148_v53  ;;  %v1592_v34 = vadd.f32 %v1591_v37, %v7285_v29  ;;  %v1679_v3 = vmul.f32 %v7310_v11, %v7310_v11  ;;  %5970 = vmatprep.subr.bf16.mxu1 %v6276_v30 }
 0x1d3   :  { %v7341_v50 = vadd.f32 %v7071_v27, %v1276_v14  ;;  %v1282_v13 = vadd.f32 %v7130_v46, %v7120_v2  ;;  %v1733_v59 = vadd.f32 %v1732_v33, %v1678_v47  ;;  %v1682_v38 = vmul.f32 %v7318_v7, %v7318_v7 }
 0x1d4   :  { %v1303_v49 = vpop.f32.mrf.mxu1  ;;  %v7306_v23 = vpop.f32.mrf.mxu0  ;;  %v7348_v53 = vadd.f32 %v7209_v26, %v1290_v55  ;;  %v1300_v63 = vadd.f32 %v1299_v19, %v7156_v54  ;;  %v1769_v27 = vadd.f32 %v1768_v16, %v1677_v25  ;;  %v1629_v14 = vadd.f32 %v1628_v28, %v7310_v11  ;;  %v11065_v28 = vld [vmem:[#allocation53_spill] sm:$0xff] }
 0x1d5   :  { %v1593_v2 = vadd.f32 %v1592_v34, %v7302_v36  ;;  %v1286_v46 = vadd.f32 %v7186_v9, %v7136_v57  ;;  %v1734_v32 = vadd.f32 %v1733_v59, %v1680_v60  ;;  %v1684_v26 = vmul.f32 %v7333_v15, %v7333_v15  ;;  %5971 = vmatpush3.bf16.msra.mxu1 %v6277_v17  ;;  %v11066_v60 = vld [vmem:[#allocation82_spill] sm:$0xff] }
 0x1d6   :  { %v7322_v24 = vpop.f32.mrf.mxu1  ;;  %v7324_v10 = vpop.f32.mrf.mxu0  ;;  %v7362_v20 = vadd.f32 %v7244_v5, %v1294_v48  ;;  %v1304_v19 = vadd.f32 %v1303_v49, %v7178_v58  ;;  %v1770_v47 = vadd.f32 %v1769_v27, %v1679_v3  ;;  %v1681_v55 = vmul.f32 %v7341_v50, %v7341_v50  ;;  %v11068_v27 = vld [vmem:[#allocation83_spill] sm:$0xff] }
 0x1d7   :  { %v1594_v30 = vadd.f32 %v1593_v2, %v7318_v7  ;;  %v7369_v16 = vadd.f32 %v7132_v31, %v1282_v13  ;;  %v1735_v9 = vadd.f32 %v1734_v32, %v1682_v38  ;;  %v1686_v57 = vmul.f32 %v7348_v53, %v7348_v53 }
 0x1d8   :  { %v1309_v12 = vpop.f32.mrf.mxu1  ;;  %v1502_v40 = vpop.f32.mrf.mxu0  ;;  %v7374_v5 = vadd.f32 %v7276_v22, %v1300_v63  ;;  %v1630_v33 = vadd.f32 %v1629_v14, %v7341_v50  ;;  %v7382_v31 = vadd.f32 %v11065_v28, %v1286_v46  ;;  %v1292_v48 = vadd.f32 %v7224_v8, %v11066_v60 }
 0x1d9   :  { %v1310_v58 = vadd.f32 %v1309_v12, %v6977_v41  ;;  %v1595_v25 = vadd.f32 %v1594_v30, %v7333_v15  ;;  %v1736_v34 = vadd.f32 %v1735_v9, %v1684_v26  ;;  %v1688_v22 = vmul.f32 %v7362_v20, %v7362_v20  ;;  %v11067_v41 = vld [vmem:[#allocation66_spill] sm:$0xff]  ;;  %v11071_v9 = vld [vmem:[#allocation51_spill] sm:$0xff] }
 0x1da   :  { %v7351_v1 = vpop.f32.mrf.mxu1  ;;  %v7353_v45 = vpop.f32.mrf.mxu0  ;;  %v7389_v3 = vadd.f32 %v7306_v23, %v1304_v19  ;;  %v1771_v59 = vadd.f32 %v1770_v47, %v1681_v55  ;;  %v1683_v38 = vmul.f32 %v7369_v16, %v7369_v16  ;;  %v1296_v8 = vadd.f32 %v7257_v42, %v11068_v27  ;;  %v11069_v23 = vld [vmem:[#allocation68_spill] sm:$0xff] }
 0x1db   :  { %v1596_v63 = vadd.f32 %v1595_v25, %v7348_v53  ;;  %v1737_v14 = vadd.f32 %v1736_v34, %v1686_v57  ;;  %v1690_v2 = vmul.f32 %v7374_v5, %v7374_v5  ;;  %v7399_v46 = vadd.f32 %v1502_v40, %v1310_v58 }
 0x1dc   :  { %v1313_v54 = vpop.f32.mrf.mxu1  ;;  %v1506_v39 = vpop.f32.mrf.mxu0  ;;  %v1685_v47 = vmul.f32 %v7382_v31, %v7382_v31  ;;  %v7408_v55 = vadd.f32 %v7226_v0, %v1292_v48  ;;  %v1302_v40 = vadd.f32 %v7289_v35, %v11071_v9  ;;  %v1692_v57 = vmul.f32 %v7389_v3, %v7389_v3  ;;  %v11073_v48 = vld [vmem:[#allocation70_spill] sm:$0xff] }
 0x1dd   :  { %v1314_v12 = vadd.f32 %v1313_v54, %v11067_v41  ;;  %v1631_v54 = vadd.f32 %v1630_v33, %v7369_v16  ;;  %v1597_v42 = vadd.f32 %v1596_v63, %v7362_v20  ;;  %v1738_v30 = vadd.f32 %v1737_v14, %v1688_v22  ;;  %v11074_v22 = vld [vmem:[#allocation41_spill] sm:$0xff] }
 0x1de   :  { %v1315_v49 = vpop.f32.mrf.mxu1  ;;  %v7377_v37 = vpop.f32.mrf.mxu0  ;;  %11070 = vst [vmem:[#allocation55_spill] sm:$0xff] %v7408_v55  ;;  %v1772_v33 = vadd.f32 %v1771_v59, %v1683_v38  ;;  %v7418_v60 = vadd.f32 %v7259_v52, %v1296_v8  ;;  %v1694_v35 = vmul.f32 %v7399_v46, %v7399_v46  ;;  %v1687_v52 = vmul.f32 %v7408_v55, %v7408_v55 }
 0x1df   :  { %v7415_v58 = vadd.f32 %v1506_v39, %v1314_v12  ;;  %v1598_v0 = vadd.f32 %v1597_v42, %v7374_v5  ;;  %v1739_v41 = vadd.f32 %v1738_v30, %v1690_v2  ;;  %v1632_v59 = vadd.f32 %v1631_v54, %v7382_v31  ;;  %v11077_v30 = vld [vmem:[#allocation72_spill] sm:$0xff] }
 0x1e0   :  { %v1319_v13 = vpop.f32.mrf.mxu1  ;;  %v1512_v17 = vpop.f32.mrf.mxu0  ;;  %11072 = vst [vmem:[#allocation45_spill] sm:$0xff] %v7418_v60  ;;  %v1773_v38 = vadd.f32 %v1772_v33, %v1685_v47  ;;  %v7433_v8 = vadd.f32 %v7291_v62, %v1302_v40  ;;  %v1689_v54 = vmul.f32 %v7418_v60, %v7418_v60 }
 0x1e1   :  { %v1320_v32 = vadd.f32 %v1319_v13, %v11069_v23  ;;  %v1306_v13 = vadd.f32 %v7322_v24, %v11074_v22  ;;  %v1599_v27 = vadd.f32 %v1598_v0, %v7389_v3  ;;  %v1740_v14 = vadd.f32 %v1739_v41, %v1692_v57  ;;  %v11076_v24 = vld [vmem:[#allocation65_spill] sm:$0xff]  ;;  %v11079_v57 = vld [vmem:[#allocation67_spill] sm:$0xff] }
 0x1e2   :  { %v1321_v26 = vpop.f32.mrf.mxu1  ;;  %v7402_v19 = vpop.f32.mrf.mxu0  ;;  %11075 = vst [vmem:[#allocation57_spill] sm:$0xff] %v7433_v8  ;;  %v1312_v2 = vadd.f32 %v7351_v1, %v11076_v24  ;;  %v1316_v1 = vadd.f32 %v1315_v49, %v11079_v57  ;;  %v1774_v41 = vadd.f32 %v1773_v38, %v1687_v52  ;;  %v11081_v49 = vld [vmem:[#allocation69_spill] sm:$0xff]  ;;  %v11082_v52 = vld [vmem:[#allocation74_spill] sm:$0xff] }
 0x1e3   :  { %v7426_v63 = vadd.f32 %v1512_v17, %v1320_v32  ;;  %v1696_v17 = vmul.f32 %v7415_v58, %v7415_v58  ;;  %v1600_v47 = vadd.f32 %v1599_v27, %v7399_v46  ;;  %v7446_v62 = vadd.f32 %v7324_v10, %v1306_v13 }
 0x1e4   :  { %v1323_v25 = vpop.f32.mrf.mxu1  ;;  %v1516_v28 = vpop.f32.mrf.mxu0  ;;  %v1741_v40 = vadd.f32 %v1740_v14, %v1694_v35  ;;  %v7458_v10 = vadd.f32 %v7353_v45, %v1312_v2  ;;  %v1322_v35 = vadd.f32 %v1321_v26, %v11081_v49  ;;  %v7469_v45 = vadd.f32 %v7377_v37, %v1316_v1 }
 0x1e5   :  { %v1324_v34 = vadd.f32 %v1323_v25, %v11073_v48  ;;  %11078 = vst [vmem:[#allocation52_spill] sm:$0xff] %v7446_v62  ;;  %v1698_v25 = vmul.f32 %v7426_v63, %v7426_v63  ;;  %v1633_v48 = vadd.f32 %v1632_v59, %v7408_v55  ;;  %v1601_v22 = vadd.f32 %v1600_v47, %v7415_v58 }
 0x1e6   :  { %v1325_v39 = vpop.f32.mrf.mxu1  ;;  %v1518_v12 = vpop.f32.mrf.mxu0  ;;  %11080 = vst [vmem:[#allocation54_spill] sm:$0xff] %v7458_v10  ;;  %v1742_v13 = vadd.f32 %v1741_v40, %v1696_v17  ;;  %v1693_v47 = vmul.f32 %v7446_v62, %v7446_v62  ;;  %11083 = vst [vmem:[#allocation56_spill] sm:$0xff] %v7469_v45  ;;  %v7481_v37 = vadd.f32 %v7402_v19, %v1322_v35 }
 0x1e7   :  { %v7442_v42 = vadd.f32 %v1516_v28, %v1324_v34  ;;  %v1691_v34 = vmul.f32 %v7433_v8, %v7433_v8  ;;  %v1634_v24 = vadd.f32 %v1633_v48, %v7418_v60  ;;  %v1602_v59 = vadd.f32 %v1601_v22, %v7426_v63  ;;  %v1582_v60 = vld [vmem:[#allocation5 + $0x1] ss:$8 sm:$0x3] }
 0x1e8   :  { %v1329_v23 = vpop.f32.mrf.mxu1  ;;  %v1522_v32 = vpop.f32.mrf.mxu0  ;;  %v1743_v2 = vadd.f32 %v1742_v13, %v1698_v25  ;;  %v1695_v22 = vmul.f32 %v7458_v10, %v7458_v10  ;;  %11085 = vst [vmem:[#allocation58_spill] sm:$0xff] %v7481_v37 }
 0x1e9   :  { %v1330_v9 = vadd.f32 %v1329_v23, %v11077_v30  ;;  %v1700_v38 = vmul.f32 %v7442_v42, %v7442_v42  ;;  %v1603_v30 = vadd.f32 %v1602_v59, %v7442_v42 }
 0x1ea   :  { %v1331_v33 = vpop.f32.mrf.mxu1  ;;  %v1524_v0 = vpop.f32.mrf.mxu0 }
 0x1eb   :  { %v7453_v28 = vadd.f32 %v1522_v32, %v1330_v9  ;;  %v1775_v32 = vadd.f32 %v1774_v41, %v1689_v54  ;;  %v11084_v9 = vld [vmem:[#allocation71_spill] sm:$0xff]  ;;  %v1635_v54 = vadd.f32 %v1634_v24, %v7433_v8  ;;  %v1744_v13 = vadd.f32 %v1743_v2, %v1700_v38 }
 0x1ec   :  { %v1333_v27 = vpop.f32.mrf.mxu1  ;;  %v1526_v14 = vpop.f32.mrf.mxu0  ;;  %v1326_v40 = vadd.f32 %v1325_v39, %v11084_v9 }
 0x1ed   :  { %v1334_v23 = vadd.f32 %v1333_v27, %v11082_v52  ;;  %v1702_v57 = vmul.f32 %v7453_v28, %v7453_v28  ;;  %v1776_v41 = vadd.f32 %v1775_v32, %v1691_v34  ;;  %v1604_v49 = vadd.f32 %v1603_v30, %v7453_v28  ;;  %v11086_v27 = vld [vmem:[#allocation76_spill] sm:$0xff]  ;;  %v11087_v52 = vld [vmem:[#allocation73_spill] sm:$0xff] }
 0x1ee   :  { %v1335_v26 = vpop.f32.mrf.mxu1  ;;  %v1528_v17 = vpop.f32.mrf.mxu0  ;;  %v1636_v59 = vadd.f32 %v1635_v54, %v7446_v62  ;;  %v1697_v34 = vmul.f32 %v7469_v45, %v7469_v45  ;;  %v7491_v32 = vadd.f32 %v1518_v12, %v1326_v40  ;;  %v11089_v54 = vld [vmem:[#allocation75_spill] sm:$0xff]  ;;  %v11090_v40 = vld [vmem:[#allocation78_spill] sm:$0xff] }
 0x1ef   :  { %v7475_v48 = vadd.f32 %v1526_v14, %v1334_v23  ;;  %v1777_v24 = vadd.f32 %v1776_v41, %v1693_v47  ;;  %v1332_v23 = vadd.f32 %v1331_v33, %v11087_v52  ;;  %v1745_v38 = vadd.f32 %v1744_v13, %v1702_v57  ;;  %v11092_v13 = vld [vmem:[#allocation23_spill] sm:$0xff] }
 0x1f0   :  { %v1339_v1 = vpop.f32.mrf.mxu1  ;;  %v1532_v25 = vpop.f32.mrf.mxu0  ;;  %11088 = vst [vmem:[#allocation59_spill] sm:$0xff] %v7491_v32  ;;  %v1637_v9 = vadd.f32 %v1636_v59, %v7458_v10  ;;  %v1699_v47 = vmul.f32 %v7481_v37, %v7481_v37  ;;  %v1336_v41 = vadd.f32 %v1335_v26, %v11089_v54  ;;  %v11094_v59 = vld [vmem:[#allocation77_spill] sm:$0xff] }
 0x1f1   :  { %v1704_v39 = vmul.f32 %v7475_v48, %v7475_v48  ;;  %v1340_v14 = vadd.f32 %v1339_v1, %v11086_v27  ;;  %v1605_v2 = vadd.f32 %v1604_v49, %v7475_v48  ;;  %v1778_v1 = vadd.f32 %v1777_v24, %v1695_v22 }
 0x1f2   :  { %v1341_v19 = vpop.f32.mrf.mxu1  ;;  %v1534_v35 = vpop.f32.mrf.mxu0  ;;  %v1638_v22 = vadd.f32 %v1637_v9, %v7469_v45  ;;  %v11098_v45 = vld [vmem:[#allocation24_spill] sm:$0xff] }
 0x1f3   :  { %v7494_v30 = vadd.f32 %v1532_v25, %v1340_v14  ;;  %v1746_v33 = vadd.f32 %v1745_v38, %v1704_v39  ;;  %v11091_v25 = vld [vmem:[#allocation43_spill] sm:$0xff]  ;;  %v7507_v14 = vadd.f32 %v1524_v0, %v1332_v23  ;;  %v1342_v24 = vadd.f32 %v1341_v19, %v11094_v59  ;;  %v11097_v59 = vld [vmem:[#allocation44_spill] sm:$0xff] }
 0x1f4   :  { %v1343_v27 = vpop.f32.mrf.mxu1  ;;  %v1536_v62 = vpop.f32.mrf.mxu0  ;;  %v1157_v49 = vadd.f32 %v11092_v13, %v11091_v25  ;;  %v1779_v10 = vadd.f32 %v1778_v1, %v1697_v34  ;;  %v1701_v39 = vmul.f32 %v7491_v32, %v7491_v32  ;;  %v11096_v13 = vld [vmem:[#allocation79_spill] sm:$0xff] }
 0x1f5   :  { %v1606_v52 = vadd.f32 %v1605_v2, %v7494_v30  ;;  %v1706_v12 = vmul.f32 %v7494_v30, %v7494_v30  ;;  %v1344_v57 = vadd.f32 %v1343_v27, %v11090_v40  ;;  %11093 = vst [vmem:[#allocation60_spill] sm:$0xff] %v7507_v14  ;;  %v1639_v27 = vadd.f32 %v1638_v22, %v7481_v37 }
 0x1f6   :  { %v1345_v26 = vpop.f32.mrf.mxu1  ;;  %v1538_v54 = vpop.f32.mrf.mxu0  ;;  %v7515_v40 = vadd.f32 %v1528_v17, %v1336_v41  ;;  %v1780_v23 = vadd.f32 %v1779_v10, %v1699_v47  ;;  %v1703_v17 = vmul.f32 %v7507_v14, %v7507_v14  ;;  %v7526_v41 = vadd.f32 %v1534_v35, %v1342_v24  ;;  %v11100_v10 = vld [vmem:[#allocation25_spill] sm:$0xff]  ;;  %v11102_v24 = vld [vmem:[#allocation26_spill] sm:$0xff] }
 0x1f7   :  { %v1747_v38 = vadd.f32 %v1746_v33, %v1706_v12  ;;  %v7512_v2 = vadd.f32 %v1536_v62, %v1344_v57  ;;  %v1346_v8 = vadd.f32 %v1345_v26, %v11096_v13  ;;  %v1159_v33 = vadd.f32 %v11098_v45, %v11097_v59 }
 0x1f8   :  { %11095 = vst [vmem:[#allocation61_spill] sm:$0xff] %v7515_v40  ;;  %v1349_v9 = vpop.f32.mrf.mxu1  ;;  %v1542_v0 = vpop.f32.mrf.mxu0  ;;  %v1640_v62 = vadd.f32 %v1639_v27, %v7491_v32  ;;  %11099 = vst [vmem:[#allocation62_spill] sm:$0xff] %v7526_v41  ;;  %v1161_v47 = vadd.f32 %v11100_v10, %v11091_v25  ;;  %v1705_v45 = vmul.f32 %v7515_v40, %v7515_v40 }
 0x1f9   :  { %v1607_v19 = vadd.f32 %v1606_v52, %v7512_v2  ;;  %v1708_v34 = vmul.f32 %v7512_v2, %v7512_v2  ;;  %v1350_v1 = vadd.f32 %v1349_v9, %v1157_v49  ;;  %v1781_v52 = vadd.f32 %v1780_v23, %v1701_v39 }
 0x1fa   :  { %v1351_v12 = vpop.f32.mrf.mxu1  ;;  %v1544_v57 = vpop.f32.mrf.mxu0  ;;  %v1641_v49 = vadd.f32 %v1640_v62, %v7507_v14  ;;  %v7535_v27 = vadd.f32 %v1538_v54, %v1346_v8  ;;  %v1163_v32 = vadd.f32 %v11102_v24, %v11097_v59 }
 0x1fb   :  { %v1748_v22 = vadd.f32 %v1747_v38, %v1708_v34  ;;  %v7530_v26 = vadd.f32 %v1542_v0, %v1350_v1  ;;  %v1352_v13 = vadd.f32 %v1351_v12, %v1159_v33  ;;  %v1782_v0 = vadd.f32 %v1781_v52, %v1703_v17  ;;  %v11104_v33 = vld [vmem:[#allocation27_spill] sm:$0xff] }
 0x1fc   :  { %11101 = vst [vmem:[#allocation63_spill] sm:$0xff] %v7535_v27  ;;  %v1353_v9 = vpop.f32.mrf.mxu1  ;;  %v1546_v35 = vpop.f32.mrf.mxu0  ;;  %v1642_v23 = vadd.f32 %v1641_v49, %v7515_v40  ;;  %v1707_v34 = vmul.f32 %v7526_v41, %v7526_v41  ;;  %v1167_v62 = vadd.f32 %v11104_v33, %v11091_v25  ;;  %v1709_v17 = vmul.f32 %v7535_v27, %v7535_v27 }
 0x1fd   :  { %v1608_v37 = vadd.f32 %v1607_v19, %v7530_v26  ;;  %v1710_v39 = vmul.f32 %v7530_v26, %v7530_v26  ;;  %v1354_v38 = vadd.f32 %v1353_v9, %v1161_v47  ;;  %v7545_v8 = vadd.f32 %v1544_v57, %v1352_v13 }
 0x1fe   :  { %v1355_v54 = vpop.f32.mrf.mxu1  ;;  %v1548_v1 = vpop.f32.mrf.mxu0  ;;  %v1783_v24 = vadd.f32 %v1782_v0, %v1705_v45  ;;  %v1643_v47 = vadd.f32 %v1642_v23, %v7526_v41  ;;  %v11107_v23 = vld [vmem:[#allocation29_spill] sm:$0xff] }
 0x1ff   :  { %11103 = vst [vmem:[#allocation64_spill] sm:$0xff] %v7545_v8  ;;  %v1749_v12 = vadd.f32 %v1748_v22, %v1710_v39  ;;  %v7549_v10 = vadd.f32 %v1546_v35, %v1354_v38  ;;  %v1356_v19 = vadd.f32 %v1355_v54, %v1163_v32  ;;  %v11106_v22 = vld [vmem:[#allocation28_spill] sm:$0xff]  ;;  %v1711_v39 = vmul.f32 %v7545_v8, %v7545_v8 }
 0x200   :  { %v1359_v52 = vpop.f32.mrf.mxu1  ;;  %v1552_v49 = vpop.f32.mrf.mxu0  ;;  %v1169_v35 = vadd.f32 %v11106_v22, %v11097_v59  ;;  %v1784_v32 = vadd.f32 %v1783_v24, %v1707_v34  ;;  %v1644_v45 = vadd.f32 %v1643_v47, %v7535_v27 }
 0x201   :  { %v1609_v57 = vadd.f32 %v1608_v37, %v7549_v10  ;;  %v1712_v13 = vmul.f32 %v7549_v10, %v7549_v10  ;;  %v7557_v9 = vadd.f32 %v1548_v1, %v1356_v19  ;;  %v1360_v33 = vadd.f32 %v1359_v52, %v1167_v62  ;;  %v11108_v52 = vld [vmem:[#allocation30_spill] sm:$0xff] }
 0x202   :  { %v1361_v38 = vpop.f32.mrf.mxu1  ;;  %v1554_v0 = vpop.f32.mrf.mxu0  ;;  %v1171_v37 = vadd.f32 %v11107_v23, %v11091_v25  ;;  %v1785_v1 = vadd.f32 %v1784_v32, %v1709_v17  ;;  %v1645_v62 = vadd.f32 %v1644_v45, %v7545_v8  ;;  %v1173_v22 = vadd.f32 %v11108_v52, %v11097_v59 }
 0x203   :  { %11105 = vst [vmem:[#allocation53_spill] sm:$0xff] %v7557_v9  ;;  %v1750_v54 = vadd.f32 %v1749_v12, %v1712_v13  ;;  %v7566_v41 = vadd.f32 %v1552_v49, %v1360_v33  ;;  %v1713_v19 = vmul.f32 %v7557_v9, %v7557_v9  ;;  %v1362_v34 = vadd.f32 %v1361_v38, %v1169_v35  ;;  %v11110_v35 = vld [vmem:[#allocation31_spill] sm:$0xff] }
 0x204   :  { %v1363_v24 = vpop.f32.mrf.mxu1  ;;  %v1556_v47 = vpop.f32.mrf.mxu0  ;;  %v1786_v49 = vadd.f32 %v1785_v1, %v1711_v39  ;;  %v1646_v17 = vadd.f32 %v1645_v62, %v7557_v9  ;;  %v1177_v45 = vadd.f32 %v11110_v35, %v11091_v25 }
 0x205   :  { %v1610_v40 = vadd.f32 %v1609_v57, %v7566_v41  ;;  %v1714_v23 = vmul.f32 %v7566_v41, %v7566_v41  ;;  %v1364_v12 = vadd.f32 %v1363_v24, %v1171_v37  ;;  %v7577_v13 = vadd.f32 %v1554_v0, %v1362_v34 }
 0x206   :  { %v1365_v33 = vpop.f32.mrf.mxu1  ;;  %v1558_v32 = vpop.f32.mrf.mxu0  ;;  %v1787_v8 = vadd.f32 %v1786_v49, %v1713_v19 }
 0x207   :  { %11109 = vst [vmem:[#allocation82_spill] sm:$0xff] %v7577_v13  ;;  %v1751_v38 = vadd.f32 %v1750_v54, %v1714_v23  ;;  %v7581_v14 = vadd.f32 %v1556_v47, %v1364_v12  ;;  %v1366_v52 = vadd.f32 %v1365_v33, %v1173_v22  ;;  %v1647_v57 = vadd.f32 %v1646_v17, %v7577_v13  ;;  %v11112_v54 = vld [vmem:[#allocation32_spill] sm:$0xff]  ;;  %v11113_v12 = vld [vmem:[#allocation33_spill] sm:$0xff] }
 0x208   :  { %v1715_v37 = vmul.f32 %v7577_v13, %v7577_v13  ;;  %v1369_v39 = vpop.f32.mrf.mxu1  ;;  %v1562_v1 = vpop.f32.mrf.mxu0  ;;  %v1179_v47 = vadd.f32 %v11112_v54, %v11097_v59  ;;  %v1181_v49 = vadd.f32 %v11113_v12, %v11091_v25 }
 0x209   :  { %v1611_v0 = vadd.f32 %v1610_v40, %v7581_v14  ;;  %v1716_v62 = vmul.f32 %v7581_v14, %v7581_v14  ;;  %v7589_v34 = vadd.f32 %v1558_v32, %v1366_v52  ;;  %v1370_v24 = vadd.f32 %v1369_v39, %v1177_v45  ;;  %v11114_v45 = vld [vmem:[#allocation35_spill] sm:$0xff] }
 0x20a   :  { %v1788_v22 = vadd.f32 %v1787_v8, %v1715_v37  ;;  %v1371_v19 = vpop.f32.mrf.mxu1  ;;  %v1564_v23 = vpop.f32.mrf.mxu0  ;;  %v1183_v52 = vadd.f32 %v11114_v45, %v11097_v59 }
 0x20b   :  { %11111 = vst [vmem:[#allocation66_spill] sm:$0xff] %v7589_v34  ;;  %v1752_v17 = vadd.f32 %v1751_v38, %v1716_v62  ;;  %v7595_v33 = vadd.f32 %v1562_v1, %v1370_v24  ;;  %v1717_v40 = vmul.f32 %v7589_v34, %v7589_v34  ;;  %v1372_v35 = vadd.f32 %v1371_v19, %v1179_v47  ;;  %v11116_v24 = vld [vmem:[#allocation36_spill] sm:$0xff] }
 0x20c   :  { %v1373_v13 = vpop.f32.mrf.mxu1  ;;  %v1566_v32 = vpop.f32.mrf.mxu0  ;;  %v1648_v54 = vadd.f32 %v1647_v57, %v7589_v34  ;;  %v1187_v47 = vadd.f32 %v11116_v24, %v11091_v25 }
 0x20d   :  { %v1612_v39 = vadd.f32 %v1611_v0, %v7595_v33  ;;  %v1718_v8 = vmul.f32 %v7595_v33, %v7595_v33  ;;  %v1374_v37 = vadd.f32 %v1373_v13, %v1181_v49  ;;  %v7605_v38 = vadd.f32 %v1564_v23, %v1372_v35 }
 0x20e   :  { %v1375_v1 = vpop.f32.mrf.mxu1  ;;  %v1568_v62 = vpop.f32.mrf.mxu0  ;;  %v1789_v45 = vadd.f32 %v1788_v22, %v1717_v40 }
 0x20f   :  { %11115 = vst [vmem:[#allocation83_spill] sm:$0xff] %v7605_v38  ;;  %v1753_v19 = vadd.f32 %v1752_v17, %v1718_v8  ;;  %v7609_v12 = vadd.f32 %v1566_v32, %v1374_v37  ;;  %v1376_v9 = vadd.f32 %v1375_v1, %v1183_v52  ;;  %v1649_v0 = vadd.f32 %v1648_v54, %v7605_v38  ;;  %v11118_v17 = vld [vmem:[#allocation40_spill] sm:$0xff]  ;;  %v11119_v8 = vld [vmem:[#allocation42_spill] sm:$0xff] }
 0x210   :  { %v1719_v27 = vmul.f32 %v7605_v38, %v7605_v38  ;;  %v1379_v13 = vpop.f32.mrf.mxu1  ;;  %v1572_v49 = vpop.f32.mrf.mxu0  ;;  %v1189_v32 = vadd.f32 %v11118_v17, %v11097_v59  ;;  %v1191_v37 = vadd.f32 %v11119_v8, %v11091_v25 }
 0x211   :  { %v1613_v57 = vadd.f32 %v1612_v39, %v7609_v12  ;;  %v1720_v23 = vmul.f32 %v7609_v12, %v7609_v12  ;;  %v7617_v35 = vadd.f32 %v1568_v62, %v1376_v9  ;;  %v1380_v24 = vadd.f32 %v1379_v13, %v1187_v47  ;;  %v11120_v62 = vld [vmem:[#allocation46_spill] sm:$0xff] }
 0x212   :  { %v1790_v52 = vadd.f32 %v1789_v45, %v1719_v27  ;;  %v1381_v22 = vpop.f32.mrf.mxu1  ;;  %v1574_v40 = vpop.f32.mrf.mxu0  ;;  %v1193_v47 = vadd.f32 %v11120_v62, %v11097_v59 }
 0x213   :  { %11117 = vst [vmem:[#allocation68_spill] sm:$0xff] %v7617_v35  ;;  %v1754_v54 = vadd.f32 %v1753_v19, %v1720_v23  ;;  %v7623_v1 = vadd.f32 %v1572_v49, %v1380_v24  ;;  %v1721_v39 = vmul.f32 %v7617_v35, %v7617_v35  ;;  %v1382_v38 = vadd.f32 %v1381_v22, %v1189_v32 }
 0x214   :  { %v1383_v34 = vpop.f32.mrf.mxu1  ;;  %v1576_v9 = vpop.f32.mrf.mxu0  ;;  %v1650_v25 = vadd.f32 %v1649_v0, %v7617_v35 }
 0x215   :  { %v1614_v13 = vadd.f32 %v1613_v57, %v7623_v1  ;;  %v1722_v27 = vmul.f32 %v7623_v1, %v7623_v1  ;;  %v1384_v45 = vadd.f32 %v1383_v34, %v1191_v37  ;;  %v7633_v19 = vadd.f32 %v1574_v40, %v1382_v38 }
 0x216   :  { %v1385_v49 = vpop.f32.mrf.mxu1  ;;  %v1791_v32 = vadd.f32 %v1790_v52, %v1721_v39  ;;  %v1578_v57 = vpop.f32.mrf.mxu0 }
 0x217   :  { %11121 = vst [vmem:[#allocation51_spill] sm:$0xff] %v7633_v19  ;;  %v1755_v23 = vadd.f32 %v1754_v54, %v1722_v27  ;;  %v7635_v24 = vadd.f32 %v1576_v9, %v1384_v45  ;;  %v1386_v17 = vadd.f32 %v1385_v49, %v1193_v47  ;;  %v1651_v22 = vadd.f32 %v1650_v25, %v7633_v19 }
 0x218   :  { %v1723_v59 = vmul.f32 %v7633_v19, %v7633_v19 }
 0x219   :  { %v1615_v8 = vadd.f32 %v1614_v13, %v7635_v24  ;;  %v1724_v34 = vmul.f32 %v7635_v24, %v7635_v24  ;;  %v7643_v0 = vadd.f32 %v1578_v57, %v1386_v17 }
 0x21a   :  { %v1792_v38 = vadd.f32 %v1791_v32, %v1723_v59 }
 0x21b   :  { %v1616_v40 = vrot.slane %v1615_v8, 4  ;;  %v1756_v37 = vadd.f32 %v1755_v23, %v1724_v34  ;;  %v1652_v54 = vadd.f32 %v1651_v22, %v7643_v0  ;;  %v1725_v52 = vmul.f32 %v7643_v0, %v7643_v0 }
 0x21d   :  { %v1617_v39 = vadd.f32 %v1616_v40, %v1615_v8  ;;  %v1757_v9 = vrot.slane %v1756_v37, 4  ;;  %v1653_v62 = vrot.slane %v1652_v54, 4  ;;  %v1793_v47 = vadd.f32 %v1792_v38, %v1725_v52  ;;  %v1584_v52 = vld [vmem:[#allocation5 + $0x2] ss:$8 sm:$0x3] }
 0x21f   :  { %v1618_v27 = vrot.slane %v1617_v39, 2  ;;  %v1758_v45 = vadd.f32 %v1757_v9, %v1756_v37  ;;  %v1654_v13 = vadd.f32 %v1653_v62, %v1652_v54  ;;  %v1794_v25 = vrot.slane %v1793_v47, 4  ;;  %v11122_v9 = vld [vmem:[#allocation37_spill] sm:$0xff] }
 0x221   :  { %v1619_v49 = vadd.f32 %v1618_v27, %v1617_v39  ;;  %v1759_v19 = vrot.slane %v1758_v45, 2  ;;  %v1655_v17 = vrot.slane %v1654_v13, 2  ;;  %v1795_v57 = vadd.f32 %v1794_v25, %v1793_v47  ;;  %v11123_v47 = vld [vmem:[#allocation38_spill] sm:$0xff] }
 0x222   :  { %v7658_v27 = vrot.slane %v1582_v60, %v11123_v47 }
 0x223   :  { %v1620_v32 = vrot.slane %v1619_v49, 1  ;;  %v1760_v59 = vadd.f32 %v1759_v19, %v1758_v45  ;;  %v1656_v23 = vadd.f32 %v1655_v17, %v1654_v13  ;;  %v1796_v34 = vrot.slane %v1795_v57, 2  ;;  %v11127_v13 = vld [vmem:[#allocation47_spill] sm:$0xff]  ;;  %v11152_v17 = vld [vmem:[#allocation62_spill] sm:$0xff] }
 0x224   :  { %v7655_v19 = vrot.slane %v1582_v60, %v11122_v9  ;;  %11124 = vst [vmem:[#allocation70_spill] sm:$0xff] %v7658_v27  ;;  %v7661_v45 = vrot.slane %v1584_v52, %v11122_v9  ;;  %v11129_v60 = vld [vmem:[#allocation49_spill] sm:$0xff] }
 0x225   :  { %v1621_v22 = vadd.f32 %v1620_v32, %v1619_v49  ;;  %v1761_v35 = vrot.slane %v1760_v59, 1  ;;  %v1657_v40 = vrot.slane %v1656_v23, 1  ;;  %v1797_v38 = vadd.f32 %v1796_v34, %v1795_v57  ;;  %v11128_v49 = vld [vmem:[#allocation80_spill] sm:$0xff]  ;;  %v11151_v34 = vld [vmem:[#allocation61_spill] sm:$0xff] }
 0x226   :  { %11125 = vst [vmem:[#allocation41_spill] sm:$0xff] %v7661_v45  ;;  %v11146_v45 = vld [vmem:[#allocation58_spill] sm:$0xff] }
 0x227   :  { %v7648_v55 = vmul.f32 0.00390625, %v1621_v22  ;;  %v1762_v8 = vadd.f32 %v1761_v35, %v1760_v59  ;;  %v7664_v35 = vrot.slane %v1584_v52, %v11123_v47  ;;  %v1658_v57 = vadd.f32 %v1657_v40, %v1656_v23 }
 0x228   :  { %v1798_v32 = vrot.slane %v1797_v38, 1 }
 0x229   :  { %v1800_v37 = vmul.f32 0.00390625, %v1762_v8  ;;  %v1802_v54 = vmul.f32 %v7648_v55, %v7648_v55  ;;  %11126 = vst [vmem:[#allocation65_spill] sm:$0xff] %v7664_v35  ;;  %v7708_v23 = vmul.f32 0.00390625, %v1658_v57  ;;  %v1834_v22 = vsub.f32 %v7362_v20, %v7648_v55 }
 0x22a   :  { %v1799_v40 = vadd.f32 %v1798_v32, %v1797_v38  ;;  %v1836_v8 = vsub.f32 %v7374_v5, %v7648_v55  ;;  %v1838_v52 = vsub.f32 %v7389_v3, %v7648_v55  ;;  %v1844_v20 = vsub.f32 %v7426_v63, %v7648_v55  ;;  %v11131_v38 = vld [vmem:[#allocation81_spill] sm:$0xff] }
 0x22b   :  { %v1804_v62 = vsub.f32 %v1800_v37, %v1802_v54  ;;  %v1803_v57 = vmul.f32 %v7708_v23, %v7708_v23  ;;  %v1846_v5 = vsub.f32 %v7442_v42, %v7648_v55  ;;  %v1848_v3 = vsub.f32 %v7453_v28, %v7648_v55 }
 0x22c   :  { %v11153_v25 = vsub.f32 %v7635_v24, %v7648_v55  ;;  %v11154_v42 = vsub.f32 %v11127_v13, %v7648_v55  ;;  %v11155_v39 = vsub.f32 %v11128_v49, %v7648_v55  ;;  %v11156_v47 = vsub.f32 %v7159_v51, %v7648_v55 }
 0x22d   :  { %v1806_v59 = vmax.f32 %v1804_v62, 0.0  ;;  %v1832_v62 = vsub.f32 %v7348_v53, %v7648_v55  ;;  %v1842_v53 = vsub.f32 %v7415_v58, %v7648_v55  ;;  %v11133_v58 = vld [vmem:[#allocation50_spill] sm:$0xff]  ;;  %v11157_v35 = vsub.f32 %v11129_v60, %v7648_v55 }
 0x22e   :  { %v11159_v24 = vsub.f32 %v7214_v18, %v7648_v55  ;;  %v11161_v13 = vsub.f32 %v7230_v6, %v7648_v55  ;;  %v11163_v51 = vsub.f32 %v7250_v43, %v7648_v55  ;;  %v11168_v18 = vsub.f32 %v7285_v29, %v7648_v55 }
 0x22f   :  { %v1872_v54 = vadd.f32 1e-05, %v1806_v59  ;;  %v1801_v59 = vmul.f32 0.00390625, %v1799_v40  ;;  %v11130_v40 = vld [vmem:[#allocation48_spill] sm:$0xff]  ;;  %v11169_v6 = vsub.f32 %v7302_v36, %v7648_v55  ;;  %v11170_v43 = vsub.f32 %v7318_v7, %v7648_v55 }
 0x230   :  { %v11171_v29 = vsub.f32 %v7475_v48, %v7648_v55  ;;  %v11172_v36 = vsub.f32 %v7494_v30, %v7648_v55  ;;  %v11173_v7 = vsub.f32 %v7512_v2, %v7648_v55  ;;  %v11176_v48 = vsub.f32 %v7566_v41, %v7648_v55 }
 0x231   :  { %6470 = vrsqrt.f32 %v1872_v54  ;;  %v1830_v54 = vsub.f32 %v7333_v15, %v7648_v55  ;;  %v1840_v15 = vsub.f32 %v7399_v46, %v7648_v55  ;;  %v1805_v32 = vsub.f32 %v1801_v59, %v1803_v57  ;;  %v11132_v46 = vld [vmem:[#allocation39_spill] sm:$0xff] }
 0x232   :  { %v11149_v59 = vld [vmem:[#allocation59_spill] sm:$0xff]  ;;  %v11177_v30 = vsub.f32 %v7581_v14, %v7648_v55  ;;  %v11178_v2 = vsub.f32 %v7595_v33, %v7648_v55 }
 0x233   :  { %v1807_v28 = vmax.f32 %v1805_v32, 0.0  ;;  %v11134_v32 = vld [vmem:[#allocation55_spill] sm:$0xff] }
 0x235   :  { %v1873_v37 = vadd.f32 1e-05, %v1807_v28 }
 0x237   :  { %6472 = vrsqrt.f32 %v1873_v37 }
 0x23e   :  { %v6471_v28 = vpop.eup %6470 }
 0x23f   :  { %v1938_v63 = vmul.f32 %v6471_v28, %v11153_v25  ;;  %v1876_v37 = vmul.f32 %v6471_v28, %v11154_v42  ;;  %v1878_v27 = vmul.f32 %v6471_v28, %v11155_v39  ;;  %v7808_v57 = vmul.f32 %v6471_v28, %v11156_v47 }
 0x240   :  { %v7813_v9 = vmul.f32 %v6471_v28, %v11157_v35  ;;  %v7818_v25 = vmul.f32 %v6471_v28, %v11159_v24  ;;  %v7823_v49 = vmul.f32 %v6471_v28, %v11161_v13  ;;  %v7828_v39 = vmul.f32 %v6471_v28, %v11163_v51 }
 0x241   :  { %v7831_v47 = vmul.f32 %v7655_v19, %v1938_v63  ;;  %v11166_v35 = vsub.f32 %v7267_v4, %v7648_v55  ;;  %v1892_v42 = vmul.f32 %v6471_v28, %v11168_v18  ;;  %v1894_v24 = vmul.f32 %v6471_v28, %v11169_v6 }
 0x242   :  { %11158 = vst [vmem:[#allocation72_spill] sm:$0xff] %v7813_v9  ;;  %11160 = vst [vmem:[#allocation67_spill] sm:$0xff] %v7818_v25  ;;  %v1896_v13 = vmul.f32 %v6471_v28, %v11170_v43  ;;  %v1898_v51 = vmul.f32 %v6471_v28, %v1830_v54  ;;  %v1900_v63 = vmul.f32 %v6471_v28, %v1832_v62 }
 0x243   :  { %11162 = vst [vmem:[#allocation69_spill] sm:$0xff] %v7823_v49  ;;  %11164 = vst [vmem:[#allocation74_spill] sm:$0xff] %v7828_v39  ;;  %v7836_v60 = vmul.f32 %v6471_v28, %v11166_v35  ;;  %v1904_v39 = vmul.f32 %v6471_v28, %v1836_v8  ;;  %v1906_v49 = vmul.f32 %v6471_v28, %v1838_v52 }
 0x244   :  { %11165 = vst [vmem:[#allocation71_spill] sm:$0xff] %v7831_v47  ;;  %v1902_v47 = vmul.f32 %v6471_v28, %v1834_v22  ;;  %v1908_v4 = vmul.f32 %v6471_v28, %v1840_v15  ;;  %v1910_v35 = vmul.f32 %v6471_v28, %v1842_v53  ;;  %v1914_v25 = vmul.f32 %v6471_v28, %v1846_v5 }
 0x245   :  { %11167 = vst [vmem:[#allocation76_spill] sm:$0xff] %v7836_v60  ;;  %v1912_v60 = vmul.f32 %v6471_v28, %v1844_v20  ;;  %v1916_v9 = vmul.f32 %v6471_v28, %v1848_v3  ;;  %v1918_v18 = vmul.f32 %v6471_v28, %v11171_v29  ;;  %v1920_v6 = vmul.f32 %v6471_v28, %v11172_v36 }
 0x246   :  { %v1922_v62 = vmul.f32 %v6471_v28, %v11173_v7  ;;  %v11174_v22 = vsub.f32 %v7530_v26, %v7648_v55  ;;  %v11175_v52 = vsub.f32 %v7549_v10, %v7648_v55  ;;  %v1928_v15 = vmul.f32 %v6471_v28, %v11176_v48 }
 0x247   :  { %v1930_v53 = vmul.f32 %v6471_v28, %v11177_v30  ;;  %v1932_v20 = vmul.f32 %v6471_v28, %v11178_v2  ;;  %v11179_v26 = vsub.f32 %v7609_v12, %v7648_v55  ;;  %v11180_v10 = vsub.f32 %v7623_v1, %v7648_v55  ;;  %v6473_v55 = vpop.eup %6472 }
 0x248   :  { %v1924_v8 = vmul.f32 %v6471_v28, %v11174_v22  ;;  %v1926_v54 = vmul.f32 %v6471_v28, %v11175_v52  ;;  %v1951_v43 = vmul.f32 %v7655_v19, %v1876_v37  ;;  %v1953_v41 = vmul.f32 %v7655_v19, %v1878_v27 }
 0x249   :  { %v1934_v5 = vmul.f32 %v6471_v28, %v11179_v26  ;;  %v1936_v3 = vmul.f32 %v6471_v28, %v11180_v10  ;;  %v7880_v29 = vmul.f32 %v7655_v19, %v1892_v42  ;;  %v7883_v14 = vmul.f32 %v7655_v19, %v1894_v24 }
 0x24a   :  { %v7886_v33 = vmul.f32 %v7655_v19, %v1896_v13  ;;  %v7889_v12 = vmul.f32 %v7655_v19, %v1898_v51  ;;  %v7892_v36 = vmul.f32 %v7655_v19, %v1900_v63  ;;  %v7895_v1 = vmul.f32 %v7655_v19, %v1902_v47 }
 0x24b   :  { %v7898_v27 = vmul.f32 %v7655_v19, %v1904_v39  ;;  %v7901_v28 = vmul.f32 %v7655_v19, %v1906_v49  ;;  %v7904_v37 = vmul.f32 %v7655_v19, %v1908_v4  ;;  %v11181_v42 = vsub.f32 %v7643_v0, %v7708_v23 }
 0x24c   :  { %v7912_v13 = vmul.f32 %v7655_v19, %v1910_v35  ;;  %v7915_v47 = vmul.f32 %v7655_v19, %v1912_v60  ;;  %v7918_v39 = vmul.f32 %v7655_v19, %v1914_v25  ;;  %v7921_v49 = vmul.f32 %v7655_v19, %v1916_v9 }
 0x24d   :  { %v7909_v24 = vmul.f32 %v6473_v55, %v11181_v42  ;;  %v7924_v51 = vmul.f32 %v7655_v19, %v1918_v18  ;;  %v7927_v63 = vmul.f32 %v7655_v19, %v1920_v6  ;;  %v7930_v0 = vmul.f32 %v7655_v19, %v1922_v62 }
 0x24e   :  { %v7933_v4 = vmul.f32 %v7655_v19, %v1924_v8  ;;  %v7936_v60 = vmul.f32 %v7655_v19, %v1926_v54  ;;  %v7939_v25 = vmul.f32 %v7655_v19, %v1928_v15  ;;  %v7942_v9 = vmul.f32 %v7655_v19, %v1930_v53 }
 0x24f   :  { %11182 = vst [vmem:[#allocation73_spill] sm:$0xff] %v7909_v24  ;;  %v7945_v35 = vmul.f32 %v7655_v19, %v1932_v20  ;;  %v7948_v18 = vmul.f32 %v7655_v19, %v1934_v5  ;;  %v7951_v6 = vmul.f32 %v7655_v19, %v1936_v3  ;;  %v11190_v7 = vsub.f32 %v11130_v40, %v7708_v23  ;;  %v11229_v24 = vld [vmem:[#allocation66_spill] sm:$0xff] }
 0x250   :  { %11183 = vst [vmem:[#allocation75_spill] sm:$0xff] %v7933_v4  ;;  %11184 = vst [vmem:[#allocation78_spill] sm:$0xff] %v7936_v60  ;;  %v11191_v22 = vsub.f32 %v11131_v38, %v7708_v23  ;;  %v11192_v52 = vsub.f32 %v11132_v46, %v7708_v23  ;;  %v11193_v48 = vsub.f32 %v11133_v58, %v7708_v23 }
 0x251   :  { %11185 = vst [vmem:[#allocation43_spill] sm:$0xff] %v7939_v25  ;;  %11186 = vst [vmem:[#allocation23_spill] sm:$0xff] %v7942_v9  ;;  %v1877_v62 = vmul.f32 %v6473_v55, %v11190_v7  ;;  %v11194_v30 = vsub.f32 %v7222_v56, %v7708_v23  ;;  %v11195_v40 = vsub.f32 %v7240_v44, %v7708_v23  ;;  %v11203_v7 = vld [vmem:[#allocation45_spill] sm:$0xff]  ;;  %v11238_v9 = vld [vmem:[#allocation51_spill] sm:$0xff] }
 0x252   :  { %11187 = vst [vmem:[#allocation77_spill] sm:$0xff] %v7945_v35  ;;  %11188 = vst [vmem:[#allocation79_spill] sm:$0xff] %v7948_v18  ;;  %v1879_v8 = vmul.f32 %v6473_v55, %v11191_v22  ;;  %v1881_v54 = vmul.f32 %v6473_v55, %v11192_v52  ;;  %v1883_v15 = vmul.f32 %v6473_v55, %v11193_v48  ;;  %v11205_v52 = vld [vmem:[#allocation57_spill] sm:$0xff]  ;;  %v11232_v18 = vld [vmem:[#allocation83_spill] sm:$0xff] }
 0x253   :  { %11189 = vst [vmem:[#allocation44_spill] sm:$0xff] %v7951_v6  ;;  %v1885_v53 = vmul.f32 %v6473_v55, %v11194_v30  ;;  %v1887_v2 = vmul.f32 %v6473_v55, %v11195_v40  ;;  %v11196_v38 = vsub.f32 %v7264_v21, %v7708_v23  ;;  %v11197_v46 = vsub.f32 %v7298_v61, %v7708_v23  ;;  %v11207_v30 = vld [vmem:[#allocation52_spill] sm:$0xff]  ;;  %v11226_v6 = vld [vmem:[#allocation82_spill] sm:$0xff] }
 0x254   :  { %v11198_v58 = vsub.f32 %v7310_v11, %v7708_v23  ;;  %v11199_v56 = vsub.f32 %v7341_v50, %v7708_v23  ;;  %v11200_v44 = vsub.f32 %v7369_v16, %v7708_v23  ;;  %v11201_v21 = vsub.f32 %v7382_v31, %v7708_v23  ;;  %v11235_v35 = vld [vmem:[#allocation68_spill] sm:$0xff]  ;;  %v11241_v25 = vld [vmem:[#allocation70_spill] sm:$0xff] }
 0x255   :  { %v1889_v20 = vmul.f32 %v6473_v55, %v11196_v38  ;;  %v1891_v26 = vmul.f32 %v6473_v55, %v11197_v46  ;;  %v11202_v11 = vsub.f32 %v11134_v32, %v7708_v23  ;;  %v11204_v50 = vsub.f32 %v11203_v7, %v7708_v23  ;;  %v11209_v38 = vld [vmem:[#allocation54_spill] sm:$0xff] }
 0x256   :  { %v7980_v5 = vmul.f32 %v6473_v55, %v11198_v58  ;;  %v7985_v10 = vmul.f32 %v6473_v55, %v11199_v56  ;;  %v7990_v3 = vmul.f32 %v6473_v55, %v11200_v44  ;;  %v7995_v61 = vmul.f32 %v6473_v55, %v11201_v21  ;;  %v11211_v58 = vld [vmem:[#allocation56_spill] sm:$0xff] }
 0x257   :  { %v8000_v42 = vmul.f32 %v6473_v55, %v11202_v11  ;;  %v8005_v22 = vmul.f32 %v6473_v55, %v11204_v50  ;;  %v11206_v16 = vsub.f32 %v11205_v52, %v7708_v23  ;;  %v11208_v31 = vsub.f32 %v11207_v30, %v7708_v23  ;;  %v11215_v52 = vld [vmem:[#allocation60_spill] sm:$0xff] }
 0x258   :  { %v11210_v32 = vsub.f32 %v11209_v38, %v7708_v23  ;;  %v11212_v56 = vsub.f32 %v11211_v58, %v7708_v23  ;;  %v11213_v21 = vsub.f32 %v11146_v45, %v7708_v23  ;;  %v11214_v7 = vsub.f32 %v11149_v59, %v7708_v23  ;;  %v11219_v58 = vld [vmem:[#allocation63_spill] sm:$0xff] }
 0x259   :  { %v8010_v48 = vmul.f32 %v6473_v55, %v11206_v16  ;;  %v8015_v40 = vmul.f32 %v6473_v55, %v11208_v31  ;;  %v11216_v16 = vsub.f32 %v11215_v52, %v7708_v23  ;;  %v11217_v31 = vsub.f32 %v11151_v34, %v7708_v23 }
 0x25a   :  { %v8020_v46 = vmul.f32 %v6473_v55, %v11210_v32  ;;  %v8025_v44 = vmul.f32 %v6473_v55, %v11212_v56  ;;  %v8030_v11 = vmul.f32 %v6473_v55, %v11213_v21  ;;  %v8035_v50 = vmul.f32 %v6473_v55, %v11214_v7  ;;  %v11221_v21 = vld [vmem:[#allocation64_spill] sm:$0xff] }
 0x25b   :  { %v8040_v30 = vmul.f32 %v6473_v55, %v11216_v16  ;;  %v8045_v38 = vmul.f32 %v6473_v55, %v11217_v31  ;;  %v11218_v45 = vsub.f32 %v11152_v17, %v7708_v23  ;;  %v11220_v59 = vsub.f32 %v11219_v58, %v7708_v23  ;;  %v11223_v16 = vld [vmem:[#allocation53_spill] sm:$0xff] }
 0x25c   :  { %v11222_v7 = vsub.f32 %v11221_v21, %v7708_v23  ;;  %v11224_v34 = vsub.f32 %v11223_v16, %v7708_v23  ;;  %v11227_v17 = vsub.f32 %v11226_v6, %v7708_v23  ;;  %v11230_v58 = vsub.f32 %v11229_v24, %v7708_v23 }
 0x25d   :  { %v8050_v32 = vmul.f32 %v6473_v55, %v11218_v45  ;;  %v8055_v56 = vmul.f32 %v6473_v55, %v11220_v59  ;;  %v11233_v21 = vsub.f32 %v11232_v18, %v7708_v23  ;;  %v11236_v16 = vsub.f32 %v11235_v35, %v7708_v23  ;;  %v11243_v35 = vld [vmem:[#allocation65_spill] sm:$0xff] }
 0x25e   :  { %v8060_v52 = vmul.f32 %v6473_v55, %v11222_v7  ;;  %v8065_v31 = vmul.f32 %v6473_v55, %v11224_v34  ;;  %v8070_v45 = vmul.f32 %v6473_v55, %v11227_v17  ;;  %v8075_v59 = vmul.f32 %v6473_v55, %v11230_v58  ;;  %v11242_v58 = vld [vmem:[#allocation41_spill] sm:$0xff] }
 0x25f   :  { %v8080_v7 = vmul.f32 %v6473_v55, %v11233_v21  ;;  %v8085_v34 = vmul.f32 %v6473_v55, %v11236_v16  ;;  %v11239_v6 = vsub.f32 %v11238_v9, %v7708_v23  ;;  %v1954_v24 = vmul.f32 %v11241_v25, %v1879_v8 }
 0x260   :  { %11225 = vst [vmem:[#allocation24_spill] sm:$0xff] %v8065_v31  ;;  %11228 = vst [vmem:[#allocation25_spill] sm:$0xff] %v8070_v45  ;;  %v1952_v45 = vmul.f32 %v11241_v25, %v1877_v62  ;;  %v2028_v18 = vadd.f32 %v11242_v58, %v1953_v41  ;;  %v1956_v21 = vmul.f32 %v11241_v25, %v1881_v54 }
 0x261   :  { %11231 = vst [vmem:[#allocation26_spill] sm:$0xff] %v8075_v59  ;;  %11234 = vst [vmem:[#allocation27_spill] sm:$0xff] %v8080_v7  ;;  %v8090_v17 = vmul.f32 %v6473_v55, %v11239_v6  ;;  %v2026_v59 = vadd.f32 %v11242_v58, %v1951_v43  ;;  %v1958_v7 = vmul.f32 %v11241_v25, %v1883_v15  ;;  %v11244_v55 = vld [vmem:[#allocation72_spill] sm:$0xff] }
 0x262   :  { %11237 = vst [vmem:[#allocation28_spill] sm:$0xff] %v8085_v34  ;;  %v2027_v16 = vadd.f32 %v11243_v35, %v1952_v45  ;;  %v2029_v34 = vadd.f32 %v11243_v35, %v1954_v24  ;;  %v1955_v23 = vmul.f32 %v7655_v19, %v7808_v57  ;;  %v1957_v9 = vmul.f32 %v7655_v19, %v11244_v55 }
 0x263   :  { %11240 = vst [vmem:[#allocation29_spill] sm:$0xff] %v8090_v17  ;;  %v2090_v62 = vmax.f32 %v2026_v59, 0.0  ;;  %v2092_v8 = vmax.f32 %v2028_v18, 0.0  ;;  %v2031_v43 = vadd.f32 %v11243_v35, %v1956_v21  ;;  %v2033_v41 = vadd.f32 %v11243_v35, %v1958_v7  ;;  %v11245_v7 = vld [vmem:[#allocation67_spill] sm:$0xff] }
 0x264   :  { %v2091_v6 = vmax.f32 %v2027_v16, 0.0  ;;  %v2093_v54 = vmax.f32 %v2029_v34, 0.0  ;;  %v2030_v15 = vadd.f32 %v11242_v58, %v1955_v23  ;;  %v2032_v45 = vadd.f32 %v11242_v58, %v1957_v9  ;;  %v11246_v16 = vld [vmem:[#allocation69_spill] sm:$0xff] }
 0x265   :  { %v2154_v17 = vpack.c.bf16 %v2092_v8, %v2090_v62  ;;  %v2095_v24 = vmax.f32 %v2031_v43, 0.0  ;;  %v2097_v60 = vmax.f32 %v2033_v41, 0.0  ;;  %v1960_v57 = vmul.f32 %v11241_v25, %v1885_v53  ;;  %v11247_v41 = vld [vmem:[#allocation74_spill] sm:$0xff] }
 0x266   :  { %v2155_v4 = vpack.c.bf16 %v2093_v54, %v2091_v6  ;;  %v2094_v31 = vmax.f32 %v2030_v15, 0.0  ;;  %v2096_v55 = vmax.f32 %v2032_v45, 0.0  ;;  %v1962_v59 = vmul.f32 %v11241_v25, %v1887_v2  ;;  %v11248_v15 = vld [vmem:[#allocation76_spill] sm:$0xff] }
 0x267   :  { %v2157_v18 = vpack.c.bf16 %v2097_v60, %v2095_v24  ;;  %v2035_v21 = vadd.f32 %v11243_v35, %v1960_v57  ;;  %v1959_v34 = vmul.f32 %v7655_v19, %v11245_v7  ;;  %v1961_v23 = vmul.f32 %v7655_v19, %v11246_v16 }
 0x268   :  { %2347 = vmatprep.mubr.bf16.mxu1 %v2155_v4  ;;  %v2156_v9 = vpack.c.bf16 %v2096_v55, %v2094_v31  ;;  %v2037_v62 = vadd.f32 %v11243_v35, %v1962_v59  ;;  %v1964_v53 = vmul.f32 %v11241_v25, %v1889_v20  ;;  %v1966_v8 = vmul.f32 %v11241_v25, %v1891_v26 }
 0x269   :  { %2348 = vmatmul.mubr.bf16.vlgmr.msra.gmra.mxu1 %v2154_v17  ;;  %v2099_v43 = vmax.f32 %v2035_v21, 0.0  ;;  %v2034_v60 = vadd.f32 %v11242_v58, %v1959_v34  ;;  %v2036_v2 = vadd.f32 %v11242_v58, %v1961_v23  ;;  %v1963_v6 = vmul.f32 %v7655_v19, %v11247_v41 }
 0x26a   :  { %2355 = vmatprep.mubr.bf16.mxu1 %v2157_v18  ;;  %v2101_v54 = vmax.f32 %v2037_v62, 0.0  ;;  %v2039_v4 = vadd.f32 %v11243_v35, %v1964_v53  ;;  %v2041_v31 = vadd.f32 %v11243_v35, %v1966_v8  ;;  %v1965_v20 = vmul.f32 %v7655_v19, %v11248_v15 }
 0x26b   :  { %v2098_v45 = vmax.f32 %v2034_v60, 0.0  ;;  %v2100_v26 = vmax.f32 %v2036_v2, 0.0  ;;  %v2038_v17 = vadd.f32 %v11242_v58, %v1963_v6  ;;  %v1968_v24 = vmul.f32 %v11241_v25, %v7980_v5 }
 0x26c   :  { %v2159_v57 = vpack.c.bf16 %v2101_v54, %v2099_v43  ;;  %v2103_v55 = vmax.f32 %v2039_v4, 0.0  ;;  %v2105_v59 = vmax.f32 %v2041_v31, 0.0  ;;  %v2040_v18 = vadd.f32 %v11242_v58, %v1965_v20 }
 0x26d   :  { %v2158_v21 = vpack.c.bf16 %v2100_v26, %v2098_v45  ;;  %v2102_v7 = vmax.f32 %v2038_v17, 0.0  ;;  %v1970_v34 = vmul.f32 %v11241_v25, %v7985_v10  ;;  %v2043_v16 = vadd.f32 %v11243_v35, %v1968_v24 }
 0x26e   :  { %v2161_v19 = vpack.c.bf16 %v2105_v59, %v2103_v55  ;;  %v2104_v23 = vmax.f32 %v2040_v18, 0.0  ;;  %v2042_v62 = vadd.f32 %v11242_v58, %v7880_v29  ;;  %v2044_v5 = vadd.f32 %v11242_v58, %v7883_v14 }
 0x26f   :  { %v2045_v53 = vadd.f32 %v11243_v35, %v1970_v34  ;;  %v2107_v8 = vmax.f32 %v2043_v16, 0.0  ;;  %v1972_v43 = vmul.f32 %v11241_v25, %v7990_v3  ;;  %v1974_v60 = vmul.f32 %v11241_v25, %v7995_v61 }
 0x270   :  { %v8142_v10 = vpack.c.bf16 %v2104_v23, %v2102_v7  ;;  %v2106_v2 = vmax.f32 %v2042_v62, 0.0  ;;  %v2108_v41 = vmax.f32 %v2044_v5, 0.0  ;;  %v2046_v6 = vadd.f32 %v11242_v58, %v7886_v33 }
 0x271   :  { %2356 = vmatmul.mubr.bf16.gmra.mxu1 %v2156_v9  ;;  %v2109_v29 = vmax.f32 %v2045_v53, 0.0  ;;  %v2047_v14 = vadd.f32 %v11243_v35, %v1972_v43  ;;  %v2049_v54 = vadd.f32 %v11243_v35, %v1974_v60  ;;  %v2048_v4 = vadd.f32 %v11242_v58, %v7889_v12 }
 0x272   :  { %2363 = vmatprep.mubr.bf16.mxu1 %v2159_v57  ;;  %v8150_v3 = vpack.c.bf16 %v2108_v41, %v2106_v2  ;;  %v2110_v61 = vmax.f32 %v2046_v6, 0.0  ;;  %v1976_v31 = vmul.f32 %v11241_v25, %v8000_v42  ;;  %v1978_v15 = vmul.f32 %v11241_v25, %v8005_v22 }
 0x273   :  { %v8156_v33 = vpack.c.bf16 %v2109_v29, %v2107_v8  ;;  %v2111_v9 = vmax.f32 %v2047_v14, 0.0  ;;  %v2113_v20 = vmax.f32 %v2049_v54, 0.0  ;;  %v2112_v45 = vmax.f32 %v2048_v4, 0.0 }
 0x274   :  { %v2051_v26 = vadd.f32 %v11243_v35, %v1976_v31  ;;  %v2053_v17 = vadd.f32 %v11243_v35, %v1978_v15  ;;  %v2050_v12 = vadd.f32 %v11242_v58, %v7892_v36  ;;  %v2052_v24 = vadd.f32 %v11242_v58, %v7895_v1 }
 0x275   :  { %v8164_v57 = vpack.c.bf16 %v2113_v20, %v2111_v9  ;;  %v8166_v42 = vpack.c.bf16 %v2112_v45, %v2110_v61  ;;  %v1980_v22 = vmul.f32 %v11241_v25, %v8010_v48  ;;  %v1982_v55 = vmul.f32 %v11241_v25, %v8015_v40 }
 0x276   :  { %v2115_v59 = vmax.f32 %v2051_v26, 0.0  ;;  %v2117_v18 = vmax.f32 %v2053_v17, 0.0  ;;  %v2114_v7 = vmax.f32 %v2050_v12, 0.0  ;;  %v2116_v34 = vmax.f32 %v2052_v24, 0.0 }
 0x277   :  { %v2055_v16 = vadd.f32 %v11243_v35, %v1980_v22  ;;  %v2057_v36 = vadd.f32 %v11243_v35, %v1982_v55  ;;  %v2054_v1 = vadd.f32 %v11242_v58, %v7898_v27  ;;  %v2056_v23 = vadd.f32 %v11242_v58, %v7901_v28 }
 0x278   :  { %v8178_v62 = vpack.c.bf16 %v2117_v18, %v2115_v59  ;;  %v8180_v48 = vpack.c.bf16 %v2116_v34, %v2114_v7  ;;  %v1984_v40 = vmul.f32 %v11241_v25, %v8020_v46  ;;  %v1986_v5 = vmul.f32 %v11241_v25, %v8025_v44 }
 0x279   :  { %2364 = vmatmul.mubr.bf16.gmra.mxu1 %v2158_v21  ;;  %v2119_v53 = vmax.f32 %v2055_v16, 0.0  ;;  %v2121_v8 = vmax.f32 %v2057_v36, 0.0  ;;  %v2118_v43 = vmax.f32 %v2054_v1, 0.0  ;;  %v2120_v60 = vmax.f32 %v2056_v23, 0.0 }
 0x27a   :  { %2371 = vmatprep.mubr.bf16.mxu1 %v2161_v19  ;;  %v2059_v27 = vadd.f32 %v11243_v35, %v1984_v40  ;;  %v2061_v28 = vadd.f32 %v11243_v35, %v1986_v5  ;;  %v2058_v2 = vadd.f32 %v11242_v58, %v7904_v37  ;;  %v2060_v41 = vadd.f32 %v11242_v58, %v7912_v13 }
 0x27b   :  { %v8192_v46 = vpack.c.bf16 %v2121_v8, %v2119_v53  ;;  %v8194_v6 = vpack.c.bf16 %v2120_v60, %v2118_v43  ;;  %v1988_v44 = vmul.f32 %v11241_v25, %v8030_v11  ;;  %v1990_v21 = vmul.f32 %v11241_v25, %v8035_v50  ;;  %v11250_v8 = vld [vmem:[#allocation75_spill] sm:$0xff]  ;;  %v11251_v43 = vld [vmem:[#allocation78_spill] sm:$0xff] }
 0x27c   :  { %v2123_v19 = vmax.f32 %v2059_v27, 0.0  ;;  %v2125_v29 = vmax.f32 %v2061_v28, 0.0  ;;  %v2122_v14 = vmax.f32 %v2058_v2, 0.0  ;;  %v2124_v54 = vmax.f32 %v2060_v41, 0.0  ;;  %v11253_v41 = vld [vmem:[#allocation26_spill] sm:$0xff] }
 0x27d   :  { %v2063_v4 = vadd.f32 %v11243_v35, %v1988_v44  ;;  %v2065_v37 = vadd.f32 %v11243_v35, %v1990_v21  ;;  %v2062_v13 = vadd.f32 %v11242_v58, %v7915_v47  ;;  %v2064_v61 = vadd.f32 %v11242_v58, %v7918_v39 }
 0x27e   :  { %v8206_v31 = vpack.c.bf16 %v2125_v29, %v2123_v19  ;;  %v8208_v11 = vpack.c.bf16 %v2124_v54, %v2122_v14  ;;  %v1992_v50 = vmul.f32 %v11241_v25, %v8040_v30  ;;  %v1994_v15 = vmul.f32 %v11241_v25, %v8045_v38 }
 0x27f   :  { %v2127_v9 = vmax.f32 %v2063_v4, 0.0  ;;  %v2129_v20 = vmax.f32 %v2065_v37, 0.0  ;;  %v2126_v45 = vmax.f32 %v2062_v13, 0.0  ;;  %v2128_v26 = vmax.f32 %v2064_v61, 0.0  ;;  %v11254_v37 = vld [vmem:[#allocation43_spill] sm:$0xff] }
 0x280   :  { %v2067_v17 = vadd.f32 %v11243_v35, %v1992_v50  ;;  %v2069_v47 = vadd.f32 %v11243_v35, %v1994_v15  ;;  %v2066_v39 = vadd.f32 %v11242_v58, %v7921_v49  ;;  %v2068_v12 = vadd.f32 %v11242_v58, %v7924_v51  ;;  %v11255_v61 = vld [vmem:[#allocation23_spill] sm:$0xff] }
 0x281   :  { %2372 = vmatmul.mubr.bf16.gmra.mxu1 %v8142_v10  ;;  %v8221_v30 = vpack.c.bf16 %v2129_v20, %v2127_v9  ;;  %v8223_v24 = vpack.c.bf16 %v2128_v26, %v2126_v45  ;;  %v1996_v38 = vmul.f32 %v11241_v25, %v8050_v32  ;;  %v1998_v22 = vmul.f32 %v11241_v25, %v8055_v56  ;;  %v11256_v20 = vld [vmem:[#allocation27_spill] sm:$0xff]  ;;  %v11257_v26 = vld [vmem:[#allocation28_spill] sm:$0xff] }
 0x282   :  { %2379 = vmatprep.mubr.bf16.mxu1 %v8156_v33  ;;  %v2131_v55 = vmax.f32 %v2067_v17, 0.0  ;;  %v2133_v59 = vmax.f32 %v2069_v47, 0.0  ;;  %v2130_v49 = vmax.f32 %v2066_v39, 0.0  ;;  %v2132_v18 = vmax.f32 %v2068_v12, 0.0  ;;  %v11249_v33 = vld [vmem:[#allocation24_spill] sm:$0xff] }
 0x283   :  { %v2071_v51 = vadd.f32 %v11243_v35, %v1996_v38  ;;  %v2073_v10 = vadd.f32 %v11243_v35, %v1998_v22  ;;  %v2070_v7 = vadd.f32 %v11242_v58, %v7927_v63  ;;  %v2072_v34 = vadd.f32 %v11242_v58, %v7930_v0 }
 0x284   :  { %v8236_v32 = vpack.c.bf16 %v2133_v59, %v2131_v55  ;;  %v8238_v16 = vpack.c.bf16 %v2132_v18, %v2130_v49  ;;  %v2000_v56 = vmul.f32 %v11241_v25, %v8060_v52  ;;  %v2002_v36 = vmul.f32 %v11241_v25, %v11249_v33  ;;  %v11252_v52 = vld [vmem:[#allocation25_spill] sm:$0xff] }
 0x285   :  { %v2135_v1 = vmax.f32 %v2071_v51, 0.0  ;;  %v2137_v23 = vmax.f32 %v2073_v10, 0.0  ;;  %v2134_v40 = vmax.f32 %v2070_v7, 0.0  ;;  %v2136_v5 = vmax.f32 %v2072_v34, 0.0  ;;  %v11258_v55 = vld [vmem:[#allocation77_spill] sm:$0xff] }
 0x286   :  { %v2075_v53 = vadd.f32 %v11243_v35, %v2000_v56  ;;  %v2077_v63 = vadd.f32 %v11243_v35, %v2002_v36  ;;  %v2074_v0 = vadd.f32 %v11242_v58, %v11250_v8  ;;  %v2076_v60 = vadd.f32 %v11242_v58, %v11251_v43  ;;  %v11260_v10 = vld [vmem:[#allocation29_spill] sm:$0xff]  ;;  %v11263_v8 = vld [vmem:[#allocation71_spill] sm:$0xff] }
 0x287   :  { %v2177_v27 = vpack.c.bf16 %v2137_v23, %v2135_v1  ;;  %v2176_v28 = vpack.c.bf16 %v2136_v5, %v2134_v40  ;;  %v2004_v2 = vmul.f32 %v11241_v25, %v11252_v52  ;;  %v2006_v44 = vmul.f32 %v11241_v25, %v11253_v41  ;;  %v11261_v34 = vld [vmem:[#allocation73_spill] sm:$0xff] }
 0x288   :  { %v2139_v21 = vmax.f32 %v2075_v53, 0.0  ;;  %v2141_v19 = vmax.f32 %v2077_v63, 0.0  ;;  %v2138_v29 = vmax.f32 %v2074_v0, 0.0  ;;  %v2140_v14 = vmax.f32 %v2076_v60, 0.0  ;;  %v11262_v53 = vld [vmem:[#allocation44_spill] sm:$0xff] }
 0x289   :  { %2380 = vmatmul.mubr.bf16.gmra.mxu1 %v8150_v3  ;;  %v2079_v54 = vadd.f32 %v11243_v35, %v2004_v2  ;;  %v2081_v4 = vadd.f32 %v11243_v35, %v2006_v44  ;;  %v2078_v13 = vadd.f32 %v11242_v58, %v11254_v37  ;;  %v2080_v50 = vadd.f32 %v11242_v58, %v11255_v61 }
 0x28a   :  { %2387 = vmatprep.mubr.bf16.mxu1 %v8164_v57  ;;  %v2179_v15 = vpack.c.bf16 %v2141_v19, %v2139_v21  ;;  %v2178_v9 = vpack.c.bf16 %v2140_v14, %v2138_v29  ;;  %v2008_v45 = vmul.f32 %v11241_v25, %v11256_v20  ;;  %v2010_v3 = vmul.f32 %v11241_v25, %v11257_v26  ;;  %v11259_v57 = vld [vmem:[#allocation79_spill] sm:$0xff] }
 0x28b   :  { %v2143_v17 = vmax.f32 %v2079_v54, 0.0  ;;  %v2145_v47 = vmax.f32 %v2081_v4, 0.0  ;;  %v2142_v39 = vmax.f32 %v2078_v13, 0.0  ;;  %v2144_v12 = vmax.f32 %v2080_v50, 0.0 }
 0x28c   :  { %v2083_v38 = vadd.f32 %v11243_v35, %v2008_v45  ;;  %v2085_v22 = vadd.f32 %v11243_v35, %v2010_v3  ;;  %v2082_v59 = vadd.f32 %v11242_v58, %v11258_v55  ;;  %v2084_v49 = vadd.f32 %v11242_v58, %v11259_v57 }
 0x28d   :  { %v2181_v18 = vpack.c.bf16 %v2145_v47, %v2143_v17  ;;  %v2180_v51 = vpack.c.bf16 %v2144_v12, %v2142_v39  ;;  %v2012_v7 = vmul.f32 %v11241_v25, %v11260_v10  ;;  %v2014_v56 = vmul.f32 %v11241_v25, %v11261_v34 }
 0x28e   :  { %v2147_v33 = vmax.f32 %v2083_v38, 0.0  ;;  %v2149_v36 = vmax.f32 %v2085_v22, 0.0  ;;  %v2146_v1 = vmax.f32 %v2082_v59, 0.0  ;;  %v2148_v23 = vmax.f32 %v2084_v49, 0.0  ;;  %v6293_v49 = vld [vmem:[#allocation10 + $0x20] ss:$8 sps:$4 sm:$0xff]  }
 0x28f   :  { %v2087_v40 = vadd.f32 %v11243_v35, %v2012_v7  ;;  %v2089_v5 = vadd.f32 %v11243_v35, %v2014_v56  ;;  %v2086_v63 = vadd.f32 %v11242_v58, %v11262_v53  ;;  %v2088_v0 = vadd.f32 %v11242_v58, %v11263_v8  ;;  %v6278_v58 = vld [vmem:[#allocation10 + $0x70] ss:$8 sps:$4 sm:$0xff]   ;;  %v6280_v35 = vld [vmem:[#allocation10 + $0x74] ss:$8 sps:$4 sm:$0xff]   ;;  %v8323_v53 = vld [vmem:[#allocation5 + $0x3] ss:$0 sm:$0xff] }
 0x290   :  { %v2183_v43 = vpack.c.bf16 %v2149_v36, %v2147_v33  ;;  %v2182_v60 = vpack.c.bf16 %v2148_v23, %v2146_v1  ;;  %2876 = vmatprep.subr.bf16.mxu0 %v6280_v35  ;;  %v6296_v7 = vld [vmem:[#allocation10 + $0x10] ss:$8 sps:$4 sm:$0xff]   ;;  %v6689_v34 = vmov 0   ;;  %v6301_v33 = vld [vmem:[#allocation10 + $0x4] ss:$8 sps:$4 sm:$0xff]  }
 0x291   :  { %2388 = vmatmul.mubr.bf16.gmra.mxu1 %v8166_v42  ;;  %v2151_v52 = vmax.f32 %v2087_v40, 0.0  ;;  %v2153_v25 = vmax.f32 %v2089_v5, 0.0  ;;  %v2150_v2 = vmax.f32 %v2086_v63, 0.0  ;;  %v2152_v41 = vmax.f32 %v2088_v0, 0.0  ;;  %2877 = vmatpush1.bf16.msra.mxu0 %v6278_v58  ;;  %v6281_v42 = vld [vmem:[#allocation10 + $0x60] ss:$8 sps:$4 sm:$0xff]  }
 0x292   :  { %2395 = vmatprep.mubr.bf16.mxu1 %v8178_v62  ;;  %v6283_v62 = vld [vmem:[#allocation10 + $0x64] ss:$8 sps:$4 sm:$0xff]   ;;  %2908 = vmatprep.mubr.bf16.mxu0 %v6689_v34  ;;  %v6299_v23 = vld [vmem:[#allocation10] ss:$8 sps:$4 sm:$0xff]  }
 0x293   :  { %v2185_v44 = vpack.c.bf16 %v2153_v25, %v2151_v52  ;;  %v2184_v21 = vpack.c.bf16 %v2152_v41, %v2150_v2  ;;  %2878 = vmatprep.subr.bf16.mxu0 %v6283_v62 }
 0x295   :  { %2879 = vmatpush1.bf16.msra.mxu0 %v6281_v42 }
 0x299   :  { %2396 = vmatmul.mubr.bf16.gmra.mxu1 %v8180_v48  ;;  %v6284_v48 = vld [vmem:[#allocation10 + $0x50] ss:$8 sps:$4 sm:$0xff]  }
 0x29a   :  { %2403 = vmatprep.mubr.bf16.mxu1 %v8192_v46  ;;  %v6286_v46 = vld [vmem:[#allocation10 + $0x54] ss:$8 sps:$4 sm:$0xff]  }
 0x29b   :  { %2880 = vmatprep.subr.bf16.mxu0 %v6286_v46 }
 0x29c   :  { %2881 = vmatpush1.bf16.msra.mxu0 %v6284_v48 }
 0x2a1   :  { %2404 = vmatmul.mubr.bf16.gmra.mxu1 %v8194_v6  ;;  %v6287_v6 = vld [vmem:[#allocation10 + $0x40] ss:$8 sps:$4 sm:$0xff]  }
 0x2a2   :  { %2411 = vmatprep.mubr.bf16.mxu1 %v8206_v31  ;;  %v6289_v31 = vld [vmem:[#allocation10 + $0x44] ss:$8 sps:$4 sm:$0xff]  }
 0x2a3   :  { %2882 = vmatprep.subr.bf16.mxu0 %v6289_v31 }
 0x2a4   :  { %2883 = vmatpush1.bf16.msra.mxu0 %v6287_v6 }
 0x2a9   :  { %2412 = vmatmul.mubr.bf16.gmra.mxu1 %v8208_v11  ;;  %v6290_v11 = vld [vmem:[#allocation10 + $0x30] ss:$8 sps:$4 sm:$0xff]  }
 0x2aa   :  { %2419 = vmatprep.mubr.bf16.mxu1 %v8221_v30  ;;  %v6292_v30 = vld [vmem:[#allocation10 + $0x34] ss:$8 sps:$4 sm:$0xff]  }
 0x2ab   :  { %2884 = vmatprep.subr.bf16.mxu0 %v6292_v30 }
 0x2ac   :  { %2885 = vmatpush1.bf16.msra.mxu0 %v6290_v11 }
 0x2b1   :  { %2420 = vmatmul.mubr.bf16.gmra.mxu1 %v8223_v24 }
 0x2b2   :  { %2427 = vmatprep.mubr.bf16.mxu1 %v8236_v32 }
 0x2b9   :  { %2428 = vmatmul.mubr.bf16.gmra.mxu1 %v8238_v16 }
 0x2ba   :  { %2435 = vmatprep.mubr.bf16.mxu1 %v2177_v27 }
 0x2c1   :  { %2436 = vmatmul.mubr.bf16.gmra.mxu1 %v2176_v28 }
 0x2c2   :  { %2443 = vmatprep.mubr.bf16.mxu1 %v2179_v15 }
 0x2c9   :  { %2444 = vmatmul.mubr.bf16.gmra.mxu1 %v2178_v9 }
 0x2ca   :  { %2451 = vmatprep.mubr.bf16.mxu1 %v2181_v18  ;;  %v6295_v18 = vld [vmem:[#allocation10 + $0x24] ss:$8 sps:$4 sm:$0xff]  }
 0x2cb   :  { %2886 = vmatprep.subr.bf16.mxu0 %v6295_v18 }
 0x2cc   :  { %2887 = vmatpush1.bf16.msra.mxu0 %v6293_v49 }
 0x2d1   :  { %2452 = vmatmul.mubr.bf16.gmra.mxu1 %v2180_v51  ;;  %v6298_v51 = vld [vmem:[#allocation10 + $0x14] ss:$8 sps:$4 sm:$0xff]  }
 0x2d2   :  { %2459 = vmatprep.mubr.bf16.mxu1 %v2183_v43  ;;  %2888 = vmatprep.subr.bf16.mxu0 %v6298_v51 }
 0x2d3   :  { %2889 = vmatpush1.bf16.msra.mxu0 %v6296_v7 }
 0x2d4   :  { %2890 = vmatprep.subr.bf16.mxu0 %v6301_v33 }
 0x2d7   :  { %2891 = vmatpush1.bf16.msra.mxu0 %v6299_v23 }
 0x2d9   :  { %2460 = vmatmul.mubr.bf16.gmra.mxu1 %v2182_v60 }
 0x2da   :  { %2467 = vmatprep.mubr.bf16.mxu1 %v2185_v44 }
 0x2e1   :  { %2468 = vmatmul.mubr.bf16.gmra.mxu1 %v2184_v21 }
 0x2e2   :  { %3533 = vmatprep.mubr.bf16.mxu1 %v6689_v34 }
 0x329   :  { %v5972_v24 = vpop.f32.mrf.mxu1 }
 0x32b   :  { %v5973_v32 = vpop.f32.mrf.mxu1 }
 0x32c   :  { %v5974_v16 = vadd.f32 %v5973_v32, %v5972_v24 }
 0x32d   :  { %v5975_v27 = vpop.f32.mrf.mxu1 }
 0x32e   :  { %v8331_v43 = vadd.f32 %v5974_v16, %v8323_v53 }
 0x32f   :  { %v5976_v28 = vpop.f32.mrf.mxu1 }
 0x330   :  { %v5977_v36 = vadd.f32 %v5976_v28, %v5975_v27  ;;  %v2516_v58 = vmul.f32 %v8331_v43, %v8331_v43 }
 0x331   :  { %v5978_v19 = vpop.f32.mrf.mxu1 }
 0x332   :  { %v8326_v63 = vadd.f32 %v5977_v36, %v8323_v53 }
 0x333   :  { %v5979_v29 = vpop.f32.mrf.mxu1 }
 0x334   :  { %v5980_v40 = vadd.f32 %v5979_v29, %v5978_v19  ;;  %v2517_v2 = vmul.f32 %v8326_v63, %v8326_v63  ;;  %v2478_v46 = vadd.f32 %v8326_v63, %v8331_v43 }
 0x335   :  { %v5981_v14 = vpop.f32.mrf.mxu1 }
 0x336   :  { %v8334_v60 = vadd.f32 %v5980_v40, %v8323_v53  ;;  %v2548_v6 = vadd.f32 %v2517_v2, %v2516_v58 }
 0x337   :  { %v5982_v54 = vpop.f32.mrf.mxu1 }
 0x338   :  { %v5983_v8 = vadd.f32 %v5982_v54, %v5981_v14  ;;  %v2518_v35 = vmul.f32 %v8334_v60, %v8334_v60  ;;  %v2479_v32 = vadd.f32 %v2478_v46, %v8334_v60 }
 0x339   :  { %v5984_v4 = vpop.f32.mrf.mxu1 }
 0x33a   :  { %v8341_v41 = vadd.f32 %v5983_v8, %v8323_v53  ;;  %v2549_v16 = vadd.f32 %v2548_v6, %v2518_v35 }
 0x33b   :  { %v5985_v37 = vpop.f32.mrf.mxu1 }
 0x33c   :  { %v5986_v52 = vadd.f32 %v5985_v37, %v5984_v4  ;;  %v2519_v31 = vmul.f32 %v8341_v41, %v8341_v41  ;;  %v2480_v14 = vadd.f32 %v2479_v32, %v8341_v41 }
 0x33d   :  { %v5987_v13 = vpop.f32.mrf.mxu1 }
 0x33e   :  { %v8350_v42 = vadd.f32 %v5986_v52, %v8323_v53  ;;  %v2550_v54 = vadd.f32 %v2549_v16, %v2519_v31 }
 0x33f   :  { %v5988_v61 = vpop.f32.mrf.mxu1 }
 0x340   :  { %v5989_v44 = vadd.f32 %v5988_v61, %v5987_v13  ;;  %v2520_v27 = vmul.f32 %v8350_v42, %v8350_v42 }
 0x341   :  { %v5990_v50 = vpop.f32.mrf.mxu1 }
 0x342   :  { %v8359_v11 = vadd.f32 %v5989_v44, %v8323_v53 }
 0x343   :  { %v5991_v15 = vpop.f32.mrf.mxu1 }
 0x344   :  { %v5992_v62 = vadd.f32 %v5991_v15, %v5990_v50  ;;  %v2521_v4 = vmul.f32 %v8359_v11, %v8359_v11  ;;  %v2481_v50 = vadd.f32 %v2480_v14, %v8350_v42  ;;  %v2551_v15 = vadd.f32 %v2550_v54, %v2520_v27 }
 0x345   :  { %v5993_v9 = vpop.f32.mrf.mxu1 }
 0x346   :  { %v8367_v28 = vadd.f32 %v5992_v62, %v8323_v53  ;;  %v2482_v49 = vadd.f32 %v2481_v50, %v8359_v11  ;;  %v2552_v18 = vadd.f32 %v2551_v15, %v2521_v4 }
 0x347   :  { %v5994_v20 = vpop.f32.mrf.mxu1 }
 0x348   :  { %v5995_v30 = vadd.f32 %v5994_v20, %v5993_v9  ;;  %v2522_v9 = vmul.f32 %v8367_v28, %v8367_v28  ;;  %v2483_v33 = vadd.f32 %v2482_v49, %v8367_v28 }
 0x349   :  { %v5996_v45 = vpop.f32.mrf.mxu1 }
 0x34a   :  { %v8373_v37 = vadd.f32 %v5995_v30, %v8323_v53  ;;  %v2553_v36 = vadd.f32 %v2552_v18, %v2522_v9 }
 0x34b   :  { %v5997_v26 = vpop.f32.mrf.mxu1 }
 0x34c   :  { %v5998_v19 = vadd.f32 %v5997_v26, %v5996_v45  ;;  %v2484_v8 = vadd.f32 %v2483_v33, %v8373_v37 }
 0x34d   :  { %v8293_v3 = vpop.f32.mrf.mxu1 }
 0x34e   :  { %v8381_v20 = vadd.f32 %v5998_v19, %v8323_v53 }
 0x34f   :  { %v8295_v17 = vpop.f32.mrf.mxu1 }
 0x350   :  { %v6001_v13 = vadd.f32 %v8295_v17, %v8293_v3  ;;  %v2523_v3 = vmul.f32 %v8373_v37, %v8373_v37  ;;  %v2485_v58 = vadd.f32 %v2484_v8, %v8381_v20 }
 0x351   :  { %v8297_v47 = vpop.f32.mrf.mxu1 }
 0x352   :  { %v8389_v17 = vadd.f32 %v6001_v13, %v8323_v53  ;;  %v2554_v52 = vadd.f32 %v2553_v36, %v2523_v3 }
 0x353   :  { %v8299_v39 = vpop.f32.mrf.mxu1 }
 0x354   :  { %v6004_v45 = vadd.f32 %v8299_v39, %v8297_v47  ;;  %v2524_v47 = vmul.f32 %v8381_v20, %v8381_v20  ;;  %v2486_v6 = vadd.f32 %v2485_v58, %v8389_v17 }
 0x355   :  { %v8301_v12 = vpop.f32.mrf.mxu1 }
 0x356   :  { %v8397_v39 = vadd.f32 %v6004_v45, %v8323_v53  ;;  %v2555_v35 = vadd.f32 %v2554_v52, %v2524_v47 }
 0x357   :  { %v8303_v38 = vpop.f32.mrf.mxu1 }
 0x358   :  { %v6007_v51 = vadd.f32 %v8303_v38, %v8301_v12  ;;  %v2525_v12 = vmul.f32 %v8389_v17, %v8389_v17  ;;  %v2487_v16 = vadd.f32 %v2486_v6, %v8397_v39 }
 0x359   :  { %v8305_v22 = vpop.f32.mrf.mxu1 }
 0x35a   :  { %v8405_v38 = vadd.f32 %v6007_v51, %v8323_v53  ;;  %v2556_v31 = vadd.f32 %v2555_v35, %v2525_v12 }
 0x35b   :  { %v8307_v55 = vpop.f32.mrf.mxu1 }
 0x35c   :  { %v6010_v23 = vadd.f32 %v8307_v55, %v8305_v22  ;;  %v2526_v22 = vmul.f32 %v8397_v39, %v8397_v39  ;;  %v2488_v54 = vadd.f32 %v2487_v16, %v8405_v38 }
 0x35d   :  { %v8309_v59 = vpop.f32.mrf.mxu1 }
 0x35e   :  { %v8413_v55 = vadd.f32 %v6010_v23, %v8323_v53  ;;  %v2557_v27 = vadd.f32 %v2556_v31, %v2526_v22 }
 0x35f   :  { %v8311_v57 = vpop.f32.mrf.mxu1 }
 0x360   :  { %v6013_v2 = vadd.f32 %v8311_v57, %v8309_v59  ;;  %v2527_v59 = vmul.f32 %v8405_v38, %v8405_v38  ;;  %v2489_v15 = vadd.f32 %v2488_v54, %v8413_v55 }
 0x361   :  { %v8313_v10 = vpop.f32.mrf.mxu1 }
 0x362   :  { %v8421_v57 = vadd.f32 %v6013_v2, %v8323_v53  ;;  %v2558_v4 = vadd.f32 %v2557_v27, %v2527_v59 }
 0x363   :  { %v8316_v56 = vpop.f32.mrf.mxu1 }
 0x364   :  { %v6016_v62 = vadd.f32 %v8316_v56, %v8313_v10  ;;  %v2528_v10 = vmul.f32 %v8413_v55, %v8413_v55  ;;  %v2490_v18 = vadd.f32 %v2489_v15, %v8421_v57 }
 0x365   :  { %v8319_v1 = vpop.f32.mrf.mxu1 }
 0x366   :  { %v8429_v56 = vadd.f32 %v6016_v62, %v8323_v53  ;;  %v2559_v9 = vadd.f32 %v2558_v4, %v2528_v10 }
 0x367   :  { %v8321_v5 = vpop.f32.mrf.mxu1 }
 0x368   :  { %v6019_v30 = vadd.f32 %v8321_v5, %v8319_v1  ;;  %v2529_v1 = vmul.f32 %v8421_v57, %v8421_v57  ;;  %v2491_v36 = vadd.f32 %v2490_v18, %v8429_v56 }
 0x369   :  { %v8328_v0 = vpop.f32.mrf.mxu1 }
 0x36a   :  { %v8437_v5 = vadd.f32 %v6019_v30, %v8323_v53  ;;  %v2560_v3 = vadd.f32 %v2559_v9, %v2529_v1 }
 0x36b   :  { %v8336_v25 = vpop.f32.mrf.mxu1 }
 0x36c   :  { %v6022_v19 = vadd.f32 %v8336_v25, %v8328_v0  ;;  %v2530_v0 = vmul.f32 %v8429_v56, %v8429_v56  ;;  %v2531_v51 = vmul.f32 %v8437_v5, %v8437_v5  ;;  %v2492_v52 = vadd.f32 %v2491_v36, %v8437_v5 }
 0x36d   :  { %v8343_v21 = vpop.f32.mrf.mxu1 }
 0x36e   :  { %v8445_v25 = vadd.f32 %v6022_v19, %v8323_v53  ;;  %v2561_v47 = vadd.f32 %v2560_v3, %v2530_v0 }
 0x36f   :  { %v8352_v48 = vpop.f32.mrf.mxu1 }
 0x370   :  { %v6025_v13 = vadd.f32 %v8352_v48, %v8343_v21  ;;  %v2532_v23 = vmul.f32 %v8445_v25, %v8445_v25  ;;  %v2562_v12 = vadd.f32 %v2561_v47, %v2531_v51  ;;  %v2493_v35 = vadd.f32 %v2492_v52, %v8445_v25 }
 0x371   :  { %v8361_v24 = vpop.f32.mrf.mxu1 }
 0x372   :  { %v8452_v21 = vadd.f32 %v6025_v13, %v8323_v53  ;;  %v2563_v22 = vadd.f32 %v2562_v12, %v2532_v23 }
 0x373   :  { %v6027_v29 = vpop.f32.mrf.mxu1 }
 0x374   :  { %v6028_v45 = vadd.f32 %v6027_v29, %v8361_v24  ;;  %v2533_v2 = vmul.f32 %v8452_v21, %v8452_v21  ;;  %v2494_v31 = vadd.f32 %v2493_v35, %v8452_v21 }
 0x375   :  { %v6029_v61 = vpop.f32.mrf.mxu1 }
 0x376   :  { %v8458_v24 = vadd.f32 %v6028_v45, %v8323_v53  ;;  %v2564_v59 = vadd.f32 %v2563_v22, %v2533_v2 }
 0x377   :  { %v6030_v26 = vpop.f32.mrf.mxu1 }
 0x378   :  { %v6031_v48 = vadd.f32 %v6030_v26, %v6029_v61  ;;  %v2534_v62 = vmul.f32 %v8458_v24, %v8458_v24  ;;  %v2495_v27 = vadd.f32 %v2494_v31, %v8458_v24 }
 0x379   :  { %v6032_v7 = vpop.f32.mrf.mxu1 }
 0x37a   :  { %v8464_v61 = vadd.f32 %v6031_v48, %v8323_v53  ;;  %v2565_v10 = vadd.f32 %v2564_v59, %v2534_v62 }
 0x37b   :  { %v6033_v40 = vpop.f32.mrf.mxu1 }
 0x37c   :  { %v6034_v29 = vadd.f32 %v6033_v40, %v6032_v7  ;;  %v2535_v30 = vmul.f32 %v8464_v61, %v8464_v61  ;;  %v2496_v4 = vadd.f32 %v2495_v27, %v8464_v61 }
 0x37d   :  { %v6035_v44 = vpop.f32.mrf.mxu1 }
 0x37e   :  { %v8470_v7 = vadd.f32 %v6034_v29, %v8323_v53  ;;  %v2566_v1 = vadd.f32 %v2565_v10, %v2535_v30 }
 0x37f   :  { %v6036_v46 = vpop.f32.mrf.mxu1 }
 0x380   :  { %v6037_v26 = vadd.f32 %v6036_v46, %v6035_v44  ;;  %v2536_v19 = vmul.f32 %v8470_v7, %v8470_v7  ;;  %v2497_v9 = vadd.f32 %v2496_v4, %v8470_v7 }
 0x381   :  { %v6038_v32 = vpop.f32.mrf.mxu1 }
 0x382   :  { %v8476_v44 = vadd.f32 %v6037_v26, %v8323_v53  ;;  %v2567_v45 = vadd.f32 %v2566_v1, %v2536_v19 }
 0x383   :  { %v6039_v14 = vpop.f32.mrf.mxu1 }
 0x384   :  { %v6040_v40 = vadd.f32 %v6039_v14, %v6038_v32  ;;  %v2537_v13 = vmul.f32 %v8476_v44, %v8476_v44  ;;  %v2498_v51 = vadd.f32 %v2497_v9, %v8476_v44 }
 0x385   :  { %v6041_v50 = vpop.f32.mrf.mxu1 }
 0x386   :  { %v8482_v32 = vadd.f32 %v6040_v40, %v8323_v53 }
 0x387   :  { %v6042_v49 = vpop.f32.mrf.mxu1 }
 0x388   :  { %v6043_v46 = vadd.f32 %v6042_v49, %v6041_v50  ;;  %v2538_v49 = vmul.f32 %v8482_v32, %v8482_v32  ;;  %v2499_v23 = vadd.f32 %v2498_v51, %v8482_v32 }
 0x389   :  { %v6044_v33 = vpop.f32.mrf.mxu1 }
 0x38a   :  { %v8488_v50 = vadd.f32 %v6043_v46, %v8323_v53 }
 0x38b   :  { %v6045_v8 = vpop.f32.mrf.mxu1 }
 0x38c   :  { %v6046_v14 = vadd.f32 %v6045_v8, %v6044_v33  ;;  %v2568_v33 = vadd.f32 %v2567_v45, %v2537_v13  ;;  %v2539_v36 = vmul.f32 %v8488_v50, %v8488_v50  ;;  %v2500_v26 = vadd.f32 %v2499_v23, %v8488_v50 }
 0x38d   :  { %v6047_v58 = vpop.f32.mrf.mxu1 }
 0x38e   :  { %v8494_v18 = vadd.f32 %v6046_v14, %v8323_v53  ;;  %v2569_v52 = vadd.f32 %v2568_v33, %v2538_v49 }
 0x38f   :  { %v6048_v6 = vpop.f32.mrf.mxu1 }
 0x390   :  { %v6049_v0 = vadd.f32 %v6048_v6, %v6047_v58  ;;  %v2540_v12 = vmul.f32 %v8494_v18, %v8494_v18  ;;  %v2570_v22 = vadd.f32 %v2569_v52, %v2539_v36  ;;  %v2501_v40 = vadd.f32 %v2500_v26, %v8494_v18 }
 0x391   :  { %v6050_v16 = vpop.f32.mrf.mxu1 }
 0x392   :  { %v8501_v29 = vadd.f32 %v6049_v0, %v8323_v53  ;;  %v2571_v59 = vadd.f32 %v2570_v22, %v2540_v12 }
 0x393   :  { %v6051_v54 = vpop.f32.mrf.mxu1 }
 0x394   :  { %v6052_v48 = vadd.f32 %v6051_v54, %v6050_v16  ;;  %v2541_v6 = vmul.f32 %v8501_v29, %v8501_v29  ;;  %v2502_v46 = vadd.f32 %v2501_v40, %v8501_v29 }
 0x395   :  { %v6053_v15 = vpop.f32.mrf.mxu1 }
 0x396   :  { %v8507_v58 = vadd.f32 %v6052_v48, %v8323_v53  ;;  %v2572_v14 = vadd.f32 %v2571_v59, %v2541_v6 }
 0x397   :  { %v6054_v3 = vpop.f32.mrf.mxu1 }
 0x398   :  { %v6055_v8 = vadd.f32 %v6054_v3, %v6053_v15  ;;  %v2542_v16 = vmul.f32 %v8507_v58, %v8507_v58  ;;  %v2503_v54 = vadd.f32 %v2502_v46, %v8507_v58 }
 0x399   :  { %v6056_v47 = vpop.f32.mrf.mxu1 }
 0x39a   :  { %v8513_v31 = vadd.f32 %v6055_v8, %v8323_v53  ;;  %v2573_v15 = vadd.f32 %v2572_v14, %v2542_v16 }
 0x39b   :  { %v6057_v2 = vpop.f32.mrf.mxu1 }
 0x39c   :  { %v6058_v35 = vadd.f32 %v6057_v2, %v6056_v47  ;;  %v2543_v4 = vmul.f32 %v8513_v31, %v8513_v31  ;;  %v2504_v9 = vadd.f32 %v2503_v54, %v8513_v31 }
 0x39d   :  { %v6059_v62 = vpop.f32.mrf.mxu1 }
 0x39e   :  { %v8519_v27 = vadd.f32 %v6058_v35, %v8323_v53  ;;  %v2574_v3 = vadd.f32 %v2573_v15, %v2543_v4 }
 0x39f   :  { %v6060_v30 = vpop.f32.mrf.mxu1 }
 0x3a0   :  { %v6061_v10 = vadd.f32 %v6060_v30, %v6059_v62  ;;  %v2544_v0 = vmul.f32 %v8519_v27, %v8519_v27  ;;  %v2505_v51 = vadd.f32 %v2504_v9, %v8519_v27 }
 0x3a1   :  { %v6062_v19 = vpop.f32.mrf.mxu1 }
 0x3a2   :  { %v8525_v1 = vadd.f32 %v6061_v10, %v8323_v53  ;;  %v2575_v47 = vadd.f32 %v2574_v3, %v2544_v0 }
 0x3a3   :  { %v6063_v13 = vpop.f32.mrf.mxu1 }
 0x3a4   :  { %v6064_v45 = vadd.f32 %v6063_v13, %v6062_v19  ;;  %v2545_v48 = vmul.f32 %v8525_v1, %v8525_v1  ;;  %v2506_v23 = vadd.f32 %v2505_v51, %v8525_v1 }
 0x3a5   :  { %v6065_v49 = vpop.f32.mrf.mxu1 }
 0x3a6   :  { %v8534_v33 = vadd.f32 %v6064_v45, %v8323_v53  ;;  %v2576_v12 = vadd.f32 %v2575_v47, %v2545_v48 }
 0x3a7   :  { %v6066_v36 = vpop.f32.mrf.mxu1 }
 0x3a8   :  { %v2546_v8 = vmul.f32 %v8534_v33, %v8534_v33  ;;  %v6067_v52 = vadd.f32 %v6066_v36, %v6065_v49  ;;  %v2507_v2 = vadd.f32 %v2506_v23, %v8534_v33 }
 0x3aa   :  { %v2473_v26 = vadd.f32 %v6067_v52, %v8323_v53  ;;  %v2577_v35 = vadd.f32 %v2576_v12, %v2546_v8 }
 0x3ac   :  { %v2508_v22 = vadd.f32 %v2507_v2, %v2473_v26  ;;  %v2547_v62 = vmul.f32 %v2473_v26, %v2473_v26 }
 0x3ae   :  { %v2509_v40 = vrot.slane %v2508_v22, 4  ;;  %v2578_v6 = vadd.f32 %v2577_v35, %v2547_v62  ;;  %v8604_v62 = vld [vmem:[#allocation5 + $0x4] ss:$0 sm:$0xff] }
 0x3b0   :  { %v2510_v59 = vadd.f32 %v2509_v40, %v2508_v22  ;;  %v2579_v30 = vrot.slane %v2578_v6, 4 }
 0x3b2   :  { %v2511_v46 = vrot.slane %v2510_v59, 2  ;;  %v2580_v16 = vadd.f32 %v2579_v30, %v2578_v6 }
 0x3b4   :  { %v2512_v10 = vadd.f32 %v2511_v46, %v2510_v59  ;;  %v2581_v19 = vrot.slane %v2580_v16, 2 }
 0x3b6   :  { %v2513_v14 = vrot.slane %v2512_v10, 1  ;;  %v2582_v54 = vadd.f32 %v2581_v19, %v2580_v16 }
 0x3b8   :  { %v2514_v4 = vadd.f32 %v2513_v14, %v2512_v10  ;;  %v2583_v13 = vrot.slane %v2582_v54, 1 }
 0x3ba   :  { %v8541_v15 = vmul.f32 0.00390625, %v2514_v4  ;;  %v2584_v9 = vadd.f32 %v2583_v13, %v2582_v54  ;;  %v8630_v4 = vld [vmem:[#allocation5 + $0x5] ss:$0 sm:$0xff] }
 0x3bc   :  { %v2585_v0 = vmul.f32 0.00390625, %v2584_v9  ;;  %v2586_v53 = vmul.f32 %v8541_v15, %v8541_v15  ;;  %v2620_v45 = vsub.f32 %v2473_v26, %v8541_v15  ;;  %v2610_v48 = vsub.f32 %v8476_v44, %v8541_v15 }
 0x3bd   :  { %v2611_v36 = vsub.f32 %v8482_v32, %v8541_v15  ;;  %v2612_v47 = vsub.f32 %v8488_v50, %v8541_v15  ;;  %v2613_v23 = vsub.f32 %v8494_v18, %v8541_v15  ;;  %v2614_v8 = vsub.f32 %v8501_v29, %v8541_v15 }
 0x3be   :  { %v2587_v49 = vsub.f32 %v2585_v0, %v2586_v53  ;;  %v2615_v52 = vsub.f32 %v8507_v58, %v8541_v15  ;;  %v2616_v12 = vsub.f32 %v8513_v31, %v8541_v15  ;;  %v2617_v44 = vsub.f32 %v8519_v27, %v8541_v15 }
 0x3bf   :  { %v2618_v32 = vsub.f32 %v8525_v1, %v8541_v15  ;;  %v2619_v50 = vsub.f32 %v8534_v33, %v8541_v15  ;;  %v2589_v29 = vsub.f32 %v8331_v43, %v8541_v15  ;;  %v2590_v58 = vsub.f32 %v8326_v63, %v8541_v15 }
 0x3c0   :  { %v2588_v3 = vmax.f32 %v2587_v49, 0.0  ;;  %v2591_v31 = vsub.f32 %v8334_v60, %v8541_v15  ;;  %v2592_v27 = vsub.f32 %v8341_v41, %v8541_v15  ;;  %v2593_v1 = vsub.f32 %v8350_v42, %v8541_v15 }
 0x3c1   :  { %v2594_v33 = vsub.f32 %v8359_v11, %v8541_v15  ;;  %v2603_v43 = vsub.f32 %v8429_v56, %v8541_v15  ;;  %v2604_v26 = vsub.f32 %v8437_v5, %v8541_v15  ;;  %v2605_v63 = vsub.f32 %v8445_v25, %v8541_v15 }
 0x3c2   :  { %v2621_v51 = vadd.f32 1e-05, %v2588_v3  ;;  %v2606_v60 = vsub.f32 %v8452_v21, %v8541_v15  ;;  %v2607_v41 = vsub.f32 %v8458_v24, %v8541_v15  ;;  %v2608_v42 = vsub.f32 %v8464_v61, %v8541_v15 }
 0x3c3   :  { %v2609_v11 = vsub.f32 %v8470_v7, %v8541_v15 }
 0x3c4   :  { %6474 = vrsqrt.f32 %v2621_v51 }
 0x3d1   :  { %v8566_v18 = vpop.eup %6474 }
 0x3d2   :  { %v8571_v2 = vmul.f32 %v8566_v18, %v2620_v45  ;;  %v2623_v56 = vmul.f32 %v8566_v18, %v2589_v29  ;;  %v2624_v35 = vmul.f32 %v8566_v18, %v2590_v58  ;;  %v2637_v5 = vmul.f32 %v8566_v18, %v2603_v43 }
 0x3d3   :  { %v2638_v25 = vmul.f32 %v8566_v18, %v2604_v26  ;;  %v2639_v22 = vmul.f32 %v8566_v18, %v2605_v63  ;;  %v2640_v21 = vmul.f32 %v8566_v18, %v2606_v60  ;;  %v2641_v24 = vmul.f32 %v8566_v18, %v2607_v41 }
 0x3d4   :  { %v8607_v61 = vmul.f32 %v8566_v18, %v2608_v42  ;;  %v2643_v7 = vmul.f32 %v8566_v18, %v2609_v11  ;;  %v8611_v40 = vmul.f32 %v8566_v18, %v2610_v48  ;;  %v2645_v6 = vmul.f32 %v8566_v18, %v2611_v36 }
 0x3d5   :  { %v8615_v59 = vmul.f32 %v8566_v18, %v2612_v47  ;;  %v2647_v30 = vmul.f32 %v8566_v18, %v2613_v23  ;;  %v8619_v46 = vmul.f32 %v8566_v18, %v2614_v8  ;;  %v2649_v16 = vmul.f32 %v8566_v18, %v2615_v52 }
 0x3d6   :  { %v8623_v10 = vmul.f32 %v8566_v18, %v2616_v12  ;;  %v2651_v19 = vmul.f32 %v8566_v18, %v2617_v44  ;;  %v8627_v14 = vmul.f32 %v8566_v18, %v2618_v32  ;;  %v2653_v54 = vmul.f32 %v8566_v18, %v2619_v50 }
 0x3d7   :  { %v2625_v13 = vmul.f32 %v8566_v18, %v2591_v31  ;;  %v2626_v9 = vmul.f32 %v8566_v18, %v2592_v27  ;;  %v2655_v0 = vmul.f32 %v2623_v56, %v8604_v62  ;;  %v2656_v53 = vmul.f32 %v2624_v35, %v8604_v62 }
 0x3d8   :  { %v2627_v45 = vmul.f32 %v8566_v18, %v2593_v1  ;;  %v2628_v49 = vmul.f32 %v8566_v18, %v2594_v33  ;;  %v2671_v3 = vmul.f32 %v2639_v22, %v8604_v62  ;;  %v2673_v51 = vmul.f32 %v2641_v24, %v8604_v62 }
 0x3d9   :  { %v2675_v48 = vmul.f32 %v2643_v7, %v8604_v62  ;;  %v8642_v36 = vmul.f32 %v2645_v6, %v8604_v62  ;;  %v8645_v47 = vmul.f32 %v2647_v30, %v8604_v62  ;;  %v8648_v23 = vmul.f32 %v2649_v16, %v8604_v62 }
 0x3da   :  { %v8651_v8 = vmul.f32 %v2651_v19, %v8604_v62  ;;  %v8654_v52 = vmul.f32 %v2653_v54, %v8604_v62  ;;  %v2687_v12 = vadd.f32 %v2655_v0, %v8630_v4  ;;  %v2688_v44 = vadd.f32 %v2656_v53, %v8630_v4 }
 0x3db   :  { %v2595_v32 = vsub.f32 %v8367_v28, %v8541_v15  ;;  %v2657_v50 = vmul.f32 %v2625_v13, %v8604_v62  ;;  %v2658_v29 = vmul.f32 %v2626_v9, %v8604_v62  ;;  %v2659_v27 = vmul.f32 %v2627_v45, %v8604_v62 }
 0x3dc   :  { %v2719_v58 = vmax.f32 %v2687_v12, 0.0  ;;  %v2720_v31 = vmax.f32 %v2688_v44, 0.0  ;;  %v2660_v1 = vmul.f32 %v2628_v49, %v8604_v62  ;;  %v2596_v33 = vsub.f32 %v8373_v37, %v8541_v15 }
 0x3dd   :  { %v2629_v43 = vmul.f32 %v8566_v18, %v2595_v32  ;;  %v2689_v63 = vadd.f32 %v2657_v50, %v8630_v4  ;;  %v2690_v28 = vadd.f32 %v2658_v29, %v8630_v4  ;;  %v2597_v60 = vsub.f32 %v8381_v20, %v8541_v15 }
 0x3de   :  { %v2751_v26 = vpack.c.bf16 %v2720_v31, %v2719_v58  ;;  %v2630_v41 = vmul.f32 %v8566_v18, %v2596_v33  ;;  %v2669_v42 = vmul.f32 %v2637_v5, %v8604_v62  ;;  %v2691_v11 = vadd.f32 %v2659_v27, %v8630_v4 }
 0x3df   :  { %v2692_v56 = vadd.f32 %v2660_v1, %v8630_v4  ;;  %v2598_v37 = vsub.f32 %v8389_v17, %v8541_v15  ;;  %v2631_v35 = vmul.f32 %v8566_v18, %v2597_v60  ;;  %v2661_v22 = vmul.f32 %v2629_v43, %v8604_v62 }
 0x3e0   :  { %2909 = vmatmul.mubr.bf16.vlgmr.msra.gmra.mxu0 %v2751_v26  ;;  %v2721_v24 = vmax.f32 %v2689_v63, 0.0  ;;  %v2722_v20 = vmax.f32 %v2690_v28, 0.0  ;;  %v2662_v5 = vmul.f32 %v2630_v41, %v8604_v62  ;;  %v2670_v6 = vmul.f32 %v2638_v25, %v8604_v62 }
 0x3e1   :  { %2918 = vmatprep.mubr.bf16.mxu0 %v6689_v34  ;;  %v2632_v7 = vmul.f32 %v8566_v18, %v2598_v37  ;;  %v2723_v30 = vmax.f32 %v2691_v11, 0.0  ;;  %v2724_v16 = vmax.f32 %v2692_v56, 0.0  ;;  %v2701_v19 = vadd.f32 %v2669_v42, %v8630_v4 }
 0x3e2   :  { %v2672_v17 = vmul.f32 %v2640_v21, %v8604_v62  ;;  %v8686_v54 = vmul.f32 %v2631_v35, %v8604_v62  ;;  %v8689_v13 = vadd.f32 %v2661_v22, %v8630_v4  ;;  %v2702_v9 = vadd.f32 %v2670_v6, %v8630_v4 }
 0x3e3   :  { %v2703_v0 = vadd.f32 %v2671_v3, %v8630_v4  ;;  %v2752_v53 = vpack.c.bf16 %v2722_v20, %v2721_v24  ;;  %v2733_v45 = vmax.f32 %v2701_v19, 0.0  ;;  %v2674_v49 = vmul.f32 %v8607_v61, %v8604_v62 }
 0x3e4   :  { %v2704_v25 = vadd.f32 %v2672_v17, %v8630_v4  ;;  %v2694_v12 = vadd.f32 %v2662_v5, %v8630_v4  ;;  %v2734_v21 = vmax.f32 %v2702_v9, 0.0  ;;  %v2705_v32 = vadd.f32 %v2673_v51, %v8630_v4 }
 0x3e5   :  { %v2735_v44 = vmax.f32 %v2703_v0, 0.0  ;;  %v2753_v50 = vpack.c.bf16 %v2724_v16, %v2723_v30  ;;  %v2706_v58 = vadd.f32 %v2674_v49, %v8630_v4  ;;  %v2676_v3 = vmul.f32 %v8611_v40, %v8604_v62 }
 0x3e6   :  { %v2736_v29 = vmax.f32 %v2704_v25, 0.0  ;;  %v8702_v31 = vpack.c.bf16 %v2734_v21, %v2733_v45  ;;  %v2737_v27 = vmax.f32 %v2705_v32, 0.0  ;;  %v2707_v61 = vadd.f32 %v2675_v48, %v8630_v4 }
 0x3e7   :  { %v2678_v1 = vmul.f32 %v8615_v59, %v8604_v62  ;;  %v2738_v51 = vmax.f32 %v2706_v58, 0.0  ;;  %v2708_v43 = vadd.f32 %v2676_v3, %v8630_v4  ;;  %v2709_v26 = vadd.f32 %v8642_v36, %v8630_v4 }
 0x3e8   :  { %2919 = vmatmul.mubr.bf16.gmra.mxu0 %v2752_v53  ;;  %v8707_v33 = vpack.c.bf16 %v2736_v29, %v2735_v44  ;;  %v2739_v63 = vmax.f32 %v2707_v61, 0.0  ;;  %v2680_v28 = vmul.f32 %v8619_v46, %v8604_v62  ;;  %v2711_v48 = vadd.f32 %v8645_v47, %v8630_v4 }
 0x3e9   :  { %2928 = vmatprep.mubr.bf16.mxu0 %v6689_v34  ;;  %v2710_v40 = vadd.f32 %v2678_v1, %v8630_v4  ;;  %v8717_v60 = vpack.c.bf16 %v2738_v51, %v2737_v27  ;;  %v2740_v59 = vmax.f32 %v2708_v43, 0.0  ;;  %v2741_v41 = vmax.f32 %v2709_v26, 0.0 }
 0x3ea   :  { %v2682_v42 = vmul.f32 %v8623_v10, %v8604_v62  ;;  %v2712_v56 = vadd.f32 %v2680_v28, %v8630_v4  ;;  %v2743_v36 = vmax.f32 %v2711_v48, 0.0  ;;  %v2713_v37 = vadd.f32 %v8648_v23, %v8630_v4 }
 0x3eb   :  { %v2742_v11 = vmax.f32 %v2710_v40, 0.0  ;;  %v8724_v35 = vpack.c.bf16 %v2740_v59, %v2739_v63  ;;  %v2684_v47 = vmul.f32 %v8627_v14, %v8604_v62  ;;  %v2715_v22 = vadd.f32 %v8651_v8, %v8630_v4  ;;  %v6310_v59 = vld [vmem:[#allocation11 + $0x54] ss:$8 sps:$4 sm:$0xff]  }
 0x3ec   :  { %v2714_v46 = vadd.f32 %v2682_v42, %v8630_v4  ;;  %v2744_v10 = vmax.f32 %v2712_v56, 0.0  ;;  %v2745_v20 = vmax.f32 %v2713_v37, 0.0  ;;  %v2686_v5 = vmul.f32 %v8571_v2, %v8604_v62  ;;  %v6313_v42 = vld [vmem:[#allocation11 + $0x44] ss:$8 sps:$4 sm:$0xff]   ;;  %v6316_v56 = vld [vmem:[#allocation11 + $0x34] ss:$8 sps:$4 sm:$0xff]  }
 0x3ed   :  { %v8731_v24 = vpack.c.bf16 %v2742_v11, %v2741_v41  ;;  %v2716_v23 = vadd.f32 %v2684_v47, %v8630_v4  ;;  %v2747_v30 = vmax.f32 %v2715_v22, 0.0  ;;  %v2717_v16 = vadd.f32 %v8654_v52, %v8630_v4  ;;  %v6311_v41 = vld [vmem:[#allocation11 + $0x40] ss:$8 sps:$4 sm:$0xff]   ;;  %v6314_v11 = vld [vmem:[#allocation11 + $0x30] ss:$8 sps:$4 sm:$0xff]  }
 0x3ee   :  { %v2746_v6 = vmax.f32 %v2714_v46, 0.0  ;;  %v2725_v14 = vmax.f32 %v8689_v13, 0.0  ;;  %v2664_v8 = vmul.f32 %v2632_v7, %v8604_v62  ;;  %v2763_v19 = vpack.c.bf16 %v2744_v10, %v2743_v36  ;;  %v2768_v36 = vld [vmem:[#allocation5 + $0x6] ss:$8 sm:$0x3]  ;;  %v11264_v37 = vld [vmem:[#allocation37_spill] sm:$0xff] }
 0x3ef   :  { %v2718_v17 = vadd.f32 %v2686_v5, %v8630_v4  ;;  %v2726_v9 = vmax.f32 %v2694_v12, 0.0  ;;  %v2748_v2 = vmax.f32 %v2716_v23, 0.0  ;;  %v2749_v53 = vmax.f32 %v2717_v16, 0.0  ;;  %v11265_v46 = vld [vmem:[#allocation38_spill] sm:$0xff] }
 0x3f0   :  { %2929 = vmatmul.mubr.bf16.gmra.mxu0 %v2753_v50  ;;  %v2764_v0 = vpack.c.bf16 %v2746_v6, %v2745_v20  ;;  %v2599_v45 = vsub.f32 %v8397_v39, %v8541_v15  ;;  %v2600_v52 = vsub.f32 %v8405_v38, %v8541_v15  ;;  %v2695_v12 = vadd.f32 %v8686_v54, %v8630_v4 }
 0x3f1   :  { %2938 = vmatprep.mubr.bf16.mxu0 %v6689_v34  ;;  %v2750_v25 = vmax.f32 %v2718_v17, 0.0  ;;  %v2765_v49 = vpack.c.bf16 %v2748_v2, %v2747_v30  ;;  %v2754_v44 = vpack.c.bf16 %v2726_v9, %v2725_v14  ;;  %v2696_v32 = vadd.f32 %v2664_v8, %v8630_v4 }
 0x3f2   :  { %v2633_v21 = vmul.f32 %v8566_v18, %v2599_v45  ;;  %v2634_v7 = vmul.f32 %v8566_v18, %v2600_v52  ;;  %v2727_v50 = vmax.f32 %v2695_v12, 0.0  ;;  %v2601_v58 = vsub.f32 %v8413_v55, %v8541_v15 }
 0x3f3   :  { %v2766_v13 = vpack.c.bf16 %v2750_v25, %v2749_v53  ;;  %v2728_v29 = vmax.f32 %v2696_v32, 0.0  ;;  %v2602_v3 = vsub.f32 %v8421_v57, %v8541_v15  ;;  %v8786_v47 = vrot.slane %v2768_v36, %v11265_v46 }
 0x3f4   :  { %v2665_v39 = vmul.f32 %v2633_v21, %v8604_v62  ;;  %v2666_v38 = vmul.f32 %v2634_v7, %v8604_v62  ;;  %v2635_v27 = vmul.f32 %v8566_v18, %v2601_v58 }
 0x3f5   :  { %v2636_v54 = vmul.f32 %v8566_v18, %v2602_v3  ;;  %v2755_v61 = vpack.c.bf16 %v2728_v29, %v2727_v50 }
 0x3f6   :  { %v2697_v1 = vadd.f32 %v2665_v39, %v8630_v4  ;;  %v2698_v51 = vadd.f32 %v2666_v38, %v8630_v4  ;;  %v2667_v43 = vmul.f32 %v2635_v27, %v8604_v62 }
 0x3f7   :  { %v2668_v55 = vmul.f32 %v2636_v54, %v8604_v62  ;;  %v6302_v62 = vld [vmem:[#allocation11 + $0x70] ss:$8 sps:$4 sm:$0xff]  }
 0x3f8   :  { %2939 = vmatmul.mubr.bf16.gmra.mxu0 %v2754_v44  ;;  %v2729_v26 = vmax.f32 %v2697_v1, 0.0  ;;  %v2730_v63 = vmax.f32 %v2698_v51, 0.0  ;;  %v2699_v57 = vadd.f32 %v2667_v43, %v8630_v4 }
 0x3f9   :  { %2948 = vmatprep.mubr.bf16.mxu0 %v6689_v34  ;;  %v2700_v15 = vadd.f32 %v2668_v55, %v8630_v4  ;;  %v6304_v4 = vld [vmem:[#allocation11 + $0x74] ss:$8 sps:$4 sm:$0xff]  }
 0x3fa   :  { %v2756_v40 = vpack.c.bf16 %v2730_v63, %v2729_v26  ;;  %v2731_v18 = vmax.f32 %v2699_v57, 0.0  ;;  %3501 = vmatprep.subr.bf16.mxu1 %v6304_v4  ;;  %v6319_v4 = vld [vmem:[#allocation11 + $0x24] ss:$8 sps:$4 sm:$0xff]  }
 0x3fb   :  { %v2732_v28 = vmax.f32 %v2700_v15, 0.0  ;;  %3502 = vmatpush1.bf16.msra.mxu1 %v6302_v62  ;;  %v6317_v62 = vld [vmem:[#allocation11 + $0x20] ss:$8 sps:$4 sm:$0xff]  }
 0x3fd   :  { %v2757_v48 = vpack.c.bf16 %v2732_v28, %v2731_v18 }
 0x400   :  { %2949 = vmatmul.mubr.bf16.gmra.mxu0 %v2755_v61 }
 0x401   :  { %2958 = vmatprep.mubr.bf16.mxu0 %v6689_v34 }
 0x408   :  { %2959 = vmatmul.mubr.bf16.gmra.mxu0 %v2756_v40 }
 0x409   :  { %2968 = vmatprep.mubr.bf16.mxu0 %v6689_v34 }
 0x410   :  { %2969 = vmatmul.mubr.bf16.gmra.mxu0 %v2757_v48 }
 0x411   :  { %2978 = vmatprep.mubr.bf16.mxu0 %v6689_v34 }
 0x418   :  { %2979 = vmatmul.mubr.bf16.gmra.mxu0 %v8702_v31  ;;  %v6305_v31 = vld [vmem:[#allocation11 + $0x60] ss:$8 sps:$4 sm:$0xff]  }
 0x419   :  { %2988 = vmatprep.mubr.bf16.mxu0 %v6689_v34 }
 0x420   :  { %2989 = vmatmul.mubr.bf16.gmra.mxu0 %v8707_v33  ;;  %v6307_v33 = vld [vmem:[#allocation11 + $0x64] ss:$8 sps:$4 sm:$0xff]  }
 0x421   :  { %2998 = vmatprep.mubr.bf16.mxu0 %v6689_v34  ;;  %3503 = vmatprep.subr.bf16.mxu1 %v6307_v33  ;;  %v6322_v33 = vld [vmem:[#allocation11 + $0x14] ss:$8 sps:$4 sm:$0xff]  }
 0x422   :  { %3504 = vmatpush1.bf16.msra.mxu1 %v6305_v31 }
 0x423   :  { %3505 = vmatprep.subr.bf16.mxu1 %v6310_v59 }
 0x428   :  { %2999 = vmatmul.mubr.bf16.gmra.mxu0 %v8717_v60  ;;  %v6308_v60 = vld [vmem:[#allocation11 + $0x50] ss:$8 sps:$4 sm:$0xff]  }
 0x429   :  { %3008 = vmatprep.mubr.bf16.mxu0 %v6689_v34  ;;  %3506 = vmatpush1.bf16.msra.mxu1 %v6308_v60 }
 0x42a   :  { %3507 = vmatprep.subr.bf16.mxu1 %v6313_v42  ;;  %v6320_v42 = vld [vmem:[#allocation11 + $0x10] ss:$8 sps:$4 sm:$0xff]  }
 0x42d   :  { %3508 = vmatpush1.bf16.msra.mxu1 %v6311_v41 }
 0x42e   :  { %3509 = vmatprep.subr.bf16.mxu1 %v6316_v56 }
 0x430   :  { %3009 = vmatmul.mubr.bf16.gmra.mxu0 %v8724_v35  ;;  %v8783_v35 = vrot.slane %v2768_v36, %v11264_v37 }
 0x431   :  { %3018 = vmatprep.mubr.bf16.mxu0 %v6689_v34  ;;  %3510 = vmatpush1.bf16.msra.mxu1 %v6314_v11  ;;  %v6325_v11 = vld [vmem:[#allocation11 + $0x4] ss:$8 sps:$4 sm:$0xff]  }
 0x432   :  { %3511 = vmatprep.subr.bf16.mxu1 %v6319_v4 }
 0x435   :  { %3512 = vmatpush1.bf16.msra.mxu1 %v6317_v62 }
 0x436   :  { %3513 = vmatprep.subr.bf16.mxu1 %v6322_v33 }
 0x438   :  { %3019 = vmatmul.mubr.bf16.gmra.mxu0 %v8731_v24 }
 0x439   :  { %3028 = vmatprep.mubr.bf16.mxu0 %v6689_v34  ;;  %3514 = vmatpush1.bf16.msra.mxu1 %v6320_v42 }
 0x43a   :  { %3515 = vmatprep.subr.bf16.mxu1 %v6325_v11 }
 0x440   :  { %3029 = vmatmul.mubr.bf16.gmra.mxu0 %v2763_v19 }
 0x441   :  { %3038 = vmatprep.mubr.bf16.mxu0 %v6689_v34 }
 0x448   :  { %3039 = vmatmul.mubr.bf16.gmra.mxu0 %v2764_v0 }
 0x449   :  { %3048 = vmatprep.mubr.bf16.mxu0 %v6689_v34 }
 0x450   :  { %3049 = vmatmul.mubr.bf16.gmra.mxu0 %v2765_v49 }
 0x451   :  { %3058 = vmatprep.mubr.bf16.mxu0 %v6689_v34 }
 0x458   :  { %3059 = vmatmul.mubr.bf16.gmra.mxu0 %v2766_v13 }
 0x4a0   :  { %v2910_v22 = vpop.f32.mrf.mxu0 }
 0x4a1   :  { %v2911_v24 = vadd.f32 %v2910_v22, %v8783_v35 }
 0x4a2   :  { %v2912_v10 = vpop.f32.mrf.mxu0 }
 0x4a3   :  { %3069 = vst [vmem:[#allocation15] sm:$0xff] %v2911_v24  ;;  %v8790_v20 = vadd.f32 %v2912_v10, %v8786_v47 }
 0x4a4   :  { %v2914_v5 = vpop.f32.mrf.mxu0 }
 0x4a5   :  { %v2915_v6 = vadd.f32 %v2914_v5, %v8783_v35  ;;  %v6323_v5 = vld [vmem:[#allocation11] ss:$8 sps:$4 sm:$0xff]  }
 0x4a6   :  { %v2916_v23 = vpop.f32.mrf.mxu0  ;;  %3516 = vmatpush1.bf16.msra.mxu1 %v6323_v5 }
 0x4a7   :  { %3070 = vst [vmem:[#allocation15 + $0x8] sm:$0xff] %v2915_v6  ;;  %v8836_v59 = vadd.f32 %v2916_v23, %v8786_v47  ;;  %v3141_v6 = vmul.f32 %v8790_v20, %v8790_v20 }
 0x4a8   :  { %v2920_v30 = vpop.f32.mrf.mxu0 }
 0x4a9   :  { %v2921_v16 = vadd.f32 %v2920_v30, %v8783_v35  ;;  %v3142_v22 = vmul.f32 %v8836_v59, %v8836_v59 }
 0x4aa   :  { %v2922_v14 = vpop.f32.mrf.mxu0 }
 0x4ab   :  { %3071 = vst [vmem:[#allocation15 + $0x10] sm:$0xff] %v2921_v16  ;;  %v8795_v8 = vadd.f32 %v2922_v14, %v8786_v47  ;;  %v3103_v16 = vadd.f32 %v8836_v59, %v8790_v20 }
 0x4ac   :  { %v2924_v19 = vpop.f32.mrf.mxu0 }
 0x4ad   :  { %v2925_v17 = vadd.f32 %v2924_v19, %v8783_v35  ;;  %v3143_v23 = vmul.f32 %v8795_v8, %v8795_v8  ;;  %v3173_v19 = vadd.f32 %v3142_v22, %v3141_v6 }
 0x4ae   :  { %v8798_v9 = vpop.f32.mrf.mxu0 }
 0x4af   :  { %3072 = vst [vmem:[#allocation15 + $0x18] sm:$0xff] %v2925_v17  ;;  %v8845_v24 = vadd.f32 %v8798_v9, %v8786_v47 }
 0x4b0   :  { %v2930_v0 = vpop.f32.mrf.mxu0 }
 0x4b1   :  { %v2931_v2 = vadd.f32 %v2930_v0, %v8783_v35  ;;  %v3144_v17 = vmul.f32 %v8845_v24, %v8845_v24 }
 0x4b2   :  { %v2932_v53 = vpop.f32.mrf.mxu0 }
 0x4b3   :  { %3073 = vst [vmem:[#allocation15 + $0x20] sm:$0xff] %v2931_v2  ;;  %v8802_v45 = vadd.f32 %v2932_v53, %v8786_v47  ;;  %v3104_v2 = vadd.f32 %v3103_v16, %v8795_v8  ;;  %v3174_v53 = vadd.f32 %v3173_v19, %v3143_v23 }
 0x4b4   :  { %v2934_v25 = vpop.f32.mrf.mxu0 }
 0x4b5   :  { %v2935_v52 = vadd.f32 %v2934_v25, %v8783_v35  ;;  %v3145_v25 = vmul.f32 %v8802_v45, %v8802_v45 }
 0x4b6   :  { %v8805_v49 = vpop.f32.mrf.mxu0 }
 0x4b7   :  { %3074 = vst [vmem:[#allocation15 + $0x28] sm:$0xff] %v2935_v52  ;;  %v8860_v9 = vadd.f32 %v8805_v49, %v8786_v47 }
 0x4b8   :  { %v2940_v21 = vpop.f32.mrf.mxu0 }
 0x4b9   :  { %v2941_v13 = vadd.f32 %v2940_v21, %v8783_v35 }
 0x4ba   :  { %v8808_v7 = vpop.f32.mrf.mxu0 }
 0x4bb   :  { %3075 = vst [vmem:[#allocation15 + $0x30] sm:$0xff] %v2941_v13  ;;  %v8869_v52 = vadd.f32 %v8808_v7, %v8786_v47  ;;  %v3105_v13 = vadd.f32 %v3104_v2, %v8845_v24 }
 0x4bc   :  { %v2944_v44 = vpop.f32.mrf.mxu0 }
 0x4bd   :  { %v2945_v12 = vadd.f32 %v2944_v44, %v8783_v35  ;;  %v3175_v44 = vadd.f32 %v3174_v53, %v3144_v17 }
 0x4be   :  { %v8811_v32 = vpop.f32.mrf.mxu0 }
 0x4bf   :  { %3076 = vst [vmem:[#allocation15 + $0x38] sm:$0xff] %v2945_v12  ;;  %v3146_v12 = vmul.f32 %v8860_v9, %v8860_v9  ;;  %v3176_v7 = vadd.f32 %v3175_v44, %v3145_v25 }
 0x4c0   :  { %v2950_v39 = vpop.f32.mrf.mxu0 }
 0x4c1   :  { %v2951_v50 = vadd.f32 %v2950_v39, %v8783_v35  ;;  %v8877_v39 = vadd.f32 %v8811_v32, %v8786_v47  ;;  %v3177_v32 = vadd.f32 %v3176_v7, %v3146_v12 }
 0x4c2   :  { %v8814_v29 = vpop.f32.mrf.mxu0 }
 0x4c3   :  { %3077 = vst [vmem:[#allocation15 + $0x40] sm:$0xff] %v2951_v50 }
 0x4c4   :  { %v2954_v38 = vpop.f32.mrf.mxu0 }
 0x4c5   :  { %v2955_v58 = vadd.f32 %v2954_v38, %v8783_v35  ;;  %v3106_v38 = vadd.f32 %v3105_v13, %v8802_v45 }
 0x4c6   :  { %v8817_v3 = vpop.f32.mrf.mxu0 }
 0x4c7   :  { %3078 = vst [vmem:[#allocation15 + $0x48] sm:$0xff] %v2955_v58  ;;  %v3147_v58 = vmul.f32 %v8869_v52, %v8869_v52 }
 0x4c8   :  { %v2960_v27 = vpop.f32.mrf.mxu0 }
 0x4c9   :  { %v2961_v54 = vadd.f32 %v2960_v27, %v8783_v35  ;;  %v8886_v27 = vadd.f32 %v8814_v29, %v8786_v47 }
 0x4ca   :  { %v8820_v61 = vpop.f32.mrf.mxu0 }
 0x4cb   :  { %3079 = vst [vmem:[#allocation15 + $0x50] sm:$0xff] %v2961_v54  ;;  %v3149_v29 = vmul.f32 %v8886_v27, %v8886_v27 }
 0x4cc   :  { %v2964_v1 = vpop.f32.mrf.mxu0 }
 0x4cd   :  { %v2965_v51 = vadd.f32 %v2964_v1, %v8783_v35  ;;  %v3107_v1 = vadd.f32 %v3106_v38, %v8860_v9 }
 0x4ce   :  { %v8823_v43 = vpop.f32.mrf.mxu0 }
 0x4cf   :  { %3080 = vst [vmem:[#allocation15 + $0x58] sm:$0xff] %v2965_v51 }
 0x4d0   :  { %v2970_v26 = vpop.f32.mrf.mxu0 }
 0x4d1   :  { %v2971_v63 = vadd.f32 %v2970_v26, %v8783_v35  ;;  %v3148_v26 = vmul.f32 %v8877_v39, %v8877_v39 }
 0x4d2   :  { %v8826_v55 = vpop.f32.mrf.mxu0 }
 0x4d3   :  { %3081 = vst [vmem:[#allocation15 + $0x60] sm:$0xff] %v2971_v63  ;;  %v8894_v63 = vadd.f32 %v8817_v3, %v8786_v47 }
 0x4d4   :  { %v2974_v40 = vpop.f32.mrf.mxu0 }
 0x4d5   :  { %v2975_v57 = vadd.f32 %v2974_v40, %v8783_v35  ;;  %v3150_v3 = vmul.f32 %v8894_v63, %v8894_v63 }
 0x4d6   :  { %v8829_v15 = vpop.f32.mrf.mxu0 }
 0x4d7   :  { %3082 = vst [vmem:[#allocation15 + $0x68] sm:$0xff] %v2975_v57  ;;  %v3108_v57 = vadd.f32 %v3107_v1, %v8869_v52 }
 0x4d8   :  { %v2980_v18 = vpop.f32.mrf.mxu0 }
 0x4d9   :  { %v2981_v28 = vadd.f32 %v2980_v18, %v8783_v35  ;;  %v3178_v18 = vadd.f32 %v3177_v32, %v3147_v58  ;;  %v3109_v4 = vadd.f32 %v3108_v57, %v8877_v39 }
 0x4da   :  { %v8832_v48 = vpop.f32.mrf.mxu0 }
 0x4db   :  { %3083 = vst [vmem:[#allocation15 + $0x70] sm:$0xff] %v2981_v28  ;;  %v8901_v28 = vadd.f32 %v8820_v61, %v8786_v47  ;;  %v3179_v33 = vadd.f32 %v3178_v18, %v3148_v26  ;;  %v3110_v11 = vadd.f32 %v3109_v4, %v8886_v27  ;;  %v8931_v17 = vadd.f32 %v8832_v48, %v8786_v47 }
 0x4dc   :  { %v2984_v31 = vpop.f32.mrf.mxu0 }
 0x4dd   :  { %v2985_v60 = vadd.f32 %v2984_v31, %v8783_v35  ;;  %v3151_v61 = vmul.f32 %v8901_v28, %v8901_v28  ;;  %v3111_v5 = vadd.f32 %v3110_v11, %v8894_v63  ;;  %v3155_v48 = vmul.f32 %v8931_v17, %v8931_v17 }
 0x4de   :  { %v8838_v41 = vpop.f32.mrf.mxu0 }
 0x4df   :  { %3084 = vst [vmem:[#allocation15 + $0x78] sm:$0xff] %v2985_v60  ;;  %v8909_v60 = vadd.f32 %v8823_v43, %v8786_v47  ;;  %v8939_v13 = vadd.f32 %v8838_v41, %v8786_v47 }
 0x4e0   :  { %v2990_v56 = vpop.f32.mrf.mxu0 }
 0x4e1   :  { %v2991_v36 = vadd.f32 %v2990_v56, %v8783_v35  ;;  %v3180_v56 = vadd.f32 %v3179_v33, %v3149_v29  ;;  %v3152_v43 = vmul.f32 %v8909_v60, %v8909_v60  ;;  %v3156_v41 = vmul.f32 %v8939_v13, %v8939_v13 }
 0x4e2   :  { %v8847_v10 = vpop.f32.mrf.mxu0 }
 0x4e3   :  { %3085 = vst [vmem:[#allocation15 + $0x80] sm:$0xff] %v2991_v36  ;;  %v8916_v36 = vadd.f32 %v8826_v55, %v8786_v47  ;;  %v3181_v23 = vadd.f32 %v3180_v56, %v3150_v3  ;;  %v8946_v38 = vadd.f32 %v8847_v10, %v8786_v47 }
 0x4e4   :  { %v2994_v30 = vpop.f32.mrf.mxu0 }
 0x4e5   :  { %v2995_v14 = vadd.f32 %v2994_v30, %v8783_v35  ;;  %v8924_v30 = vadd.f32 %v8829_v15, %v8786_v47  ;;  %v3182_v19 = vadd.f32 %v3181_v23, %v3151_v61  ;;  %v3153_v55 = vmul.f32 %v8916_v36, %v8916_v36 }
 0x4e6   :  { %v8862_v0 = vpop.f32.mrf.mxu0  ;;  %v3157_v10 = vmul.f32 %v8946_v38, %v8946_v38 }
 0x4e7   :  { %3086 = vst [vmem:[#allocation15 + $0x88] sm:$0xff] %v2995_v14  ;;  %v3112_v14 = vadd.f32 %v3111_v5, %v8901_v28  ;;  %v3154_v15 = vmul.f32 %v8924_v30, %v8924_v30 }
 0x4e8   :  { %v3000_v21 = vpop.f32.mrf.mxu0 }
 0x4e9   :  { %v3001_v49 = vadd.f32 %v3000_v21, %v8783_v35  ;;  %v3113_v53 = vadd.f32 %v3112_v14, %v8909_v60  ;;  %v3183_v21 = vadd.f32 %v3182_v19, %v3152_v43 }
 0x4ea   :  { %v8879_v50 = vpop.f32.mrf.mxu0 }
 0x4eb   :  { %3087 = vst [vmem:[#allocation15 + $0x90] sm:$0xff] %v3001_v49  ;;  %v3114_v44 = vadd.f32 %v3113_v53, %v8916_v36  ;;  %v3184_v12 = vadd.f32 %v3183_v21, %v3153_v55  ;;  %v8961_v18 = vadd.f32 %v8879_v50, %v8786_v47 }
 0x4ec   :  { %v3004_v54 = vpop.f32.mrf.mxu0 }
 0x4ed   :  { %v3005_v51 = vadd.f32 %v3004_v54, %v8783_v35  ;;  %v3115_v58 = vadd.f32 %v3114_v44, %v8924_v30  ;;  %v3185_v1 = vadd.f32 %v3184_v12, %v3154_v15  ;;  %v3159_v50 = vmul.f32 %v8961_v18, %v8961_v18 }
 0x4ee   :  { %v3006_v40 = vpop.f32.mrf.mxu0 }
 0x4ef   :  { %3088 = vst [vmem:[#allocation15 + $0x98] sm:$0xff] %v3005_v51  ;;  %v8954_v51 = vadd.f32 %v8862_v0, %v8786_v47  ;;  %v3116_v26 = vadd.f32 %v3115_v58, %v8931_v17  ;;  %v3186_v57 = vadd.f32 %v3185_v1, %v3155_v48  ;;  %v8968_v33 = vadd.f32 %v3006_v40, %v8786_v47 }
 0x4f0   :  { %v3010_v62 = vpop.f32.mrf.mxu0 }
 0x4f1   :  { %v3011_v31 = vadd.f32 %v3010_v62, %v8783_v35  ;;  %v3117_v62 = vadd.f32 %v3116_v26, %v8939_v13  ;;  %v3158_v0 = vmul.f32 %v8954_v51, %v8954_v51  ;;  %v3160_v40 = vmul.f32 %v8968_v33, %v8968_v33 }
 0x4f2   :  { %v3012_v42 = vpop.f32.mrf.mxu0 }
 0x4f3   :  { %3089 = vst [vmem:[#allocation15 + $0xa0] sm:$0xff] %v3011_v31  ;;  %v3187_v31 = vadd.f32 %v3186_v57, %v3156_v41  ;;  %v3118_v11 = vadd.f32 %v3117_v62, %v8946_v38  ;;  %v8974_v61 = vadd.f32 %v3012_v42, %v8786_v47 }
 0x4f4   :  { %v3014_v22 = vpop.f32.mrf.mxu0 }
 0x4f5   :  { %v3015_v6 = vadd.f32 %v3014_v22, %v8783_v35  ;;  %v3188_v56 = vadd.f32 %v3187_v31, %v3157_v10  ;;  %v3119_v5 = vadd.f32 %v3118_v11, %v8954_v51  ;;  %v3161_v42 = vmul.f32 %v8974_v61, %v8974_v61 }
 0x4f6   :  { %v3016_v16 = vpop.f32.mrf.mxu0 }
 0x4f7   :  { %3090 = vst [vmem:[#allocation15 + $0xa8] sm:$0xff] %v3015_v6  ;;  %v3189_v23 = vadd.f32 %v3188_v56, %v3158_v0  ;;  %v8981_v43 = vadd.f32 %v3016_v16, %v8786_v47  ;;  %v3120_v19 = vadd.f32 %v3119_v5, %v8961_v18 }
 0x4f8   :  { %v3020_v2 = vpop.f32.mrf.mxu0 }
 0x4f9   :  { %v3021_v25 = vadd.f32 %v3020_v2, %v8783_v35  ;;  %v3190_v55 = vadd.f32 %v3189_v23, %v3159_v50  ;;  %v3162_v16 = vmul.f32 %v8981_v43, %v8981_v43 }
 0x4fa   :  { %v3022_v49 = vpop.f32.mrf.mxu0 }
 0x4fb   :  { %3091 = vst [vmem:[#allocation15 + $0xb0] sm:$0xff] %v3021_v25  ;;  %v8987_v2 = vadd.f32 %v3022_v49, %v8786_v47  ;;  %v3121_v25 = vadd.f32 %v3120_v19, %v8968_v33  ;;  %v3191_v15 = vadd.f32 %v3190_v55, %v3160_v40 }
 0x4fc   :  { %v3024_v7 = vpop.f32.mrf.mxu0 }
 0x4fd   :  { %v3025_v54 = vadd.f32 %v3024_v7, %v8783_v35  ;;  %v3122_v48 = vadd.f32 %v3121_v25, %v8974_v61  ;;  %v3192_v7 = vadd.f32 %v3191_v15, %v3161_v42  ;;  %v3163_v49 = vmul.f32 %v8987_v2, %v8987_v2 }
 0x4fe   :  { %v3026_v32 = vpop.f32.mrf.mxu0 }
 0x4ff   :  { %3092 = vst [vmem:[#allocation15 + $0xb8] sm:$0xff] %v3025_v54  ;;  %v8994_v44 = vadd.f32 %v3026_v32, %v8786_v47  ;;  %v3123_v1 = vadd.f32 %v3122_v48, %v8981_v43  ;;  %v3193_v26 = vadd.f32 %v3192_v7, %v3162_v16 }
 0x500   :  { %v3030_v29 = vpop.f32.mrf.mxu0 }
 0x501   :  { %v3031_v4 = vadd.f32 %v3030_v29, %v8783_v35  ;;  %v3164_v32 = vmul.f32 %v8994_v44, %v8994_v44  ;;  %v3124_v10 = vadd.f32 %v3123_v1, %v8987_v2  ;;  %v3194_v62 = vadd.f32 %v3193_v26, %v3163_v49 }
 0x502   :  { %v3032_v3 = vpop.f32.mrf.mxu0 }
 0x503   :  { %3093 = vst [vmem:[#allocation15 + $0xc0] sm:$0xff] %v3031_v4  ;;  %v9000_v58 = vadd.f32 %v3032_v3, %v8786_v47  ;;  %v3125_v0 = vadd.f32 %v3124_v10, %v8994_v44  ;;  %v3195_v56 = vadd.f32 %v3194_v62, %v3164_v32 }
 0x504   :  { %v3034_v22 = vpop.f32.mrf.mxu0 }
 0x505   :  { %v3035_v6 = vadd.f32 %v3034_v22, %v8783_v35  ;;  %v3165_v4 = vmul.f32 %v9000_v58, %v9000_v58  ;;  %v3126_v22 = vadd.f32 %v3125_v0, %v9000_v58 }
 0x506   :  { %v3036_v14 = vpop.f32.mrf.mxu0 }
 0x507   :  { %3094 = vst [vmem:[#allocation15 + $0xc8] sm:$0xff] %v3035_v6  ;;  %v9008_v29 = vadd.f32 %v3036_v14, %v8786_v47  ;;  %v3196_v23 = vadd.f32 %v3195_v56, %v3165_v4 }
 0x508   :  { %v3040_v53 = vpop.f32.mrf.mxu0 }
 0x509   :  { %v3041_v21 = vadd.f32 %v3040_v53, %v8783_v35  ;;  %v3166_v5 = vmul.f32 %v9008_v29, %v9008_v29  ;;  %v3127_v14 = vadd.f32 %v3126_v22, %v9008_v29 }
 0x50a   :  { %v3042_v12 = vpop.f32.mrf.mxu0 }
 0x50b   :  { %3095 = vst [vmem:[#allocation15 + $0xd0] sm:$0xff] %v3041_v21  ;;  %v9014_v3 = vadd.f32 %v3042_v12, %v8786_v47  ;;  %v3197_v25 = vadd.f32 %v3196_v23, %v3166_v5 }
 0x50c   :  { %v3044_v54 = vpop.f32.mrf.mxu0 }
 0x50d   :  { %v3045_v41 = vadd.f32 %v3044_v54, %v8783_v35  ;;  %v3167_v19 = vmul.f32 %v9014_v3, %v9014_v3  ;;  %v3128_v21 = vadd.f32 %v3127_v14, %v9014_v3 }
 0x50e   :  { %v3046_v57 = vpop.f32.mrf.mxu0 }
 0x50f   :  { %3096 = vst [vmem:[#allocation15 + $0xd8] sm:$0xff] %v3045_v41  ;;  %v9021_v6 = vadd.f32 %v3046_v57, %v8786_v47  ;;  %v3198_v48 = vadd.f32 %v3197_v25, %v3167_v19 }
 0x510   :  { %v3050_v31 = vpop.f32.mrf.mxu0 }
 0x511   :  { %v3051_v11 = vadd.f32 %v3050_v31, %v8783_v35  ;;  %v3168_v15 = vmul.f32 %v9021_v6, %v9021_v6  ;;  %v3129_v7 = vadd.f32 %v3128_v21, %v9021_v6 }
 0x512   :  { %v3052_v50 = vpop.f32.mrf.mxu0 }
 0x513   :  { %3097 = vst [vmem:[#allocation15 + $0xe0] sm:$0xff] %v3051_v11  ;;  %v9027_v55 = vadd.f32 %v3052_v50, %v8786_v47  ;;  %v3199_v41 = vadd.f32 %v3198_v48, %v3168_v15 }
 0x514   :  { %v3054_v40 = vpop.f32.mrf.mxu0 }
 0x515   :  { %v3055_v42 = vadd.f32 %v3054_v40, %v8783_v35  ;;  %v3169_v49 = vmul.f32 %v9027_v55, %v9027_v55  ;;  %v3130_v26 = vadd.f32 %v3129_v7, %v9027_v55 }
 0x516   :  { %v3056_v53 = vpop.f32.mrf.mxu0 }
 0x517   :  { %3098 = vst [vmem:[#allocation15 + $0xe8] sm:$0xff] %v3055_v42  ;;  %v9034_v16 = vadd.f32 %v3056_v53, %v8786_v47  ;;  %v3200_v62 = vadd.f32 %v3199_v41, %v3169_v49 }
 0x518   :  { %v3060_v12 = vpop.f32.mrf.mxu0 }
 0x519   :  { %v3061_v54 = vadd.f32 %v3060_v12, %v8783_v35  ;;  %v3170_v32 = vmul.f32 %v9034_v16, %v9034_v16  ;;  %v3131_v4 = vadd.f32 %v3130_v26, %v9034_v16 }
 0x51a   :  { %v3062_v1 = vpop.f32.mrf.mxu0 }
 0x51b   :  { %3099 = vst [vmem:[#allocation15 + $0xf0] sm:$0xff] %v3061_v54  ;;  %v9044_v57 = vadd.f32 %v3062_v1, %v8786_v47  ;;  %v3201_v56 = vadd.f32 %v3200_v62, %v3170_v32 }
 0x51c   :  { %v3064_v10 = vpop.f32.mrf.mxu0 }
 0x51d   :  { %v3171_v31 = vmul.f32 %v9044_v57, %v9044_v57  ;;  %v3065_v0 = vadd.f32 %v3064_v10, %v8783_v35  ;;  %v3132_v50 = vadd.f32 %v3131_v4, %v9044_v57 }
 0x51e   :  { %v3066_v11 = vpop.f32.mrf.mxu0 }
 0x51f   :  { %3100 = vst [vmem:[#allocation15 + $0xf8] sm:$0xff] %v3065_v0  ;;  %v3067_v22 = vadd.f32 %v3066_v11, %v8786_v47  ;;  %v3202_v5 = vadd.f32 %v3201_v56, %v3171_v31 }
 0x521   :  { %v3133_v23 = vadd.f32 %v3132_v50, %v3067_v22  ;;  %v3172_v40 = vmul.f32 %v3067_v22, %v3067_v22 }
 0x523   :  { %v3134_v14 = vrot.slane %v3133_v23, 4  ;;  %v3203_v19 = vadd.f32 %v3202_v5, %v3172_v40 }
 0x525   :  { %v3135_v42 = vadd.f32 %v3134_v14, %v3133_v23  ;;  %v3204_v53 = vrot.slane %v3203_v19, 4 }
 0x527   :  { %v3136_v25 = vrot.slane %v3135_v42, 2  ;;  %v3205_v21 = vadd.f32 %v3204_v53, %v3203_v19 }
 0x529   :  { %v3137_v15 = vadd.f32 %v3136_v25, %v3135_v42  ;;  %v3206_v12 = vrot.slane %v3205_v21, 2 }
 0x52b   :  { %v3138_v48 = vrot.slane %v3137_v15, 1  ;;  %v3207_v35 = vadd.f32 %v3206_v12, %v3205_v21 }
 0x52d   :  { %v3139_v7 = vadd.f32 %v3138_v48, %v3137_v15  ;;  %v3208_v49 = vrot.slane %v3207_v35, 1 }
 0x52f   :  { %v9052_v54 = vmul.f32 0.00390625, %v3139_v7  ;;  %v3209_v1 = vadd.f32 %v3208_v49, %v3207_v35 }
 0x531   :  { %v3210_v41 = vmul.f32 0.00390625, %v3209_v1  ;;  %v3211_v47 = vmul.f32 %v9052_v54, %v9052_v54  ;;  %v3245_v26 = vsub.f32 %v3067_v22, %v9052_v54  ;;  %v3235_v4 = vsub.f32 %v8981_v43, %v9052_v54 }
 0x532   :  { %v3236_v31 = vsub.f32 %v8987_v2, %v9052_v54  ;;  %v3237_v0 = vsub.f32 %v8994_v44, %v9052_v54  ;;  %v3238_v11 = vsub.f32 %v9000_v58, %v9052_v54  ;;  %v3239_v56 = vsub.f32 %v9008_v29, %v9052_v54 }
 0x533   :  { %v3212_v32 = vsub.f32 %v3210_v41, %v3211_v47  ;;  %v3240_v50 = vsub.f32 %v9014_v3, %v9052_v54  ;;  %v3241_v22 = vsub.f32 %v9021_v6, %v9052_v54  ;;  %v3242_v43 = vsub.f32 %v9027_v55, %v9052_v54  ;;  %v9083_v3 = vld [vmem:[#allocation5 + $0x7] ss:$0 sm:$0xff] }
 0x534   :  { %v3243_v2 = vsub.f32 %v9034_v16, %v9052_v54  ;;  %v3244_v44 = vsub.f32 %v9044_v57, %v9052_v54  ;;  %v3214_v58 = vsub.f32 %v8790_v20, %v9052_v54  ;;  %v3215_v29 = vsub.f32 %v8836_v59, %v9052_v54 }
 0x535   :  { %v3213_v10 = vmax.f32 %v3212_v32, 0.0  ;;  %v3216_v6 = vsub.f32 %v8795_v8, %v9052_v54  ;;  %v3217_v55 = vsub.f32 %v8845_v24, %v9052_v54  ;;  %v3218_v16 = vsub.f32 %v8802_v45, %v9052_v54 }
 0x536   :  { %v3226_v57 = vsub.f32 %v8916_v36, %v9052_v54  ;;  %v3227_v59 = vsub.f32 %v8924_v30, %v9052_v54  ;;  %v3228_v23 = vsub.f32 %v8931_v17, %v9052_v54  ;;  %v3229_v8 = vsub.f32 %v8939_v13, %v9052_v54 }
 0x537   :  { %v3246_v62 = vadd.f32 1e-05, %v3213_v10  ;;  %v3230_v24 = vsub.f32 %v8946_v38, %v9052_v54  ;;  %v3231_v45 = vsub.f32 %v8954_v51, %v9052_v54  ;;  %v3232_v36 = vsub.f32 %v8961_v18, %v9052_v54 }
 0x538   :  { %v3233_v40 = vsub.f32 %v8968_v33, %v9052_v54  ;;  %v3234_v17 = vsub.f32 %v8974_v61, %v9052_v54  ;;  %v3219_v32 = vsub.f32 %v8860_v9, %v9052_v54 }
 0x539   :  { %6476 = vrsqrt.f32 %v3246_v62 }
 0x546   :  { %v9081_v5 = vpop.eup %6476 }
 0x547   :  { %v3279_v20 = vmul.f32 %v9081_v5, %v3245_v26  ;;  %v3248_v13 = vmul.f32 %v9081_v5, %v3214_v58  ;;  %v3249_v14 = vmul.f32 %v9081_v5, %v3215_v29  ;;  %v3250_v38 = vmul.f32 %v9081_v5, %v3216_v6 }
 0x548   :  { %v3251_v51 = vmul.f32 %v9081_v5, %v3217_v55  ;;  %v3260_v19 = vmul.f32 %v9081_v5, %v3226_v57  ;;  %v3261_v18 = vmul.f32 %v9081_v5, %v3227_v59  ;;  %v3262_v33 = vmul.f32 %v9081_v5, %v3228_v23 }
 0x549   :  { %v9109_v30 = vmul.f32 %v3279_v20, %v9083_v3  ;;  %v3263_v42 = vmul.f32 %v9081_v5, %v3229_v8  ;;  %v3264_v53 = vmul.f32 %v9081_v5, %v3230_v24  ;;  %v3265_v61 = vmul.f32 %v9081_v5, %v3231_v45 }
 0x54a   :  { %v3266_v25 = vmul.f32 %v9081_v5, %v3232_v36  ;;  %v3267_v21 = vmul.f32 %v9081_v5, %v3233_v40  ;;  %v3268_v15 = vmul.f32 %v9081_v5, %v3234_v17  ;;  %v3269_v12 = vmul.f32 %v9081_v5, %v3235_v4 }
 0x54b   :  { %v3270_v48 = vmul.f32 %v9081_v5, %v3236_v31  ;;  %v3271_v35 = vmul.f32 %v9081_v5, %v3237_v0  ;;  %v3272_v7 = vmul.f32 %v9081_v5, %v3238_v11  ;;  %v3273_v49 = vmul.f32 %v9081_v5, %v3239_v56 }
 0x54c   :  { %v3274_v1 = vmul.f32 %v9081_v5, %v3240_v50  ;;  %v3275_v41 = vmul.f32 %v9081_v5, %v3241_v22  ;;  %v3276_v47 = vmul.f32 %v9081_v5, %v3242_v43  ;;  %v3277_v26 = vmul.f32 %v9081_v5, %v3243_v2 }
 0x54d   :  { %v3252_v10 = vmul.f32 %v9081_v5, %v3218_v16  ;;  %v3278_v62 = vmul.f32 %v9081_v5, %v3244_v44  ;;  %v3220_v4 = vsub.f32 %v8869_v52, %v9052_v54  ;;  %v3253_v31 = vmul.f32 %v9081_v5, %v3219_v32  ;;  %v9150_v44 = vld [vmem:[#allocation5 + $0x30] ss:$0 sm:$0xff] }
 0x54e   :  { %v3280_v0 = vmul.f32 %v3248_v13, %v9083_v3  ;;  %v3281_v11 = vmul.f32 %v3249_v14, %v9083_v3  ;;  %v3282_v56 = vmul.f32 %v3250_v38, %v9083_v3  ;;  %v3283_v50 = vmul.f32 %v3251_v51, %v9083_v3 }
 0x54f   :  { %v3284_v22 = vmul.f32 %v3252_v10, %v9083_v3  ;;  %v3296_v9 = vmul.f32 %v3264_v53, %v9083_v3  ;;  %v3297_v43 = vmul.f32 %v3265_v61, %v9083_v3  ;;  %v3298_v2 = vmul.f32 %v3266_v25, %v9083_v3 }
 0x550   :  { %v3299_v52 = vmul.f32 %v3267_v21, %v9083_v3  ;;  %v3300_v58 = vmul.f32 %v3268_v15, %v9083_v3  ;;  %v3301_v29 = vmul.f32 %v3269_v12, %v9083_v3  ;;  %v3302_v6 = vmul.f32 %v3270_v48, %v9083_v3 }
 0x551   :  { %v3303_v55 = vmul.f32 %v3271_v35, %v9083_v3  ;;  %v3304_v16 = vmul.f32 %v3272_v7, %v9083_v3  ;;  %v9159_v57 = vmul.f32 %v3273_v49, %v9083_v3  ;;  %v9162_v20 = vmul.f32 %v3274_v1, %v9083_v3 }
 0x552   :  { %v9165_v59 = vmul.f32 %v3275_v41, %v9083_v3  ;;  %v9168_v23 = vmul.f32 %v3276_v47, %v9083_v3  ;;  %v9171_v8 = vmul.f32 %v3277_v26, %v9083_v3  ;;  %v9174_v24 = vmul.f32 %v3278_v62, %v9083_v3 }
 0x553   :  { %v3285_v45 = vmul.f32 %v3253_v31, %v9083_v3  ;;  %v3312_v36 = vadd.f32 %v3280_v0, %v9150_v44  ;;  %v3313_v40 = vadd.f32 %v3281_v11, %v9150_v44  ;;  %v3221_v17 = vsub.f32 %v8877_v39, %v9052_v54 }
 0x554   :  { %v3254_v13 = vmul.f32 %v9081_v5, %v3220_v4  ;;  %v3314_v14 = vadd.f32 %v3282_v56, %v9150_v44  ;;  %v3315_v38 = vadd.f32 %v3283_v50, %v9150_v44  ;;  %v3292_v51 = vmul.f32 %v3260_v19, %v9083_v3 }
 0x555   :  { %v3293_v53 = vmul.f32 %v3261_v18, %v9083_v3  ;;  %v3344_v61 = vmax.f32 %v3312_v36, 0.0  ;;  %v3345_v25 = vmax.f32 %v3313_v40, 0.0  ;;  %v3255_v21 = vmul.f32 %v9081_v5, %v3221_v17 }
 0x556   :  { %v3294_v15 = vmul.f32 %v3262_v33, %v9083_v3  ;;  %v3295_v12 = vmul.f32 %v3263_v42, %v9083_v3  ;;  %v9190_v39 = vadd.f32 %v3284_v22, %v9150_v44  ;;  %v9193_v35 = vadd.f32 %v3285_v45, %v9150_v44 }
 0x557   :  { %v3376_v48 = vpack.c.bf16 %v3345_v25, %v3344_v61  ;;  %v3222_v19 = vsub.f32 %v8886_v27, %v9052_v54  ;;  %v3346_v7 = vmax.f32 %v3314_v14, 0.0  ;;  %v3347_v18 = vmax.f32 %v3315_v38, 0.0 }
 0x558   :  { %v3223_v49 = vsub.f32 %v8894_v63, %v9052_v54  ;;  %v3286_v1 = vmul.f32 %v3254_v13, %v9083_v3  ;;  %v3324_v33 = vadd.f32 %v3292_v51, %v9150_v44  ;;  %v3325_v42 = vadd.f32 %v3293_v53, %v9150_v44 }
 0x559   :  { %3534 = vmatmul.mubr.bf16.vlgmr.msra.gmra.mxu1 %v3376_v48  ;;  %v3287_v41 = vmul.f32 %v3255_v21, %v9083_v3  ;;  %v3348_v47 = vmax.f32 %v9190_v39, 0.0  ;;  %v3326_v27 = vadd.f32 %v3294_v15, %v9150_v44  ;;  %v3327_v26 = vadd.f32 %v3295_v12, %v9150_v44 }
 0x55a   :  { %3543 = vmatprep.mubr.bf16.mxu1 %v6689_v34  ;;  %v3349_v32 = vmax.f32 %v9193_v35, 0.0  ;;  %v3356_v63 = vmax.f32 %v3324_v33, 0.0  ;;  %v3357_v10 = vmax.f32 %v3325_v42, 0.0  ;;  %v3328_v62 = vadd.f32 %v3296_v9, %v9150_v44 }
 0x55b   :  { %v3377_v4 = vpack.c.bf16 %v3347_v18, %v3346_v7  ;;  %v3358_v31 = vmax.f32 %v3326_v27, 0.0  ;;  %v3359_v0 = vmax.f32 %v3327_v26, 0.0  ;;  %v3329_v11 = vadd.f32 %v3297_v43, %v9150_v44 }
 0x55c   :  { %v9210_v56 = vpack.c.bf16 %v3357_v10, %v3356_v63  ;;  %v3360_v50 = vmax.f32 %v3328_v62, 0.0  ;;  %v3330_v22 = vadd.f32 %v3298_v2, %v9150_v44  ;;  %v3331_v45 = vadd.f32 %v3299_v52, %v9150_v44 }
 0x55d   :  { %v9214_v36 = vpack.c.bf16 %v3359_v0, %v3358_v31  ;;  %v3361_v40 = vmax.f32 %v3329_v11, 0.0  ;;  %v3332_v17 = vadd.f32 %v3300_v58, %v9150_v44  ;;  %v3333_v13 = vadd.f32 %v3301_v29, %v9150_v44 }
 0x55e   :  { %v3362_v9 = vmax.f32 %v3330_v22, 0.0  ;;  %v3363_v14 = vmax.f32 %v3331_v45, 0.0  ;;  %v3334_v38 = vadd.f32 %v3302_v6, %v9150_v44  ;;  %v3335_v43 = vadd.f32 %v3303_v55, %v9150_v44 }
 0x55f   :  { %v9220_v51 = vpack.c.bf16 %v3361_v40, %v3360_v50  ;;  %v3364_v53 = vmax.f32 %v3332_v17, 0.0  ;;  %v3365_v61 = vmax.f32 %v3333_v13, 0.0  ;;  %v3336_v2 = vadd.f32 %v3304_v16, %v9150_v44 }
 0x560   :  { %v9223_v52 = vpack.c.bf16 %v3363_v14, %v3362_v9  ;;  %v3366_v25 = vmax.f32 %v3334_v38, 0.0  ;;  %v3367_v21 = vmax.f32 %v3335_v43, 0.0  ;;  %v3337_v58 = vadd.f32 %v9159_v57, %v9150_v44  ;;  %v6332_v14 = vld [vmem:[#allocation13 + $0xf0] ss:$24 sps:$4 sm:$0xff]   ;;  %v6334_v38 = vld [vmem:[#allocation13 + $0xf4] ss:$24 sps:$4 sm:$0xff]  }
 0x561   :  { %3544 = vmatmul.mubr.bf16.gmra.mxu1 %v3377_v4  ;;  %v3386_v29 = vpack.c.bf16 %v3365_v61, %v3364_v53  ;;  %v3368_v6 = vmax.f32 %v3336_v2, 0.0  ;;  %v3338_v55 = vadd.f32 %v9162_v20, %v9150_v44  ;;  %v3339_v15 = vadd.f32 %v9165_v59, %v9150_v44  ;;  %v6335_v43 = vld [vmem:[#allocation13 + $0xc0] ss:$24 sps:$4 sm:$0xff]   ;;  %v6338_v53 = vld [vmem:[#allocation13 + $0x90] ss:$24 sps:$4 sm:$0xff]  }
 0x562   :  { %3553 = vmatprep.mubr.bf16.mxu1 %v6689_v34  ;;  %v3387_v12 = vpack.c.bf16 %v3367_v21, %v3366_v25  ;;  %v3369_v16 = vmax.f32 %v3337_v58, 0.0  ;;  %v3340_v39 = vadd.f32 %v9168_v23, %v9150_v44  ;;  %v3341_v48 = vadd.f32 %v9171_v8, %v9150_v44  ;;  %v6340_v61 = vld [vmem:[#allocation13 + $0x94] ss:$24 sps:$4 sm:$0xff]   ;;  %v6343_v2 = vld [vmem:[#allocation13 + $0x64] ss:$24 sps:$4 sm:$0xff]  }
 0x563   :  { %v3370_v35 = vmax.f32 %v3338_v55, 0.0  ;;  %v3371_v57 = vmax.f32 %v3339_v15, 0.0  ;;  %v3342_v7 = vadd.f32 %v9174_v24, %v9150_v44  ;;  %v3343_v18 = vadd.f32 %v9109_v30, %v9150_v44  ;;  %v6346_v25 = vld [vmem:[#allocation13 + $0x34] ss:$24 sps:$4 sm:$0xff]   ;;  %v6347_v21 = vld [vmem:[#allocation13] ss:$24 sps:$4 sm:$0xff]  }
 0x564   :  { %v3256_v20 = vmul.f32 %v9081_v5, %v3222_v19  ;;  %v3388_v33 = vpack.c.bf16 %v3369_v16, %v3368_v6  ;;  %v3372_v59 = vmax.f32 %v3340_v39, 0.0  ;;  %v3373_v42 = vmax.f32 %v3341_v48, 0.0  ;;  %v6349_v58 = vld [vmem:[#allocation13 + $0x4] ss:$24 sps:$4 sm:$0xff]   ;;  %v6352_v6 = vld [vmem:[#allocation13 + $0x2d4] ss:$24 sps:$4 sm:$0xff]  }
 0x565   :  { %v3257_v27 = vmul.f32 %v9081_v5, %v3223_v49  ;;  %v3389_v26 = vpack.c.bf16 %v3371_v57, %v3370_v35  ;;  %v3374_v23 = vmax.f32 %v3342_v7, 0.0  ;;  %v3375_v63 = vmax.f32 %v3343_v18, 0.0  ;;  %v6353_v55 = vld [vmem:[#allocation13 + $0x158] ss:$24 sps:$4 sm:$0xff]   ;;  %v6355_v15 = vld [vmem:[#allocation13 + $0x15c] ss:$24 sps:$4 sm:$0xff]  }
 0x566   :  { %v3378_v10 = vpack.c.bf16 %v3349_v32, %v3348_v47  ;;  %v3318_v8 = vadd.f32 %v3286_v1, %v9150_v44  ;;  %v3319_v62 = vadd.f32 %v3287_v41, %v9150_v44  ;;  %v3390_v4 = vpack.c.bf16 %v3373_v42, %v3372_v59  ;;  %5102 = vmatprep.subr.bf16.mxu1 %v6355_v15  ;;  %v6358_v16 = vld [vmem:[#allocation13 + $0x12c] ss:$24 sps:$4 sm:$0xff]   ;;  %v6359_v39 = vld [vmem:[#allocation13 + $0x2a0] ss:$24 sps:$4 sm:$0xff]   ;;  %v6364_v7 = vld [vmem:[#allocation13 + $0xfc] ss:$24 sps:$4 sm:$0xff]  }
 0x567   :  { %v3391_v24 = vpack.c.bf16 %v3375_v63, %v3374_v23  ;;  %v3288_v30 = vmul.f32 %v3256_v20, %v9083_v3  ;;  %v3289_v19 = vmul.f32 %v3257_v27, %v9083_v3  ;;  %v3224_v49 = vsub.f32 %v8901_v28, %v9052_v54  ;;  %5103 = vmatpush1.bf16.msra.mxu1 %v6353_v55  ;;  %v6361_v48 = vld [vmem:[#allocation13 + $0x2a4] ss:$24 sps:$4 sm:$0xff]   ;;  %v6362_v35 = vld [vmem:[#allocation13 + $0xf8] ss:$24 sps:$4 sm:$0xff]  }
 0x568   :  { %v3350_v31 = vmax.f32 %v3318_v8, 0.0  ;;  %v3351_v0 = vmax.f32 %v3319_v62, 0.0  ;;  %v3225_v47 = vsub.f32 %v8909_v60, %v9052_v54  ;;  %5104 = vmatprep.subr.bf16.mxu1 %v6358_v16 }
 0x569   :  { %3554 = vmatmul.mubr.bf16.gmra.mxu1 %v3378_v10  ;;  %v3258_v1 = vmul.f32 %v9081_v5, %v3224_v49  ;;  %v3320_v11 = vadd.f32 %v3288_v30, %v9150_v44  ;;  %v3321_v50 = vadd.f32 %v3289_v19, %v9150_v44 }
 0x56a   :  { %3563 = vmatprep.mubr.bf16.mxu1 %v6689_v34  ;;  %v3259_v41 = vmul.f32 %v9081_v5, %v3225_v47  ;;  %v3379_v32 = vpack.c.bf16 %v3351_v0, %v3350_v31  ;;  %v6373_v31 = vld [vmem:[#allocation13 + $0x9c] ss:$24 sps:$4 sm:$0xff]   ;;  %v6371_v0 = vld [vmem:[#allocation13 + $0x98] ss:$24 sps:$4 sm:$0xff]  }
 0x56b   :  { %v3290_v22 = vmul.f32 %v3258_v1, %v9083_v3  ;;  %v3352_v28 = vmax.f32 %v3320_v11, 0.0  ;;  %v3353_v40 = vmax.f32 %v3321_v50, 0.0  ;;  %v6376_v1 = vld [vmem:[#allocation13 + $0x6c] ss:$24 sps:$4 sm:$0xff]   ;;  %v6382_v50 = vld [vmem:[#allocation13 + $0x3c] ss:$24 sps:$4 sm:$0xff]  }
 0x56c   :  { %v3291_v45 = vmul.f32 %v3259_v41, %v9083_v3  ;;  %v6326_v3 = vld [vmem:[#allocation13 + $0x150] ss:$24 sps:$4 sm:$0xff]  }
 0x56d   :  { %v3380_v17 = vpack.c.bf16 %v3353_v40, %v3352_v28  ;;  %v3322_v60 = vadd.f32 %v3290_v22, %v9150_v44  ;;  %v6374_v41 = vld [vmem:[#allocation13 + $0x68] ss:$24 sps:$4 sm:$0xff]   ;;  %v6380_v22 = vld [vmem:[#allocation13 + $0x38] ss:$24 sps:$4 sm:$0xff]   ;;  %v6385_v40 = vld [vmem:[#allocation13 + $0xc] ss:$24 sps:$4 sm:$0xff]  }
 0x56e   :  { %v3323_v54 = vadd.f32 %v3291_v45, %v9150_v44  ;;  %v6328_v44 = vld [vmem:[#allocation13 + $0x154] ss:$24 sps:$4 sm:$0xff]  }
 0x56f   :  { %v3354_v5 = vmax.f32 %v3322_v60, 0.0  ;;  %4909 = vmatprep.subr.bf16.mxu0 %v6328_v44  ;;  %v6394_v44 = vld [vmem:[#allocation13 + $0x2ac] ss:$24 sps:$4 sm:$0xff]  }
 0x570   :  { %v3355_v13 = vmax.f32 %v3323_v54, 0.0  ;;  %4910 = vmatpush1.bf16.msra.mxu0 %v6326_v3 }
 0x571   :  { %3564 = vmatmul.mubr.bf16.gmra.mxu1 %v3379_v32 }
 0x572   :  { %3573 = vmatprep.mubr.bf16.mxu1 %v6689_v34  ;;  %v3381_v9 = vpack.c.bf16 %v3355_v13, %v3354_v5  ;;  %v6391_v5 = vld [vmem:[#allocation13 + $0x2dc] ss:$24 sps:$4 sm:$0xff]   ;;  %v6389_v13 = vld [vmem:[#allocation13 + $0x2d8] ss:$24 sps:$4 sm:$0xff]  }
 0x579   :  { %3574 = vmatmul.mubr.bf16.gmra.mxu1 %v3380_v17  ;;  %v6383_v17 = vld [vmem:[#allocation13 + $0x8] ss:$24 sps:$4 sm:$0xff]  }
 0x57a   :  { %3583 = vmatprep.mubr.bf16.mxu1 %v6689_v34 }
 0x581   :  { %3584 = vmatmul.mubr.bf16.gmra.mxu1 %v3381_v9 }
 0x582   :  { %3593 = vmatprep.mubr.bf16.mxu1 %v6689_v34 }
 0x589   :  { %3594 = vmatmul.mubr.bf16.gmra.mxu1 %v9210_v56  ;;  %v6329_v56 = vld [vmem:[#allocation13 + $0x120] ss:$24 sps:$4 sm:$0xff]  }
 0x58a   :  { %3603 = vmatprep.mubr.bf16.mxu1 %v6689_v34 }
 0x591   :  { %3604 = vmatmul.mubr.bf16.gmra.mxu1 %v9214_v36  ;;  %v6331_v36 = vld [vmem:[#allocation13 + $0x124] ss:$24 sps:$4 sm:$0xff]  }
 0x592   :  { %3613 = vmatprep.mubr.bf16.mxu1 %v6689_v34  ;;  %4911 = vmatprep.subr.bf16.mxu0 %v6331_v36 }
 0x593   :  { %4912 = vmatpush1.bf16.msra.mxu0 %v6329_v56  ;;  %v6392_v56 = vld [vmem:[#allocation13 + $0x2a8] ss:$24 sps:$4 sm:$0xff]  }
 0x594   :  { %4913 = vmatprep.subr.bf16.mxu0 %v6334_v38  ;;  %v6370_v38 = vld [vmem:[#allocation13 + $0x274] ss:$24 sps:$4 sm:$0xff]  }
 0x597   :  { %4914 = vmatpush1.bf16.msra.mxu0 %v6332_v14 }
 0x599   :  { %3614 = vmatmul.mubr.bf16.gmra.mxu1 %v9220_v51  ;;  %v6337_v51 = vld [vmem:[#allocation13 + $0xc4] ss:$24 sps:$4 sm:$0xff]  }
 0x59a   :  { %3623 = vmatprep.mubr.bf16.mxu1 %v6689_v34  ;;  %4915 = vmatprep.subr.bf16.mxu0 %v6337_v51  ;;  %v6368_v51 = vld [vmem:[#allocation13 + $0x270] ss:$24 sps:$4 sm:$0xff]  }
 0x59b   :  { %4916 = vmatpush1.bf16.msra.mxu0 %v6335_v43  ;;  %v6400_v43 = vld [vmem:[#allocation13 + $0x27c] ss:$24 sps:$4 sm:$0xff]  }
 0x59c   :  { %4917 = vmatprep.subr.bf16.mxu0 %v6340_v61  ;;  %v3393_v61 = vld [vmem:[#allocation5 + $0x31] ss:$8 sm:$0x3] }
 0x59f   :  { %4918 = vmatpush1.bf16.msra.mxu0 %v6338_v53  ;;  %v6398_v53 = vld [vmem:[#allocation13 + $0x278] ss:$24 sps:$4 sm:$0xff]  }
 0x5a0   :  { %4919 = vmatprep.subr.bf16.mxu0 %v6343_v2 }
 0x5a1   :  { %3624 = vmatmul.mubr.bf16.gmra.mxu1 %v9223_v52  ;;  %v6344_v52 = vld [vmem:[#allocation13 + $0x30] ss:$24 sps:$4 sm:$0xff]  }
 0x5a2   :  { %3633 = vmatprep.mubr.bf16.mxu1 %v6689_v34 }
 0x5a9   :  { %3634 = vmatmul.mubr.bf16.gmra.mxu1 %v3386_v29  ;;  %v6350_v29 = vld [vmem:[#allocation13 + $0x2d0] ss:$24 sps:$4 sm:$0xff]  }
 0x5aa   :  { %3643 = vmatprep.mubr.bf16.mxu1 %v6689_v34 }
 0x5b1   :  { %3644 = vmatmul.mubr.bf16.gmra.mxu1 %v3387_v12  ;;  %v6356_v12 = vld [vmem:[#allocation13 + $0x128] ss:$24 sps:$4 sm:$0xff]  }
 0x5b2   :  { %3653 = vmatprep.mubr.bf16.mxu1 %v6689_v34  ;;  %5105 = vmatpush1.bf16.msra.mxu1 %v6356_v12 }
 0x5b3   :  { %5106 = vmatprep.subr.bf16.mxu1 %v6364_v7 }
 0x5b6   :  { %5107 = vmatpush1.bf16.msra.mxu1 %v6362_v35 }
 0x5b9   :  { %3654 = vmatmul.mubr.bf16.gmra.mxu1 %v3388_v33 }
 0x5ba   :  { %3663 = vmatprep.mubr.bf16.mxu1 %v6689_v34 }
 0x5c1   :  { %3664 = vmatmul.mubr.bf16.gmra.mxu1 %v3389_v26 }
 0x5c2   :  { %3673 = vmatprep.mubr.bf16.mxu1 %v6689_v34 }
 0x5c9   :  { %3674 = vmatmul.mubr.bf16.gmra.mxu1 %v3390_v4  ;;  %v6367_v4 = vld [vmem:[#allocation13 + $0xcc] ss:$24 sps:$4 sm:$0xff]  }
 0x5ca   :  { %3683 = vmatprep.mubr.bf16.mxu1 %v6689_v34  ;;  %v6341_v34 = vld [vmem:[#allocation13 + $0x60] ss:$24 sps:$4 sm:$0xff]   ;;  %5108 = vmatprep.subr.bf16.mxu1 %v6367_v4 }
 0x5cb   :  { %4920 = vmatpush1.bf16.msra.mxu0 %v6341_v34 }
 0x5cc   :  { %4921 = vmatprep.subr.bf16.mxu0 %v6346_v25  ;;  %v6403_v25 = vld [vmem:[#allocation13 + $0x24c] ss:$24 sps:$4 sm:$0xff]  }
 0x5cf   :  { %4922 = vmatpush1.bf16.msra.mxu0 %v6344_v52  ;;  %v6379_v52 = vld [vmem:[#allocation13 + $0x244] ss:$24 sps:$4 sm:$0xff]  }
 0x5d0   :  { %4923 = vmatprep.subr.bf16.mxu0 %v6349_v58  ;;  %v6377_v58 = vld [vmem:[#allocation13 + $0x240] ss:$24 sps:$4 sm:$0xff]  }
 0x5d1   :  { %3684 = vmatmul.mubr.bf16.gmra.mxu1 %v3391_v24  ;;  %v6365_v24 = vld [vmem:[#allocation13 + $0xc8] ss:$24 sps:$4 sm:$0xff]  }
 0x5d2   :  { %5109 = vmatpush1.bf16.msra.mxu1 %v6365_v24 }
 0x5d3   :  { %4924 = vmatpush1.bf16.msra.mxu0 %v6347_v21  ;;  %5110 = vmatprep.subr.bf16.mxu1 %v6373_v31  ;;  %v9334_v21 = vrot.slane %v3393_v61, %v11264_v37  ;;  %v6407_v31 = vld [vmem:[#allocation13 + $0x218] ss:$24 sps:$4 sm:$0xff]  }
 0x5d4   :  { %4925 = vmatprep.subr.bf16.mxu0 %v6352_v6  ;;  %v9337_v6 = vrot.slane %v3393_v61, %v11265_v46 }
 0x5d6   :  { %5111 = vmatpush1.bf16.msra.mxu1 %v6371_v0  ;;  %v6409_v0 = vld [vmem:[#allocation13 + $0x21c] ss:$24 sps:$4 sm:$0xff]  }
 0x5d7   :  { %4926 = vmatpush2.bf16.msra.mxu0 %v6350_v29  ;;  %5112 = vmatprep.subr.bf16.mxu1 %v6376_v1  ;;  %v6401_v29 = vld [vmem:[#allocation13 + $0x248] ss:$24 sps:$4 sm:$0xff]  }
 0x5d8   :  { %4927 = vmatprep.subr.bf16.mxu0 %v6361_v48  ;;  %v6388_v48 = vld [vmem:[#allocation13 + $0x214] ss:$24 sps:$4 sm:$0xff]   ;;  %v6395_v1 = vld [vmem:[#allocation13 + $0x1e0] ss:$24 sps:$4 sm:$0xff]  }
 0x5da   :  { %5113 = vmatpush1.bf16.msra.mxu1 %v6374_v41 }
 0x5db   :  { %4928 = vmatpush2.bf16.msra.mxu0 %v6359_v39  ;;  %5114 = vmatprep.subr.bf16.mxu1 %v6382_v50  ;;  %v6386_v39 = vld [vmem:[#allocation13 + $0x210] ss:$24 sps:$4 sm:$0xff]  }
 0x5dc   :  { %4929 = vmatprep.subr.bf16.mxu0 %v6370_v38 }
 0x5de   :  { %5115 = vmatpush1.bf16.msra.mxu1 %v6380_v22  ;;  %v6406_v22 = vld [vmem:[#allocation13 + $0x1b4] ss:$24 sps:$4 sm:$0xff]  }
 0x5df   :  { %5116 = vmatprep.subr.bf16.mxu1 %v6385_v40  ;;  %4930 = vmatpush2.bf16.msra.mxu0 %v6368_v51 }
 0x5e0   :  { %4931 = vmatprep.subr.bf16.mxu0 %v6379_v52  ;;  %v6404_v52 = vld [vmem:[#allocation13 + $0x1b0] ss:$24 sps:$4 sm:$0xff]  }
 0x5e2   :  { %5117 = vmatpush1.bf16.msra.mxu1 %v6383_v17 }
 0x5e3   :  { %5118 = vmatprep.subr.bf16.mxu1 %v6391_v5  ;;  %4932 = vmatpush2.bf16.msra.mxu0 %v6377_v58  ;;  %v6410_v5 = vld [vmem:[#allocation13 + $0x1e8] ss:$24 sps:$4 sm:$0xff]  }
 0x5e4   :  { %4933 = vmatprep.subr.bf16.mxu0 %v6388_v48  ;;  %v6415_v48 = vld [vmem:[#allocation13 + $0x184] ss:$24 sps:$4 sm:$0xff]  }
 0x5e6   :  { %5119 = vmatpush2.bf16.msra.mxu1 %v6389_v13 }
 0x5e7   :  { %5120 = vmatprep.subr.bf16.mxu1 %v6394_v44  ;;  %4934 = vmatpush2.bf16.msra.mxu0 %v6386_v39 }
 0x5ea   :  { %5121 = vmatpush2.bf16.msra.mxu1 %v6392_v56 }
 0x5eb   :  { %5122 = vmatprep.subr.bf16.mxu1 %v6400_v43 }
 0x5ee   :  { %5123 = vmatpush2.bf16.msra.mxu1 %v6398_v53 }
 0x5ef   :  { %5124 = vmatprep.subr.bf16.mxu1 %v6403_v25 }
 0x5f2   :  { %5125 = vmatpush2.bf16.msra.mxu1 %v6401_v29 }
 0x5f3   :  { %5126 = vmatprep.subr.bf16.mxu1 %v6409_v0 }
 0x5f6   :  { %5127 = vmatpush2.bf16.msra.mxu1 %v6407_v31 }
 0x619   :  { %v9275_v57 = vpop.f32.mrf.mxu1 }
 0x61a   :  { %v9353_v35 = vadd.f32 %v9275_v57, %v9334_v21 }
 0x61b   :  { %v9277_v18 = vpop.f32.mrf.mxu1 }
 0x61c   :  { %v9361_v4 = vadd.f32 %v9277_v18, %v9337_v6  ;;  %v6412_v18 = vld [vmem:[#allocation13 + $0x1ec] ss:$24 sps:$4 sm:$0xff]   ;;  %v3774_v40 = vmul.f32 %v9353_v35, %v9353_v35 }
 0x61d   :  { %v9279_v20 = vpop.f32.mrf.mxu1  ;;  %5128 = vmatprep.subr.bf16.mxu1 %v6412_v18 }
 0x61e   :  { %v9343_v15 = vadd.f32 %v9279_v20, %v9334_v21  ;;  %v6397_v20 = vld [vmem:[#allocation13 + $0x1e4] ss:$24 sps:$4 sm:$0xff]   ;;  %5129 = vmatpush2.bf16.msra.mxu1 %v6410_v5 }
 0x61f   :  { %v9281_v33 = vpop.f32.mrf.mxu1  ;;  %4935 = vmatprep.subr.bf16.mxu0 %v6397_v20 }
 0x620   :  { %v9347_v12 = vadd.f32 %v9281_v33, %v9337_v6  ;;  %v3776_v57 = vmul.f32 %v9343_v15, %v9343_v15  ;;  %v3698_v13 = vadd.f32 %v9343_v15, %v9353_v35  ;;  %4936 = vmatpush2.bf16.msra.mxu0 %v6395_v1 }
 0x621   :  { %v9283_v59 = vpop.f32.mrf.mxu1  ;;  %4937 = vmatprep.subr.bf16.mxu0 %v6406_v22 }
 0x622   :  { %v9357_v7 = vadd.f32 %v9283_v59, %v9334_v21  ;;  %v3777_v41 = vmul.f32 %v9347_v12, %v9347_v12  ;;  %v3838_v43 = vadd.f32 %v3776_v57, %v3774_v40  ;;  %v3735_v51 = vadd.f32 %v9347_v12, %v9361_v4  ;;  %v6416_v57 = vld [vmem:[#allocation13 + $0x1b8] ss:$24 sps:$4 sm:$0xff]   ;;  %v6421_v40 = vld [vmem:[#allocation13 + $0x18c] ss:$24 sps:$4 sm:$0xff]  }
 0x623   :  { %v9285_v42 = vpop.f32.mrf.mxu1 }
 0x624   :  { %v9365_v33 = vadd.f32 %v9285_v42, %v9337_v6  ;;  %4938 = vmatpush2.bf16.msra.mxu0 %v6404_v52 }
 0x625   :  { %v9287_v27 = vpop.f32.mrf.mxu1  ;;  %4939 = vmatprep.subr.bf16.mxu0 %v6415_v48 }
 0x626   :  { %v9373_v59 = vadd.f32 %v9287_v27, %v9334_v21  ;;  %v3778_v27 = vmul.f32 %v9357_v7, %v9357_v7  ;;  %v3779_v44 = vmul.f32 %v9365_v33, %v9365_v33 }
 0x627   :  { %v9289_v26 = vpop.f32.mrf.mxu1 }
 0x628   :  { %v9379_v42 = vadd.f32 %v9289_v26, %v9337_v6  ;;  %v3775_v26 = vmul.f32 %v9361_v4, %v9361_v4  ;;  %v3780_v53 = vmul.f32 %v9373_v59, %v9373_v59  ;;  %v3839_v20 = vadd.f32 %v3838_v43, %v3778_v27 }
 0x629   :  { %v9291_v23 = vpop.f32.mrf.mxu1 }
 0x62a   :  { %v9389_v17 = vadd.f32 %v9291_v23, %v9334_v21  ;;  %v6418_v23 = vld [vmem:[#allocation13 + $0x1bc] ss:$24 sps:$4 sm:$0xff]   ;;  %v3875_v25 = vadd.f32 %v3777_v41, %v3775_v26  ;;  %v3781_v58 = vmul.f32 %v9379_v42, %v9379_v42  ;;  %v3840_v27 = vadd.f32 %v3839_v20, %v3780_v53 }
 0x62b   :  { %v9293_v63 = vpop.f32.mrf.mxu1  ;;  %5130 = vmatprep.subr.bf16.mxu1 %v6418_v23  ;;  %v6424_v53 = vld [vmem:[#allocation13 + $0x164] ss:$24 sps:$4 sm:$0xff]  }
 0x62c   :  { %v9399_v56 = vadd.f32 %v9293_v63, %v9337_v6  ;;  %v3699_v63 = vadd.f32 %v3698_v13, %v9357_v7  ;;  %v3782_v31 = vmul.f32 %v9389_v17, %v9389_v17  ;;  %v3876_v1 = vadd.f32 %v3875_v25, %v3779_v44  ;;  %v6413_v13 = vld [vmem:[#allocation13 + $0x180] ss:$24 sps:$4 sm:$0xff]   ;;  %5131 = vmatpush2.bf16.msra.mxu1 %v6416_v57 }
 0x62d   :  { %v9295_v10 = vpop.f32.mrf.mxu1  ;;  %5132 = vmatprep.subr.bf16.mxu1 %v6421_v40  ;;  %4940 = vmatpush2.bf16.msra.mxu0 %v6413_v13 }
 0x62e   :  { %11266 = vst [vmem:[#allocation30_spill] sm:$0xff] %v9399_v56  ;;  %v9409_v61 = vadd.f32 %v9295_v10, %v9334_v21  ;;  %v3736_v10 = vadd.f32 %v3735_v51, %v9365_v33  ;;  %v3783_v18 = vmul.f32 %v9399_v56, %v9399_v56  ;;  %v3877_v44 = vadd.f32 %v3876_v1, %v3781_v58  ;;  %v6419_v58 = vld [vmem:[#allocation13 + $0x188] ss:$24 sps:$4 sm:$0xff]  }
 0x62f   :  { %v9297_v8 = vpop.f32.mrf.mxu1  ;;  %v3841_v25 = vadd.f32 %v3840_v27, %v3782_v31  ;;  %5295 = vmatprep.subr.bf16.mxu0 %v6424_v53 }
 0x630   :  { %v9416_v29 = vadd.f32 %v9297_v8, %v9337_v6  ;;  %v3700_v8 = vadd.f32 %v3699_v63, %v9373_v59  ;;  %v3784_v5 = vmul.f32 %v9409_v61, %v9409_v61  ;;  %v3878_v20 = vadd.f32 %v3877_v44, %v3783_v18  ;;  %5133 = vmatpush2.bf16.msra.mxu1 %v6419_v58 }
 0x631   :  { %v9299_v62 = vpop.f32.mrf.mxu1 }
 0x632   :  { %11267 = vst [vmem:[#allocation31_spill] sm:$0xff] %v9416_v29  ;;  %v9425_v0 = vadd.f32 %v9299_v62, %v9334_v21  ;;  %v3737_v62 = vadd.f32 %v3736_v10, %v9379_v42  ;;  %v3785_v43 = vmul.f32 %v9416_v29, %v9416_v29  ;;  %v3842_v1 = vadd.f32 %v3841_v25, %v3784_v5 }
 0x633   :  { %v9301_v30 = vpop.f32.mrf.mxu1 }
 0x634   :  { %v9432_v41 = vadd.f32 %v9301_v30, %v9337_v6  ;;  %v3701_v30 = vadd.f32 %v3700_v8, %v9389_v17  ;;  %v3786_v52 = vmul.f32 %v9425_v0, %v9425_v0  ;;  %v3879_v18 = vadd.f32 %v3878_v20, %v3785_v43 }
 0x635   :  { %v9303_v19 = vpop.f32.mrf.mxu1 }
 0x636   :  { %11268 = vst [vmem:[#allocation32_spill] sm:$0xff] %v9432_v41  ;;  %v9441_v26 = vadd.f32 %v9303_v19, %v9334_v21  ;;  %v3738_v19 = vadd.f32 %v3737_v62, %v9399_v56  ;;  %v3787_v10 = vmul.f32 %v9432_v41, %v9432_v41  ;;  %v3843_v5 = vadd.f32 %v3842_v1, %v3786_v52 }
 0x637   :  { %v9305_v49 = vpop.f32.mrf.mxu1 }
 0x638   :  { %v9448_v23 = vadd.f32 %v9305_v49, %v9337_v6  ;;  %v3702_v49 = vadd.f32 %v3701_v30, %v9409_v61  ;;  %v3739_v8 = vadd.f32 %v3738_v19, %v9416_v29  ;;  %v3880_v30 = vadd.f32 %v3879_v18, %v3787_v10 }
 0x639   :  { %v9307_v47 = vpop.f32.mrf.mxu1 }
 0x63a   :  { %11269 = vst [vmem:[#allocation33_spill] sm:$0xff] %v9448_v23  ;;  %v9457_v63 = vadd.f32 %v9307_v47, %v9334_v21  ;;  %v3788_v47 = vmul.f32 %v9441_v26, %v9441_v26  ;;  %v3703_v27 = vadd.f32 %v3702_v49, %v9425_v0  ;;  %v3740_v44 = vadd.f32 %v3739_v8, %v9432_v41 }
 0x63b   :  { %v9309_v32 = vpop.f32.mrf.mxu1 }
 0x63c   :  { %v9464_v48 = vadd.f32 %v9309_v32, %v9337_v6  ;;  %v3789_v32 = vmul.f32 %v9448_v23, %v9448_v23  ;;  %v3704_v43 = vadd.f32 %v3703_v27, %v9441_v26  ;;  %v3844_v19 = vadd.f32 %v3843_v5, %v3788_v47 }
 0x63d   :  { %v9311_v11 = vpop.f32.mrf.mxu1  ;;  %v3741_v52 = vadd.f32 %v3740_v44, %v9448_v23 }
 0x63e   :  { %11270 = vst [vmem:[#allocation35_spill] sm:$0xff] %v9464_v48  ;;  %v9473_v57 = vadd.f32 %v9311_v11, %v9334_v21  ;;  %v3790_v11 = vmul.f32 %v9457_v63, %v9457_v63  ;;  %v3881_v20 = vadd.f32 %v3880_v30, %v3789_v32  ;;  %v3705_v49 = vadd.f32 %v3704_v43, %v9457_v63 }
 0x63f   :  { %v9313_v45 = vpop.f32.mrf.mxu1  ;;  %v3742_v47 = vadd.f32 %v3741_v52, %v9464_v48 }
 0x640   :  { %v9480_v40 = vadd.f32 %v9313_v45, %v9337_v6  ;;  %v3791_v45 = vmul.f32 %v9464_v48, %v9464_v48  ;;  %v3845_v8 = vadd.f32 %v3844_v19, %v3790_v11  ;;  %v3706_v32 = vadd.f32 %v3705_v49, %v9473_v57 }
 0x641   :  { %v9315_v28 = vpop.f32.mrf.mxu1 }
 0x642   :  { %11271 = vst [vmem:[#allocation36_spill] sm:$0xff] %v9480_v40  ;;  %v9489_v13 = vadd.f32 %v9315_v28, %v9334_v21  ;;  %v3792_v28 = vmul.f32 %v9473_v57, %v9473_v57  ;;  %v3793_v10 = vmul.f32 %v9480_v40, %v9480_v40  ;;  %v3882_v27 = vadd.f32 %v3881_v20, %v3791_v45 }
 0x643   :  { %v9317_v60 = vpop.f32.mrf.mxu1  ;;  %v3743_v30 = vadd.f32 %v3742_v47, %v9480_v40 }
 0x644   :  { %v9496_v53 = vadd.f32 %v9317_v60, %v9337_v6  ;;  %v3794_v18 = vmul.f32 %v9489_v13, %v9489_v13  ;;  %v3846_v11 = vadd.f32 %v3845_v8, %v3792_v28  ;;  %v3883_v45 = vadd.f32 %v3882_v27, %v3793_v10 }
 0x645   :  { %v9319_v54 = vpop.f32.mrf.mxu1  ;;  %v3707_v19 = vadd.f32 %v3706_v32, %v9489_v13 }
 0x646   :  { %11272 = vst [vmem:[#allocation40_spill] sm:$0xff] %v9496_v53  ;;  %v9505_v58 = vadd.f32 %v9319_v54, %v9334_v21  ;;  %v3795_v5 = vmul.f32 %v9496_v53, %v9496_v53  ;;  %v3847_v20 = vadd.f32 %v3846_v11, %v3794_v18  ;;  %v3744_v49 = vadd.f32 %v3743_v30, %v9496_v53 }
 0x647   :  { %v9321_v9 = vpop.f32.mrf.mxu1 }
 0x648   :  { %v9512_v60 = vadd.f32 %v9321_v9, %v9337_v6  ;;  %v3796_v43 = vmul.f32 %v9505_v58, %v9505_v58  ;;  %v3884_v10 = vadd.f32 %v3883_v45, %v3795_v5  ;;  %v3708_v47 = vadd.f32 %v3707_v19, %v9505_v58 }
 0x649   :  { %v9323_v3 = vpop.f32.mrf.mxu1 }
 0x64a   :  { %11273 = vst [vmem:[#allocation42_spill] sm:$0xff] %v9512_v60  ;;  %v9521_v54 = vadd.f32 %v9323_v3, %v9334_v21  ;;  %v3797_v52 = vmul.f32 %v9512_v60, %v9512_v60  ;;  %v3848_v32 = vadd.f32 %v3847_v20, %v3796_v43  ;;  %v3745_v11 = vadd.f32 %v3744_v49, %v9512_v60 }
 0x64b   :  { %v9325_v36 = vpop.f32.mrf.mxu1 }
 0x64c   :  { %v9528_v9 = vadd.f32 %v9325_v36, %v9337_v6  ;;  %v3798_v8 = vmul.f32 %v9521_v54, %v9521_v54  ;;  %v3885_v5 = vadd.f32 %v3884_v10, %v3797_v52  ;;  %v3709_v45 = vadd.f32 %v3708_v47, %v9521_v54 }
 0x64d   :  { %v9327_v14 = vpop.f32.mrf.mxu1 }
 0x64e   :  { %11274 = vst [vmem:[#allocation46_spill] sm:$0xff] %v9528_v9  ;;  %v9537_v3 = vadd.f32 %v9327_v14, %v9334_v21  ;;  %v3799_v27 = vmul.f32 %v9528_v9, %v9528_v9  ;;  %v3849_v20 = vadd.f32 %v3848_v32, %v3798_v8  ;;  %v3746_v49 = vadd.f32 %v3745_v11, %v9528_v9 }
 0x64f   :  { %v9329_v34 = vpop.f32.mrf.mxu1 }
 0x650   :  { %v9544_v36 = vadd.f32 %v9329_v34, %v9337_v6  ;;  %v3800_v30 = vmul.f32 %v9537_v3, %v9537_v3  ;;  %v3886_v52 = vadd.f32 %v3885_v5, %v3799_v27  ;;  %v3710_v10 = vadd.f32 %v3709_v45, %v9537_v3 }
 0x651   :  { %v9331_v2 = vpop.f32.mrf.mxu1 }
 0x652   :  { %11275 = vst [vmem:[#allocation47_spill] sm:$0xff] %v9544_v36  ;;  %v9553_v14 = vadd.f32 %v9331_v2, %v9334_v21  ;;  %v3801_v19 = vmul.f32 %v9544_v36, %v9544_v36  ;;  %v3850_v32 = vadd.f32 %v3849_v20, %v3800_v30  ;;  %v3747_v11 = vadd.f32 %v3746_v49, %v9544_v36 }
 0x653   :  { %v9339_v55 = vpop.f32.mrf.mxu1 }
 0x654   :  { %v9560_v34 = vadd.f32 %v9339_v55, %v9337_v6  ;;  %v3802_v60 = vmul.f32 %v9553_v14, %v9553_v14  ;;  %v3887_v27 = vadd.f32 %v3886_v52, %v3801_v19  ;;  %v3711_v5 = vadd.f32 %v3710_v10, %v9553_v14 }
 0x655   :  { %v9349_v16 = vpop.f32.mrf.mxu1 }
 0x656   :  { %11276 = vst [vmem:[#allocation80_spill] sm:$0xff] %v9560_v34  ;;  %v9567_v2 = vadd.f32 %v9349_v16, %v9334_v21  ;;  %v3803_v47 = vmul.f32 %v9560_v34, %v9560_v34  ;;  %v3851_v20 = vadd.f32 %v3850_v32, %v3802_v60  ;;  %v3748_v49 = vadd.f32 %v3747_v11, %v9560_v34 }
 0x657   :  { %v9367_v24 = vpop.f32.mrf.mxu1 }
 0x658   :  { %v9574_v55 = vadd.f32 %v9367_v24, %v9337_v6  ;;  %v3804_v9 = vmul.f32 %v9567_v2, %v9567_v2  ;;  %v3888_v19 = vadd.f32 %v3887_v27, %v3803_v47  ;;  %v3712_v52 = vadd.f32 %v3711_v5, %v9567_v2 }
 0x659   :  { %v9381_v50 = vpop.f32.mrf.mxu1 }
 0x65a   :  { %11277 = vst [vmem:[#allocation49_spill] sm:$0xff] %v9574_v55  ;;  %v9581_v16 = vadd.f32 %v9381_v50, %v9334_v21  ;;  %v3805_v45 = vmul.f32 %v9574_v55, %v9574_v55  ;;  %v3852_v32 = vadd.f32 %v3851_v20, %v3804_v9  ;;  %v3749_v11 = vadd.f32 %v3748_v49, %v9574_v55 }
 0x65b   :  { %v9401_v38 = vpop.f32.mrf.mxu1 }
 0x65c   :  { %v9588_v24 = vadd.f32 %v9401_v38, %v9337_v6  ;;  %v3806_v36 = vmul.f32 %v9581_v16, %v9581_v16  ;;  %v3889_v47 = vadd.f32 %v3888_v19, %v3805_v45  ;;  %v3713_v27 = vadd.f32 %v3712_v52, %v9581_v16 }
 0x65d   :  { %v9418_v39 = vpop.f32.mrf.mxu1 }
 0x65e   :  { %11278 = vst [vmem:[#allocation48_spill] sm:$0xff] %v9588_v24  ;;  %v9595_v50 = vadd.f32 %v9418_v39, %v9334_v21  ;;  %v3807_v10 = vmul.f32 %v9588_v24, %v9588_v24  ;;  %v3853_v20 = vadd.f32 %v3852_v32, %v3806_v36  ;;  %v3750_v49 = vadd.f32 %v3749_v11, %v9588_v24 }
 0x65f   :  { %v9434_v22 = vpop.f32.mrf.mxu1 }
 0x660   :  { %v9602_v38 = vadd.f32 %v9434_v22, %v9337_v6  ;;  %v3808_v34 = vmul.f32 %v9595_v50, %v9595_v50  ;;  %v3890_v45 = vadd.f32 %v3889_v47, %v3807_v10  ;;  %v3714_v19 = vadd.f32 %v3713_v27, %v9595_v50 }
 0x661   :  { %v9450_v51 = vpop.f32.mrf.mxu1 }
 0x662   :  { %11279 = vst [vmem:[#allocation81_spill] sm:$0xff] %v9602_v38  ;;  %v9609_v39 = vadd.f32 %v9450_v51, %v9334_v21  ;;  %v3809_v5 = vmul.f32 %v9602_v38, %v9602_v38  ;;  %v3854_v32 = vadd.f32 %v3853_v20, %v3808_v34  ;;  %v3751_v11 = vadd.f32 %v3750_v49, %v9602_v38 }
 0x663   :  { %v9466_v31 = vpop.f32.mrf.mxu1 }
 0x664   :  { %v9616_v22 = vadd.f32 %v9466_v31, %v9337_v6  ;;  %v3810_v55 = vmul.f32 %v9609_v39, %v9609_v39  ;;  %v3891_v10 = vadd.f32 %v3890_v45, %v3809_v5  ;;  %v3715_v47 = vadd.f32 %v3714_v19, %v9609_v39 }
 0x665   :  { %v9482_v62 = vpop.f32.mrf.mxu1 }
 0x666   :  { %11280 = vst [vmem:[#allocation39_spill] sm:$0xff] %v9616_v22  ;;  %v9623_v51 = vadd.f32 %v9482_v62, %v9334_v21  ;;  %v3811_v52 = vmul.f32 %v9616_v22, %v9616_v22  ;;  %v3855_v34 = vadd.f32 %v3854_v32, %v3810_v55 }
 0x667   :  { %v9498_v25 = vpop.f32.mrf.mxu1 }
 0x668   :  { %v9630_v31 = vadd.f32 %v9498_v25, %v9337_v6  ;;  %v3812_v24 = vmul.f32 %v9623_v51, %v9623_v51  ;;  %v3892_v38 = vadd.f32 %v3891_v10, %v3811_v52  ;;  %v3716_v5 = vadd.f32 %v3715_v47, %v9623_v51 }
 0x669   :  { %v9514_v1 = vpop.f32.mrf.mxu1 }
 0x66a   :  { %11281 = vst [vmem:[#allocation50_spill] sm:$0xff] %v9630_v31  ;;  %v9637_v62 = vadd.f32 %v9514_v1, %v9334_v21  ;;  %v3813_v27 = vmul.f32 %v9630_v31, %v9630_v31  ;;  %v3856_v40 = vadd.f32 %v3855_v34, %v3812_v24 }
 0x66b   :  { %v9530_v44 = vpop.f32.mrf.mxu1 }
 0x66c   :  { %v9644_v25 = vadd.f32 %v9530_v44, %v9337_v6  ;;  %v3814_v20 = vmul.f32 %v9637_v62, %v9637_v62  ;;  %v3717_v52 = vadd.f32 %v3716_v5, %v9637_v62 }
 0x66d   :  { %v9546_v28 = vpop.f32.mrf.mxu1 }
 0x66e   :  { %11282 = vst [vmem:[#allocation55_spill] sm:$0xff] %v9644_v25  ;;  %v9651_v1 = vadd.f32 %v9546_v28, %v9334_v21  ;;  %v3752_v28 = vadd.f32 %v3751_v11, %v9616_v22  ;;  %v3815_v45 = vmul.f32 %v9644_v25, %v9644_v25  ;;  %v3893_v11 = vadd.f32 %v3892_v38, %v3813_v27 }
 0x66f   :  { %v3641_v18 = vpop.f32.mrf.mxu1  ;;  %v3857_v22 = vadd.f32 %v3856_v40, %v3814_v20 }
 0x670   :  { %v9657_v44 = vadd.f32 %v3641_v18, %v9337_v6  ;;  %v3816_v18 = vmul.f32 %v9651_v1, %v9651_v1  ;;  %v3718_v38 = vadd.f32 %v3717_v52, %v9651_v1 }
 0x671   :  { %v3645_v43 = vpop.f32.mrf.mxu1 }
 0x672   :  { %11283 = vst [vmem:[#allocation58_spill] sm:$0xff] %v9657_v44  ;;  %v9662_v49 = vadd.f32 %v3645_v43, %v9334_v21  ;;  %v3753_v43 = vadd.f32 %v3752_v28, %v9630_v31  ;;  %v3817_v10 = vmul.f32 %v9657_v44, %v9657_v44  ;;  %v3894_v28 = vadd.f32 %v3893_v11, %v3815_v45 }
 0x673   :  { %v3647_v8 = vpop.f32.mrf.mxu1  ;;  %v3858_v5 = vadd.f32 %v3857_v22, %v3816_v18 }
 0x674   :  { %v9671_v55 = vadd.f32 %v3647_v8, %v9337_v6  ;;  %v3818_v24 = vmul.f32 %v9662_v49, %v9662_v49 }
 0x675   :  { %v3649_v30 = vpop.f32.mrf.mxu1 }
 0x676   :  { %11284 = vst [vmem:[#allocation59_spill] sm:$0xff] %v9671_v55  ;;  %v9674_v32 = vadd.f32 %v3649_v30, %v9334_v21  ;;  %v3754_v30 = vadd.f32 %v3753_v43, %v9644_v25  ;;  %v3819_v31 = vmul.f32 %v9671_v55, %v9671_v55  ;;  %v3719_v43 = vadd.f32 %v3718_v38, %v9662_v49 }
 0x677   :  { %v3651_v60 = vpop.f32.mrf.mxu1  ;;  %v3859_v11 = vadd.f32 %v3858_v5, %v3818_v24 }
 0x678   :  { %v9683_v34 = vadd.f32 %v3651_v60, %v9337_v6  ;;  %v3820_v40 = vmul.f32 %v9674_v32, %v9674_v32  ;;  %v3755_v60 = vadd.f32 %v3754_v30, %v9657_v44 }
 0x679   :  { %v3655_v9 = vpop.f32.mrf.mxu1 }
 0x67a   :  { %11285 = vst [vmem:[#allocation61_spill] sm:$0xff] %v9683_v34  ;;  %v9686_v8 = vadd.f32 %v3655_v9, %v9334_v21  ;;  %v3895_v9 = vadd.f32 %v3894_v28, %v3817_v10  ;;  %v3821_v22 = vmul.f32 %v9683_v34, %v9683_v34  ;;  %v3756_v52 = vadd.f32 %v3755_v60, %v9671_v55 }
 0x67b   :  { %v3657_v36 = vpop.f32.mrf.mxu1  ;;  %v3720_v28 = vadd.f32 %v3719_v43, %v9674_v32  ;;  %v3860_v38 = vadd.f32 %v3859_v11, %v3820_v40 }
 0x67c   :  { %v9695_v20 = vadd.f32 %v3657_v36, %v9337_v6  ;;  %v3822_v18 = vmul.f32 %v9686_v8, %v9686_v8  ;;  %v3896_v30 = vadd.f32 %v3895_v9, %v3819_v31 }
 0x67d   :  { %v3659_v53 = vpop.f32.mrf.mxu1  ;;  %v3721_v31 = vadd.f32 %v3720_v28, %v9686_v8 }
 0x67e   :  { %11286 = vst [vmem:[#allocation62_spill] sm:$0xff] %v9695_v20  ;;  %v9699_v48 = vadd.f32 %v3659_v53, %v9334_v21  ;;  %v3823_v24 = vmul.f32 %v9695_v20, %v9695_v20  ;;  %v3897_v55 = vadd.f32 %v3896_v30, %v3821_v22  ;;  %v3861_v9 = vadd.f32 %v3860_v38, %v3822_v18 }
 0x67f   :  { %v3661_v19 = vpop.f32.mrf.mxu1 }
 0x680   :  { %v9708_v36 = vadd.f32 %v3661_v19, %v9337_v6  ;;  %v3824_v5 = vmul.f32 %v9699_v48, %v9699_v48  ;;  %v3722_v22 = vadd.f32 %v3721_v31, %v9699_v48 }
 0x681   :  { %v3665_v47 = vpop.f32.mrf.mxu1 }
 0x682   :  { %11287 = vst [vmem:[#allocation45_spill] sm:$0xff] %v9708_v36  ;;  %v9711_v10 = vadd.f32 %v3665_v47, %v9334_v21  ;;  %v3757_v47 = vadd.f32 %v3756_v52, %v9683_v34  ;;  %v3825_v40 = vmul.f32 %v9708_v36, %v9708_v36  ;;  %v3898_v52 = vadd.f32 %v3897_v55, %v3823_v24 }
 0x683   :  { %v3667_v27 = vpop.f32.mrf.mxu1  ;;  %v3862_v30 = vadd.f32 %v3861_v9, %v3824_v5 }
 0x684   :  { %v9719_v44 = vadd.f32 %v3667_v27, %v9337_v6  ;;  %v3826_v43 = vmul.f32 %v9711_v10, %v9711_v10  ;;  %v3758_v25 = vadd.f32 %v3757_v47, %v9695_v20  ;;  %v3723_v23 = vadd.f32 %v3722_v22, %v9711_v10 }
 0x685   :  { %v3669_v45 = vpop.f32.mrf.mxu1  ;;  %v3899_v55 = vadd.f32 %v3898_v52, %v3825_v40 }
 0x686   :  { %11288 = vst [vmem:[#allocation57_spill] sm:$0xff] %v9719_v44  ;;  %v9722_v19 = vadd.f32 %v3669_v45, %v9334_v21  ;;  %v3827_v18 = vmul.f32 %v9719_v44, %v9719_v44  ;;  %v3863_v24 = vadd.f32 %v3862_v30, %v3826_v43 }
 0x687   :  { %v3671_v53 = vpop.f32.mrf.mxu1 }
 0x688   :  { %v9731_v11 = vadd.f32 %v3671_v53, %v9337_v6  ;;  %v3828_v28 = vmul.f32 %v9722_v19, %v9722_v19  ;;  %v3724_v20 = vadd.f32 %v3723_v23, %v9722_v19  ;;  %v3900_v22 = vadd.f32 %v3899_v55, %v3827_v18 }
 0x689   :  { %v3675_v60 = vpop.f32.mrf.mxu1 }
 0x68a   :  { %11289 = vst [vmem:[#allocation52_spill] sm:$0xff] %v9731_v11  ;;  %v9734_v27 = vadd.f32 %v3675_v60, %v9334_v21  ;;  %v3759_v60 = vadd.f32 %v3758_v25, %v9708_v36  ;;  %v3829_v5 = vmul.f32 %v9731_v11, %v9731_v11  ;;  %v3864_v36 = vadd.f32 %v3863_v24, %v3828_v28 }
 0x68b   :  { %v3677_v45 = vpop.f32.mrf.mxu1 }
 0x68c   :  { %v9743_v38 = vadd.f32 %v3677_v45, %v9337_v6  ;;  %v3830_v31 = vmul.f32 %v9734_v27, %v9734_v27  ;;  %v3760_v45 = vadd.f32 %v3759_v60, %v9719_v44  ;;  %v3901_v23 = vadd.f32 %v3900_v22, %v3829_v5 }
 0x68d   :  { %v3679_v53 = vpop.f32.mrf.mxu1 }
 0x68e   :  { %11290 = vst [vmem:[#allocation54_spill] sm:$0xff] %v9743_v38  ;;  %v9748_v47 = vadd.f32 %v3679_v53, %v9334_v21  ;;  %v3831_v40 = vmul.f32 %v9743_v38, %v9743_v38  ;;  %v3761_v30 = vadd.f32 %v3760_v45, %v9731_v11  ;;  %v3725_v53 = vadd.f32 %v3724_v20, %v9734_v27 }
 0x68f   :  { %v3681_v9 = vpop.f32.mrf.mxu1  ;;  %v3865_v44 = vadd.f32 %v3864_v36, %v3830_v31 }
 0x690   :  { %v9757_v25 = vadd.f32 %v3681_v9, %v9337_v6  ;;  %v3832_v43 = vmul.f32 %v9748_v47, %v9748_v47  ;;  %v3762_v55 = vadd.f32 %v3761_v30, %v9743_v38  ;;  %v3726_v24 = vadd.f32 %v3725_v53, %v9748_v47 }
 0x691   :  { %v3685_v52 = vpop.f32.mrf.mxu1  ;;  %v3902_v20 = vadd.f32 %v3901_v23, %v3831_v40 }
 0x692   :  { %11291 = vst [vmem:[#allocation56_spill] sm:$0xff] %v9757_v25  ;;  %v9766_v60 = vadd.f32 %v3685_v52, %v9334_v21  ;;  %v3833_v18 = vmul.f32 %v9757_v25, %v9757_v25  ;;  %v3866_v11 = vadd.f32 %v3865_v44, %v3832_v43  ;;  %v3763_v5 = vadd.f32 %v3762_v55, %v9757_v25 }
 0x693   :  { %v3687_v28 = vpop.f32.mrf.mxu1 }
 0x694   :  { %v3834_v9 = vmul.f32 %v9766_v60, %v9766_v60  ;;  %v9775_v45 = vadd.f32 %v3687_v28, %v9337_v6  ;;  %v3727_v36 = vadd.f32 %v3726_v24, %v9766_v60  ;;  %v3903_v30 = vadd.f32 %v3902_v20, %v3833_v18 }
 0x695   :  { %v3689_v52 = vpop.f32.mrf.mxu1 }
 0x696   :  { %11292 = vst [vmem:[#allocation60_spill] sm:$0xff] %v9775_v45  ;;  %v3835_v31 = vmul.f32 %v9775_v45, %v9775_v45  ;;  %v9782_v22 = vadd.f32 %v3689_v52, %v9334_v21  ;;  %v3867_v53 = vadd.f32 %v3866_v11, %v3834_v9  ;;  %v3764_v34 = vadd.f32 %v3763_v5, %v9775_v45 }
 0x697   :  { %v3691_v38 = vpop.f32.mrf.mxu1 }
 0x698   :  { %v3728_v28 = vadd.f32 %v3727_v36, %v9782_v22  ;;  %v3836_v44 = vmul.f32 %v9782_v22, %v9782_v22  ;;  %v9789_v40 = vadd.f32 %v3691_v38, %v9337_v6  ;;  %v3904_v43 = vadd.f32 %v3903_v30, %v3835_v31 }
 0x69a   :  { %v3729_v23 = vrot.slane %v3728_v28, 4  ;;  %v3868_v55 = vadd.f32 %v3867_v53, %v3836_v44  ;;  %v3765_v24 = vadd.f32 %v3764_v34, %v9789_v40  ;;  %v3837_v21 = vmul.f32 %v9789_v40, %v9789_v40 }
 0x69c   :  { %v3730_v11 = vadd.f32 %v3729_v23, %v3728_v28  ;;  %v3869_v18 = vrot.slane %v3868_v55, 4  ;;  %v3766_v9 = vrot.slane %v3765_v24, 4  ;;  %v3905_v20 = vadd.f32 %v3904_v43, %v3837_v21 }
 0x69e   :  { %v3731_v52 = vrot.slane %v3730_v11, 2  ;;  %v3870_v5 = vadd.f32 %v3869_v18, %v3868_v55  ;;  %v3767_v36 = vadd.f32 %v3766_v9, %v3765_v24  ;;  %v3906_v45 = vrot.slane %v3905_v20, 4  ;;  %v3695_v24 = vld [vmem:[#allocation5 + $0x32] ss:$8 sm:$0x3] }
 0x69f   :  { %v3697_v18 = vld [vmem:[#allocation5 + $0x33] ss:$8 sm:$0x3] }
 0x6a0   :  { %v3732_v25 = vadd.f32 %v3731_v52, %v3730_v11  ;;  %v3871_v41 = vrot.slane %v3870_v5, 2  ;;  %v3768_v6 = vrot.slane %v3767_v36, 2  ;;  %v3907_v38 = vadd.f32 %v3906_v45, %v3905_v20 }
 0x6a1   :  { %v9804_v52 = vrot.slane %v3695_v24, %v11265_v46 }
 0x6a2   :  { %v3733_v31 = vrot.slane %v3732_v25, 1  ;;  %v3872_v30 = vadd.f32 %v3871_v41, %v3870_v5  ;;  %v3769_v34 = vadd.f32 %v3768_v6, %v3767_v36  ;;  %v3908_v29 = vrot.slane %v3907_v38, 2 }
 0x6a3   :  { %v9801_v41 = vrot.slane %v3695_v24, %v11264_v37  ;;  %11293 = vst [vmem:[#allocation63_spill] sm:$0xff] %v9804_v52  ;;  %v9807_v5 = vrot.slane %v3697_v18, %v11264_v37  ;;  %v11318_v52 = vld [vmem:[#allocation81_spill] sm:$0xff] }
 0x6a4   :  { %v3734_v53 = vadd.f32 %v3733_v31, %v3732_v25  ;;  %v3873_v44 = vrot.slane %v3872_v30, 1  ;;  %v3770_v21 = vrot.slane %v3769_v34, 1  ;;  %v3909_v11 = vadd.f32 %v3908_v29, %v3907_v38 }
 0x6a5   :  { %11294 = vst [vmem:[#allocation64_spill] sm:$0xff] %v9807_v5  ;;  %v9814_v38 = vrot.slane %v3697_v18, %v11265_v46  ;;  %v11317_v5 = vld [vmem:[#allocation48_spill] sm:$0xff] }
 0x6a6   :  { %v9794_v56 = vmul.f32 0.00390625, %v3734_v53  ;;  %v3874_v28 = vadd.f32 %v3873_v44, %v3872_v30  ;;  %v3771_v9 = vadd.f32 %v3770_v21, %v3769_v34  ;;  %v3910_v20 = vrot.slane %v3909_v11, 1  ;;  %v11319_v34 = vld [vmem:[#allocation39_spill] sm:$0xff]  ;;  %v11323_v30 = vld [vmem:[#allocation58_spill] sm:$0xff] }
 0x6a7   :  { %11295 = vst [vmem:[#allocation53_spill] sm:$0xff] %v9814_v38 }
 0x6a8   :  { %v3912_v23 = vmul.f32 0.00390625, %v3874_v28  ;;  %v3914_v43 = vmul.f32 %v9794_v56, %v9794_v56  ;;  %v9834_v21 = vmul.f32 0.00390625, %v3771_v9  ;;  %v3922_v18 = vsub.f32 %v9343_v15, %v9794_v56 }
 0x6a9   :  { %v3960_v15 = vsub.f32 %v9637_v62, %v9794_v56  ;;  %v11313_v55 = vsub.f32 %v9782_v22, %v9794_v56  ;;  %v11320_v22 = vld [vmem:[#allocation50_spill] sm:$0xff] }
 0x6aa   :  { %v3916_v45 = vsub.f32 %v3912_v23, %v3914_v43  ;;  %v3928_v23 = vsub.f32 %v9389_v17, %v9794_v56  ;;  %v3915_v9 = vmul.f32 %v9834_v21, %v9834_v21  ;;  %v3952_v17 = vsub.f32 %v9581_v16, %v9794_v56 }
 0x6ab   :  { %v3953_v31 = vsub.f32 %v11317_v5, %v9834_v21  ;;  %v3955_v29 = vsub.f32 %v11318_v52, %v9834_v21  ;;  %v3957_v6 = vsub.f32 %v11319_v34, %v9834_v21  ;;  %v3963_v38 = vsub.f32 %v11323_v30, %v9834_v21 }
 0x6ac   :  { %v3918_v25 = vmax.f32 %v3916_v45, 0.0  ;;  %v3911_v45 = vadd.f32 %v3910_v20, %v3909_v11  ;;  %v3954_v20 = vsub.f32 %v9595_v50, %v9794_v56  ;;  %v11296_v11 = vld [vmem:[#allocation30_spill] sm:$0xff]  ;;  %v11324_v5 = vsub.f32 %v9353_v35, %v9794_v56 }
 0x6ad   :  { %v11325_v35 = vsub.f32 %v9651_v1, %v9794_v56  ;;  %v11329_v1 = vsub.f32 %v9699_v48, %v9794_v56  ;;  %v11333_v48 = vsub.f32 %v9748_v47, %v9794_v56  ;;  %v11338_v47 = vld [vmem:[#allocation59_spill] sm:$0xff] }
 0x6ae   :  { %v3984_v36 = vadd.f32 1e-05, %v3918_v25  ;;  %v3924_v25 = vsub.f32 %v9357_v7, %v9794_v56  ;;  %v3913_v28 = vmul.f32 0.00390625, %v3911_v45  ;;  %v3948_v7 = vsub.f32 %v9553_v14, %v9794_v56  ;;  %v11299_v14 = vld [vmem:[#allocation61_spill] sm:$0xff] }
 0x6af   :  { %v3956_v45 = vsub.f32 %v9609_v39, %v9794_v56 }
 0x6b0   :  { %6478 = vrsqrt.f32 %v3984_v36  ;;  %v3926_v36 = vsub.f32 %v9373_v59, %v9794_v56  ;;  %v3917_v24 = vsub.f32 %v3913_v28, %v3915_v9  ;;  %v3950_v59 = vsub.f32 %v9567_v2, %v9794_v56  ;;  %v11300_v2 = vld [vmem:[#allocation62_spill] sm:$0xff] }
 0x6b1   :  { %v3958_v28 = vsub.f32 %v9623_v51, %v9794_v56 }
 0x6b2   :  { %v3919_v9 = vmax.f32 %v3917_v24, 0.0  ;;  %v11297_v24 = vld [vmem:[#allocation31_spill] sm:$0xff] }
 0x6b4   :  { %v3985_v50 = vadd.f32 1e-05, %v3919_v9  ;;  %v11301_v9 = vld [vmem:[#allocation45_spill] sm:$0xff] }
 0x6b6   :  { %6480 = vrsqrt.f32 %v3985_v50  ;;  %v11322_v50 = vld [vmem:[#allocation55_spill] sm:$0xff] }
 0x6b7   :  { %v3961_v62 = vsub.f32 %v11322_v50, %v9834_v21 }
 0x6bd   :  { %v6479_v37 = vpop.eup %6478 }
 0x6be   :  { %v4050_v46 = vmul.f32 %v6479_v37, %v11313_v55  ;;  %v3959_v55 = vsub.f32 %v11320_v22, %v9834_v21  ;;  %v3988_v44 = vmul.f32 %v6479_v37, %v11324_v5  ;;  %v3990_v52 = vmul.f32 %v6479_v37, %v3922_v18 }
 0x6bf   :  { %v3992_v53 = vmul.f32 %v6479_v37, %v3924_v25  ;;  %v3994_v43 = vmul.f32 %v6479_v37, %v3926_v36  ;;  %v3996_v34 = vmul.f32 %v6479_v37, %v3928_v23  ;;  %v9949_v51 = vmul.f32 %v6479_v37, %v3948_v7 }
 0x6c0   :  { %v9940_v16 = vmul.f32 %v9801_v41, %v4050_v46  ;;  %v9951_v22 = vmul.f32 %v6479_v37, %v3950_v59  ;;  %v9953_v46 = vmul.f32 %v6479_v37, %v3952_v17  ;;  %v9957_v50 = vmul.f32 %v6479_v37, %v3956_v45 }
 0x6c1   :  { %v9959_v39 = vmul.f32 %v6479_v37, %v3958_v28  ;;  %v9961_v30 = vmul.f32 %v6479_v37, %v3960_v15  ;;  %v9966_v18 = vmul.f32 %v6479_v37, %v11325_v35  ;;  %v11326_v23 = vsub.f32 %v9662_v49, %v9794_v56 }
 0x6c2   :  { %11321 = vst [vmem:[#allocation82_spill] sm:$0xff] %v9940_v16  ;;  %v9955_v16 = vmul.f32 %v6479_v37, %v3954_v20  ;;  %v11327_v36 = vsub.f32 %v9674_v32, %v9794_v56  ;;  %v11328_v59 = vsub.f32 %v9686_v8, %v9794_v56  ;;  %v9986_v17 = vmul.f32 %v6479_v37, %v11329_v1 }
 0x6c3   :  { %v9971_v25 = vmul.f32 %v6479_v37, %v11326_v23  ;;  %v11330_v49 = vsub.f32 %v9711_v10, %v9794_v56  ;;  %v11331_v32 = vsub.f32 %v9722_v19, %v9794_v56  ;;  %v11332_v8 = vsub.f32 %v9734_v27, %v9794_v56 }
 0x6c4   :  { %v9976_v7 = vmul.f32 %v6479_v37, %v11327_v36  ;;  %v9981_v15 = vmul.f32 %v6479_v37, %v11328_v59  ;;  %v10006_v5 = vmul.f32 %v6479_v37, %v11333_v48  ;;  %v11334_v10 = vsub.f32 %v9409_v61, %v9794_v56 }
 0x6c5   :  { %v9991_v20 = vmul.f32 %v6479_v37, %v11330_v49  ;;  %v9996_v45 = vmul.f32 %v6479_v37, %v11331_v32  ;;  %v10001_v28 = vmul.f32 %v6479_v37, %v11332_v8  ;;  %v11335_v23 = vsub.f32 %v9425_v0, %v9794_v56 }
 0x6c6   :  { %v3998_v35 = vmul.f32 %v6479_v37, %v11334_v10  ;;  %v11336_v36 = vsub.f32 %v9441_v26, %v9794_v56  ;;  %v11337_v27 = vsub.f32 %v9766_v60, %v9794_v56  ;;  %v3965_v49 = vsub.f32 %v11338_v47, %v9834_v21  ;;  %v10031_v10 = vpop.eup %6480 }
 0x6c7   :  { %v4000_v19 = vmul.f32 %v6479_v37, %v11335_v23  ;;  %v11339_v32 = vsub.f32 %v9457_v63, %v9794_v56  ;;  %v11340_v8 = vsub.f32 %v9473_v57, %v9794_v56  ;;  %v11341_v48 = vsub.f32 %v9489_v13, %v9794_v56 }
 0x6c8   :  { %v4002_v59 = vmul.f32 %v6479_v37, %v11336_v36  ;;  %v4048_v1 = vmul.f32 %v6479_v37, %v11337_v27  ;;  %v11342_v60 = vsub.f32 %v9505_v58, %v9794_v56  ;;  %v11343_v36 = vsub.f32 %v9521_v54, %v9794_v56 }
 0x6c9   :  { %v4004_v61 = vmul.f32 %v6479_v37, %v11339_v32  ;;  %v4006_v0 = vmul.f32 %v6479_v37, %v11340_v8  ;;  %v4008_v26 = vmul.f32 %v6479_v37, %v11341_v48  ;;  %v11344_v57 = vsub.f32 %v9537_v3, %v9794_v56 }
 0x6ca   :  { %v10036_v23 = vmul.f32 %v6479_v37, %v11342_v60  ;;  %v10041_v63 = vmul.f32 %v6479_v37, %v11343_v36  ;;  %v4063_v13 = vmul.f32 %v9801_v41, %v3988_v44  ;;  %v11345_v47 = vsub.f32 %v9789_v40, %v9834_v21 }
 0x6cb   :  { %v10046_v27 = vmul.f32 %v6479_v37, %v11344_v57  ;;  %v4065_v58 = vmul.f32 %v9801_v41, %v3990_v52  ;;  %v4067_v8 = vmul.f32 %v9801_v41, %v3992_v53  ;;  %v4069_v54 = vmul.f32 %v9801_v41, %v3994_v43 }
 0x6cc   :  { %v10053_v32 = vmul.f32 %v10031_v10, %v11345_v47  ;;  %v10059_v48 = vmul.f32 %v9801_v41, %v3996_v34  ;;  %v10062_v37 = vmul.f32 %v9801_v41, %v3998_v35  ;;  %v10065_v56 = vmul.f32 %v9801_v41, %v4000_v19 }
 0x6cd   :  { %v10068_v3 = vmul.f32 %v9801_v41, %v4002_v59  ;;  %v11347_v40 = vsub.f32 %v9361_v4, %v9834_v21  ;;  %v10075_v53 = vmul.f32 %v9801_v41, %v4004_v61  ;;  %v10078_v43 = vmul.f32 %v9801_v41, %v4006_v0 }
 0x6ce   :  { %11346 = vst [vmem:[#allocation66_spill] sm:$0xff] %v10053_v32  ;;  %v10081_v52 = vmul.f32 %v9801_v41, %v4008_v26  ;;  %v11348_v34 = vsub.f32 %v9347_v12, %v9834_v21  ;;  %v11349_v19 = vsub.f32 %v9365_v33, %v9834_v21  ;;  %v11350_v59 = vsub.f32 %v9379_v42, %v9834_v21  ;;  %v11375_v32 = vld [vmem:[#allocation33_spill] sm:$0xff] }
 0x6cf   :  { %v3989_v44 = vmul.f32 %v10031_v10, %v11347_v40  ;;  %v11351_v0 = vsub.f32 %v11296_v11, %v9834_v21  ;;  %v11352_v12 = vsub.f32 %v11297_v24, %v9834_v21  ;;  %v10104_v36 = vmul.f32 %v10031_v10, %v3953_v31 }
 0x6d0   :  { %v3991_v35 = vmul.f32 %v10031_v10, %v11348_v34  ;;  %v3993_v4 = vmul.f32 %v10031_v10, %v11349_v19  ;;  %v3995_v61 = vmul.f32 %v10031_v10, %v11350_v59  ;;  %v10107_v33 = vmul.f32 %v10031_v10, %v3955_v29  ;;  %v11361_v34 = vld [vmem:[#allocation52_spill] sm:$0xff]  ;;  %v11364_v59 = vld [vmem:[#allocation54_spill] sm:$0xff] }
 0x6d1   :  { %v3997_v26 = vmul.f32 %v10031_v10, %v11351_v0  ;;  %v3999_v60 = vmul.f32 %v10031_v10, %v11352_v12  ;;  %v10110_v42 = vmul.f32 %v10031_v10, %v3957_v6  ;;  %v10113_v57 = vmul.f32 %v10031_v10, %v3959_v55  ;;  %v11367_v12 = vld [vmem:[#allocation56_spill] sm:$0xff] }
 0x6d2   :  { %v10116_v11 = vmul.f32 %v10031_v10, %v3961_v62  ;;  %v10119_v47 = vmul.f32 %v10031_v10, %v3963_v38  ;;  %v10122_v24 = vmul.f32 %v10031_v10, %v3965_v49  ;;  %v11353_v31 = vsub.f32 %v11299_v14, %v9834_v21  ;;  %v11358_v49 = vld [vmem:[#allocation57_spill] sm:$0xff] }
 0x6d3   :  { %v11354_v6 = vsub.f32 %v11300_v2, %v9834_v21  ;;  %v11356_v62 = vsub.f32 %v11301_v9, %v9834_v21  ;;  %v11359_v40 = vsub.f32 %v11358_v49, %v9834_v21  ;;  %v11362_v19 = vsub.f32 %v11361_v34, %v9834_v21  ;;  %v11373_v34 = vld [vmem:[#allocation32_spill] sm:$0xff] }
 0x6d4   :  { %v10128_v29 = vmul.f32 %v10031_v10, %v11353_v31  ;;  %v11365_v0 = vsub.f32 %v11364_v59, %v9834_v21  ;;  %v11368_v31 = vsub.f32 %v11367_v12, %v9834_v21  ;;  %v11377_v12 = vld [vmem:[#allocation35_spill] sm:$0xff] }
 0x6d5   :  { %v10134_v55 = vmul.f32 %v10031_v10, %v11354_v6  ;;  %v10140_v38 = vmul.f32 %v10031_v10, %v11356_v62  ;;  %v10146_v14 = vmul.f32 %v10031_v10, %v11359_v40  ;;  %v10152_v2 = vmul.f32 %v10031_v10, %v11362_v19  ;;  %v11370_v62 = vld [vmem:[#allocation60_spill] sm:$0xff] }
 0x6d6   :  { %v10158_v9 = vmul.f32 %v10031_v10, %v11365_v0  ;;  %v10164_v6 = vmul.f32 %v10031_v10, %v11368_v31  ;;  %v11371_v49 = vsub.f32 %v11370_v62, %v9834_v21  ;;  %v11374_v19 = vsub.f32 %v11373_v34, %v9834_v21  ;;  %v11379_v62 = vld [vmem:[#allocation36_spill] sm:$0xff] }
 0x6d7   :  { %11355 = vst [vmem:[#allocation83_spill] sm:$0xff] %v10134_v55  ;;  %11357 = vst [vmem:[#allocation68_spill] sm:$0xff] %v10140_v38  ;;  %v11376_v0 = vsub.f32 %v11375_v32, %v9834_v21  ;;  %v11378_v31 = vsub.f32 %v11377_v12, %v9834_v21  ;;  %v11381_v34 = vld [vmem:[#allocation40_spill] sm:$0xff]  ;;  %v10200_v32 = vmul.f32 %v9801_v41, %v9953_v46 }
 0x6d8   :  { %11360 = vst [vmem:[#allocation51_spill] sm:$0xff] %v10146_v14  ;;  %11363 = vst [vmem:[#allocation70_spill] sm:$0xff] %v10152_v2  ;;  %v10170_v40 = vmul.f32 %v10031_v10, %v11371_v49  ;;  %v4001_v59 = vmul.f32 %v10031_v10, %v11374_v19  ;;  %v11380_v49 = vsub.f32 %v11379_v62, %v9834_v21 }
 0x6d9   :  { %11366 = vst [vmem:[#allocation41_spill] sm:$0xff] %v10158_v9  ;;  %11369 = vst [vmem:[#allocation65_spill] sm:$0xff] %v10164_v6  ;;  %v4003_v9 = vmul.f32 %v10031_v10, %v11376_v0  ;;  %v10184_v6 = vmul.f32 %v10031_v10, %v11378_v31  ;;  %v11382_v19 = vsub.f32 %v11381_v34, %v9834_v21 }
 0x6da   :  { %11372 = vst [vmem:[#allocation72_spill] sm:$0xff] %v10170_v40  ;;  %v10190_v40 = vmul.f32 %v10031_v10, %v11380_v49  ;;  %v10204_v0 = vmul.f32 %v9801_v41, %v9955_v16  ;;  %v10208_v12 = vmul.f32 %v9801_v41, %v9957_v50  ;;  %v10212_v31 = vmul.f32 %v9801_v41, %v9959_v39 }
 0x6db   :  { %v10196_v2 = vmul.f32 %v10031_v10, %v11382_v19  ;;  %v10216_v62 = vmul.f32 %v9801_v41, %v9961_v30  ;;  %v10220_v46 = vmul.f32 %v9801_v41, %v9966_v18  ;;  %v10224_v16 = vmul.f32 %v9801_v41, %v9971_v25  ;;  %v11392_v19 = vld [vmem:[#allocation64_spill] sm:$0xff] }
 0x6dc   :  { %v10228_v50 = vmul.f32 %v9801_v41, %v9976_v7  ;;  %v10232_v39 = vmul.f32 %v9801_v41, %v9981_v15  ;;  %v10236_v30 = vmul.f32 %v9801_v41, %v9986_v17  ;;  %v10240_v18 = vmul.f32 %v9801_v41, %v9991_v20  ;;  %v11391_v17 = vld [vmem:[#allocation63_spill] sm:$0xff] }
 0x6dd   :  { %v10244_v25 = vmul.f32 %v9801_v41, %v9996_v45  ;;  %v10248_v7 = vmul.f32 %v9801_v41, %v10001_v28  ;;  %v10252_v15 = vmul.f32 %v9801_v41, %v10006_v5  ;;  %v10255_v49 = vmul.f32 %v9801_v41, %v4048_v1 }
 0x6de   :  { %11383 = vst [vmem:[#allocation67_spill] sm:$0xff] %v10228_v50  ;;  %11384 = vst [vmem:[#allocation69_spill] sm:$0xff] %v10232_v39  ;;  %v4064_v34 = vmul.f32 %v11391_v17, %v3989_v44  ;;  %v4066_v20 = vmul.f32 %v11391_v17, %v3991_v35  ;;  %v4140_v45 = vadd.f32 %v11392_v19, %v4065_v58  ;;  %v11396_v58 = vld [vmem:[#allocation46_spill] sm:$0xff] }
 0x6df   :  { %11385 = vst [vmem:[#allocation74_spill] sm:$0xff] %v10236_v30  ;;  %11386 = vst [vmem:[#allocation76_spill] sm:$0xff] %v10240_v18  ;;  %v4138_v18 = vadd.f32 %v11392_v19, %v4063_v13  ;;  %v4070_v28 = vmul.f32 %v11391_v17, %v3995_v61  ;;  %v4144_v5 = vadd.f32 %v11392_v19, %v4069_v54  ;;  %v11394_v30 = vld [vmem:[#allocation42_spill] sm:$0xff] }
 0x6e0   :  { %11387 = vst [vmem:[#allocation24_spill] sm:$0xff] %v10244_v25  ;;  %11388 = vst [vmem:[#allocation75_spill] sm:$0xff] %v10248_v7  ;;  %v4068_v25 = vmul.f32 %v11391_v17, %v3993_v4  ;;  %v4142_v7 = vadd.f32 %v11392_v19, %v4067_v8  ;;  %v4204_v44 = vmax.f32 %v4140_v45, 0.0  ;;  %v11395_v35 = vsub.f32 %v11394_v30, %v9834_v21 }
 0x6e1   :  { %11389 = vst [vmem:[#allocation78_spill] sm:$0xff] %v10252_v15  ;;  %11390 = vst [vmem:[#allocation25_spill] sm:$0xff] %v10255_v49  ;;  %v11393_v15 = vld [vmem:[#allocation53_spill] sm:$0xff]  ;;  %v4202_v49 = vmax.f32 %v4138_v18, 0.0  ;;  %v11397_v4 = vsub.f32 %v11396_v58, %v9834_v21 }
 0x6e2   :  { %v4139_v14 = vadd.f32 %v11393_v15, %v4064_v34  ;;  %v4141_v1 = vadd.f32 %v11393_v15, %v4066_v20  ;;  %v4011_v13 = vmul.f32 %v10031_v10, %v11395_v35  ;;  %v4143_v8 = vadd.f32 %v11393_v15, %v4068_v25  ;;  %v11398_v34 = vld [vmem:[#allocation47_spill] sm:$0xff] }
 0x6e3   :  { %v10275_v61 = vmul.f32 %v10031_v10, %v11397_v4  ;;  %v4145_v54 = vadd.f32 %v11393_v15, %v4070_v28  ;;  %v11399_v20 = vsub.f32 %v11398_v34, %v9834_v21  ;;  %v4072_v35 = vmul.f32 %v11391_v17, %v3997_v26  ;;  %v6422_v34 = vld [vmem:[#allocation13 + $0x160] ss:$24 sps:$4 sm:$0xff]  }
 0x6e4   :  { %v4203_v45 = vmax.f32 %v4139_v14, 0.0  ;;  %v4205_v30 = vmax.f32 %v4141_v1, 0.0  ;;  %v4207_v39 = vmax.f32 %v4143_v8, 0.0  ;;  %v4206_v58 = vmax.f32 %v4142_v7, 0.0  ;;  %v11400_v1 = vld [vmem:[#allocation80_spill] sm:$0xff] }
 0x6e5   :  { %v10283_v18 = vmul.f32 %v10031_v10, %v11399_v20  ;;  %v4209_v38 = vmax.f32 %v4145_v54, 0.0  ;;  %v4074_v4 = vmul.f32 %v11391_v17, %v3999_v60  ;;  %v10287_v55 = vpack.c.bf16 %v4204_v44, %v4202_v49  ;;  %v6427_v44 = vld [vmem:[#allocation13 + $0x134] ss:$24 sps:$4 sm:$0xff]  }
 0x6e6   :  { %v10289_v25 = vpack.c.bf16 %v4205_v30, %v4203_v45  ;;  %v4208_v28 = vmax.f32 %v4144_v5, 0.0  ;;  %v4147_v50 = vadd.f32 %v11393_v15, %v4072_v35  ;;  %v10295_v14 = vadd.f32 %v11392_v19, %v10059_v48  ;;  %v6425_v35 = vld [vmem:[#allocation13 + $0x130] ss:$24 sps:$4 sm:$0xff]  }
 0x6e7   :  { %v4149_v20 = vadd.f32 %v11393_v15, %v4074_v4  ;;  %v4076_v26 = vmul.f32 %v11391_v17, %v4001_v59  ;;  %v4078_v7 = vmul.f32 %v11391_v17, %v4003_v9  ;;  %v11401_v60 = vsub.f32 %v11400_v1, %v9834_v21 }
 0x6e8   :  { %4941 = vmatprep.mubr.bf16.mxu0 %v10289_v25  ;;  %5134 = vmatprep.mubr.bf16.mxu1 %v10289_v25  ;;  %v10307_v5 = vpack.c.bf16 %v4209_v38, %v4207_v39  ;;  %v4148_v48 = vadd.f32 %v11392_v19, %v10062_v37  ;;  %v4211_v9 = vmax.f32 %v4147_v50, 0.0  ;;  %v4150_v54 = vadd.f32 %v11392_v19, %v10065_v56 }
 0x6e9   :  { %v10303_v49 = vmul.f32 %v10031_v10, %v11401_v60  ;;  %4942 = vmatmul.mubr.bf16.vlgmr.msra.gmra.mxu0 %v10287_v55  ;;  %5135 = vmatmul.mubr.bf16.vlgmr.msra.gmra.mxu1 %v10287_v55  ;;  %v4151_v59 = vadd.f32 %v11393_v15, %v4076_v26  ;;  %v4153_v8 = vadd.f32 %v11393_v15, %v4078_v7  ;;  %v4213_v38 = vmax.f32 %v4149_v20, 0.0  ;;  %v6428_v60 = vld [vmem:[#allocation13 + $0x100] ss:$24 sps:$4 sm:$0xff]  }
 0x6ea   :  { %4951 = vmatprep.mubr.bf16.mxu0 %v10307_v5  ;;  %5144 = vmatprep.mubr.bf16.mxu1 %v10307_v5  ;;  %v4152_v37 = vadd.f32 %v11392_v19, %v10068_v3  ;;  %v4080_v39 = vmul.f32 %v11391_v17, %v10184_v6  ;;  %v4082_v50 = vmul.f32 %v11391_v17, %v10190_v40  ;;  %v4210_v4 = vmax.f32 %v10295_v14, 0.0  ;;  %v6430_v3 = vld [vmem:[#allocation13 + $0x104] ss:$24 sps:$4 sm:$0xff]  }
 0x6eb   :  { %v4085_v45 = vmul.f32 %v9801_v41, %v10036_v23  ;;  %v4091_v56 = vmul.f32 %v9801_v41, %v9949_v51  ;;  %5296 = vmatpush1.bf16.msra.mxu0 %v6422_v34  ;;  %v10329_v30 = vpack.c.bf16 %v4208_v28, %v4206_v58  ;;  %v4154_v40 = vadd.f32 %v11392_v19, %v10075_v53 }
 0x6ec   :  { %5297 = vmatprep.subr.bf16.mxu0 %v6427_v44  ;;  %v4155_v20 = vadd.f32 %v11393_v15, %v4080_v39  ;;  %v4157_v6 = vadd.f32 %v11393_v15, %v4082_v50  ;;  %v4156_v23 = vadd.f32 %v11392_v19, %v10078_v43  ;;  %v4212_v26 = vmax.f32 %v4148_v48, 0.0 }
 0x6ed   :  { %v4214_v51 = vmax.f32 %v4150_v54, 0.0  ;;  %v4084_v58 = vmul.f32 %v11391_v17, %v10196_v2  ;;  %v4086_v28 = vmul.f32 %v11391_v17, %v4011_v13  ;;  %v10341_v34 = vpack.c.bf16 %v4213_v38, %v4211_v9  ;;  %v6433_v2 = vld [vmem:[#allocation13 + $0xd4] ss:$24 sps:$4 sm:$0xff]  }
 0x6ee   :  { %v4215_v14 = vmax.f32 %v4151_v59, 0.0  ;;  %v4217_v7 = vmax.f32 %v4153_v8, 0.0  ;;  %v4216_v1 = vmax.f32 %v4152_v37, 0.0  ;;  %v4158_v43 = vadd.f32 %v11392_v19, %v10081_v52  ;;  %v11402_v37 = vld [vmem:[#allocation49_spill] sm:$0xff] }
 0x6ef   :  { %5298 = vmatpush1.bf16.msra.mxu0 %v6425_v35  ;;  %v4159_v44 = vadd.f32 %v11393_v15, %v4084_v58  ;;  %v4161_v53 = vadd.f32 %v11393_v15, %v4086_v28  ;;  %v4160_v48 = vadd.f32 %v11392_v19, %v4085_v45  ;;  %v4219_v54 = vmax.f32 %v4155_v20, 0.0 }
 0x6f0   :  { %5299 = vmatprep.subr.bf16.mxu0 %v6430_v3  ;;  %v4221_v13 = vmax.f32 %v4157_v6, 0.0  ;;  %v4218_v9 = vmax.f32 %v4154_v40, 0.0  ;;  %v4220_v38 = vmax.f32 %v4156_v23, 0.0  ;;  %v4093_v59 = vmul.f32 %v9801_v41, %v9951_v22  ;;  %v6436_v23 = vld [vmem:[#allocation13 + $0xa4] ss:$24 sps:$4 sm:$0xff]  }
 0x6f1   :  { %4952 = vmatmul.mubr.bf16.gmra.mxu0 %v10329_v30  ;;  %5145 = vmatmul.mubr.bf16.gmra.mxu1 %v10329_v30  ;;  %v4088_v8 = vmul.f32 %v11391_v17, %v10275_v61  ;;  %v4090_v52 = vmul.f32 %v11391_v17, %v10283_v18  ;;  %v11403_v39 = vsub.f32 %v11402_v37, %v9834_v21  ;;  %v4223_v22 = vmax.f32 %v4159_v44, 0.0  ;;  %v6431_v18 = vld [vmem:[#allocation13 + $0xd0] ss:$24 sps:$4 sm:$0xff]  }
 0x6f2   :  { %v4087_v45 = vmul.f32 %v9801_v41, %v10041_v63  ;;  %4961 = vmatprep.mubr.bf16.mxu0 %v10341_v34  ;;  %5154 = vmatprep.mubr.bf16.mxu1 %v10341_v34  ;;  %v4225_v35 = vmax.f32 %v4161_v53, 0.0  ;;  %v4089_v61 = vmul.f32 %v9801_v41, %v10046_v27  ;;  %v10366_v3 = vpack.c.bf16 %v4212_v26, %v4210_v4  ;;  %v6439_v53 = vld [vmem:[#allocation13 + $0x74] ss:$24 sps:$4 sm:$0xff]  }
 0x6f3   :  { %v4019_v50 = vmul.f32 %v10031_v10, %v11403_v39  ;;  %5300 = vmatpush1.bf16.msra.mxu0 %v6428_v60  ;;  %v4222_v20 = vmax.f32 %v4158_v43, 0.0  ;;  %v4224_v21 = vmax.f32 %v4160_v48, 0.0  ;;  %v10368_v6 = vpack.c.bf16 %v4217_v7, %v4215_v14  ;;  %v6434_v7 = vld [vmem:[#allocation13 + $0xa0] ss:$24 sps:$4 sm:$0xff]   ;;  %v6442_v39 = vld [vmem:[#allocation13 + $0x44] ss:$24 sps:$4 sm:$0xff]  }
 0x6f4   :  { %v10370_v10 = vpack.c.bf16 %v4216_v1, %v4214_v51  ;;  %5301 = vmatprep.subr.bf16.mxu0 %v6433_v2  ;;  %v10372_v63 = vpack.c.bf16 %v4221_v13, %v4219_v54  ;;  %v10374_v40 = vpack.c.bf16 %v4220_v38, %v4218_v9  ;;  %v10377_v58 = vadd.f32 %v11393_v15, %v4088_v8  ;;  %v6437_v8 = vld [vmem:[#allocation13 + $0x70] ss:$24 sps:$4 sm:$0xff]  }
 0x6f5   :  { %v10380_v41 = vadd.f32 %v11393_v15, %v4090_v52  ;;  %v4166_v27 = vadd.f32 %v11392_v19, %v4091_v56  ;;  %v4168_v4 = vadd.f32 %v11392_v19, %v4093_v59  ;;  %v10384_v26 = vpack.c.bf16 %v4225_v35, %v4223_v22 }
 0x6f6   :  { %v10387_v51 = vadd.f32 %v11392_v19, %v4087_v45  ;;  %v4096_v28 = vmul.f32 %v11391_v17, %v10104_v36  ;;  %v4098_v14 = vmul.f32 %v11391_v17, %v10107_v33  ;;  %v10393_v1 = vpack.c.bf16 %v4224_v21, %v4222_v20 }
 0x6f7   :  { %5302 = vmatpush1.bf16.msra.mxu0 %v6431_v18  ;;  %v10396_v60 = vadd.f32 %v11392_v19, %v4089_v61  ;;  %v4230_v56 = vmax.f32 %v4166_v27, 0.0  ;;  %v4232_v44 = vmax.f32 %v4168_v4, 0.0  ;;  %v10400_v43 = vmul.f32 %v11391_v17, %v10303_v49  ;;  %v6440_v27 = vld [vmem:[#allocation13 + $0x40] ss:$24 sps:$4 sm:$0xff]  }
 0x6f8   :  { %5303 = vmatprep.subr.bf16.mxu0 %v6436_v23  ;;  %v4171_v36 = vadd.f32 %v11393_v15, %v4096_v28  ;;  %v4173_v48 = vadd.f32 %v11393_v15, %v4098_v14  ;;  %v4170_v33 = vadd.f32 %v11392_v19, %v10200_v32  ;;  %v4227_v2 = vmax.f32 %v10377_v58, 0.0  ;;  %v6445_v14 = vld [vmem:[#allocation13 + $0x14] ss:$24 sps:$4 sm:$0xff]  }
 0x6f9   :  { %4962 = vmatmul.mubr.bf16.gmra.mxu0 %v10366_v3  ;;  %5155 = vmatmul.mubr.bf16.gmra.mxu1 %v10366_v3  ;;  %v10409_v54 = vpack.c.bf16 %v4232_v44, %v4230_v56  ;;  %v4172_v13 = vadd.f32 %v11392_v19, %v10204_v0  ;;  %v4100_v49 = vmul.f32 %v11391_v17, %v10110_v42 }
 0x6fa   :  { %4971 = vmatprep.mubr.bf16.mxu0 %v10368_v6  ;;  %5164 = vmatprep.mubr.bf16.mxu1 %v10368_v6  ;;  %v10418_v32 = vmul.f32 %v11391_v17, %v4019_v50  ;;  %v4235_v9 = vmax.f32 %v4171_v36, 0.0  ;;  %v4237_v38 = vmax.f32 %v4173_v48, 0.0  ;;  %v4234_v59 = vmax.f32 %v4170_v33, 0.0 }
 0x6fb   :  { %5304 = vmatpush1.bf16.msra.mxu0 %v6434_v7  ;;  %v4236_v52 = vmax.f32 %v4172_v13, 0.0  ;;  %v4102_v37 = vmul.f32 %v11391_v17, %v10113_v57  ;;  %v4175_v0 = vadd.f32 %v11393_v15, %v4100_v49  ;;  %v4174_v42 = vadd.f32 %v11392_v19, %v10208_v12  ;;  %v11404_v13 = vld [vmem:[#allocation67_spill] sm:$0xff] }
 0x6fc   :  { %5305 = vmatprep.subr.bf16.mxu0 %v6439_v53  ;;  %v10425_v45 = vpack.c.bf16 %v4237_v38, %v4235_v9  ;;  %v4176_v50 = vadd.f32 %v11392_v19, %v10212_v31  ;;  %v4104_v22 = vmul.f32 %v11391_v17, %v10116_v11  ;;  %v4106_v35 = vmul.f32 %v11391_v17, %v10119_v47  ;;  %v6443_v9 = vld [vmem:[#allocation13 + $0x10] ss:$24 sps:$4 sm:$0xff]  }
 0x6fd   :  { %v10433_v61 = vpack.c.bf16 %v4236_v52, %v4234_v59  ;;  %v4177_v57 = vadd.f32 %v11393_v15, %v4102_v37  ;;  %v4239_v18 = vmax.f32 %v4175_v0, 0.0  ;;  %v4238_v20 = vmax.f32 %v4174_v42, 0.0  ;;  %v11405_v52 = vld [vmem:[#allocation83_spill] sm:$0xff] }
 0x6fe   :  { %v4240_v12 = vmax.f32 %v4176_v50, 0.0  ;;  %v4179_v21 = vadd.f32 %v11393_v15, %v4104_v22  ;;  %v4181_v23 = vadd.f32 %v11393_v15, %v4106_v35  ;;  %v4178_v31 = vadd.f32 %v11392_v19, %v10216_v62  ;;  %v6448_v0 = vld [vmem:[#allocation13 + $0x2e4] ss:$24 sps:$4 sm:$0xff]   ;;  %v11406_v50 = vld [vmem:[#allocation68_spill] sm:$0xff] }
 0x6ff   :  { %5306 = vmatpush1.bf16.msra.mxu0 %v6437_v8  ;;  %v4241_v11 = vmax.f32 %v4177_v57, 0.0  ;;  %v4180_v47 = vadd.f32 %v11392_v19, %v10220_v46  ;;  %v4108_v4 = vmul.f32 %v11391_v17, %v10122_v24  ;;  %v4110_v28 = vmul.f32 %v11391_v17, %v10128_v29 }
 0x700   :  { %5307 = vmatprep.subr.bf16.mxu0 %v6442_v39  ;;  %v10446_v7 = vpack.c.bf16 %v4240_v12, %v4238_v20  ;;  %v4243_v56 = vmax.f32 %v4179_v21, 0.0  ;;  %v4245_v44 = vmax.f32 %v4181_v23, 0.0  ;;  %v4242_v53 = vmax.f32 %v4178_v31, 0.0  ;;  %v11408_v20 = vld [vmem:[#allocation74_spill] sm:$0xff]  ;;  %v11409_v21 = vld [vmem:[#allocation51_spill] sm:$0xff] }
 0x701   :  { %4972 = vmatmul.mubr.bf16.gmra.mxu0 %v10370_v10  ;;  %5165 = vmatmul.mubr.bf16.gmra.mxu1 %v10370_v10  ;;  %v10450_v62 = vpack.c.bf16 %v4241_v11, %v4239_v18  ;;  %v4244_v46 = vmax.f32 %v4180_v47, 0.0  ;;  %v4183_v36 = vadd.f32 %v11393_v15, %v4108_v4  ;;  %v4185_v24 = vadd.f32 %v11393_v15, %v4110_v28  ;;  %v11410_v47 = vld [vmem:[#allocation70_spill] sm:$0xff] }
 0x702   :  { %4981 = vmatprep.mubr.bf16.mxu0 %v10372_v63  ;;  %5174 = vmatprep.mubr.bf16.mxu1 %v10372_v63  ;;  %v4229_v29 = vmax.f32 %v10380_v41, 0.0  ;;  %v10457_v48 = vpack.c.bf16 %v4245_v44, %v4243_v56  ;;  %v4182_v33 = vadd.f32 %v11392_v19, %v10224_v16  ;;  %v4184_v49 = vadd.f32 %v11392_v19, %v11404_v13  ;;  %v11407_v16 = vld [vmem:[#allocation69_spill] sm:$0xff]  ;;  %v6446_v28 = vld [vmem:[#allocation13 + $0x2e0] ss:$24 sps:$4 sm:$0xff]   ;;  %v11412_v13 = vld [vmem:[#allocation24_spill] sm:$0xff] }
 0x703   :  { %5308 = vmatpush1.bf16.msra.mxu0 %v6440_v27  ;;  %v10463_v38 = vpack.c.bf16 %v4244_v46, %v4242_v53  ;;  %v4247_v59 = vmax.f32 %v4183_v36, 0.0  ;;  %v4249_v8 = vmax.f32 %v4185_v24, 0.0  ;;  %v4112_v37 = vmul.f32 %v11391_v17, %v11405_v52  ;;  %v11411_v53 = vld [vmem:[#allocation76_spill] sm:$0xff] }
 0x704   :  { %5309 = vmatprep.subr.bf16.mxu0 %v6445_v14  ;;  %v4246_v42 = vmax.f32 %v4182_v33, 0.0  ;;  %v4248_v39 = vmax.f32 %v4184_v49, 0.0  ;;  %v4114_v22 = vmul.f32 %v11391_v17, %v11406_v50  ;;  %v4186_v35 = vadd.f32 %v11392_v19, %v11407_v16  ;;  %v6451_v36 = vld [vmem:[#allocation13 + $0x2b4] ss:$24 sps:$4 sm:$0xff]  }
 0x705   :  { %v10471_v57 = vpack.c.bf16 %v4249_v8, %v4247_v59  ;;  %v4187_v18 = vadd.f32 %v11393_v15, %v4112_v37  ;;  %v4188_v12 = vadd.f32 %v11392_v19, %v11408_v20  ;;  %v4116_v23 = vmul.f32 %v11391_v17, %v11409_v21  ;;  %v11413_v59 = vld [vmem:[#allocation41_spill] sm:$0xff]  ;;  %v11415_v20 = vld [vmem:[#allocation75_spill] sm:$0xff]  ;;  %v11416_v21 = vld [vmem:[#allocation78_spill] sm:$0xff] }
 0x706   :  { %v10478_v31 = vpack.c.bf16 %v4248_v39, %v4246_v42  ;;  %v4189_v27 = vadd.f32 %v11393_v15, %v4114_v22  ;;  %v4250_v11 = vmax.f32 %v4186_v35, 0.0  ;;  %v4118_v4 = vmul.f32 %v11391_v17, %v11410_v47  ;;  %v11414_v42 = vld [vmem:[#allocation65_spill] sm:$0xff]  ;;  %v6454_v47 = vld [vmem:[#allocation13 + $0x284] ss:$24 sps:$4 sm:$0xff]  }
 0x707   :  { %5310 = vmatpush1.bf16.msra.mxu0 %v6443_v9  ;;  %v4251_v14 = vmax.f32 %v4187_v18, 0.0  ;;  %v4252_v56 = vmax.f32 %v4188_v12, 0.0  ;;  %v4191_v44 = vadd.f32 %v11393_v15, %v4116_v23  ;;  %v4190_v46 = vadd.f32 %v11392_v19, %v11411_v53  ;;  %v6449_v35 = vld [vmem:[#allocation13 + $0x2b0] ss:$24 sps:$4 sm:$0xff]  }
 0x708   :  { %5311 = vmatprep.subr.bf16.mxu0 %v6448_v0  ;;  %v4253_v24 = vmax.f32 %v4189_v27, 0.0  ;;  %v4193_v33 = vadd.f32 %v11393_v15, %v4118_v4  ;;  %v4192_v49 = vadd.f32 %v11392_v19, %v11412_v13  ;;  %v4120_v8 = vmul.f32 %v11391_v17, %v11413_v59  ;;  %v11417_v27 = vld [vmem:[#allocation72_spill] sm:$0xff] }
 0x709   :  { %4982 = vmatmul.mubr.bf16.gmra.mxu0 %v10374_v40  ;;  %5175 = vmatmul.mubr.bf16.gmra.mxu1 %v10374_v40  ;;  %v10493_v9 = vpack.c.bf16 %v4252_v56, %v4250_v11  ;;  %v4255_v52 = vmax.f32 %v4191_v44, 0.0  ;;  %v4254_v37 = vmax.f32 %v4190_v46, 0.0  ;;  %v4122_v0 = vmul.f32 %v11391_v17, %v11414_v42 }
 0x70a   :  { %4991 = vmatprep.mubr.bf16.mxu0 %v10384_v26  ;;  %5184 = vmatprep.mubr.bf16.mxu1 %v10384_v26  ;;  %v10499_v39 = vpack.c.bf16 %v4253_v24, %v4251_v14  ;;  %v4257_v50 = vmax.f32 %v4193_v33, 0.0  ;;  %v4256_v22 = vmax.f32 %v4192_v49, 0.0  ;;  %v4195_v16 = vadd.f32 %v11393_v15, %v4120_v8  ;;  %v11420_v8 = vld [vmem:[#allocation82_spill] sm:$0xff] }
 0x70b   :  { %5312 = vmatpush2.bf16.msra.mxu0 %v6446_v28  ;;  %v4197_v18 = vadd.f32 %v11393_v15, %v4122_v0  ;;  %v4194_v12 = vadd.f32 %v11392_v19, %v11415_v20  ;;  %v4196_v23 = vadd.f32 %v11392_v19, %v11416_v21  ;;  %v4124_v11 = vmul.f32 %v11391_v17, %v11417_v27  ;;  %v11418_v28 = vld [vmem:[#allocation66_spill] sm:$0xff]  ;;  %v6463_v27 = vld [vmem:[#allocation13 + $0x1f4] ss:$24 sps:$4 sm:$0xff]  }
 0x70c   :  { %5313 = vmatprep.subr.bf16.mxu0 %v6451_v36  ;;  %v10509_v4 = vpack.c.bf16 %v4257_v50, %v4255_v52  ;;  %v10511_v14 = vpack.c.bf16 %v4256_v22, %v4254_v37  ;;  %v4259_v56 = vmax.f32 %v4195_v16, 0.0  ;;  %v4126_v44 = vmul.f32 %v11391_v17, %v11418_v28  ;;  %v11419_v36 = vld [vmem:[#allocation25_spill] sm:$0xff]  ;;  %v6452_v37 = vld [vmem:[#allocation13 + $0x280] ss:$24 sps:$4 sm:$0xff]   ;;  %v6460_v20 = vld [vmem:[#allocation13 + $0x224] ss:$24 sps:$4 sm:$0xff]  }
 0x70d   :  { %v4261_v53 = vmax.f32 %v4197_v18, 0.0  ;;  %v4258_v46 = vmax.f32 %v4194_v12, 0.0  ;;  %v4260_v24 = vmax.f32 %v4196_v23, 0.0  ;;  %v4199_v33 = vadd.f32 %v11393_v15, %v4124_v11  ;;  %v6457_v22 = vld [vmem:[#allocation13 + $0x254] ss:$24 sps:$4 sm:$0xff]  }
 0x70e   :  { %v4167_v13 = vadd.f32 %v11393_v15, %v10400_v43  ;;  %v4201_v49 = vadd.f32 %v11393_v15, %v4126_v44  ;;  %v4198_v59 = vadd.f32 %v11392_v19, %v11419_v36  ;;  %v4200_v52 = vadd.f32 %v11392_v19, %v11420_v8  ;;  %v6458_v21 = vld [vmem:[#allocation13 + $0x220] ss:$24 sps:$4 sm:$0xff]  }
 0x70f   :  { %v10527_v17 = vpack.c.bf16 %v4229_v29, %v4227_v2  ;;  %5314 = vmatpush2.bf16.msra.mxu0 %v6449_v35  ;;  %v10529_v42 = vpack.c.bf16 %v4261_v53, %v4259_v56  ;;  %v10531_v0 = vpack.c.bf16 %v4260_v24, %v4258_v46  ;;  %v4263_v43 = vmax.f32 %v4199_v33, 0.0  ;;  %v6464_v11 = vld [vmem:[#allocation13 + $0x1c0] ss:$24 sps:$4 sm:$0xff]   ;;  %v6467_v56 = vld [vmem:[#allocation13 + $0x190] ss:$24 sps:$4 sm:$0xff]  }
 0x710   :  { %v4169_v50 = vadd.f32 %v11393_v15, %v10418_v32  ;;  %5315 = vmatprep.subr.bf16.mxu0 %v6454_v47  ;;  %v4265_v16 = vmax.f32 %v4201_v49, 0.0  ;;  %v4262_v19 = vmax.f32 %v4198_v59, 0.0  ;;  %v4264_v18 = vmax.f32 %v4200_v52, 0.0  ;;  %v6455_v32 = vld [vmem:[#allocation13 + $0x250] ss:$24 sps:$4 sm:$0xff]  }
 0x711   :  { %4992 = vmatmul.mubr.bf16.gmra.mxu0 %v10393_v1  ;;  %5185 = vmatmul.mubr.bf16.gmra.mxu1 %v10393_v1  ;;  %v4226_v2 = vmax.f32 %v10387_v51, 0.0  ;;  %v4228_v15 = vmax.f32 %v10396_v60, 0.0  ;;  %v4231_v29 = vmax.f32 %v4167_v13, 0.0  ;;  %v6461_v51 = vld [vmem:[#allocation13 + $0x1f0] ss:$24 sps:$4 sm:$0xff]  }
 0x712   :  { %5001 = vmatprep.mubr.bf16.mxu0 %v10527_v17  ;;  %5194 = vmatprep.mubr.bf16.mxu1 %v10527_v17  ;;  %v10539_v58 = vpack.c.bf16 %v4265_v16, %v4263_v43  ;;  %v10541_v41 = vpack.c.bf16 %v4264_v18, %v4262_v19  ;;  %v4233_v35 = vmax.f32 %v4169_v50, 0.0  ;;  %v6466_v60 = vld [vmem:[#allocation13 + $0x1c4] ss:$24 sps:$4 sm:$0xff]   ;;  %v6469_v47 = vld [vmem:[#allocation13 + $0x194] ss:$24 sps:$4 sm:$0xff]  }
 0x713   :  { %5316 = vmatpush2.bf16.msra.mxu0 %v6452_v37  ;;  %v10545_v12 = vpack.c.bf16 %v4228_v15, %v4226_v2 }
 0x714   :  { %5317 = vmatprep.subr.bf16.mxu0 %v6457_v22  ;;  %v10547_v23 = vpack.c.bf16 %v4233_v35, %v4231_v29 }
 0x717   :  { %5318 = vmatpush2.bf16.msra.mxu0 %v6455_v32 }
 0x718   :  { %5319 = vmatprep.subr.bf16.mxu0 %v6460_v20 }
 0x719   :  { %5002 = vmatmul.mubr.bf16.gmra.mxu0 %v10545_v12  ;;  %5195 = vmatmul.mubr.bf16.gmra.mxu1 %v10545_v12 }
 0x71a   :  { %5011 = vmatprep.mubr.bf16.mxu0 %v10547_v23  ;;  %5204 = vmatprep.mubr.bf16.mxu1 %v10547_v23 }
 0x71b   :  { %5320 = vmatpush2.bf16.msra.mxu0 %v6458_v21 }
 0x71c   :  { %5321 = vmatprep.subr.bf16.mxu0 %v6463_v27 }
 0x71f   :  { %5322 = vmatpush2.bf16.msra.mxu0 %v6461_v51 }
 0x720   :  { %5323 = vmatprep.subr.bf16.mxu0 %v6466_v60 }
 0x721   :  { %5012 = vmatmul.mubr.bf16.gmra.mxu0 %v10409_v54  ;;  %5205 = vmatmul.mubr.bf16.gmra.mxu1 %v10409_v54 }
 0x722   :  { %5021 = vmatprep.mubr.bf16.mxu0 %v10425_v45  ;;  %5214 = vmatprep.mubr.bf16.mxu1 %v10425_v45 }
 0x723   :  { %5324 = vmatpush2.bf16.msra.mxu0 %v6464_v11 }
 0x724   :  { %5325 = vmatprep.subr.bf16.mxu0 %v6469_v47 }
 0x727   :  { %5326 = vmatpush2.bf16.msra.mxu0 %v6467_v56 }
 0x729   :  { %5022 = vmatmul.mubr.bf16.gmra.mxu0 %v10433_v61  ;;  %5215 = vmatmul.mubr.bf16.gmra.mxu1 %v10433_v61 }
 0x72a   :  { %5031 = vmatprep.mubr.bf16.mxu0 %v10450_v62  ;;  %5224 = vmatprep.mubr.bf16.mxu1 %v10450_v62 }
 0x731   :  { %5032 = vmatmul.mubr.bf16.gmra.mxu0 %v10446_v7  ;;  %5225 = vmatmul.mubr.bf16.gmra.mxu1 %v10446_v7 }
 0x732   :  { %5041 = vmatprep.mubr.bf16.mxu0 %v10457_v48  ;;  %5234 = vmatprep.mubr.bf16.mxu1 %v10457_v48 }
 0x739   :  { %5042 = vmatmul.mubr.bf16.gmra.mxu0 %v10463_v38  ;;  %5235 = vmatmul.mubr.bf16.gmra.mxu1 %v10463_v38 }
 0x73a   :  { %5051 = vmatprep.mubr.bf16.mxu0 %v10471_v57  ;;  %5244 = vmatprep.mubr.bf16.mxu1 %v10471_v57 }
 0x741   :  { %5052 = vmatmul.mubr.bf16.gmra.mxu0 %v10478_v31  ;;  %5245 = vmatmul.mubr.bf16.gmra.mxu1 %v10478_v31 }
 0x742   :  { %5061 = vmatprep.mubr.bf16.mxu0 %v10499_v39  ;;  %5254 = vmatprep.mubr.bf16.mxu1 %v10499_v39 }
 0x749   :  { %5062 = vmatmul.mubr.bf16.gmra.mxu0 %v10493_v9  ;;  %5255 = vmatmul.mubr.bf16.gmra.mxu1 %v10493_v9 }
 0x74a   :  { %5071 = vmatprep.mubr.bf16.mxu0 %v10509_v4  ;;  %5264 = vmatprep.mubr.bf16.mxu1 %v10509_v4 }
 0x751   :  { %5072 = vmatmul.mubr.bf16.gmra.mxu0 %v10511_v14  ;;  %5265 = vmatmul.mubr.bf16.gmra.mxu1 %v10511_v14 }
 0x752   :  { %5081 = vmatprep.mubr.bf16.mxu0 %v10529_v42  ;;  %5274 = vmatprep.mubr.bf16.mxu1 %v10529_v42 }
 0x759   :  { %5082 = vmatmul.mubr.bf16.gmra.mxu0 %v10531_v0  ;;  %5275 = vmatmul.mubr.bf16.gmra.mxu1 %v10531_v0 }
 0x75a   :  { %5091 = vmatprep.mubr.bf16.mxu0 %v10539_v58  ;;  %5284 = vmatprep.mubr.bf16.mxu1 %v10539_v58 }
 0x761   :  { %5092 = vmatmul.mubr.bf16.gmra.mxu0 %v10541_v41  ;;  %5285 = vmatmul.mubr.bf16.gmra.mxu1 %v10541_v41 }
 0x762   :  { %5327 = vmatprep.mubr.bf16.mxu0 %v10289_v25  ;;  %v4300_v25 = vld [vmem:[#allocation5 + $0x34] ss:$8 sm:$0x30] }
 0x769   :  { %5328 = vmatmul.mubr.bf16.vlgmr.msra.gmra.mxu0 %v10287_v55  ;;  %v4299_v55 = vld [vmem:[#allocation5 + $0x34] ss:$8 sm:$0xf] }
 0x76a   :  { %5337 = vmatprep.mubr.bf16.mxu0 %v10307_v5  ;;  %v11421_v5 = vld [vmem:[#allocation34_spill] sm:$0xff] }
 0x771   :  { %5338 = vmatmul.mubr.bf16.gmra.mxu0 %v10329_v30  ;;  %v4409_v30 = vsub.s32 2, %v11421_v5 }
 0x772   :  { %5347 = vmatprep.mubr.bf16.mxu0 %v10341_v34  ;;  %v10605_v34 = vor.u32 %v4300_v25, %v4299_v55 }
 0x779   :  { %5348 = vmatmul.mubr.bf16.gmra.mxu0 %v10366_v3  ;;  %v4413_v3 = vsub.s32 3, %v11421_v5 }
 0x77a   :  { %5357 = vmatprep.mubr.bf16.mxu0 %v10368_v6  ;;  %v11422_v6 = vld [vmem:[#allocation37_spill] sm:$0xff] }
 0x781   :  { %5358 = vmatmul.mubr.bf16.gmra.mxu0 %v10370_v10  ;;  %v10610_v10 = vrot.slane %v10605_v34, %v11422_v6 }
 0x782   :  { %5367 = vmatprep.mubr.bf16.mxu0 %v10372_v63  ;;  %v10613_v63 = vrot.slane %v10605_v34, %v4409_v30 }
 0x789   :  { %5368 = vmatmul.mubr.bf16.gmra.mxu0 %v10374_v40  ;;  %v11423_v40 = vld [vmem:[#allocation38_spill] sm:$0xff] }
 0x78a   :  { %5377 = vmatprep.mubr.bf16.mxu0 %v10384_v26  ;;  %v10617_v26 = vrot.slane %v10605_v34, %v11423_v40 }
 0x791   :  { %5378 = vmatmul.mubr.bf16.gmra.mxu0 %v10393_v1  ;;  %v10620_v1 = vrot.slane %v10605_v34, %v4413_v3 }
 0x792   :  { %5387 = vmatprep.mubr.bf16.mxu0 %v10527_v17 }
 0x799   :  { %5388 = vmatmul.mubr.bf16.gmra.mxu0 %v10545_v12 }
 0x79a   :  { %5397 = vmatprep.mubr.bf16.mxu0 %v10547_v23 }
 0x7a1   :  { %5398 = vmatmul.mubr.bf16.gmra.mxu0 %v10409_v54 }
 0x7a2   :  { %5407 = vmatprep.mubr.bf16.mxu0 %v10425_v45 }
 0x7a9   :  { %v4943_v54 = vpop.f32.mrf.mxu0  ;;  %v5136_v45 = vpop.f32.mrf.mxu1  ;;  %5408 = vmatmul.mubr.bf16.gmra.mxu0 %v10433_v61 }
 0x7aa   :  { %v4944_v28 = vadd.f32 %v4943_v54, %v10610_v10  ;;  %v5137_v44 = vadd.f32 %v5136_v45, %v10613_v63  ;;  %5417 = vmatprep.mubr.bf16.mxu0 %v10450_v62 }
 0x7ab   :  { %v4945_v53 = vpop.f32.mrf.mxu0  ;;  %v5138_v46 = vpop.f32.mrf.mxu1 }
 0x7ac   :  { %5488 = vst [vmem:[#allocation14] sm:$0xff] %v4944_v28  ;;  %5490 = vst [vmem:[#allocation14 + $0x10] sm:$0xff] %v5137_v44  ;;  %v4946_v24 = vadd.f32 %v4945_v53, %v10617_v26  ;;  %v5139_v33 = vadd.f32 %v5138_v46, %v10620_v1 }
 0x7ad   :  { %v4947_v13 = vpop.f32.mrf.mxu0  ;;  %v5140_v49 = vpop.f32.mrf.mxu1 }
 0x7ae   :  { %5489 = vst [vmem:[#allocation14 + $0x8] sm:$0xff] %v4946_v24  ;;  %5491 = vst [vmem:[#allocation14 + $0x18] sm:$0xff] %v5139_v33  ;;  %v4948_v61 = vadd.f32 %v4947_v13, %v10610_v10  ;;  %v5141_v36 = vadd.f32 %v5140_v49, %v10613_v63 }
 0x7af   :  { %v4949_v59 = vpop.f32.mrf.mxu0  ;;  %v5142_v8 = vpop.f32.mrf.mxu1 }
 0x7b0   :  { %5494 = vst [vmem:[#allocation14 + $0x30] sm:$0xff] %v4948_v61  ;;  %5496 = vst [vmem:[#allocation14 + $0x40] sm:$0xff] %v5141_v36  ;;  %v4950_v62 = vadd.f32 %v4949_v59, %v10617_v26  ;;  %v5143_v52 = vadd.f32 %v5142_v8, %v10620_v1 }
 0x7b1   :  { %v4953_v17 = vpop.f32.mrf.mxu0  ;;  %v5146_v37 = vpop.f32.mrf.mxu1  ;;  %5418 = vmatmul.mubr.bf16.gmra.mxu0 %v10446_v7 }
 0x7b2   :  { %5495 = vst [vmem:[#allocation14 + $0x38] sm:$0xff] %v4950_v62  ;;  %5497 = vst [vmem:[#allocation14 + $0x48] sm:$0xff] %v5143_v52  ;;  %v4954_v43 = vadd.f32 %v4953_v17, %v10610_v10  ;;  %v5147_v50 = vadd.f32 %v5146_v37, %v10613_v63  ;;  %5427 = vmatprep.mubr.bf16.mxu0 %v10457_v48 }
 0x7b3   :  { %v4955_v22 = vpop.f32.mrf.mxu0  ;;  %v5148_v16 = vpop.f32.mrf.mxu1 }
 0x7b4   :  { %5500 = vst [vmem:[#allocation14 + $0x60] sm:$0xff] %v4954_v43  ;;  %5502 = vst [vmem:[#allocation14 + $0x70] sm:$0xff] %v5147_v50  ;;  %v4956_v19 = vadd.f32 %v4955_v22, %v10617_v26  ;;  %v5149_v18 = vadd.f32 %v5148_v16, %v10620_v1 }
 0x7b5   :  { %v4957_v2 = vpop.f32.mrf.mxu0  ;;  %v5150_v15 = vpop.f32.mrf.mxu1 }
 0x7b6   :  { %5501 = vst [vmem:[#allocation14 + $0x68] sm:$0xff] %v4956_v19  ;;  %5503 = vst [vmem:[#allocation14 + $0x78] sm:$0xff] %v5149_v18  ;;  %v4958_v7 = vadd.f32 %v4957_v2, %v10610_v10  ;;  %v5151_v32 = vadd.f32 %v5150_v15, %v10613_v63 }
 0x7b7   :  { %v4959_v29 = vpop.f32.mrf.mxu0  ;;  %v5152_v35 = vpop.f32.mrf.mxu1 }
 0x7b8   :  { %5506 = vst [vmem:[#allocation14 + $0x90] sm:$0xff] %v4958_v7  ;;  %5508 = vst [vmem:[#allocation14 + $0xa0] sm:$0xff] %v5151_v32  ;;  %v4960_v48 = vadd.f32 %v4959_v29, %v10617_v26  ;;  %v5153_v20 = vadd.f32 %v5152_v35, %v10620_v1 }
 0x7b9   :  { %v4963_v12 = vpop.f32.mrf.mxu0  ;;  %v5156_v21 = vpop.f32.mrf.mxu1  ;;  %5428 = vmatmul.mubr.bf16.gmra.mxu0 %v10463_v38 }
 0x7ba   :  { %5507 = vst [vmem:[#allocation14 + $0x98] sm:$0xff] %v4960_v48  ;;  %5509 = vst [vmem:[#allocation14 + $0xa8] sm:$0xff] %v5153_v20  ;;  %v4964_v23 = vadd.f32 %v4963_v12, %v10610_v10  ;;  %v5157_v27 = vadd.f32 %v5156_v21, %v10613_v63  ;;  %5437 = vmatprep.mubr.bf16.mxu0 %v10471_v57 }
 0x7bb   :  { %v4965_v51 = vpop.f32.mrf.mxu0  ;;  %v5158_v60 = vpop.f32.mrf.mxu1 }
 0x7bc   :  { %5512 = vst [vmem:[#allocation14 + $0xc0] sm:$0xff] %v4964_v23  ;;  %5514 = vst [vmem:[#allocation14 + $0xd0] sm:$0xff] %v5157_v27  ;;  %v4966_v11 = vadd.f32 %v4965_v51, %v10617_v26  ;;  %v5159_v47 = vadd.f32 %v5158_v60, %v10620_v1 }
 0x7bd   :  { %v4967_v56 = vpop.f32.mrf.mxu0  ;;  %v5160_v55 = vpop.f32.mrf.mxu1 }
 0x7be   :  { %5513 = vst [vmem:[#allocation14 + $0xc8] sm:$0xff] %v4966_v11  ;;  %5515 = vst [vmem:[#allocation14 + $0xd8] sm:$0xff] %v5159_v47  ;;  %v4968_v38 = vadd.f32 %v4967_v56, %v10610_v10  ;;  %v5161_v25 = vadd.f32 %v5160_v55, %v10613_v63 }
 0x7bf   :  { %v4969_v30 = vpop.f32.mrf.mxu0  ;;  %v5162_v3 = vpop.f32.mrf.mxu1 }
 0x7c0   :  { %5518 = vst [vmem:[#allocation14 + $0xf0] sm:$0xff] %v4968_v38  ;;  %5520 = vst [vmem:[#allocation14 + $0x100] sm:$0xff] %v5161_v25  ;;  %v4970_v57 = vadd.f32 %v4969_v30, %v10617_v26  ;;  %v5163_v6 = vadd.f32 %v5162_v3, %v10620_v1 }
 0x7c1   :  { %v4973_v40 = vpop.f32.mrf.mxu0  ;;  %v5166_v54 = vpop.f32.mrf.mxu1  ;;  %5438 = vmatmul.mubr.bf16.gmra.mxu0 %v10478_v31 }
 0x7c2   :  { %5519 = vst [vmem:[#allocation14 + $0xf8] sm:$0xff] %v4970_v57  ;;  %5521 = vst [vmem:[#allocation14 + $0x108] sm:$0xff] %v5163_v6  ;;  %v4974_v45 = vadd.f32 %v4973_v40, %v10610_v10  ;;  %v5167_v28 = vadd.f32 %v5166_v54, %v10613_v63  ;;  %5447 = vmatprep.mubr.bf16.mxu0 %v10499_v39 }
 0x7c3   :  { %v4975_v44 = vpop.f32.mrf.mxu0  ;;  %v5168_v53 = vpop.f32.mrf.mxu1 }
 0x7c4   :  { %5524 = vst [vmem:[#allocation14 + $0x120] sm:$0xff] %v4974_v45  ;;  %5526 = vst [vmem:[#allocation14 + $0x130] sm:$0xff] %v5167_v28  ;;  %v4976_v46 = vadd.f32 %v4975_v44, %v10617_v26  ;;  %v5169_v24 = vadd.f32 %v5168_v53, %v10620_v1 }
 0x7c5   :  { %v4977_v33 = vpop.f32.mrf.mxu0  ;;  %v5170_v13 = vpop.f32.mrf.mxu1 }
 0x7c6   :  { %5525 = vst [vmem:[#allocation14 + $0x128] sm:$0xff] %v4976_v46  ;;  %5527 = vst [vmem:[#allocation14 + $0x138] sm:$0xff] %v5169_v24  ;;  %v4978_v31 = vadd.f32 %v4977_v33, %v10610_v10  ;;  %v5171_v49 = vadd.f32 %v5170_v13, %v10613_v63 }
 0x7c7   :  { %v4979_v61 = vpop.f32.mrf.mxu0  ;;  %v5172_v36 = vpop.f32.mrf.mxu1 }
 0x7c8   :  { %5530 = vst [vmem:[#allocation14 + $0x150] sm:$0xff] %v4978_v31  ;;  %5532 = vst [vmem:[#allocation14 + $0x160] sm:$0xff] %v5171_v49  ;;  %v4980_v39 = vadd.f32 %v4979_v61, %v10617_v26  ;;  %v5173_v59 = vadd.f32 %v5172_v36, %v10620_v1 }
 0x7c9   :  { %v4983_v8 = vpop.f32.mrf.mxu0  ;;  %v5176_v62 = vpop.f32.mrf.mxu1  ;;  %5448 = vmatmul.mubr.bf16.gmra.mxu0 %v10493_v9 }
 0x7ca   :  { %5531 = vst [vmem:[#allocation14 + $0x158] sm:$0xff] %v4980_v39  ;;  %5533 = vst [vmem:[#allocation14 + $0x168] sm:$0xff] %v5173_v59  ;;  %v4984_v52 = vadd.f32 %v4983_v8, %v10610_v10  ;;  %v5177_v17 = vadd.f32 %v5176_v62, %v10613_v63  ;;  %5457 = vmatprep.mubr.bf16.mxu0 %v10509_v4 }
 0x7cb   :  { %v4985_v37 = vpop.f32.mrf.mxu0  ;;  %v5178_v43 = vpop.f32.mrf.mxu1 }
 0x7cc   :  { %5536 = vst [vmem:[#allocation14 + $0x180] sm:$0xff] %v4984_v52  ;;  %5538 = vst [vmem:[#allocation14 + $0x190] sm:$0xff] %v5177_v17  ;;  %v4986_v50 = vadd.f32 %v4985_v37, %v10617_v26  ;;  %v5179_v22 = vadd.f32 %v5178_v43, %v10620_v1 }
 0x7cd   :  { %v4987_v16 = vpop.f32.mrf.mxu0  ;;  %v5180_v19 = vpop.f32.mrf.mxu1 }
 0x7ce   :  { %5537 = vst [vmem:[#allocation14 + $0x188] sm:$0xff] %v4986_v50  ;;  %5539 = vst [vmem:[#allocation14 + $0x198] sm:$0xff] %v5179_v22  ;;  %v4988_v9 = vadd.f32 %v4987_v16, %v10610_v10  ;;  %v5181_v18 = vadd.f32 %v5180_v19, %v10613_v63 }
 0x7cf   :  { %v4989_v2 = vpop.f32.mrf.mxu0  ;;  %v5182_v15 = vpop.f32.mrf.mxu1 }
 0x7d0   :  { %5542 = vst [vmem:[#allocation14 + $0x1b0] sm:$0xff] %v4988_v9  ;;  %5544 = vst [vmem:[#allocation14 + $0x1c0] sm:$0xff] %v5181_v18  ;;  %v4990_v4 = vadd.f32 %v4989_v2, %v10617_v26  ;;  %v5183_v7 = vadd.f32 %v5182_v15, %v10620_v1 }
 0x7d1   :  { %v4993_v32 = vpop.f32.mrf.mxu0  ;;  %v5186_v29 = vpop.f32.mrf.mxu1  ;;  %5458 = vmatmul.mubr.bf16.gmra.mxu0 %v10511_v14 }
 0x7d2   :  { %5543 = vst [vmem:[#allocation14 + $0x1b8] sm:$0xff] %v4990_v4  ;;  %5545 = vst [vmem:[#allocation14 + $0x1c8] sm:$0xff] %v5183_v7  ;;  %v4994_v35 = vadd.f32 %v4993_v32, %v10610_v10  ;;  %v5187_v48 = vadd.f32 %v5186_v29, %v10613_v63  ;;  %5467 = vmatprep.mubr.bf16.mxu0 %v10529_v42 }
 0x7d3   :  { %v4995_v20 = vpop.f32.mrf.mxu0  ;;  %v5188_v12 = vpop.f32.mrf.mxu1 }
 0x7d4   :  { %5548 = vst [vmem:[#allocation14 + $0x1e0] sm:$0xff] %v4994_v35  ;;  %5550 = vst [vmem:[#allocation14 + $0x1f0] sm:$0xff] %v5187_v48  ;;  %v4996_v21 = vadd.f32 %v4995_v20, %v10617_v26  ;;  %v5189_v23 = vadd.f32 %v5188_v12, %v10620_v1 }
 0x7d5   :  { %v4997_v27 = vpop.f32.mrf.mxu0  ;;  %v5190_v51 = vpop.f32.mrf.mxu1 }
 0x7d6   :  { %5549 = vst [vmem:[#allocation14 + $0x1e8] sm:$0xff] %v4996_v21  ;;  %5551 = vst [vmem:[#allocation14 + $0x1f8] sm:$0xff] %v5189_v23  ;;  %v4998_v14 = vadd.f32 %v4997_v27, %v10610_v10  ;;  %v5191_v60 = vadd.f32 %v5190_v51, %v10613_v63 }
 0x7d7   :  { %v4999_v11 = vpop.f32.mrf.mxu0  ;;  %v5192_v47 = vpop.f32.mrf.mxu1 }
 0x7d8   :  { %5554 = vst [vmem:[#allocation14 + $0x210] sm:$0xff] %v4998_v14  ;;  %5556 = vst [vmem:[#allocation14 + $0x220] sm:$0xff] %v5191_v60  ;;  %v5000_v42 = vadd.f32 %v4999_v11, %v10617_v26  ;;  %v5193_v56 = vadd.f32 %v5192_v47, %v10620_v1 }
 0x7d9   :  { %v5003_v55 = vpop.f32.mrf.mxu0  ;;  %v5196_v38 = vpop.f32.mrf.mxu1  ;;  %5468 = vmatmul.mubr.bf16.gmra.mxu0 %v10531_v0 }
 0x7da   :  { %5555 = vst [vmem:[#allocation14 + $0x218] sm:$0xff] %v5000_v42  ;;  %5557 = vst [vmem:[#allocation14 + $0x228] sm:$0xff] %v5193_v56  ;;  %v5004_v25 = vadd.f32 %v5003_v55, %v10610_v10  ;;  %v5197_v30 = vadd.f32 %v5196_v38, %v10613_v63  ;;  %5477 = vmatprep.mubr.bf16.mxu0 %v10539_v58 }
 0x7db   :  { %v5005_v3 = vpop.f32.mrf.mxu0  ;;  %v5198_v57 = vpop.f32.mrf.mxu1 }
 0x7dc   :  { %5560 = vst [vmem:[#allocation14 + $0x240] sm:$0xff] %v5004_v25  ;;  %5562 = vst [vmem:[#allocation14 + $0x250] sm:$0xff] %v5197_v30  ;;  %v5006_v6 = vadd.f32 %v5005_v3, %v10617_v26  ;;  %v5199_v40 = vadd.f32 %v5198_v57, %v10620_v1 }
 0x7dd   :  { %v5007_v54 = vpop.f32.mrf.mxu0  ;;  %v5200_v45 = vpop.f32.mrf.mxu1 }
 0x7de   :  { %5561 = vst [vmem:[#allocation14 + $0x248] sm:$0xff] %v5006_v6  ;;  %5563 = vst [vmem:[#allocation14 + $0x258] sm:$0xff] %v5199_v40  ;;  %v5008_v0 = vadd.f32 %v5007_v54, %v10610_v10  ;;  %v5201_v28 = vadd.f32 %v5200_v45, %v10613_v63 }
 0x7df   :  { %v5009_v44 = vpop.f32.mrf.mxu0  ;;  %v5202_v53 = vpop.f32.mrf.mxu1 }
 0x7e0   :  { %5566 = vst [vmem:[#allocation14 + $0x270] sm:$0xff] %v5008_v0  ;;  %5568 = vst [vmem:[#allocation14 + $0x280] sm:$0xff] %v5201_v28  ;;  %v5010_v58 = vadd.f32 %v5009_v44, %v10617_v26  ;;  %v5203_v46 = vadd.f32 %v5202_v53, %v10620_v1 }
 0x7e1   :  { %v5013_v24 = vpop.f32.mrf.mxu0  ;;  %v5206_v33 = vpop.f32.mrf.mxu1  ;;  %5478 = vmatmul.mubr.bf16.gmra.mxu0 %v10541_v41 }
 0x7e2   :  { %5567 = vst [vmem:[#allocation14 + $0x278] sm:$0xff] %v5010_v58  ;;  %5569 = vst [vmem:[#allocation14 + $0x288] sm:$0xff] %v5203_v46  ;;  %v5014_v13 = vadd.f32 %v5013_v24, %v10610_v10  ;;  %v5207_v31 = vadd.f32 %v5206_v33, %v10613_v63 }
 0x7e3   :  { %v5015_v49 = vpop.f32.mrf.mxu0  ;;  %v5208_v61 = vpop.f32.mrf.mxu1 }
 0x7e4   :  { %5572 = vst [vmem:[#allocation14 + $0x2a0] sm:$0xff] %v5014_v13  ;;  %5574 = vst [vmem:[#allocation14 + $0x2b0] sm:$0xff] %v5207_v31  ;;  %v5016_v36 = vadd.f32 %v5015_v49, %v10617_v26  ;;  %v5209_v39 = vadd.f32 %v5208_v61, %v10620_v1 }
 0x7e5   :  { %v5017_v59 = vpop.f32.mrf.mxu0  ;;  %v5210_v8 = vpop.f32.mrf.mxu1 }
 0x7e6   :  { %5573 = vst [vmem:[#allocation14 + $0x2a8] sm:$0xff] %v5016_v36  ;;  %5575 = vst [vmem:[#allocation14 + $0x2b8] sm:$0xff] %v5209_v39  ;;  %v5018_v41 = vadd.f32 %v5017_v59, %v10610_v10  ;;  %v5211_v62 = vadd.f32 %v5210_v8, %v10613_v63 }
 0x7e7   :  { %v5019_v52 = vpop.f32.mrf.mxu0  ;;  %v5212_v17 = vpop.f32.mrf.mxu1 }
 0x7e8   :  { %5578 = vst [vmem:[#allocation14 + $0x2d0] sm:$0xff] %v5018_v41  ;;  %5580 = vst [vmem:[#allocation14 + $0x2e0] sm:$0xff] %v5211_v62  ;;  %v5020_v37 = vadd.f32 %v5019_v52, %v10617_v26  ;;  %v5213_v43 = vadd.f32 %v5212_v17, %v10620_v1 }
 0x7e9   :  { %v5023_v50 = vpop.f32.mrf.mxu0  ;;  %v5216_v22 = vpop.f32.mrf.mxu1 }
 0x7ea   :  { %5579 = vst [vmem:[#allocation14 + $0x2d8] sm:$0xff] %v5020_v37  ;;  %5581 = vst [vmem:[#allocation14 + $0x2e8] sm:$0xff] %v5213_v43  ;;  %v5024_v16 = vadd.f32 %v5023_v50, %v10610_v10  ;;  %v5217_v19 = vadd.f32 %v5216_v22, %v10613_v63 }
 0x7eb   :  { %v5025_v9 = vpop.f32.mrf.mxu0  ;;  %v5218_v18 = vpop.f32.mrf.mxu1 }
 0x7ec   :  { %5584 = vst [vmem:[#allocation14 + $0x300] sm:$0xff] %v5024_v16  ;;  %5586 = vst [vmem:[#allocation14 + $0x310] sm:$0xff] %v5217_v19  ;;  %v5026_v2 = vadd.f32 %v5025_v9, %v10617_v26  ;;  %v5219_v15 = vadd.f32 %v5218_v18, %v10620_v1 }
 0x7ed   :  { %v5027_v4 = vpop.f32.mrf.mxu0  ;;  %v5220_v7 = vpop.f32.mrf.mxu1 }
 0x7ee   :  { %5585 = vst [vmem:[#allocation14 + $0x308] sm:$0xff] %v5026_v2  ;;  %5587 = vst [vmem:[#allocation14 + $0x318] sm:$0xff] %v5219_v15  ;;  %v5028_v32 = vadd.f32 %v5027_v4, %v10610_v10  ;;  %v5221_v29 = vadd.f32 %v5220_v7, %v10613_v63 }
 0x7ef   :  { %v5029_v35 = vpop.f32.mrf.mxu0  ;;  %v5222_v48 = vpop.f32.mrf.mxu1 }
 0x7f0   :  { %5590 = vst [vmem:[#allocation14 + $0x330] sm:$0xff] %v5028_v32  ;;  %5592 = vst [vmem:[#allocation14 + $0x340] sm:$0xff] %v5221_v29  ;;  %v5030_v20 = vadd.f32 %v5029_v35, %v10617_v26  ;;  %v5223_v12 = vadd.f32 %v5222_v48, %v10620_v1 }
 0x7f1   :  { %v5033_v21 = vpop.f32.mrf.mxu0  ;;  %v5226_v23 = vpop.f32.mrf.mxu1 }
 0x7f2   :  { %5591 = vst [vmem:[#allocation14 + $0x338] sm:$0xff] %v5030_v20  ;;  %5593 = vst [vmem:[#allocation14 + $0x348] sm:$0xff] %v5223_v12  ;;  %v5034_v27 = vadd.f32 %v5033_v21, %v10610_v10  ;;  %v5227_v51 = vadd.f32 %v5226_v23, %v10613_v63 }
 0x7f3   :  { %v5035_v14 = vpop.f32.mrf.mxu0  ;;  %v5228_v60 = vpop.f32.mrf.mxu1 }
 0x7f4   :  { %5596 = vst [vmem:[#allocation14 + $0x360] sm:$0xff] %v5034_v27  ;;  %5598 = vst [vmem:[#allocation14 + $0x370] sm:$0xff] %v5227_v51  ;;  %v5036_v11 = vadd.f32 %v5035_v14, %v10617_v26  ;;  %v5229_v47 = vadd.f32 %v5228_v60, %v10620_v1 }
 0x7f5   :  { %v5037_v42 = vpop.f32.mrf.mxu0  ;;  %v5230_v56 = vpop.f32.mrf.mxu1 }
 0x7f6   :  { %5597 = vst [vmem:[#allocation14 + $0x368] sm:$0xff] %v5036_v11  ;;  %5599 = vst [vmem:[#allocation14 + $0x378] sm:$0xff] %v5229_v47  ;;  %v5038_v55 = vadd.f32 %v5037_v42, %v10610_v10  ;;  %v5231_v38 = vadd.f32 %v5230_v56, %v10613_v63 }
 0x7f7   :  { %v5039_v25 = vpop.f32.mrf.mxu0  ;;  %v5232_v30 = vpop.f32.mrf.mxu1 }
 0x7f8   :  { %5602 = vst [vmem:[#allocation14 + $0x390] sm:$0xff] %v5038_v55  ;;  %5604 = vst [vmem:[#allocation14 + $0x3a0] sm:$0xff] %v5231_v38  ;;  %v5040_v3 = vadd.f32 %v5039_v25, %v10617_v26  ;;  %v5233_v57 = vadd.f32 %v5232_v30, %v10620_v1 }
 0x7f9   :  { %v5043_v6 = vpop.f32.mrf.mxu0  ;;  %v5236_v40 = vpop.f32.mrf.mxu1 }
 0x7fa   :  { %5603 = vst [vmem:[#allocation14 + $0x398] sm:$0xff] %v5040_v3  ;;  %5605 = vst [vmem:[#allocation14 + $0x3a8] sm:$0xff] %v5233_v57  ;;  %v5044_v54 = vadd.f32 %v5043_v6, %v10610_v10  ;;  %v5237_v45 = vadd.f32 %v5236_v40, %v10613_v63 }
 0x7fb   :  { %v5045_v0 = vpop.f32.mrf.mxu0  ;;  %v5238_v28 = vpop.f32.mrf.mxu1 }
 0x7fc   :  { %5608 = vst [vmem:[#allocation14 + $0x3c0] sm:$0xff] %v5044_v54  ;;  %5610 = vst [vmem:[#allocation14 + $0x3d0] sm:$0xff] %v5237_v45  ;;  %v5046_v44 = vadd.f32 %v5045_v0, %v10617_v26  ;;  %v5239_v53 = vadd.f32 %v5238_v28, %v10620_v1 }
 0x7fd   :  { %v5047_v58 = vpop.f32.mrf.mxu0  ;;  %v5240_v46 = vpop.f32.mrf.mxu1 }
 0x7fe   :  { %5609 = vst [vmem:[#allocation14 + $0x3c8] sm:$0xff] %v5046_v44  ;;  %5611 = vst [vmem:[#allocation14 + $0x3d8] sm:$0xff] %v5239_v53  ;;  %v5048_v24 = vadd.f32 %v5047_v58, %v10610_v10  ;;  %v5241_v33 = vadd.f32 %v5240_v46, %v10613_v63 }
 0x7ff   :  { %v5049_v13 = vpop.f32.mrf.mxu0  ;;  %v5242_v31 = vpop.f32.mrf.mxu1 }
 0x800   :  { %5614 = vst [vmem:[#allocation14 + $0x3f0] sm:$0xff] %v5048_v24  ;;  %5616 = vst [vmem:[#allocation14 + $0x400] sm:$0xff] %v5241_v33  ;;  %v5050_v49 = vadd.f32 %v5049_v13, %v10617_v26  ;;  %v5243_v61 = vadd.f32 %v5242_v31, %v10620_v1 }
 0x801   :  { %v5053_v36 = vpop.f32.mrf.mxu0  ;;  %v5246_v39 = vpop.f32.mrf.mxu1 }
 0x802   :  { %5615 = vst [vmem:[#allocation14 + $0x3f8] sm:$0xff] %v5050_v49  ;;  %5617 = vst [vmem:[#allocation14 + $0x408] sm:$0xff] %v5243_v61  ;;  %v5054_v59 = vadd.f32 %v5053_v36, %v10610_v10  ;;  %v5247_v8 = vadd.f32 %v5246_v39, %v10613_v63 }
 0x803   :  { %v5055_v41 = vpop.f32.mrf.mxu0  ;;  %v5248_v62 = vpop.f32.mrf.mxu1 }
 0x804   :  { %5620 = vst [vmem:[#allocation14 + $0x420] sm:$0xff] %v5054_v59  ;;  %5622 = vst [vmem:[#allocation14 + $0x430] sm:$0xff] %v5247_v8  ;;  %v5056_v52 = vadd.f32 %v5055_v41, %v10617_v26  ;;  %v5249_v17 = vadd.f32 %v5248_v62, %v10620_v1 }
 0x805   :  { %v5057_v37 = vpop.f32.mrf.mxu0  ;;  %v5250_v43 = vpop.f32.mrf.mxu1 }
 0x806   :  { %5621 = vst [vmem:[#allocation14 + $0x428] sm:$0xff] %v5056_v52  ;;  %5623 = vst [vmem:[#allocation14 + $0x438] sm:$0xff] %v5249_v17  ;;  %v5058_v50 = vadd.f32 %v5057_v37, %v10610_v10  ;;  %v5251_v22 = vadd.f32 %v5250_v43, %v10613_v63  ;;  %v4417_v37 = vsub.s32 4, %v11421_v5 }
 0x807   :  { %v5059_v16 = vpop.f32.mrf.mxu0  ;;  %v5252_v19 = vpop.f32.mrf.mxu1 }
 0x808   :  { %5626 = vst [vmem:[#allocation14 + $0x450] sm:$0xff] %v5058_v50  ;;  %5628 = vst [vmem:[#allocation14 + $0x460] sm:$0xff] %v5251_v22  ;;  %v5060_v9 = vadd.f32 %v5059_v16, %v10617_v26  ;;  %v5253_v18 = vadd.f32 %v5252_v19, %v10620_v1  ;;  %v4421_v19 = vsub.s32 5, %v11421_v5 }
 0x809   :  { %v5063_v2 = vpop.f32.mrf.mxu0  ;;  %v5256_v15 = vpop.f32.mrf.mxu1 }
 0x80a   :  { %5627 = vst [vmem:[#allocation14 + $0x458] sm:$0xff] %v5060_v9  ;;  %5629 = vst [vmem:[#allocation14 + $0x468] sm:$0xff] %v5253_v18  ;;  %v5064_v4 = vadd.f32 %v5063_v2, %v10610_v10  ;;  %v5257_v7 = vadd.f32 %v5256_v15, %v10613_v63 }
 0x80b   :  { %v5065_v32 = vpop.f32.mrf.mxu0  ;;  %v5258_v29 = vpop.f32.mrf.mxu1 }
 0x80c   :  { %5632 = vst [vmem:[#allocation14 + $0x480] sm:$0xff] %v5064_v4  ;;  %5634 = vst [vmem:[#allocation14 + $0x490] sm:$0xff] %v5257_v7  ;;  %v5066_v35 = vadd.f32 %v5065_v32, %v10617_v26  ;;  %v5259_v48 = vadd.f32 %v5258_v29, %v10620_v1  ;;  %v10766_v32 = vrot.slane %v10605_v34, %v4417_v37 }
 0x80d   :  { %v5067_v20 = vpop.f32.mrf.mxu0  ;;  %v5260_v12 = vpop.f32.mrf.mxu1 }
 0x80e   :  { %5633 = vst [vmem:[#allocation14 + $0x488] sm:$0xff] %v5066_v35  ;;  %5635 = vst [vmem:[#allocation14 + $0x498] sm:$0xff] %v5259_v48  ;;  %v5068_v21 = vadd.f32 %v5067_v20, %v10610_v10  ;;  %v5261_v23 = vadd.f32 %v5260_v12, %v10613_v63  ;;  %v10771_v20 = vrot.slane %v10605_v34, %v4421_v19 }
 0x80f   :  { %v5069_v27 = vpop.f32.mrf.mxu0  ;;  %v5262_v51 = vpop.f32.mrf.mxu1 }
 0x810   :  { %5638 = vst [vmem:[#allocation14 + $0x4b0] sm:$0xff] %v5068_v21  ;;  %5640 = vst [vmem:[#allocation14 + $0x4c0] sm:$0xff] %v5261_v23  ;;  %v5070_v14 = vadd.f32 %v5069_v27, %v10617_v26  ;;  %v5263_v60 = vadd.f32 %v5262_v51, %v10620_v1 }
 0x811   :  { %v5073_v11 = vpop.f32.mrf.mxu0  ;;  %v5266_v47 = vpop.f32.mrf.mxu1 }
 0x812   :  { %5639 = vst [vmem:[#allocation14 + $0x4b8] sm:$0xff] %v5070_v14  ;;  %5641 = vst [vmem:[#allocation14 + $0x4c8] sm:$0xff] %v5263_v60  ;;  %v5074_v42 = vadd.f32 %v5073_v11, %v10610_v10  ;;  %v5267_v56 = vadd.f32 %v5266_v47, %v10613_v63 }
 0x813   :  { %v5075_v55 = vpop.f32.mrf.mxu0  ;;  %v5268_v38 = vpop.f32.mrf.mxu1 }
 0x814   :  { %5644 = vst [vmem:[#allocation14 + $0x4e0] sm:$0xff] %v5074_v42  ;;  %5646 = vst [vmem:[#allocation14 + $0x4f0] sm:$0xff] %v5267_v56  ;;  %v5076_v25 = vadd.f32 %v5075_v55, %v10617_v26  ;;  %v5269_v30 = vadd.f32 %v5268_v38, %v10620_v1 }
 0x815   :  { %v5077_v3 = vpop.f32.mrf.mxu0  ;;  %v5270_v57 = vpop.f32.mrf.mxu1 }
 0x816   :  { %5645 = vst [vmem:[#allocation14 + $0x4e8] sm:$0xff] %v5076_v25  ;;  %5647 = vst [vmem:[#allocation14 + $0x4f8] sm:$0xff] %v5269_v30  ;;  %v5078_v6 = vadd.f32 %v5077_v3, %v10610_v10  ;;  %v5271_v40 = vadd.f32 %v5270_v57, %v10613_v63 }
 0x817   :  { %v5079_v54 = vpop.f32.mrf.mxu0  ;;  %v5272_v45 = vpop.f32.mrf.mxu1 }
 0x818   :  { %5650 = vst [vmem:[#allocation14 + $0x510] sm:$0xff] %v5078_v6  ;;  %5652 = vst [vmem:[#allocation14 + $0x520] sm:$0xff] %v5271_v40  ;;  %v5080_v0 = vadd.f32 %v5079_v54, %v10617_v26  ;;  %v5273_v28 = vadd.f32 %v5272_v45, %v10620_v1 }
 0x819   :  { %v5083_v44 = vpop.f32.mrf.mxu0  ;;  %v5276_v53 = vpop.f32.mrf.mxu1 }
 0x81a   :  { %5651 = vst [vmem:[#allocation14 + $0x518] sm:$0xff] %v5080_v0  ;;  %5653 = vst [vmem:[#allocation14 + $0x528] sm:$0xff] %v5273_v28  ;;  %v5084_v58 = vadd.f32 %v5083_v44, %v10610_v10  ;;  %v5277_v46 = vadd.f32 %v5276_v53, %v10613_v63 }
 0x81b   :  { %v5085_v24 = vpop.f32.mrf.mxu0  ;;  %v5278_v33 = vpop.f32.mrf.mxu1 }
 0x81c   :  { %5656 = vst [vmem:[#allocation14 + $0x540] sm:$0xff] %v5084_v58  ;;  %5658 = vst [vmem:[#allocation14 + $0x550] sm:$0xff] %v5277_v46  ;;  %v5086_v13 = vadd.f32 %v5085_v24, %v10617_v26  ;;  %v5279_v31 = vadd.f32 %v5278_v33, %v10620_v1 }
 0x81d   :  { %v5087_v49 = vpop.f32.mrf.mxu0  ;;  %v5280_v61 = vpop.f32.mrf.mxu1 }
 0x81e   :  { %5657 = vst [vmem:[#allocation14 + $0x548] sm:$0xff] %v5086_v13  ;;  %5659 = vst [vmem:[#allocation14 + $0x558] sm:$0xff] %v5279_v31  ;;  %v5088_v36 = vadd.f32 %v5087_v49, %v10610_v10  ;;  %v5281_v39 = vadd.f32 %v5280_v61, %v10613_v63 }
 0x81f   :  { %v5089_v59 = vpop.f32.mrf.mxu0  ;;  %v5282_v8 = vpop.f32.mrf.mxu1 }
 0x820   :  { %5662 = vst [vmem:[#allocation14 + $0x570] sm:$0xff] %v5088_v36  ;;  %5664 = vst [vmem:[#allocation14 + $0x580] sm:$0xff] %v5281_v39  ;;  %v5090_v41 = vadd.f32 %v5089_v59, %v10617_v26  ;;  %v5283_v62 = vadd.f32 %v5282_v8, %v10620_v1 }
 0x821   :  { %v5093_v52 = vpop.f32.mrf.mxu0  ;;  %v5286_v17 = vpop.f32.mrf.mxu1 }
 0x822   :  { %5663 = vst [vmem:[#allocation14 + $0x578] sm:$0xff] %v5090_v41  ;;  %5665 = vst [vmem:[#allocation14 + $0x588] sm:$0xff] %v5283_v62  ;;  %v5094_v43 = vadd.f32 %v5093_v52, %v10610_v10  ;;  %v5287_v50 = vadd.f32 %v5286_v17, %v10613_v63 }
 0x823   :  { %v5095_v22 = vpop.f32.mrf.mxu0  ;;  %v5288_v16 = vpop.f32.mrf.mxu1 }
 0x824   :  { %5668 = vst [vmem:[#allocation14 + $0x5a0] sm:$0xff] %v5094_v43  ;;  %5670 = vst [vmem:[#allocation14 + $0x5b0] sm:$0xff] %v5287_v50  ;;  %v5096_v9 = vadd.f32 %v5095_v22, %v10617_v26  ;;  %v5289_v18 = vadd.f32 %v5288_v16, %v10620_v1 }
 0x825   :  { %v5097_v2 = vpop.f32.mrf.mxu0  ;;  %v5290_v15 = vpop.f32.mrf.mxu1 }
 0x826   :  { %5669 = vst [vmem:[#allocation14 + $0x5a8] sm:$0xff] %v5096_v9  ;;  %5671 = vst [vmem:[#allocation14 + $0x5b8] sm:$0xff] %v5289_v18  ;;  %v5098_v4 = vadd.f32 %v5097_v2, %v10610_v10  ;;  %v5291_v7 = vadd.f32 %v5290_v15, %v10613_v63 }
 0x827   :  { %v5099_v29 = vpop.f32.mrf.mxu0  ;;  %v5292_v35 = vpop.f32.mrf.mxu1 }
 0x828   :  { %5674 = vst [vmem:[#allocation14 + $0x5d0] sm:$0xff] %v5098_v4  ;;  %5676 = vst [vmem:[#allocation14 + $0x5e0] sm:$0xff] %v5291_v7  ;;  %v5100_v5 = vadd.f32 %v5099_v29, %v10617_v26  ;;  %v5293_v48 = vadd.f32 %v5292_v35, %v10620_v1 }
 0x829   :  { %v5329_v12 = vpop.f32.mrf.mxu0 }
 0x82a   :  { %5675 = vst [vmem:[#allocation14 + $0x5d8] sm:$0xff] %v5100_v5  ;;  %5677 = vst [vmem:[#allocation14 + $0x5e8] sm:$0xff] %v5293_v48  ;;  %v5330_v10 = vadd.f32 %v5329_v12, %v10766_v32 }
 0x82b   :  { %v5331_v63 = vpop.f32.mrf.mxu0 }
 0x82c   :  { %5492 = vst [vmem:[#allocation14 + $0x20] sm:$0xff] %v5330_v10  ;;  %v5332_v21 = vadd.f32 %v5331_v63, %v10771_v20 }
 0x82d   :  { %v5333_v23 = vpop.f32.mrf.mxu0 }
 0x82e   :  { %5493 = vst [vmem:[#allocation14 + $0x28] sm:$0xff] %v5332_v21  ;;  %v5334_v26 = vadd.f32 %v5333_v23, %v10766_v32 }
 0x82f   :  { %6633 = shalt.err (!%p6630_p11)
}
 0x830   :  { %5703 = dma.vmem_to_hbm [thread:$0]  %s5698_s6, 4096, %s10857_s8, [#allocation16], %s6682_s23, %s6682_s23, %s6683_s24   ;;  %v5335_v34 = vpop.f32.mrf.mxu0  ;;  %5498 = vst [vmem:[#allocation14 + $0x50] sm:$0xff] %v5334_v26 }
 0x831   :  { %v5336_v1 = vadd.f32 %v5335_v34, %v10771_v20  ;;  %s6691_s8 = smov [#allocation14]  }
 0x832   :  { %v5339_v27 = vpop.f32.mrf.mxu0  ;;  %s5685_s23 = sshll.u32 %s6691_s8, 4  ;;  %s5686_s23 = int_to_ptr.vmem [resolvable:$true] %s5685_s23 }
 0x833   :  { %5499 = vst [vmem:[#allocation14 + $0x58] sm:$0xff] %v5336_v1  ;;  %v5340_v51 = vadd.f32 %v5339_v27, %v10766_v32  ;;  %s6642_s24 = scalar_lea.vmem %s5686_s23, 24576  ;;  %p6647_p13 = scmp.lt.s32.totalorder %s5686_s23, %s5686_s23 }
 0x834   :  { %v5341_v14 = vpop.f32.mrf.mxu0  ;;  %p6643_p12 = scmp.ne.s32.totalorder %s5686_s23, %s6642_s24  ;;  %p6648_p0 = scmp.lt.s32.totalorder %s6642_s24, %s6642_s24 }
 0x835   :  { %5504 = vst [vmem:[#allocation14 + $0x80] sm:$0xff] %v5340_v51  ;;  %v5342_v60 = vadd.f32 %v5341_v14, %v10771_v20 }
 0x836   :  { %v5343_v11 = vpop.f32.mrf.mxu0  ;;  %p6649_p1 = por %p6648_p0, %p6647_p13 }
 0x837   :  { %5505 = vst [vmem:[#allocation14 + $0x88] sm:$0xff] %v5342_v60  ;;  %v5344_v47 = vadd.f32 %v5343_v11, %v10766_v32 }
 0x838   :  { %v5345_v42 = vpop.f32.mrf.mxu0  ;;  %p6650_p2 = pnand %p6649_p1, %p6643_p12 }
 0x839   :  { %5510 = vst [vmem:[#allocation14 + $0xb0] sm:$0xff] %v5344_v47  ;;  %v5346_v56 = vadd.f32 %v5345_v42, %v10771_v20 }
 0x83a   :  { %v5349_v55 = vpop.f32.mrf.mxu0 }
 0x83b   :  { %5511 = vst [vmem:[#allocation14 + $0xb8] sm:$0xff] %v5346_v56  ;;  %v5350_v38 = vadd.f32 %v5349_v55, %v10766_v32 }
 0x83c   :  { %v5351_v25 = vpop.f32.mrf.mxu0 }
 0x83d   :  { %5516 = vst [vmem:[#allocation14 + $0xe0] sm:$0xff] %v5350_v38  ;;  %v5352_v30 = vadd.f32 %v5351_v25, %v10771_v20 }
 0x83e   :  { %v5353_v3 = vpop.f32.mrf.mxu0 }
 0x83f   :  { %5517 = vst [vmem:[#allocation14 + $0xe8] sm:$0xff] %v5352_v30  ;;  %v5354_v57 = vadd.f32 %v5353_v3, %v10766_v32 }
 0x840   :  { %v5355_v6 = vpop.f32.mrf.mxu0 }
 0x841   :  { %5522 = vst [vmem:[#allocation14 + $0x110] sm:$0xff] %v5354_v57  ;;  %v5356_v40 = vadd.f32 %v5355_v6, %v10771_v20 }
 0x842   :  { %v5359_v54 = vpop.f32.mrf.mxu0 }
 0x843   :  { %5523 = vst [vmem:[#allocation14 + $0x118] sm:$0xff] %v5356_v40  ;;  %v5360_v45 = vadd.f32 %v5359_v54, %v10766_v32 }
 0x844   :  { %v5361_v0 = vpop.f32.mrf.mxu0 }
 0x845   :  { %5528 = vst [vmem:[#allocation14 + $0x140] sm:$0xff] %v5360_v45  ;;  %v5362_v28 = vadd.f32 %v5361_v0, %v10771_v20 }
 0x846   :  { %v5363_v44 = vpop.f32.mrf.mxu0 }
 0x847   :  { %5529 = vst [vmem:[#allocation14 + $0x148] sm:$0xff] %v5362_v28  ;;  %v5364_v53 = vadd.f32 %v5363_v44, %v10766_v32 }
 0x848   :  { %v5365_v58 = vpop.f32.mrf.mxu0 }
 0x849   :  { %5534 = vst [vmem:[#allocation14 + $0x170] sm:$0xff] %v5364_v53  ;;  %v5366_v46 = vadd.f32 %v5365_v58, %v10771_v20 }
 0x84a   :  { %v5369_v24 = vpop.f32.mrf.mxu0 }
 0x84b   :  { %5535 = vst [vmem:[#allocation14 + $0x178] sm:$0xff] %v5366_v46  ;;  %v5370_v33 = vadd.f32 %v5369_v24, %v10766_v32 }
 0x84c   :  { %v5371_v13 = vpop.f32.mrf.mxu0 }
 0x84d   :  { %5540 = vst [vmem:[#allocation14 + $0x1a0] sm:$0xff] %v5370_v33  ;;  %v5372_v31 = vadd.f32 %v5371_v13, %v10771_v20 }
 0x84e   :  { %v5373_v49 = vpop.f32.mrf.mxu0 }
 0x84f   :  { %5541 = vst [vmem:[#allocation14 + $0x1a8] sm:$0xff] %v5372_v31  ;;  %v5374_v61 = vadd.f32 %v5373_v49, %v10766_v32 }
 0x850   :  { %v5375_v36 = vpop.f32.mrf.mxu0 }
 0x851   :  { %5546 = vst [vmem:[#allocation14 + $0x1d0] sm:$0xff] %v5374_v61  ;;  %v5376_v39 = vadd.f32 %v5375_v36, %v10771_v20 }
 0x852   :  { %v5379_v59 = vpop.f32.mrf.mxu0 }
 0x853   :  { %5547 = vst [vmem:[#allocation14 + $0x1d8] sm:$0xff] %v5376_v39  ;;  %v5380_v8 = vadd.f32 %v5379_v59, %v10766_v32 }
 0x854   :  { %v5381_v41 = vpop.f32.mrf.mxu0 }
 0x855   :  { %5552 = vst [vmem:[#allocation14 + $0x200] sm:$0xff] %v5380_v8  ;;  %v5382_v62 = vadd.f32 %v5381_v41, %v10771_v20 }
 0x856   :  { %v5383_v52 = vpop.f32.mrf.mxu0 }
 0x857   :  { %5553 = vst [vmem:[#allocation14 + $0x208] sm:$0xff] %v5382_v62  ;;  %v5384_v17 = vadd.f32 %v5383_v52, %v10766_v32 }
 0x858   :  { %v5385_v37 = vpop.f32.mrf.mxu0 }
 0x859   :  { %5558 = vst [vmem:[#allocation14 + $0x230] sm:$0xff] %v5384_v17  ;;  %v5386_v43 = vadd.f32 %v5385_v37, %v10771_v20 }
 0x85a   :  { %v5389_v50 = vpop.f32.mrf.mxu0 }
 0x85b   :  { %5559 = vst [vmem:[#allocation14 + $0x238] sm:$0xff] %v5386_v43  ;;  %v5390_v22 = vadd.f32 %v5389_v50, %v10766_v32 }
 0x85c   :  { %v5391_v16 = vpop.f32.mrf.mxu0 }
 0x85d   :  { %5564 = vst [vmem:[#allocation14 + $0x260] sm:$0xff] %v5390_v22  ;;  %v5392_v19 = vadd.f32 %v5391_v16, %v10771_v20 }
 0x85e   :  { %v5393_v9 = vpop.f32.mrf.mxu0 }
 0x85f   :  { %5565 = vst [vmem:[#allocation14 + $0x268] sm:$0xff] %v5392_v19  ;;  %v5394_v18 = vadd.f32 %v5393_v9, %v10766_v32 }
 0x860   :  { %v5395_v2 = vpop.f32.mrf.mxu0 }
 0x861   :  { %5570 = vst [vmem:[#allocation14 + $0x290] sm:$0xff] %v5394_v18  ;;  %v5396_v15 = vadd.f32 %v5395_v2, %v10771_v20 }
 0x862   :  { %v5399_v4 = vpop.f32.mrf.mxu0 }
 0x863   :  { %5571 = vst [vmem:[#allocation14 + $0x298] sm:$0xff] %v5396_v15  ;;  %v5400_v7 = vadd.f32 %v5399_v4, %v10766_v32 }
 0x864   :  { %v5401_v29 = vpop.f32.mrf.mxu0 }
 0x865   :  { %5576 = vst [vmem:[#allocation14 + $0x2c0] sm:$0xff] %v5400_v7  ;;  %v5402_v35 = vadd.f32 %v5401_v29, %v10771_v20 }
 0x866   :  { %v5403_v5 = vpop.f32.mrf.mxu0 }
 0x867   :  { %5577 = vst [vmem:[#allocation14 + $0x2c8] sm:$0xff] %v5402_v35  ;;  %v5404_v48 = vadd.f32 %v5403_v5, %v10766_v32 }
 0x868   :  { %v5405_v12 = vpop.f32.mrf.mxu0 }
 0x869   :  { %5582 = vst [vmem:[#allocation14 + $0x2f0] sm:$0xff] %v5404_v48  ;;  %v5406_v10 = vadd.f32 %v5405_v12, %v10771_v20 }
 0x86a   :  { %v5409_v63 = vpop.f32.mrf.mxu0 }
 0x86b   :  { %5583 = vst [vmem:[#allocation14 + $0x2f8] sm:$0xff] %v5406_v10  ;;  %v5410_v21 = vadd.f32 %v5409_v63, %v10766_v32 }
 0x86c   :  { %v5411_v23 = vpop.f32.mrf.mxu0 }
 0x86d   :  { %5588 = vst [vmem:[#allocation14 + $0x320] sm:$0xff] %v5410_v21  ;;  %v5412_v26 = vadd.f32 %v5411_v23, %v10771_v20 }
 0x86e   :  { %v5413_v34 = vpop.f32.mrf.mxu0 }
 0x86f   :  { %5589 = vst [vmem:[#allocation14 + $0x328] sm:$0xff] %v5412_v26  ;;  %v5414_v1 = vadd.f32 %v5413_v34, %v10766_v32 }
 0x870   :  { %v5415_v27 = vpop.f32.mrf.mxu0 }
 0x871   :  { %5594 = vst [vmem:[#allocation14 + $0x350] sm:$0xff] %v5414_v1  ;;  %v5416_v51 = vadd.f32 %v5415_v27, %v10771_v20 }
 0x872   :  { %v5419_v14 = vpop.f32.mrf.mxu0 }
 0x873   :  { %5595 = vst [vmem:[#allocation14 + $0x358] sm:$0xff] %v5416_v51  ;;  %v5420_v60 = vadd.f32 %v5419_v14, %v10766_v32 }
 0x874   :  { %v5421_v11 = vpop.f32.mrf.mxu0 }
 0x875   :  { %5600 = vst [vmem:[#allocation14 + $0x380] sm:$0xff] %v5420_v60  ;;  %v5422_v47 = vadd.f32 %v5421_v11, %v10771_v20 }
 0x876   :  { %v5423_v42 = vpop.f32.mrf.mxu0 }
 0x877   :  { %5601 = vst [vmem:[#allocation14 + $0x388] sm:$0xff] %v5422_v47  ;;  %v5424_v56 = vadd.f32 %v5423_v42, %v10766_v32 }
 0x878   :  { %v5425_v55 = vpop.f32.mrf.mxu0 }
 0x879   :  { %5606 = vst [vmem:[#allocation14 + $0x3b0] sm:$0xff] %v5424_v56  ;;  %v5426_v38 = vadd.f32 %v5425_v55, %v10771_v20 }
 0x87a   :  { %v5429_v25 = vpop.f32.mrf.mxu0 }
 0x87b   :  { %5607 = vst [vmem:[#allocation14 + $0x3b8] sm:$0xff] %v5426_v38  ;;  %v5430_v30 = vadd.f32 %v5429_v25, %v10766_v32 }
 0x87c   :  { %v5431_v3 = vpop.f32.mrf.mxu0 }
 0x87d   :  { %5612 = vst [vmem:[#allocation14 + $0x3e0] sm:$0xff] %v5430_v30  ;;  %v5432_v57 = vadd.f32 %v5431_v3, %v10771_v20 }
 0x87e   :  { %v5433_v6 = vpop.f32.mrf.mxu0 }
 0x87f   :  { %5613 = vst [vmem:[#allocation14 + $0x3e8] sm:$0xff] %v5432_v57  ;;  %v5434_v40 = vadd.f32 %v5433_v6, %v10766_v32 }
 0x880   :  { %v5435_v54 = vpop.f32.mrf.mxu0 }
 0x881   :  { %5618 = vst [vmem:[#allocation14 + $0x410] sm:$0xff] %v5434_v40  ;;  %v5436_v45 = vadd.f32 %v5435_v54, %v10771_v20 }
 0x882   :  { %v5439_v0 = vpop.f32.mrf.mxu0 }
 0x883   :  { %5619 = vst [vmem:[#allocation14 + $0x418] sm:$0xff] %v5436_v45  ;;  %v5440_v28 = vadd.f32 %v5439_v0, %v10766_v32 }
 0x884   :  { %v5441_v44 = vpop.f32.mrf.mxu0 }
 0x885   :  { %5624 = vst [vmem:[#allocation14 + $0x440] sm:$0xff] %v5440_v28  ;;  %v5442_v53 = vadd.f32 %v5441_v44, %v10771_v20 }
 0x886   :  { %v5443_v58 = vpop.f32.mrf.mxu0 }
 0x887   :  { %5625 = vst [vmem:[#allocation14 + $0x448] sm:$0xff] %v5442_v53  ;;  %v5444_v46 = vadd.f32 %v5443_v58, %v10766_v32 }
 0x888   :  { %v5445_v24 = vpop.f32.mrf.mxu0 }
 0x889   :  { %5630 = vst [vmem:[#allocation14 + $0x470] sm:$0xff] %v5444_v46  ;;  %v5446_v33 = vadd.f32 %v5445_v24, %v10771_v20 }
 0x88a   :  { %v5449_v13 = vpop.f32.mrf.mxu0 }
 0x88b   :  { %5631 = vst [vmem:[#allocation14 + $0x478] sm:$0xff] %v5446_v33  ;;  %v5450_v31 = vadd.f32 %v5449_v13, %v10766_v32 }
 0x88c   :  { %v5451_v49 = vpop.f32.mrf.mxu0 }
 0x88d   :  { %5636 = vst [vmem:[#allocation14 + $0x4a0] sm:$0xff] %v5450_v31  ;;  %v5452_v61 = vadd.f32 %v5451_v49, %v10771_v20 }
 0x88e   :  { %v5453_v36 = vpop.f32.mrf.mxu0 }
 0x88f   :  { %5637 = vst [vmem:[#allocation14 + $0x4a8] sm:$0xff] %v5452_v61  ;;  %v5454_v39 = vadd.f32 %v5453_v36, %v10766_v32 }
 0x890   :  { %v5455_v59 = vpop.f32.mrf.mxu0 }
 0x891   :  { %5642 = vst [vmem:[#allocation14 + $0x4d0] sm:$0xff] %v5454_v39  ;;  %v5456_v8 = vadd.f32 %v5455_v59, %v10771_v20 }
 0x892   :  { %v5459_v41 = vpop.f32.mrf.mxu0 }
 0x893   :  { %5643 = vst [vmem:[#allocation14 + $0x4d8] sm:$0xff] %v5456_v8  ;;  %v5460_v62 = vadd.f32 %v5459_v41, %v10766_v32 }
 0x894   :  { %v5461_v52 = vpop.f32.mrf.mxu0 }
 0x895   :  { %5648 = vst [vmem:[#allocation14 + $0x500] sm:$0xff] %v5460_v62  ;;  %v5462_v17 = vadd.f32 %v5461_v52, %v10771_v20 }
 0x896   :  { %v5463_v37 = vpop.f32.mrf.mxu0 }
 0x897   :  { %5649 = vst [vmem:[#allocation14 + $0x508] sm:$0xff] %v5462_v17  ;;  %v5464_v43 = vadd.f32 %v5463_v37, %v10766_v32 }
 0x898   :  { %v5465_v50 = vpop.f32.mrf.mxu0 }
 0x899   :  { %5654 = vst [vmem:[#allocation14 + $0x530] sm:$0xff] %v5464_v43  ;;  %v5466_v22 = vadd.f32 %v5465_v50, %v10771_v20 }
 0x89a   :  { %v5469_v16 = vpop.f32.mrf.mxu0 }
 0x89b   :  { %5655 = vst [vmem:[#allocation14 + $0x538] sm:$0xff] %v5466_v22  ;;  %v5470_v19 = vadd.f32 %v5469_v16, %v10766_v32 }
 0x89c   :  { %v5471_v9 = vpop.f32.mrf.mxu0 }
 0x89d   :  { %5660 = vst [vmem:[#allocation14 + $0x560] sm:$0xff] %v5470_v19  ;;  %v5472_v18 = vadd.f32 %v5471_v9, %v10771_v20 }
 0x89e   :  { %v5473_v2 = vpop.f32.mrf.mxu0 }
 0x89f   :  { %5661 = vst [vmem:[#allocation14 + $0x568] sm:$0xff] %v5472_v18  ;;  %v5474_v15 = vadd.f32 %v5473_v2, %v10766_v32 }
 0x8a0   :  { %v5475_v4 = vpop.f32.mrf.mxu0 }
 0x8a1   :  { %5666 = vst [vmem:[#allocation14 + $0x590] sm:$0xff] %v5474_v15  ;;  %v5476_v7 = vadd.f32 %v5475_v4, %v10771_v20 }
 0x8a2   :  { %v5479_v29 = vpop.f32.mrf.mxu0 }
 0x8a3   :  { %5667 = vst [vmem:[#allocation14 + $0x598] sm:$0xff] %v5476_v7  ;;  %v5480_v35 = vadd.f32 %v5479_v29, %v10766_v32 }
 0x8a4   :  { %v5481_v5 = vpop.f32.mrf.mxu0 }
 0x8a5   :  { %5672 = vst [vmem:[#allocation14 + $0x5c0] sm:$0xff] %v5480_v35  ;;  %v5482_v48 = vadd.f32 %v5481_v5, %v10771_v20 }
 0x8a6   :  { %v5483_v12 = vpop.f32.mrf.mxu0 }
 0x8a7   :  { %5673 = vst [vmem:[#allocation14 + $0x5c8] sm:$0xff] %v5482_v48  ;;  %v5484_v10 = vadd.f32 %v5483_v12, %v10766_v32 }
 0x8a8   :  { %v5485_v63 = vpop.f32.mrf.mxu0 }
 0x8a9   :  { %5678 = vst [vmem:[#allocation14 + $0x5f0] sm:$0xff] %v5484_v10  ;;  %v5486_v21 = vadd.f32 %v5485_v63, %v10771_v20 }
 0x8ab   :  { %5679 = vst [vmem:[#allocation14 + $0x5f8] sm:$0xff] %v5486_v21 }
 0x8ac   :  { %6653 = shalt.err (!%p6650_p2)
}
 0x8ad   :  { %5691 = dma.vmem_to_hbm [thread:$0]  %s5686_s23, 24576, %s10856_s7, [#allocation4], %s6676_s10, %s6676_s10, %s6677_s11  }
 0x8ae   :  { %6670 = dma.done.wait [#allocation4], 24576  }
 0x8af   :  { %6671 = vsyncadd [#allocation4], 4294942720 }
 0x8b0   :  { %6672 = dma.done.wait [#allocation16], 4096  }
 0x8b1   :  { %6673 = vsyncadd [#allocation16], 4294963200 }
 0x8b2   :  { %5710 = vsyncpa [#allocation3], 1 }
 0x8b3   :  { %5711 = vsyncpa [#allocation6], 1 }
 0x8b4   :  { %5712 = vsyncpa [#allocation9], 1 }
 0x8b5   :  { %5713 = vsyncpa [#allocation12], 1 }
 0x8b6   :  { %5714 = vsyncpa [#allocation4], 1 }
 0x8b7   :  { %5715 = vsyncpa [#allocation16], 1 }

</bundles_post_ra>
